<compile_context>
chip_gen: v7x
topology: tpu7x:2x2x1
jax: 0.10.0
libtpu: 0.0.40
codegen_flags: <defaults>
</compile_context>

<pallas_src>
import numpy as np
import jax
import jax.numpy as jnp
from jax.experimental import pallas as pl
from jax.experimental.pallas import tpu as pltpu


# --------------------------- Pallas kernel ---------------------------------
def _spec_kernel(frames_ref, win_ref, basis_ref, out_ref):
    # frames_ref: (tM, n_fft) f32      -- tM = tile of (batch*frames)
    # win_ref   : (1, 1, n_fft) f32    -- centered hann window for this resolution
    # basis_ref : (n_fft, 2*f_pad) bf16 -- [cos | sin], zero-padded freq columns
    # out_ref   : (1, tM, f_pad) f32
    xw = (frames_ref[...] * win_ref[0]).astype(jnp.bfloat16)      # window + bf16 for MXU
    y = jnp.dot(xw, basis_ref[...], preferred_element_type=jnp.float32)  # (tM, 2*f_pad)
    f_pad = y.shape[-1] // 2
    re = y[:, :f_pad]
    im = y[:, f_pad:]
    power = re * re + im * im                                     # |X|^2
    # Spectrogram(power=1) + AmplitudeToDB(stype='power', amin=1e-10, ref=1):
    #   10*log10(max(|X|, 1e-10)) == 5*log10(max(|X|^2, 1e-20))  (no sqrt needed)
    scale = float(5.0 / np.log(10.0))
    out_ref[0] = scale * jnp.log(jnp.maximum(power, 1e-20))


# --------------------------- parameter setup (glue) -------------------------
def _hann_window(win_length):
    n = np.arange(win_length)
    return (0.5 - 0.5 * np.cos(2.0 * np.pi * n / win_length)).astype(np.float32)


def _make_windows(n_fft, win_length_list):
    # torch.stft centers a shorter window inside n_fft with zero padding.
    wins = []
    for wl in win_length_list:
        w = _hann_window(wl)
        left = (n_fft - wl) // 2
        wins.append(np.pad(w, (left, n_fft - wl - left)))
    return np.stack(wins).astype(np.float32)[:, None, :]          # (R, 1, n_fft)


def _make_basis(n_fft, f_pad):
    # One-sided real-DFT basis, cos and sin concatenated along the column axis
    # and zero-padded from n_bins=1025 to f_pad (lane-dense MXU N dimension).
    n_bins = n_fft // 2 + 1
    n = np.arange(n_fft, dtype=np.int64)[:, None]
    f = np.arange(n_bins, dtype=np.int64)[None, :]
    ang = 2.0 * np.pi * ((n * f) % n_fft) / n_fft                 # small phase args
    basis = np.zeros((n_fft, 2 * f_pad), np.float32)
    basis[:, :n_bins] = np.cos(ang)
    basis[:, f_pad:f_pad + n_bins] = np.sin(ang)
    return basis


def _round_up(x, m):
    return (x + m - 1) // m * m


# --------------------------- wrapper ----------------------------------------
def multi_resolution_spec(x, win_length_list=(2048, 1024, 512), hop_size=512):
    """x: (B, 1, L) float32 waveform. Returns (B, R, n_fft//2+1, L//hop+1) dB."""
    B, C, L = x.shape
    assert C == 1, "expects single-channel audio (B, 1, L)"
    R = len(win_length_list)
    n_fft = max(win_length_list)
    n_bins = n_fft // 2 + 1
    f_pad = _round_up(n_bins, 128)          # lane-dense output / basis columns
    n_frames = L // hop_size + 1            # center=True framing
    pad = n_fft // 2

    # Framing (glue): center reflect pad, frames from hop-shifted views
    # (pure layout ops; avoids materialising a 4x-expanded gather).
    sig = x[:, 0, :].astype(jnp.float32)
    padded = jnp.pad(sig, ((0, 0), (pad, pad)), mode="reflect")
    if n_fft % hop_size == 0:
        k = n_fft // hop_size
        chunks = [
            padded[:, i * hop_size:i * hop_size + n_frames * hop_size]
            .reshape(B, n_frames, hop_size)
            for i in range(k)
        ]
        frames = jnp.concatenate(chunks, axis=-1)                  # (B, T, n_fft)
    else:  # general fallback
        idx = jnp.arange(n_frames)[:, None] * hop_size + jnp.arange(n_fft)[None, :]
        frames = padded[:, idx]

    # Fold batch into the matmul M dimension and pad to the M tile.
    M = B * n_frames
    tM = min(256, _round_up(M, 8))
    M_pad = _round_up(M, tM)
    frames = frames.reshape(M, n_fft)
    if M_pad != M:
        frames = jnp.pad(frames, ((0, M_pad - M), (0, 0)))

    windows = jnp.asarray(_make_windows(n_fft, win_length_list))             # f32
    basis = jnp.asarray(_make_basis(n_fft, f_pad), dtype=jnp.bfloat16)       # bf16

    num_m = M_pad // tM
    # VMEM budget: double-buffered basis + frames + out blocks, plus headroom
    # for in-kernel temporaries. Stays well under v7x's 64 MiB physical VMEM.
    basis_bytes = n_fft * 2 * f_pad * 2                                      # bf16
    frames_blk_bytes = tM * n_fft * 4
    out_blk_bytes = tM * f_pad * 4
    vmem_limit = int(2 * (basis_bytes + frames_blk_bytes + out_blk_bytes) + (16 << 20))

    out = pl.pallas_call(
        _spec_kernel,
        out_shape=jax.ShapeDtypeStruct((R, M_pad, f_pad), jnp.float32),
        grid_spec=pltpu.PrefetchScalarGridSpec(
            num_scalar_prefetch=0,
            # R innermost: the frame tile index is constant across the 3
            # resolutions, so each frame tile is DMA'd from HBM only once.
            grid=(num_m, R),
            in_specs=[
                pl.BlockSpec((tM, n_fft), lambda m, r: (m, 0)),        # frames
                pl.BlockSpec((1, 1, n_fft), lambda m, r: (r, 0, 0)),   # window
                pl.BlockSpec((n_fft, 2 * f_pad), lambda m, r: (0, 0)),  # basis (resident)
            ],
            out_specs=pl.BlockSpec((1, tM, f_pad), lambda m, r: (r, m, 0)),
        ),
        compiler_params=pltpu.CompilerParams(
            dimension_semantics=("parallel", "parallel"),
            vmem_limit_bytes=vmem_limit,
        ),
    )(frames, windows, basis)

    # Drop M / frequency padding BEFORE the layout permute, then reshape to
    # torch's (batch, channel, freq, time).
    out = out[:, :M, :n_bins]                      # (R, B*T, F)
    out = out.reshape(R, B, n_frames, n_bins)      # (R, B, T, F)
    return jnp.transpose(out, (1, 0, 3, 2))        # (B, R, F, T)


if __name__ == "__main__":
    key = jax.random.PRNGKey(0)
    B, L, hop = 2, 2048, 512
    x = jax.random.normal(key, (B, 1, L), dtype=jnp.float32)

    y = multi_resolution_spec(x, win_length_list=(2048, 1024, 512), hop_size=hop)
    y = jax.block_until_ready(y)

    assert y.shape == (B, 3, 2048 // 2 + 1, L // hop + 1), y.shape
    assert y.dtype == jnp.float32
    assert bool(jnp.all(jnp.isfinite(y)))
    print("KERNEL_OK")
</pallas_src>

<mosaic_0001>
module attributes {stable_mosaic.version = 11 : i64} {
  func.func @_spec_kernel(%arg0: i32, %arg1: i32, %arg2: memref<16x2048xf32, #tpu.memory_space<vmem>>, %arg3: memref<1x1x2048xf32, #tpu.memory_space<vmem>>, %arg4: memref<2048x2304xbf16, #tpu.memory_space<vmem>>, %arg5: memref<1x16x1152xf32, #tpu.memory_space<vmem>>) attributes {dimension_semantics = [#tpu.dimension_semantics<parallel>, #tpu.dimension_semantics<parallel>], iteration_bounds = array<i64: 1, 3>, scalar_prefetch = 0 : i64, scratch_operands = 0 : i64, tpu.core_type = #tpu.core_type<tc>, window_params = [{transform_indices = @transform_0, window_bounds = array<i64: 16, 2048>}, {transform_indices = @transform_1, window_bounds = array<i64: 1, 1, 2048>}, {pipeline_mode = #tpu.pipeline_mode<synchronous>, transform_indices = @transform_2, window_bounds = array<i64: 2048, 2304>}, {transform_indices = @transform_3, window_bounds = array<i64: 1, 16, 1152>}]} {
    %c0 = arith.constant 0 : index
    %c0_0 = arith.constant 0 : index
    %0 = vector.load %arg2[%c0, %c0_0] : memref<16x2048xf32, #tpu.memory_space<vmem>>, vector<16x2048xf32>
    %c0_1 = arith.constant 0 : index
    %c0_2 = arith.constant 0 : index
    %c0_3 = arith.constant 0 : index
    %1 = vector.load %arg3[%c0_1, %c0_2, %c0_3] : memref<1x1x2048xf32, #tpu.memory_space<vmem>>, vector<1x1x2048xf32>
    %2 = vector.shape_cast %1 : vector<1x1x2048xf32> to vector<1x2048xf32>
    %3 = vector.broadcast %2 : vector<1x2048xf32> to vector<16x2048xf32>
    %4 = arith.mulf %0, %3 : vector<16x2048xf32>
    %5 = arith.truncf %4 : vector<16x2048xf32> to vector<16x2048xbf16>
    %c0_4 = arith.constant 0 : index
    %c0_5 = arith.constant 0 : index
    %6 = vector.load %arg4[%c0_4, %c0_5] : memref<2048x2304xbf16, #tpu.memory_space<vmem>>, vector<2048x2304xbf16>
    %cst = arith.constant dense<0.000000e+00> : vector<16x2304xf32>
    %7 = tpu.matmul %5, %6, %cst {dimension_numbers = #tpu.dot_dimension_numbers<[1], [0], [0], [1], [0, 0, 1, 1], [], []>} : vector<16x2048xbf16>, vector<2048x2304xbf16>, vector<16x2304xf32> -> vector<16x2304xf32>
    %8 = vector.extract_strided_slice %7 {offsets = [0, 0], sizes = [16, 1152], strides = [1, 1]} : vector<16x2304xf32> to vector<16x1152xf32>
    %9 = vector.extract_strided_slice %7 {offsets = [0, 1152], sizes = [16, 1152], strides = [1, 1]} : vector<16x2304xf32> to vector<16x1152xf32>
    %10 = arith.mulf %8, %8 : vector<16x1152xf32>
    %11 = arith.mulf %9, %9 : vector<16x1152xf32>
    %12 = arith.addf %10, %11 : vector<16x1152xf32>
    %cst_6 = arith.constant 9.99999968E-21 : f32
    %13 = vector.broadcast %cst_6 : f32 to vector<16x1152xf32>
    %14 = arith.maximumf %12, %13 : vector<16x1152xf32>
    %15 = math.log %14 : vector<16x1152xf32>
    %cst_7 = arith.constant 2.17147231 : f32
    %16 = vector.broadcast %cst_7 : f32 to vector<16x1152xf32>
    %17 = arith.mulf %16, %15 : vector<16x1152xf32>
    %c0_8 = arith.constant 0 : index
    %c0_9 = arith.constant 0 : index
    %c0_10 = arith.constant 0 : index
    %18 = vector.load %arg5[%c0_8, %c0_9, %c0_10] : memref<1x16x1152xf32, #tpu.memory_space<vmem>>, vector<1x16x1152xf32>
    %19 = vector.shape_cast %18 : vector<1x16x1152xf32> to vector<16x1152xf32>
    %20 = vector.shape_cast %17 : vector<16x1152xf32> to vector<1x16x1152xf32>
    tpu.vector_store %arg5[%c0_8, %c0_9, %c0_10], %20 {strides = array<i32>} : memref<1x16x1152xf32, #tpu.memory_space<vmem>>, vector<1x16x1152xf32>,
    return
  }
  func.func @transform_0(%arg0: i32, %arg1: i32) -> (i32, i32) {
    %c0_i32 = arith.constant 0 : i32
    %c0_i32_0 = arith.constant 0 : i32
    return %arg0, %c0_i32 : i32, i32
  }
  func.func @transform_1(%arg0: i32, %arg1: i32) -> (i32, i32, i32) {
    %c0_i32 = arith.constant 0 : i32
    %c0_i32_0 = arith.constant 0 : i32
    %c0_i32_1 = arith.constant 0 : i32
    return %arg1, %c0_i32, %c0_i32_0 : i32, i32, i32
  }
  func.func @transform_2(%arg0: i32, %arg1: i32) -> (i32, i32) {
    %c0_i32 = arith.constant 0 : i32
    %c0_i32_0 = arith.constant 0 : i32
    %c0_i32_1 = arith.constant 0 : i32
    return %c0_i32, %c0_i32_0 : i32, i32
  }
  func.func @transform_3(%arg0: i32, %arg1: i32) -> (i32, i32, i32) {
    %c0_i32 = arith.constant 0 : i32
    %c0_i32_0 = arith.constant 0 : i32
    return %arg1, %arg0, %c0_i32 : i32, i32, i32
  }
}

</mosaic_0001>

<bundles_post_ra>
// kernel: tpu_custom_call.1
= control target key start
LH: loop header
LB: loop body
LE: loop exit
PB: predicated region body
PF: predicated region fallthrough
CT: control target
= control target key end

     0   :  { %8 = vsyncpa [#allocation3], 0  ;;  %s24504_s0 = inlined_call_operand.hbm [shape: f32[16,2048], index: 0, kind: input, shape index: {}]   ;;  %s24505_s1 = inlined_call_operand.hbm [shape: f32[3,1,2048], index: 1, kind: input, shape index: {}]   ;;  %s24506_s2 = inlined_call_operand.hbm [shape: bf16[2048,2304], index: 2, kind: input, shape index: {}]   ;;  %s24507_s3 = inlined_call_operand.hbm [shape: f32[3,16,1152], index: 3, kind: output, shape index: {}]  }
   0x1   :  { %9 = vsyncpa [#allocation6], 0 }
   0x2   :  { %11 = vsyncpa [#allocation6 + $0x1], 0 }
   0x3   :  { %12 = vsyncpa [#allocation4], 0 }
   0x4   :  { %14 = vsyncpa [#allocation4 + $0x1], 0  ;;  %s23959_s12 = smov 0   ;;  %s23961_s13 = smov 0  }
   0x5   :  { %s23963_s14 = smov 0   ;;  %s23965_s15 = smov 0  }
   0x6   :  { %s23967_s16 = smov 0   ;;  %s23969_s17 = smov 0  }
   0x7 LB: > { %s23990_s18 = sadd.s32 4294967295, %s23927_s17   ;;  %s17594_s19 = sadd.s32 4294967294, %s23927_s17   ;;  %s23927_s17 = sphi %s23969_s17, %s20_s17   ;;  %s23923_s16 = sphi %s23967_s16, %s24529_s16   ;;  %s23919_s15 = sphi %s23965_s15, %s24528_s15   ;;  %s23915_s14 = sphi %s23963_s14, %s24527_s14   ;;  %s23911_s13 = sphi %s23961_s13, %s24526_s13   ;;  %s23907_s12 = sphi %s23959_s12, %s24525_s12  }
   0x8   : > { %p78_p0 = scmp.ne.s32.totalorder %s23911_s13, %s23907_s12  ;;  %p24508_p1 = scmp.eq.s32.totalorder %s23990_s18, 0 }
   0x9   : > { %p131_p3 = scmp.eq.s32.totalorder %s17594_s19, 2  ;;  %p17595_p5 = scmp.ge.s32.totalorder %s23927_s17, 1 }
   0xa   : > { %p23999_p4 = por %p24508_p1, %p78_p0  ;;  %p138_p7 = scmp.lt.s32.totalorder %s23927_s17, 4 }
   0xb   : > { %p24004_p6 = por %p131_p3, %p78_p0  ;;  %s23929_s23 = smov [#allocation7]  }
   0xc   : > { %s24511_s20 = scalar_select %p23999_p4, 1, 0 }
   0xd   : > { %s24512_s21 = scalar_select %p24004_p6, 1, 0 }
   0xe   : > { %p24009_p8 = pnand %p17595_p5, %p138_p7  ;;  %s167_s24 = sshll.u32 %s23929_s23, 4  ;;  %s168_s24 = int_to_ptr.vmem [resolvable:$true] %s167_s24 }
   0xf   : > { %s23930_s26 = smov [#allocation2]   ;;  %s23751_s30 = scalar_lea.hbm %s24506_s2, 294912 }
  0x10   : > { %s24513_s22 = scalar_select %p24009_p8, 1, 0 }
  0x11   : > { %p20180_p9 = pneg %p24009_p8  ;;  %s154_s27 = sshll.u32 %s23930_s26, 4  ;;  %s155_s27 = int_to_ptr.vmem [resolvable:$true] %s154_s27 }
  0x12   : > { %p23752_p11 = scmp.ne.s32.totalorder %s24506_s2, %s23751_s30  ;;  %p23758_p3 = scmp.lt.u32.totalorder %s23751_s30, %s24506_s2 }
  0x13   : > { %p24017_p10 = pnand %p20180_p9, %p24508_p1 }
  0x15   : > { %p23753_p12 = pneg %p24017_p10 }
  0x17   : > { %p23754_p13 = pnand %p23753_p12, %p23752_p11 }
  0x19   : > { %p23755_p0 = pneg %p23754_p13 }
  0x1b   : > { %p23760_p5 = pnand %p23758_p3, %p23755_p0 }
  0x1d   : > { %23763 = shalt.err (!%p23760_p5)
}
  0x1e   : > { %s23764_s8 = scalar_lea.vmem %s168_s24, 294912  ;;  %p23772_p2 = scmp.lt.s32.totalorder %s168_s24, %s168_s24 }
  0x1f   : > { %p23765_p7 = scmp.ne.s32.totalorder %s168_s24, %s23764_s8  ;;  %p23773_p6 = scmp.lt.s32.totalorder %s23764_s8, %s23764_s8 }
  0x21   : > { %p23767_p9 = pnand %p23765_p7, %p23753_p12  ;;  %p23774_p4 = por %p23773_p6, %p23772_p2 }
  0x23   : > { %p23768_p1 = pneg %p23767_p9 }
  0x25   : > { %p23775_p8 = pnand %p23774_p4, %p23768_p1 }
  0x27   : > { %23778 = shalt.err (!%p23775_p8)
}
  0x28   : > { %s23931_s9 = smov 1152   ;;  %s23932_s10 = smov 72  }
  0x29   : > { %20186 = dma.hbm_to_vmem [thread:$0]  (!%p24017_p10), %s24506_s2, 294912, %s168_s24, [#allocation6], %s23931_s9, %s23931_s9, %s23932_s10  }
  0x2a   : > { %s23779_s28 = scalar_lea.hbm %s24504_s0, 4096 }
  0x2b   : > { %p23780_p2 = scmp.ne.s32.totalorder %s24504_s0, %s23779_s28  ;;  %p23786_p6 = scmp.lt.u32.totalorder %s23779_s28, %s24504_s0 }
  0x2d   : > { %p23782_p1 = pnand %p23780_p2, %p23753_p12 }
  0x2f   : > { %p23783_p4 = pneg %p23782_p1 }
  0x31   : > { %p23788_p8 = pnand %p23786_p6, %p23783_p4 }
  0x33   : > { %23791 = shalt.err (!%p23788_p8)
}
  0x34   : > { %s23792_s24 = scalar_lea.vmem %s155_s27, 4096  ;;  %p23800_p3 = scmp.lt.s32.totalorder %s155_s27, %s155_s27 }
  0x35   : > { %p23793_p11 = scmp.ne.s32.totalorder %s155_s27, %s23792_s24  ;;  %p23801_p5 = scmp.lt.s32.totalorder %s23792_s24, %s23792_s24 }
  0x37   : > { %p23795_p13 = pnand %p23793_p11, %p23753_p12  ;;  %p23802_p7 = por %p23801_p5, %p23800_p3 }
  0x39   : > { %p23796_p0 = pneg %p23795_p13 }
  0x3b   : > { %p23803_p9 = pnand %p23802_p7, %p23796_p0 }
  0x3d   : > { %23806 = shalt.err (!%p23803_p9)
}
  0x3e   : > { %s23933_s6 = smov 2048   ;;  %s23934_s7 = smov 128  }
  0x3f   : > { %20183 = dma.hbm_to_vmem [thread:$0]  (!%p24017_p10), %s24504_s0, 4096, %s155_s27, [#allocation3], %s23933_s6, %s23933_s6, %s23934_s7  }
  0x40   : > { %s29_s10 = sadd.s32 1, %s23923_s16  ;;  %s65_s11 = sadd.s32 1, %s23915_s14 }
  0x41   : > { %p30_p12 = scmp.ge.s32.totalorder %s29_s10, 3  ;;  %p72_p2 = scmp.ne.s32.totalorder %s23915_s14, %s23911_s13 }
  0x42   : > { %p73_p1 = scmp.eq.s32.totalorder %s23927_s17, 0  ;;  %p20197_p4 = scmp.lt.s32.totalorder %s23927_s17, 3 }
  0x43   : > { %s24531_s10 = smov (%p30_p12, %s29_s10), 0  ;;  %p24515_p8 = scmp.eq.s32.totalorder %s23990_s18, 2 }
  0x44   : > { %p74_p6 = por %p73_p1, %p72_p2  ;;  %s62_s25 = ssub.s32 %s23923_s16, %s24531_s10 }
  0x45   : > { %p24073_p11 = por %p24515_p8, %p72_p2  ;;  %s181_s23 = sand.u32 1, %s23927_s17  }
  0x46   : > { %p63_p13 = scmp.eq.s32.totalorder %s62_s25, 0  ;;  %s183_s26 = sand.u32 1, %s23915_s14  }
  0x47   : > { %s19913_s27 = sshll.u32 %s23923_s16, 8  ;;  %s17599_s29 = sshll.u32 %s183_s26, 4 }
  0x48   : > { %s24083_s28 = scalar_select %p63_p13, %s23915_s14, %s65_s11  }
  0x49   : > { %s24088_s5 = scalar_lea.hbm %s24505_s1, %s19913_s27  ;;  %p24090_p10 = pnand %p20197_p4, %p74_p6 }
  0x4a   : > { %s185_s6 = scalar_lea.vmem [#allocation5], %s17599_s29  ;;  %s182_s8 = scalar_lea.sflag [#allocation6], %s181_s23 }
  0x4b   : > { %s193_s7 = sshll.u32 %s185_s6, 4  ;;  %s23807_s9 = scalar_lea.hbm %s24088_s5, 256  ;;  %s24094_s7 = int_to_ptr.vmem [resolvable:$true] %s193_s7 }
  0x4c   : > { %p23808_p0 = scmp.ne.s32.totalorder %s24088_s5, %s23807_s9  ;;  %p23809_p3 = pneg %p24090_p10 }
  0x4d   : > { %s23812_s26 = scalar_lea.hbm %s24505_s1, 768  ;;  %p23813_p9 = scmp.lt.u32.totalorder %s24088_s5, %s24505_s1 }
  0x4e   : > { %p23810_p5 = pnand %p23809_p3, %p23808_p0  ;;  %p23814_p12 = scmp.lt.u32.totalorder %s23812_s26, %s23807_s9 }
  0x4f   : > { %p23816_p1 = scmp.lt.u32.totalorder %s23807_s9, %s24088_s5 }
  0x50   : > { %p23811_p7 = pneg %p23810_p5  ;;  %p23815_p2 = por %p23814_p12, %p23813_p9 }
  0x52   : > { %p23817_p4 = por %p23816_p1, %p23815_p2 }
  0x54   : > { %p23818_p6 = pnand %p23817_p4, %p23811_p7 }
  0x56   : > { %23821 = shalt.err (!%p23818_p6)
}
  0x57   : > { %s23822_s23 = scalar_lea.vmem %s24094_s7, 256  ;;  %s23935_s29 = smov [#allocation5]  }
  0x58   : > { %p23823_p8 = scmp.ne.s32.totalorder %s24094_s7, %s23822_s23  ;;  %s23827_s4 = sshll.u32 %s23935_s29, 4  ;;  %s23828_s4 = int_to_ptr.vmem [resolvable:$false] %s23827_s4 }
  0x59   : > { %s23829_s6 = scalar_lea.vmem %s23828_s4, 512  ;;  %p23830_p5 = scmp.lt.s32.totalorder %s24094_s7, %s23828_s4 }
  0x5a   : > { %p23825_p13 = pnand %p23823_p8, %p23809_p3  ;;  %p23831_p9 = scmp.lt.s32.totalorder %s23829_s6, %s23822_s23 }
  0x5c   : > { %p23826_p0 = pneg %p23825_p13  ;;  %p23832_p12 = por %p23831_p9, %p23830_p5 }
  0x5e   : > { %p23833_p2 = pnand %p23832_p12, %p23826_p0 }
  0x60   : > { %23836 = shalt.err (!%p23833_p2)
}
  0x61   : > { %20190 = dma.hbm_to_vmem [thread:$0]  (!%p24090_p10), %s24088_s5, 256, %s24094_s7, %s182_s8  }
  0x62   : > { %p24518_p7 = scmp.ne.s32.totalorder %s24513_s22, 0 }
  0x63   : > { %p24519_p3 = scmp.eq.s32.totalorder (!%p24518_p7), %s23990_s18, 0 }
  0x64   : > { %202 = sbr.rel (%p24518_p7) target bundleno = 2676 (0xa74), region = 32 }
  0x6b   : > { %23890 = dma.done.wait (%p24519_p3), [#allocation3], 4096   ;;  %p24520_p1 = pmov %p24519_p3 }
  0x6c   : > { %s208_s9 = sand.u32 1, %s23990_s18   ;;  %s24129_s11 = sand.u32 1, %s23911_s13  }
  0x6d   : > { %23892 = vsyncadd (%p24520_p1), [#allocation3], 4294963200  ;;  %s17604_s24 = sshll.u32 %s24129_s11, 4  ;;  %s209_s25 = scalar_lea.sflag [#allocation6], %s208_s9 }
  0x6e   : > { %s24132_s26 = scalar_lea.vmem [#allocation5], %s17604_s24  ;;  %p24521_p10 = scmp.ne.s32.totalorder %s24511_s20, 0 }
  0x70   : > { %23894 = dma.done.wait (%p24521_p10), %s209_s25, 256  }
  0x71   : > { %23896 = vsyncadd (%p24521_p10), %s209_s25, 4294967040  ;;  %p24522_p4 = pmov %p24520_p1 }
  0x72   : > { %p24523_p6 = pmov %p24520_p1 }
  0x73   : > { %23898 = dma.done.wait (%p24522_p4), [#allocation6], 294912  }
  0x74   : > { %23900 = vsyncadd (%p24523_p6), [#allocation6], 4294672384  ;;  %v20257_v0 = vld [vmem:[#allocation7 + $0x4] ss:$72 sps:$4 sm:$0xff]   ;;  %v20261_v2 = vld [vmem:[#allocation7] ss:$72 sps:$4 sm:$0xff]   ;;  %v277_v37 = vlaneseq }
  0x75   : > { %v20259_v1 = vld [vmem:[#allocation7 + $0x2404] ss:$72 sps:$4 sm:$0xff]   ;;  %14229 = vmatprep.subr.bf16.mxu1 %v20257_v0  ;;  %v20262_v3 = vld [vmem:[#allocation7 + $0x2400] ss:$72 sps:$4 sm:$0xff]   ;;  %v20263_v4 = vld [vmem:[#allocation7 + $0x94] ss:$72 sps:$4 sm:$0xff]  }
  0x76   : > { %14401 = vmatprep.subr.bf16.mxu0 %v20259_v1  ;;  %14230 = vmatpush1.bf16.msra.mxu1 %v20261_v2  ;;  %v20265_v5 = vld [vmem:[#allocation7 + $0x2494] ss:$72 sps:$4 sm:$0xff]   ;;  %v20267_v6 = vld [vmem:[#allocation7 + $0x90] ss:$72 sps:$4 sm:$0xff]   ;;  %v20269_v8 = vld [vmem:[#allocation7 + $0x124] ss:$72 sps:$4 sm:$0xff]  }
  0x77   : > { %14402 = vmatpush1.bf16.msra.mxu0 %v20262_v3  ;;  %14231 = vmatprep.subr.bf16.mxu1 %v20263_v4  ;;  %v20268_v7 = vld [vmem:[#allocation7 + $0x2490] ss:$72 sps:$4 sm:$0xff]   ;;  %v20271_v9 = vld [vmem:[#allocation7 + $0x2524] ss:$72 sps:$4 sm:$0xff]   ;;  %v20273_v10 = vld [vmem:[#allocation7 + $0x120] ss:$72 sps:$4 sm:$0xff]  }
  0x78   : > { %14403 = vmatprep.subr.bf16.mxu0 %v20265_v5  ;;  %v20274_v11 = vld [vmem:[#allocation7 + $0x2520] ss:$72 sps:$4 sm:$0xff]   ;;  %v20275_v12 = vld [vmem:[#allocation7 + $0x1b4] ss:$72 sps:$4 sm:$0xff]   ;;  %v20279_v14 = vld [vmem:[#allocation7 + $0x1b0] ss:$72 sps:$4 sm:$0xff]  }
  0x79   : > { %v20277_v13 = vld [vmem:[#allocation7 + $0x25b4] ss:$72 sps:$4 sm:$0xff]   ;;  %v20280_v15 = vld [vmem:[#allocation7 + $0x25b0] ss:$72 sps:$4 sm:$0xff]   ;;  %v20281_v16 = vld [vmem:[#allocation7 + $0x244] ss:$72 sps:$4 sm:$0xff]  }
  0x7a   : > { %14232 = vmatpush1.bf16.msra.mxu1 %v20267_v6  ;;  %v20283_v17 = vld [vmem:[#allocation7 + $0x2644] ss:$72 sps:$4 sm:$0xff]   ;;  %v20285_v18 = vld [vmem:[#allocation7 + $0x240] ss:$72 sps:$4 sm:$0xff]   ;;  %v20287_v20 = vld [vmem:[#allocation7 + $0x2d4] ss:$72 sps:$4 sm:$0xff]  }
  0x7b   : > { %14404 = vmatpush1.bf16.msra.mxu0 %v20268_v7  ;;  %14233 = vmatprep.subr.bf16.mxu1 %v20269_v8  ;;  %v20286_v19 = vld [vmem:[#allocation7 + $0x2640] ss:$72 sps:$4 sm:$0xff]   ;;  %v20289_v21 = vld [vmem:[#allocation7 + $0x26d4] ss:$72 sps:$4 sm:$0xff]   ;;  %v20291_v22 = vld [vmem:[#allocation7 + $0x2d0] ss:$72 sps:$4 sm:$0xff]  }
  0x7c   : > { %14405 = vmatprep.subr.bf16.mxu0 %v20271_v9  ;;  %v20292_v23 = vld [vmem:[#allocation7 + $0x26d0] ss:$72 sps:$4 sm:$0xff]   ;;  %v20293_v24 = vld [vmem:[#allocation7 + $0x364] ss:$72 sps:$4 sm:$0xff]   ;;  %v20297_v26 = vld [vmem:[#allocation7 + $0x360] ss:$72 sps:$4 sm:$0xff]  }
  0x7d   : > { %v20295_v25 = vld [vmem:[#allocation7 + $0x2764] ss:$72 sps:$4 sm:$0xff]   ;;  %v20298_v27 = vld [vmem:[#allocation7 + $0x2760] ss:$72 sps:$4 sm:$0xff]   ;;  %v20299_v28 = vld [vmem:[#allocation7 + $0x3f4] ss:$72 sps:$4 sm:$0xff]  }
  0x7e   : > { %14234 = vmatpush1.bf16.msra.mxu1 %v20273_v10  ;;  %v20301_v29 = vld [vmem:[#allocation7 + $0x27f4] ss:$72 sps:$4 sm:$0xff]   ;;  %v20303_v30 = vld [vmem:[#allocation7 + $0x3f0] ss:$72 sps:$4 sm:$0xff]   ;;  %v20305_v32 = vld [vmem:[#allocation7 + $0x484] ss:$72 sps:$4 sm:$0xff]  }
  0x7f   : > { %14406 = vmatpush1.bf16.msra.mxu0 %v20274_v11  ;;  %14235 = vmatprep.subr.bf16.mxu1 %v20275_v12  ;;  %v20304_v31 = vld [vmem:[#allocation7 + $0x27f0] ss:$72 sps:$4 sm:$0xff]   ;;  %v20307_v33 = vld [vmem:[#allocation7 + $0x2884] ss:$72 sps:$4 sm:$0xff]   ;;  %v20309_v34 = vld [vmem:[#allocation7 + $0x480] ss:$72 sps:$4 sm:$0xff]  }
  0x80   : > { %14407 = vmatprep.subr.bf16.mxu0 %v20277_v13  ;;  %v20310_v35 = vld [vmem:[#allocation7 + $0x2880] ss:$72 sps:$4 sm:$0xff]   ;;  %v20311_v36 = vld [vmem:[#allocation7 + $0x514] ss:$72 sps:$4 sm:$0xff]   ;;  %v20315_v39 = vld [vmem:[#allocation7 + $0x510] ss:$72 sps:$4 sm:$0xff]  }
  0x81   : > { %v20313_v38 = vld [vmem:[#allocation7 + $0x2914] ss:$72 sps:$4 sm:$0xff]   ;;  %v20316_v40 = vld [vmem:[#allocation7 + $0x2910] ss:$72 sps:$4 sm:$0xff]   ;;  %v20317_v41 = vld [vmem:[#allocation7 + $0x5a4] ss:$72 sps:$4 sm:$0xff]  }
  0x82   : > { %14236 = vmatpush1.bf16.msra.mxu1 %v20279_v14  ;;  %v24142_v42 = vshrl.u32 %v277_v37, 7  ;;  %v20319_v43 = vld [vmem:[#allocation7 + $0x29a4] ss:$72 sps:$4 sm:$0xff]   ;;  %v20321_v44 = vld [vmem:[#allocation7 + $0x5a0] ss:$72 sps:$4 sm:$0xff]   ;;  %s20166_s18 = smul.u32 144, %s24129_s11 }
  0x83   : > { %14408 = vmatpush1.bf16.msra.mxu0 %v20280_v15  ;;  %14237 = vmatprep.subr.bf16.mxu1 %v20281_v16  ;;  %v20322_v45 = vld [vmem:[#allocation7 + $0x29a0] ss:$72 sps:$4 sm:$0xff]   ;;  %v20323_v46 = vld [vmem:[#allocation7 + $0x634] ss:$72 sps:$4 sm:$0xff]   ;;  %v20327_v49 = vld [vmem:[#allocation7 + $0x630] ss:$72 sps:$4 sm:$0xff]  }
  0x84   : > { %14409 = vmatprep.subr.bf16.mxu0 %v20283_v17  ;;  %v283_v47 = vsub.s32 1, %v24142_v42  ;;  %v20325_v48 = vld [vmem:[#allocation7 + $0x2a34] ss:$72 sps:$4 sm:$0xff]   ;;  %v20328_v50 = vld [vmem:[#allocation7 + $0x2a30] ss:$72 sps:$4 sm:$0xff]   ;;  %v242_v51 = vld [vmem:[#allocation2 + $0x8] sm:$0xff] }
  0x85   : > { %v258_v52 = vld [vmem:[#allocation2 + $0x88] sm:$0xff]  ;;  %v24146_v53 = vld [vmem:[%s24132_s26] sm:$0xff]  ;;  %v279_v7 = vsub.s32 0, %v24142_v42  ;;  %s24347_s20 = scalar_lea.vmem [#allocation8], %s20166_s18  ;;  %s20167_s22 = smul.u32 2304, %s23919_s15 }
  0x86   : > { %14238 = vmatpush1.bf16.msra.mxu1 %v20285_v18  ;;  %v20329_v54 = vld [vmem:[#allocation7 + $0x6c4] ss:$72 sps:$4 sm:$0xff]   ;;  %v284_v56 = vrot.slane %v24146_v53, %v283_v47  ;;  %v20333_v63 = vld [vmem:[#allocation7 + $0x6c0] ss:$72 sps:$4 sm:$0xff]   ;;  %v20335_v4 = vld [vmem:[#allocation7 + $0x754] ss:$72 sps:$4 sm:$0xff]  }
  0x87   : > { %14410 = vmatpush1.bf16.msra.mxu0 %v20286_v19  ;;  %14239 = vmatprep.subr.bf16.mxu1 %v20287_v20  ;;  %v20331_v55 = vld [vmem:[#allocation7 + $0x2ac4] ss:$72 sps:$4 sm:$0xff]   ;;  %v20334_v0 = vld [vmem:[#allocation7 + $0x2ac0] ss:$72 sps:$4 sm:$0xff]   ;;  %v20337_v5 = vld [vmem:[#allocation7 + $0x2b54] ss:$72 sps:$4 sm:$0xff]   ;;  %v280_v16 = vrot.slane %v24146_v53, %v279_v7  ;;  %s24451_s8 = scalar_lea.hbm %s24507_s3, %s20167_s22 }
  0x88   : > { %14411 = vmatprep.subr.bf16.mxu0 %v20289_v21  ;;  %v250_v57 = vld [vmem:[#allocation2 + $0x48] sm:$0xff]  ;;  %v358_v60 = vmul.f32 %v284_v56, %v242_v51  ;;  %v374_v61 = vmul.f32 %v284_v56, %v258_v52  ;;  %v20339_v8 = vld [vmem:[#allocation7 + $0x750] ss:$72 sps:$4 sm:$0xff]   ;;  %v241_v14 = vld [vmem:[#allocation2] sm:$0xff]  ;;  %s17486_s5 = sshll.u32 %s24347_s20, 4  ;;  %s17470_s27 = scalar_lea.sflag [#allocation4], %s24129_s11  ;;  %s24453_s5 = int_to_ptr.vmem [resolvable:$true] %s17486_s5 }
  0x89   : > { %v266_v58 = vld [vmem:[#allocation2 + $0xc8] sm:$0xff]  ;;  %v20340_v9 = vld [vmem:[#allocation7 + $0x2b50] ss:$72 sps:$4 sm:$0xff]   ;;  %v257_v15 = vld [vmem:[#allocation2 + $0x80] sm:$0xff]  ;;  %s23837_s30 = scalar_lea.vmem %s24453_s5, 2304  ;;  %s23936_s23 = smov [#allocation8]  }
  0x8a   : > { %14240 = vmatpush1.bf16.msra.mxu1 %v20291_v22  ;;  %v24150_v59 = vld [vmem:[%s24132_s26 + $0x8] sm:$0xff]  ;;  %v24153_v1 = vpack.c.bf16 %v374_v61, %v358_v60  ;;  %v249_v18 = vld [vmem:[#allocation2 + $0x40] sm:$0xff]  ;;  %v357_v22 = vmul.f32 %v280_v16, %v241_v14  ;;  %p23838_p8 = scmp.ne.s32.totalorder %s24453_s5, %s23837_s30  ;;  %s23841_s29 = sshll.u32 %s23936_s23, 4  ;;  %s23842_s29 = int_to_ptr.vmem [resolvable:$false] %s23841_s29 }
  0x8b   : > { %14412 = vmatpush1.bf16.msra.mxu0 %v20292_v23  ;;  %14241 = vmatprep.subr.bf16.mxu1 %v20293_v24  ;;  %v316_v62 = vrot.slane %v24150_v59, %v283_v47  ;;  %v20341_v10 = vld [vmem:[#allocation7 + $0x7e4] ss:$72 sps:$4 sm:$0xff]   ;;  %v20345_v12 = vld [vmem:[#allocation7 + $0x7e0] ss:$72 sps:$4 sm:$0xff]   ;;  %v312_v17 = vrot.slane %v24150_v59, %v279_v7  ;;  %v20347_v20 = vld [vmem:[#allocation7 + $0x874] ss:$72 sps:$4 sm:$0xff]   ;;  %v373_v23 = vmul.f32 %v280_v16, %v257_v15  ;;  %p23844_p5 = scmp.lt.s32.totalorder %s24453_s5, %s23842_s29 }
  0x8c   : > { %14413 = vmatprep.subr.bf16.mxu0 %v20295_v25  ;;  %14261 = vmatprep.mubr.bf16.mxu1 %v24153_v1  ;;  %v20343_v11 = vld [vmem:[#allocation7 + $0x2be4] ss:$72 sps:$4 sm:$0xff]   ;;  %v20346_v13 = vld [vmem:[#allocation7 + $0x2be0] ss:$72 sps:$4 sm:$0xff]   ;;  %v20349_v21 = vld [vmem:[#allocation7 + $0x2c74] ss:$72 sps:$4 sm:$0xff]   ;;  %p23839_p13 = pnand %p23838_p8, %p24073_p11 }
  0x8d   : > { %v366_v2 = vmul.f32 %v316_v62, %v250_v57  ;;  %v382_v3 = vmul.f32 %v316_v62, %v266_v58  ;;  %v265_v19 = vld [vmem:[#allocation2 + $0xc0] sm:$0xff]  ;;  %v365_v24 = vmul.f32 %v312_v17, %v249_v18  ;;  %v20362_v37 = vld [vmem:[#allocation7 + $0x2d90] ss:$72 sps:$4 sm:$0xff]   ;;  %v20385_v51 = vld [vmem:[#allocation7 + $0xbd4] ss:$72 sps:$4 sm:$0xff]   ;;  %s23843_s4 = scalar_lea.vmem %s23842_s29, 4608 }
  0x8e   : > { %14242 = vmatpush1.bf16.msra.mxu1 %v20297_v26  ;;  %v381_v25 = vmul.f32 %v312_v17, %v265_v19  ;;  %v20351_v26 = vld [vmem:[#allocation7 + $0x870] ss:$72 sps:$4 sm:$0xff]   ;;  %v20379_v47 = vld [vmem:[#allocation7 + $0xb44] ss:$72 sps:$4 sm:$0xff]   ;;  %v20388_v52 = vld [vmem:[#allocation7 + $0x2fd4] ss:$72 sps:$4 sm:$0xff]   ;;  %p23840_p0 = pneg %p23839_p13  ;;  %p23845_p9 = scmp.lt.s32.totalorder %s23843_s4, %s23837_s30 }
  0x8f   : > { %14414 = vmatpush1.bf16.msra.mxu0 %v20298_v27  ;;  %14243 = vmatprep.subr.bf16.mxu1 %v20299_v28  ;;  %v24156_v6 = vpack.c.bf16 %v382_v3, %v366_v2  ;;  %v20352_v27 = vld [vmem:[#allocation7 + $0x2c70] ss:$72 sps:$4 sm:$0xff]   ;;  %v20355_v28 = vld [vmem:[#allocation7 + $0x904] ss:$72 sps:$4 sm:$0xff]   ;;  %v20389_v61 = vld [vmem:[#allocation7 + $0xc60] ss:$72 sps:$4 sm:$0xff]  }
  0x90   : > { %14415 = vmatprep.subr.bf16.mxu0 %v20301_v29  ;;  %v20358_v29 = vld [vmem:[#allocation7 + $0x2d04] ss:$72 sps:$4 sm:$0xff]   ;;  %v20386_v56 = vld [vmem:[#allocation7 + $0x2fd0] ss:$72 sps:$4 sm:$0xff]   ;;  %v20392_v62 = vld [vmem:[#allocation7 + $0x3060] ss:$72 sps:$4 sm:$0xff]   ;;  %p23846_p12 = por %p23845_p9, %p23844_p5 }
  0x91   : > { %14433 = vmatprep.mubr.bf16.mxu0 %v24156_v6  ;;  %v20391_v57 = vld [vmem:[#allocation7 + $0xc64] ss:$72 sps:$4 sm:$0xff]   ;;  %v20400_v2 = vld [vmem:[#allocation7 + $0x30f4] ss:$72 sps:$4 sm:$0xff]   ;;  %v20401_v18 = vld [vmem:[#allocation7 + $0xd80] ss:$72 sps:$4 sm:$0xff]  }
  0x92   : > { %14244 = vmatpush1.bf16.msra.mxu1 %v20303_v30  ;;  %v24162_v30 = vpack.c.bf16 %v373_v23, %v357_v22  ;;  %v20394_v58 = vld [vmem:[#allocation7 + $0x3064] ss:$72 sps:$4 sm:$0xff]   ;;  %v244_v3 = vld [vmem:[#allocation2 + $0x18] sm:$0xff]  ;;  %v20404_v19 = vld [vmem:[#allocation7 + $0x3180] ss:$72 sps:$4 sm:$0xff]   ;;  %p23847_p2 = pnand %p23846_p12, %p23840_p0 }
  0x93   : > { %14416 = vmatpush1.bf16.msra.mxu0 %v20304_v31  ;;  %14245 = vmatprep.subr.bf16.mxu1 %v20305_v32  ;;  %v24164_v31 = vpack.c.bf16 %v381_v25, %v365_v24  ;;  %v20353_v32 = vld [vmem:[#allocation7 + $0x900] ss:$72 sps:$4 sm:$0xff]   ;;  %v20403_v15 = vld [vmem:[#allocation7 + $0xd84] ss:$72 sps:$4 sm:$0xff]   ;;  %v20407_v22 = vld [vmem:[#allocation7 + $0xe10] ss:$72 sps:$4 sm:$0xff]  }
  0x94   : > { %14417 = vmatprep.subr.bf16.mxu0 %v20307_v33  ;;  %v20356_v33 = vld [vmem:[#allocation7 + $0x2d00] ss:$72 sps:$4 sm:$0xff]   ;;  %v20406_v16 = vld [vmem:[#allocation7 + $0x3184] ss:$72 sps:$4 sm:$0xff]   ;;  %v20410_v23 = vld [vmem:[#allocation7 + $0x3210] ss:$72 sps:$4 sm:$0xff]  }
  0x95   : > { %v20415_v24 = vld [vmem:[#allocation7 + $0xea4] ss:$72 sps:$4 sm:$0xff]  }
  0x96   : > { %14246 = vmatpush1.bf16.msra.mxu1 %v20309_v34  ;;  %v20361_v34 = vld [vmem:[#allocation7 + $0x994] ss:$72 sps:$4 sm:$0xff]   ;;  %v20418_v25 = vld [vmem:[#allocation7 + $0x32a4] ss:$72 sps:$4 sm:$0xff]  }
  0x97   : > { %14418 = vmatpush1.bf16.msra.mxu0 %v20310_v35  ;;  %14247 = vmatprep.subr.bf16.mxu1 %v20311_v36  ;;  %v20364_v35 = vld [vmem:[#allocation7 + $0x2d94] ss:$72 sps:$4 sm:$0xff]   ;;  %v20359_v36 = vld [vmem:[#allocation7 + $0x990] ss:$72 sps:$4 sm:$0xff]  }
  0x98   : > { %14419 = vmatprep.subr.bf16.mxu0 %v20313_v38  ;;  %v20367_v38 = vld [vmem:[#allocation7 + $0xa24] ss:$72 sps:$4 sm:$0xff]  }
  0x9a   : > { %14248 = vmatpush1.bf16.msra.mxu1 %v20315_v39  ;;  %v20370_v39 = vld [vmem:[#allocation7 + $0x2e24] ss:$72 sps:$4 sm:$0xff]  }
  0x9b   : > { %14420 = vmatpush1.bf16.msra.mxu0 %v20316_v40  ;;  %14249 = vmatprep.subr.bf16.mxu1 %v20317_v41  ;;  %v20365_v40 = vld [vmem:[#allocation7 + $0xa20] ss:$72 sps:$4 sm:$0xff]  }
  0x9c   : > { %14421 = vmatprep.subr.bf16.mxu0 %v20319_v43  ;;  %v20368_v41 = vld [vmem:[#allocation7 + $0x2e20] ss:$72 sps:$4 sm:$0xff]   ;;  %v20373_v43 = vld [vmem:[#allocation7 + $0xab4] ss:$72 sps:$4 sm:$0xff]  }
  0x9e   : > { %14250 = vmatpush1.bf16.msra.mxu1 %v20321_v44  ;;  %v20376_v44 = vld [vmem:[#allocation7 + $0x2eb4] ss:$72 sps:$4 sm:$0xff]  }
  0x9f   : > { %14422 = vmatpush1.bf16.msra.mxu0 %v20322_v45  ;;  %14251 = vmatprep.subr.bf16.mxu1 %v20323_v46  ;;  %v20371_v45 = vld [vmem:[#allocation7 + $0xab0] ss:$72 sps:$4 sm:$0xff]  }
  0xa0   : > { %14423 = vmatprep.subr.bf16.mxu0 %v20325_v48  ;;  %v20374_v46 = vld [vmem:[#allocation7 + $0x2eb0] ss:$72 sps:$4 sm:$0xff]   ;;  %v20382_v48 = vld [vmem:[#allocation7 + $0x2f44] ss:$72 sps:$4 sm:$0xff]  }
  0xa2   : > { %14252 = vmatpush1.bf16.msra.mxu1 %v20327_v49  ;;  %v20377_v49 = vld [vmem:[#allocation7 + $0xb40] ss:$72 sps:$4 sm:$0xff]  }
  0xa3   : > { %14424 = vmatpush1.bf16.msra.mxu0 %v20328_v50  ;;  %14253 = vmatprep.subr.bf16.mxu1 %v20329_v54  ;;  %v20380_v50 = vld [vmem:[#allocation7 + $0x2f40] ss:$72 sps:$4 sm:$0xff]   ;;  %v291_v54 = vsub.s32 3, %v24142_v42 }
  0xa4   : > { %14425 = vmatprep.subr.bf16.mxu0 %v20331_v55  ;;  %v20383_v55 = vld [vmem:[#allocation7 + $0xbd0] ss:$72 sps:$4 sm:$0xff]  }
  0xa5   : > { %v292_v60 = vrot.slane %v24146_v53, %v291_v54 }
  0xa6   : > { %14254 = vmatpush1.bf16.msra.mxu1 %v20333_v63  ;;  %v324_v63 = vrot.slane %v24150_v59, %v291_v54  ;;  %v267_v54 = vld [vmem:[#allocation2 + $0xd0] sm:$0xff] }
  0xa7   : > { %14426 = vmatpush1.bf16.msra.mxu0 %v20334_v0  ;;  %14255 = vmatprep.subr.bf16.mxu1 %v20335_v4  ;;  %v20397_v0 = vld [vmem:[#allocation7 + $0xcf4] ss:$72 sps:$4 sm:$0xff]  }
  0xa8   : > { %14427 = vmatprep.subr.bf16.mxu0 %v20337_v5  ;;  %v260_v4 = vld [vmem:[#allocation2 + $0x98] sm:$0xff]  ;;  %v360_v5 = vmul.f32 %v292_v60, %v244_v3 }
  0xa9   : > { %v376_v7 = vmul.f32 %v292_v60, %v260_v4 }
  0xaa   : > { %14256 = vmatpush1.bf16.msra.mxu1 %v20339_v8  ;;  %v252_v8 = vld [vmem:[#allocation2 + $0x58] sm:$0xff] }
  0xab   : > { %14428 = vmatpush1.bf16.msra.mxu0 %v20340_v9  ;;  %14257 = vmatprep.subr.bf16.mxu1 %v20341_v10  ;;  %v268_v9 = vld [vmem:[#allocation2 + $0xd8] sm:$0xff]  ;;  %v368_v10 = vmul.f32 %v324_v63, %v252_v8  ;;  %v20452_v8 = vld [vmem:[#allocation7 + $0x3600] ss:$72 sps:$4 sm:$0xff]  }
  0xac   : > { %14429 = vmatprep.subr.bf16.mxu0 %v20343_v11  ;;  %v20395_v11 = vld [vmem:[#allocation7 + $0xcf0] ss:$72 sps:$4 sm:$0xff]   ;;  %v384_v14 = vmul.f32 %v324_v63, %v268_v9  ;;  %v20457_v9 = vld [vmem:[#allocation7 + $0x1294] ss:$72 sps:$4 sm:$0xff]  }
  0xad   : > { %v20446_v63 = vld [vmem:[#allocation7 + $0x3570] ss:$72 sps:$4 sm:$0xff]  }
  0xae   : > { %14258 = vmatpush1.bf16.msra.mxu1 %v20345_v12  ;;  %v20398_v12 = vld [vmem:[#allocation7 + $0x30f0] ss:$72 sps:$4 sm:$0xff]   ;;  %v24174_v17 = vpack.c.bf16 %v384_v14, %v368_v10  ;;  %v20460_v10 = vld [vmem:[#allocation7 + $0x3694] ss:$72 sps:$4 sm:$0xff]  }
  0xaf   : > { %14430 = vmatpush1.bf16.msra.mxu0 %v20346_v13  ;;  %14259 = vmatprep.subr.bf16.mxu1 %v20347_v20  ;;  %v24171_v13 = vpack.c.bf16 %v376_v7, %v360_v5  ;;  %v20409_v20 = vld [vmem:[#allocation7 + $0xe14] ss:$72 sps:$4 sm:$0xff]   ;;  %v299_v5 = vsub.s32 5, %v24142_v42  ;;  %v20449_v7 = vld [vmem:[#allocation7 + $0x1200] ss:$72 sps:$4 sm:$0xff]  }
  0xb0   : > { %14431 = vmatprep.subr.bf16.mxu0 %v20349_v21  ;;  %v20412_v21 = vld [vmem:[#allocation7 + $0x3214] ss:$72 sps:$4 sm:$0xff]   ;;  %v20458_v14 = vld [vmem:[#allocation7 + $0x3690] ss:$72 sps:$4 sm:$0xff]  }
  0xb2   : > { %14260 = vmatpush1.bf16.msra.mxu1 %v20351_v26  ;;  %v20413_v26 = vld [vmem:[#allocation7 + $0xea0] ss:$72 sps:$4 sm:$0xff]  }
  0xb3   : > { %14432 = vmatpush1.bf16.msra.mxu0 %v20352_v27  ;;  %14272 = vmatprep.subr.bf16.mxu1 %v20355_v28  ;;  %v20416_v27 = vld [vmem:[#allocation7 + $0x32a0] ss:$72 sps:$4 sm:$0xff]   ;;  %v20421_v28 = vld [vmem:[#allocation7 + $0xf34] ss:$72 sps:$4 sm:$0xff]  }
  0xb4   : > { %14444 = vmatprep.subr.bf16.mxu0 %v20358_v29  ;;  %v20424_v29 = vld [vmem:[#allocation7 + $0x3334] ss:$72 sps:$4 sm:$0xff]  }
  0xb5   : > { %14262 = vmatmul.mubr.bf16.vlgmr.msra.gmra.mrb[0].mxu1 %v24162_v30 }
  0xb6   : > { %14434 = vmatmul.mubr.bf16.vlgmr.msra.gmra.mrb[0].mxu0 %v24164_v31  ;;  %14273 = vmatpush1.bf16.msra.mxu1 %v20353_v32  ;;  %v20419_v32 = vld [vmem:[#allocation7 + $0xf30] ss:$72 sps:$4 sm:$0xff]  }
  0xb7   : > { %14445 = vmatpush1.bf16.msra.mxu0 %v20356_v33  ;;  %14274 = vmatprep.subr.bf16.mxu1 %v20361_v34  ;;  %v20422_v33 = vld [vmem:[#allocation7 + $0x3330] ss:$72 sps:$4 sm:$0xff]   ;;  %v20427_v34 = vld [vmem:[#allocation7 + $0xfc4] ss:$72 sps:$4 sm:$0xff]  }
  0xb8   : > { %14446 = vmatprep.subr.bf16.mxu0 %v20364_v35  ;;  %14304 = vmatprep.mubr.bf16.mxu1 %v24171_v13  ;;  %v20430_v35 = vld [vmem:[#allocation7 + $0x33c4] ss:$72 sps:$4 sm:$0xff]  }
  0xb9   : > { %14476 = vmatprep.mubr.bf16.mxu0 %v24174_v17 }
  0xba   : > { %14275 = vmatpush1.bf16.msra.mxu1 %v20359_v36  ;;  %v20425_v36 = vld [vmem:[#allocation7 + $0xfc0] ss:$72 sps:$4 sm:$0xff]  }
  0xbb   : > { %14447 = vmatpush1.bf16.msra.mxu0 %v20362_v37  ;;  %14276 = vmatprep.subr.bf16.mxu1 %v20367_v38  ;;  %v20428_v37 = vld [vmem:[#allocation7 + $0x33c0] ss:$72 sps:$4 sm:$0xff]   ;;  %v20433_v38 = vld [vmem:[#allocation7 + $0x1054] ss:$72 sps:$4 sm:$0xff]  }
  0xbc   : > { %14448 = vmatprep.subr.bf16.mxu0 %v20370_v39  ;;  %v20436_v39 = vld [vmem:[#allocation7 + $0x3454] ss:$72 sps:$4 sm:$0xff]  }
  0xbe   : > { %14277 = vmatpush1.bf16.msra.mxu1 %v20365_v40  ;;  %v287_v40 = vsub.s32 2, %v24142_v42 }
  0xbf   : > { %14449 = vmatpush1.bf16.msra.mxu0 %v20368_v41  ;;  %14278 = vmatprep.subr.bf16.mxu1 %v20373_v43  ;;  %v20431_v41 = vld [vmem:[#allocation7 + $0x1050] ss:$72 sps:$4 sm:$0xff]  }
  0xc0   : > { %14450 = vmatprep.subr.bf16.mxu0 %v20376_v44  ;;  %v20434_v43 = vld [vmem:[#allocation7 + $0x3450] ss:$72 sps:$4 sm:$0xff]   ;;  %v20439_v44 = vld [vmem:[#allocation7 + $0x10e4] ss:$72 sps:$4 sm:$0xff]  }
  0xc2   : > { %14279 = vmatpush1.bf16.msra.mxu1 %v20371_v45  ;;  %v20442_v45 = vld [vmem:[#allocation7 + $0x34e4] ss:$72 sps:$4 sm:$0xff]  }
  0xc3   : > { %14451 = vmatpush1.bf16.msra.mxu0 %v20374_v46  ;;  %14280 = vmatprep.subr.bf16.mxu1 %v20379_v47  ;;  %v20437_v46 = vld [vmem:[#allocation7 + $0x10e0] ss:$72 sps:$4 sm:$0xff]  }
  0xc4   : > { %14452 = vmatprep.subr.bf16.mxu0 %v20382_v48  ;;  %v20440_v47 = vld [vmem:[#allocation7 + $0x34e0] ss:$72 sps:$4 sm:$0xff]   ;;  %v243_v48 = vld [vmem:[#allocation2 + $0x10] sm:$0xff] }
  0xc6   : > { %14281 = vmatpush1.bf16.msra.mxu1 %v20377_v49  ;;  %v259_v49 = vld [vmem:[#allocation2 + $0x90] sm:$0xff] }
  0xc7   : > { %14453 = vmatpush1.bf16.msra.mxu0 %v20380_v50  ;;  %14282 = vmatprep.subr.bf16.mxu1 %v20385_v51  ;;  %v288_v50 = vrot.slane %v24146_v53, %v287_v40  ;;  %v320_v51 = vrot.slane %v24150_v59, %v287_v40  ;;  %v20484_v40 = vld [vmem:[#allocation7 + $0x38d4] ss:$72 sps:$4 sm:$0xff]  }
  0xc8   : > { %14454 = vmatprep.subr.bf16.mxu0 %v20388_v52  ;;  %v251_v52 = vld [vmem:[#allocation2 + $0x50] sm:$0xff] }
  0xc9   : > { %v367_v60 = vmul.f32 %v320_v51, %v251_v52  ;;  %v20499_v52 = vld [vmem:[#allocation7 + $0x1684] ss:$72 sps:$4 sm:$0xff]  }
  0xca   : > { %14283 = vmatpush1.bf16.msra.mxu1 %v20383_v55  ;;  %v20445_v55 = vld [vmem:[#allocation7 + $0x1174] ss:$72 sps:$4 sm:$0xff]  }
  0xcb   : > { %14455 = vmatpush1.bf16.msra.mxu0 %v20386_v56  ;;  %14284 = vmatprep.subr.bf16.mxu1 %v20391_v57  ;;  %v20448_v56 = vld [vmem:[#allocation7 + $0x3574] ss:$72 sps:$4 sm:$0xff]   ;;  %v359_v57 = vmul.f32 %v288_v50, %v243_v48 }
  0xcc   : > { %14456 = vmatprep.subr.bf16.mxu0 %v20394_v58  ;;  %v375_v58 = vmul.f32 %v288_v50, %v259_v49  ;;  %v20493_v48 = vld [vmem:[#allocation7 + $0x15f4] ss:$72 sps:$4 sm:$0xff]   ;;  %v20491_v50 = vld [vmem:[#allocation7 + $0x15f0] ss:$72 sps:$4 sm:$0xff]  }
  0xcd   : > { %v20496_v49 = vld [vmem:[#allocation7 + $0x39f4] ss:$72 sps:$4 sm:$0xff]  }
  0xce   : > { %14285 = vmatpush1.bf16.msra.mxu1 %v20389_v61  ;;  %v383_v61 = vmul.f32 %v320_v51, %v267_v54  ;;  %v24180_v3 = vpack.c.bf16 %v375_v58, %v359_v57  ;;  %v20494_v51 = vld [vmem:[#allocation7 + $0x39f0] ss:$72 sps:$4 sm:$0xff]   ;;  %v20502_v54 = vld [vmem:[#allocation7 + $0x3a84] ss:$72 sps:$4 sm:$0xff]   ;;  %v20505_v57 = vld [vmem:[#allocation7 + $0x1714] ss:$72 sps:$4 sm:$0xff]  }
  0xcf   : > { %14457 = vmatpush1.bf16.msra.mxu0 %v20392_v62  ;;  %14286 = vmatprep.subr.bf16.mxu1 %v20397_v0  ;;  %v20443_v62 = vld [vmem:[#allocation7 + $0x1170] ss:$72 sps:$4 sm:$0xff]   ;;  %v20451_v0 = vld [vmem:[#allocation7 + $0x1204] ss:$72 sps:$4 sm:$0xff]   ;;  %v20508_v58 = vld [vmem:[#allocation7 + $0x3b14] ss:$72 sps:$4 sm:$0xff]  }
  0xd0   : > { %14458 = vmatprep.subr.bf16.mxu0 %v20400_v2  ;;  %v20454_v2 = vld [vmem:[#allocation7 + $0x3604] ss:$72 sps:$4 sm:$0xff]   ;;  %v24182_v4 = vpack.c.bf16 %v383_v61, %v367_v60  ;;  %v20503_v60 = vld [vmem:[#allocation7 + $0x1710] ss:$72 sps:$4 sm:$0xff]  }
  0xd1   : > { %v20506_v61 = vld [vmem:[#allocation7 + $0x3b10] ss:$72 sps:$4 sm:$0xff]  }
  0xd2   : > { %14287 = vmatpush1.bf16.msra.mxu1 %v20395_v11  ;;  %v300_v11 = vrot.slane %v24146_v53, %v299_v5  ;;  %v270_v53 = vld [vmem:[#allocation2 + $0xe8] sm:$0xff] }
  0xd3   : > { %14459 = vmatpush1.bf16.msra.mxu0 %v20398_v12  ;;  %14288 = vmatprep.subr.bf16.mxu1 %v20403_v15  ;;  %v20455_v12 = vld [vmem:[#allocation7 + $0x1290] ss:$72 sps:$4 sm:$0xff]   ;;  %v20463_v15 = vld [vmem:[#allocation7 + $0x1324] ss:$72 sps:$4 sm:$0xff]  }
  0xd4   : > { %14460 = vmatprep.subr.bf16.mxu0 %v20406_v16  ;;  %v20466_v16 = vld [vmem:[#allocation7 + $0x3724] ss:$72 sps:$4 sm:$0xff]  }
  0xd6   : > { %14289 = vmatpush1.bf16.msra.mxu1 %v20401_v18  ;;  %v332_v18 = vrot.slane %v24150_v59, %v299_v5  ;;  %v20517_v5 = vld [vmem:[#allocation7 + $0x1834] ss:$72 sps:$4 sm:$0xff]  }
  0xd7   : > { %14461 = vmatpush1.bf16.msra.mxu0 %v20404_v19  ;;  %14290 = vmatprep.subr.bf16.mxu1 %v20409_v20  ;;  %v246_v19 = vld [vmem:[#allocation2 + $0x28] sm:$0xff] }
  0xd8   : > { %14462 = vmatprep.subr.bf16.mxu0 %v20412_v21  ;;  %v262_v20 = vld [vmem:[#allocation2 + $0xa8] sm:$0xff] }
  0xd9   : > { %v20461_v21 = vld [vmem:[#allocation7 + $0x1320] ss:$72 sps:$4 sm:$0xff]  }
  0xda   : > { %14291 = vmatpush1.bf16.msra.mxu1 %v20407_v22  ;;  %v20464_v22 = vld [vmem:[#allocation7 + $0x3720] ss:$72 sps:$4 sm:$0xff]  }
  0xdb   : > { %14463 = vmatpush1.bf16.msra.mxu0 %v20410_v23  ;;  %14292 = vmatprep.subr.bf16.mxu1 %v20415_v24  ;;  %v362_v23 = vmul.f32 %v300_v11, %v246_v19  ;;  %v378_v24 = vmul.f32 %v300_v11, %v262_v20  ;;  %v20526_v11 = vld [vmem:[#allocation7 + $0x3cc4] ss:$72 sps:$4 sm:$0xff]   ;;  %v20527_v19 = vld [vmem:[#allocation7 + $0x1950] ss:$72 sps:$4 sm:$0xff]  }
  0xdc   : > { %14464 = vmatprep.subr.bf16.mxu0 %v20418_v25  ;;  %v254_v25 = vld [vmem:[#allocation2 + $0x68] sm:$0xff]  ;;  %v20530_v20 = vld [vmem:[#allocation7 + $0x3d50] ss:$72 sps:$4 sm:$0xff]  }
  0xde   : > { %14293 = vmatpush1.bf16.msra.mxu1 %v20413_v26  ;;  %v20469_v26 = vld [vmem:[#allocation7 + $0x13b4] ss:$72 sps:$4 sm:$0xff]  }
  0xdf   : > { %14465 = vmatpush1.bf16.msra.mxu0 %v20416_v27  ;;  %14294 = vmatprep.subr.bf16.mxu1 %v20421_v28  ;;  %v20472_v27 = vld [vmem:[#allocation7 + $0x37b4] ss:$72 sps:$4 sm:$0xff]   ;;  %v24189_v28 = vpack.c.bf16 %v378_v24, %v362_v23  ;;  %v20533_v23 = vld [vmem:[#allocation7 + $0x19e0] ss:$72 sps:$4 sm:$0xff]  }
  0xe0   : > { %14466 = vmatprep.subr.bf16.mxu0 %v20424_v29  ;;  %v370_v29 = vmul.f32 %v332_v18, %v254_v25  ;;  %v20536_v24 = vld [vmem:[#allocation7 + $0x3de0] ss:$72 sps:$4 sm:$0xff]  }
  0xe1   : > { %v245_v25 = vld [vmem:[#allocation2 + $0x20] sm:$0xff] }
  0xe2   : > { %14295 = vmatpush1.bf16.msra.mxu1 %v20419_v32  ;;  %v386_v32 = vmul.f32 %v332_v18, %v270_v53  ;;  %v295_v18 = vsub.s32 4, %v24142_v42  ;;  %v307_v53 = vsub.s32 7, %v24142_v42 }
  0xe3   : > { %14467 = vmatpush1.bf16.msra.mxu0 %v20422_v33  ;;  %14296 = vmatprep.subr.bf16.mxu1 %v20427_v34  ;;  %v20467_v33 = vld [vmem:[#allocation7 + $0x13b0] ss:$72 sps:$4 sm:$0xff]  }
  0xe4   : > { %14468 = vmatprep.subr.bf16.mxu0 %v20430_v35  ;;  %v24192_v59 = vpack.c.bf16 %v386_v32, %v370_v29  ;;  %v20470_v34 = vld [vmem:[#allocation7 + $0x37b0] ss:$72 sps:$4 sm:$0xff]   ;;  %v20475_v35 = vld [vmem:[#allocation7 + $0x1444] ss:$72 sps:$4 sm:$0xff]  }
  0xe5   : > { %v261_v29 = vld [vmem:[#allocation2 + $0xa0] sm:$0xff] }
  0xe6   : > { %14297 = vmatpush1.bf16.msra.mxu1 %v20425_v36  ;;  %v20478_v36 = vld [vmem:[#allocation7 + $0x3844] ss:$72 sps:$4 sm:$0xff]  }
  0xe7   : > { %14469 = vmatpush1.bf16.msra.mxu0 %v20428_v37  ;;  %14298 = vmatprep.subr.bf16.mxu1 %v20433_v38  ;;  %v20473_v37 = vld [vmem:[#allocation7 + $0x1440] ss:$72 sps:$4 sm:$0xff]  }
  0xe8   : > { %14470 = vmatprep.subr.bf16.mxu0 %v20436_v39  ;;  %v20476_v38 = vld [vmem:[#allocation7 + $0x3840] ss:$72 sps:$4 sm:$0xff]   ;;  %v20481_v39 = vld [vmem:[#allocation7 + $0x14d4] ss:$72 sps:$4 sm:$0xff]  }
  0xe9   : > { %v24198_v32 = vld [vmem:[%s24132_s26] sm:$0xff] }
  0xea   : > { %14299 = vmatpush1.bf16.msra.mxu1 %v20431_v41  ;;  %v20479_v41 = vld [vmem:[#allocation7 + $0x14d0] ss:$72 sps:$4 sm:$0xff]  }
  0xeb   : > { %14471 = vmatpush1.bf16.msra.mxu0 %v20434_v43  ;;  %14300 = vmatprep.subr.bf16.mxu1 %v20439_v44  ;;  %v20482_v43 = vld [vmem:[#allocation7 + $0x38d0] ss:$72 sps:$4 sm:$0xff]   ;;  %v20487_v44 = vld [vmem:[#allocation7 + $0x1564] ss:$72 sps:$4 sm:$0xff]  }
  0xec   : > { %14472 = vmatprep.subr.bf16.mxu0 %v20442_v45  ;;  %v20490_v45 = vld [vmem:[#allocation7 + $0x3964] ss:$72 sps:$4 sm:$0xff]  }
  0xee   : > { %14301 = vmatpush1.bf16.msra.mxu1 %v20437_v46  ;;  %v20485_v46 = vld [vmem:[#allocation7 + $0x1560] ss:$72 sps:$4 sm:$0xff]  }
  0xef   : > { %14473 = vmatpush1.bf16.msra.mxu0 %v20440_v47  ;;  %14302 = vmatprep.subr.bf16.mxu1 %v20445_v55  ;;  %v20488_v47 = vld [vmem:[#allocation7 + $0x3960] ss:$72 sps:$4 sm:$0xff]  }
  0xf0   : > { %14474 = vmatprep.subr.bf16.mxu0 %v20448_v56  ;;  %v20497_v55 = vld [vmem:[#allocation7 + $0x1680] ss:$72 sps:$4 sm:$0xff]  }
  0xf1   : > { %v20500_v56 = vld [vmem:[#allocation7 + $0x3a80] ss:$72 sps:$4 sm:$0xff]  }
  0xf2   : > { %14303 = vmatpush1.bf16.msra.mxu1 %v20443_v62  ;;  %v20511_v62 = vld [vmem:[#allocation7 + $0x17a4] ss:$72 sps:$4 sm:$0xff]  }
  0xf3   : > { %14475 = vmatpush1.bf16.msra.mxu0 %v20446_v63  ;;  %14315 = vmatprep.subr.bf16.mxu1 %v20451_v0  ;;  %v20514_v63 = vld [vmem:[#allocation7 + $0x3ba4] ss:$72 sps:$4 sm:$0xff]   ;;  %v20509_v0 = vld [vmem:[#allocation7 + $0x17a0] ss:$72 sps:$4 sm:$0xff]  }
  0xf4   : > { %14487 = vmatprep.subr.bf16.mxu0 %v20454_v2  ;;  %v20512_v2 = vld [vmem:[#allocation7 + $0x3ba0] ss:$72 sps:$4 sm:$0xff]  }
  0xf5   : > { %14305 = vmatmul.mubr.bf16.vlgmr.msra.gmra.mrb[0].mxu1 %v24180_v3 }
  0xf6   : > { %14477 = vmatmul.mubr.bf16.vlgmr.msra.gmra.mrb[0].mxu0 %v24182_v4  ;;  %14316 = vmatpush1.bf16.msra.mxu1 %v20449_v7  ;;  %v20520_v7 = vld [vmem:[#allocation7 + $0x3c34] ss:$72 sps:$4 sm:$0xff]  }
  0xf7   : > { %14488 = vmatpush1.bf16.msra.mxu0 %v20452_v8  ;;  %14317 = vmatprep.subr.bf16.mxu1 %v20457_v9  ;;  %v20515_v8 = vld [vmem:[#allocation7 + $0x1830] ss:$72 sps:$4 sm:$0xff]  }
  0xf8   : > { %14489 = vmatprep.subr.bf16.mxu0 %v20460_v10  ;;  %14347 = vmatprep.mubr.bf16.mxu1 %v24189_v28  ;;  %v20518_v9 = vld [vmem:[#allocation7 + $0x3c30] ss:$72 sps:$4 sm:$0xff]   ;;  %v20523_v10 = vld [vmem:[#allocation7 + $0x18c4] ss:$72 sps:$4 sm:$0xff]  }
  0xf9   : > { %14519 = vmatprep.mubr.bf16.mxu0 %v24192_v59 }
  0xfa   : > { %14318 = vmatpush1.bf16.msra.mxu1 %v20455_v12  ;;  %v20521_v12 = vld [vmem:[#allocation7 + $0x18c0] ss:$72 sps:$4 sm:$0xff]  }
  0xfb   : > { %14490 = vmatpush1.bf16.msra.mxu0 %v20458_v14  ;;  %14319 = vmatprep.subr.bf16.mxu1 %v20463_v15  ;;  %v20524_v14 = vld [vmem:[#allocation7 + $0x3cc0] ss:$72 sps:$4 sm:$0xff]   ;;  %v20529_v15 = vld [vmem:[#allocation7 + $0x1954] ss:$72 sps:$4 sm:$0xff]  }
  0xfc   : > { %14491 = vmatprep.subr.bf16.mxu0 %v20466_v16  ;;  %v20532_v16 = vld [vmem:[#allocation7 + $0x3d54] ss:$72 sps:$4 sm:$0xff]  }
  0xfe   : > { %14320 = vmatpush1.bf16.msra.mxu1 %v20461_v21  ;;  %v20535_v21 = vld [vmem:[#allocation7 + $0x19e4] ss:$72 sps:$4 sm:$0xff]  }
  0xff   : > { %14492 = vmatpush1.bf16.msra.mxu0 %v20464_v22  ;;  %14321 = vmatprep.subr.bf16.mxu1 %v20469_v26  ;;  %v20538_v22 = vld [vmem:[#allocation7 + $0x3de4] ss:$72 sps:$4 sm:$0xff]   ;;  %v20541_v26 = vld [vmem:[#allocation7 + $0x1a74] ss:$72 sps:$4 sm:$0xff]  }
 0x100   : > { %14493 = vmatprep.subr.bf16.mxu0 %v20472_v27  ;;  %v20544_v27 = vld [vmem:[#allocation7 + $0x3e74] ss:$72 sps:$4 sm:$0xff]  }
 0x102   : > { %14322 = vmatpush1.bf16.msra.mxu1 %v20467_v33  ;;  %v296_v33 = vrot.slane %v24198_v32, %v295_v18 }
 0x103   : > { %14494 = vmatpush1.bf16.msra.mxu0 %v20470_v34  ;;  %14323 = vmatprep.subr.bf16.mxu1 %v20475_v35  ;;  %v24202_v34 = vld [vmem:[%s24132_s26 + $0x8] sm:$0xff] }
 0x104   : > { %14495 = vmatprep.subr.bf16.mxu0 %v20478_v36  ;;  %v328_v35 = vrot.slane %v24202_v34, %v295_v18  ;;  %v253_v36 = vld [vmem:[#allocation2 + $0x60] sm:$0xff]  ;;  %v20566_v18 = vld [vmem:[#allocation7 + $0x40b0] ss:$72 sps:$4 sm:$0xff]  }
 0x106   : > { %14324 = vmatpush1.bf16.msra.mxu1 %v20473_v37  ;;  %v269_v37 = vld [vmem:[#allocation2 + $0xe0] sm:$0xff] }
 0x107   : > { %14496 = vmatpush1.bf16.msra.mxu0 %v20476_v38  ;;  %14325 = vmatprep.subr.bf16.mxu1 %v20481_v39  ;;  %v248_v38 = vld [vmem:[#allocation2 + $0x38] sm:$0xff] }
 0x108   : > { %14497 = vmatprep.subr.bf16.mxu0 %v20484_v40  ;;  %v264_v39 = vld [vmem:[#allocation2 + $0xb8] sm:$0xff]  ;;  %v308_v40 = vrot.slane %v24198_v32, %v307_v53 }
 0x10a   : > { %14326 = vmatpush1.bf16.msra.mxu1 %v20479_v41  ;;  %v256_v41 = vld [vmem:[#allocation2 + $0x78] sm:$0xff] }
 0x10b   : > { %14498 = vmatpush1.bf16.msra.mxu0 %v20482_v43  ;;  %14327 = vmatprep.subr.bf16.mxu1 %v20487_v44  ;;  %v340_v43 = vrot.slane %v24202_v34, %v307_v53  ;;  %v361_v44 = vmul.f32 %v296_v33, %v245_v25  ;;  %v20575_v25 = vld [vmem:[#allocation7 + $0x1dd0] ss:$72 sps:$4 sm:$0xff]  }
 0x10c   : > { %14499 = vmatprep.subr.bf16.mxu0 %v20490_v45  ;;  %v377_v45 = vmul.f32 %v296_v33, %v261_v29  ;;  %v20578_v53 = vld [vmem:[#allocation7 + $0x41d0] ss:$72 sps:$4 sm:$0xff]   ;;  %v20581_v29 = vld [vmem:[#allocation7 + $0x1e60] ss:$72 sps:$4 sm:$0xff]  }
 0x10d   : > { %v20584_v33 = vld [vmem:[#allocation7 + $0x4260] ss:$72 sps:$4 sm:$0xff]  }
 0x10e   : > { %14328 = vmatpush1.bf16.msra.mxu1 %v20485_v46  ;;  %v369_v46 = vmul.f32 %v328_v35, %v253_v36  ;;  %v20592_v36 = vld [vmem:[#allocation7 + $0x42f4] ss:$72 sps:$4 sm:$0xff]  }
 0x10f   : > { %14500 = vmatpush1.bf16.msra.mxu0 %v20488_v47  ;;  %14329 = vmatprep.subr.bf16.mxu1 %v20493_v48  ;;  %v385_v47 = vmul.f32 %v328_v35, %v269_v37  ;;  %v272_v48 = vld [vmem:[#allocation2 + $0xf8] sm:$0xff] }
 0x110   : > { %14501 = vmatprep.subr.bf16.mxu0 %v20496_v49  ;;  %v20539_v49 = vld [vmem:[#allocation7 + $0x1a70] ss:$72 sps:$4 sm:$0xff]   ;;  %v20589_v35 = vld [vmem:[#allocation7 + $0x1ef4] ss:$72 sps:$4 sm:$0xff]  }
 0x111   : > { %v20587_v37 = vld [vmem:[#allocation7 + $0x1ef0] ss:$72 sps:$4 sm:$0xff]  }
 0x112   : > { %14330 = vmatpush1.bf16.msra.mxu1 %v20491_v50  ;;  %v20542_v50 = vld [vmem:[#allocation7 + $0x3e70] ss:$72 sps:$4 sm:$0xff]  }
 0x113   : > { %14502 = vmatpush1.bf16.msra.mxu0 %v20494_v51  ;;  %14331 = vmatprep.subr.bf16.mxu1 %v20499_v52  ;;  %v20547_v51 = vld [vmem:[#allocation7 + $0x1b04] ss:$72 sps:$4 sm:$0xff]  }
 0x114   : > { %14503 = vmatprep.subr.bf16.mxu0 %v20502_v54  ;;  %v20550_v52 = vld [vmem:[#allocation7 + $0x3f04] ss:$72 sps:$4 sm:$0xff]   ;;  %v364_v54 = vmul.f32 %v308_v40, %v248_v38  ;;  %v20590_v38 = vld [vmem:[#allocation7 + $0x42f0] ss:$72 sps:$4 sm:$0xff]  }
 0x116   : > { %14332 = vmatpush1.bf16.msra.mxu1 %v20497_v55  ;;  %v380_v55 = vmul.f32 %v308_v40, %v264_v39  ;;  %v20595_v39 = vld [vmem:[#allocation7 + $0x1f84] ss:$72 sps:$4 sm:$0xff]  }
 0x117   : > { %14504 = vmatpush1.bf16.msra.mxu0 %v20500_v56  ;;  %14333 = vmatprep.subr.bf16.mxu1 %v20505_v57  ;;  %v372_v56 = vmul.f32 %v340_v43, %v256_v41  ;;  %v388_v57 = vmul.f32 %v340_v43, %v272_v48  ;;  %v20598_v40 = vld [vmem:[#allocation7 + $0x4384] ss:$72 sps:$4 sm:$0xff]   ;;  %v20593_v41 = vld [vmem:[#allocation7 + $0x1f80] ss:$72 sps:$4 sm:$0xff]  }
 0x118   : > { %14505 = vmatprep.subr.bf16.mxu0 %v20508_v58  ;;  %v24207_v58 = vpack.c.bf16 %v377_v45, %v361_v44  ;;  %v20596_v43 = vld [vmem:[#allocation7 + $0x4380] ss:$72 sps:$4 sm:$0xff]   ;;  %v20601_v44 = vld [vmem:[#allocation7 + $0x2014] ss:$72 sps:$4 sm:$0xff]   ;;  %v20607_v48 = vld [vmem:[#allocation7 + $0x20a4] ss:$72 sps:$4 sm:$0xff]  }
 0x119   : > { %v20604_v45 = vld [vmem:[#allocation7 + $0x4414] ss:$72 sps:$4 sm:$0xff]  }
 0x11a   : > { %14334 = vmatpush1.bf16.msra.mxu1 %v20503_v60  ;;  %v24209_v60 = vpack.c.bf16 %v385_v47, %v369_v46  ;;  %v20599_v46 = vld [vmem:[#allocation7 + $0x2010] ss:$72 sps:$4 sm:$0xff]  }
 0x11b   : > { %14506 = vmatpush1.bf16.msra.mxu0 %v20506_v61  ;;  %14335 = vmatprep.subr.bf16.mxu1 %v20511_v62  ;;  %v20545_v61 = vld [vmem:[#allocation7 + $0x1b00] ss:$72 sps:$4 sm:$0xff]   ;;  %v20602_v47 = vld [vmem:[#allocation7 + $0x4410] ss:$72 sps:$4 sm:$0xff]  }
 0x11c   : > { %14507 = vmatprep.subr.bf16.mxu0 %v20514_v63  ;;  %v20548_v62 = vld [vmem:[#allocation7 + $0x3f00] ss:$72 sps:$4 sm:$0xff]   ;;  %v20553_v63 = vld [vmem:[#allocation7 + $0x1b94] ss:$72 sps:$4 sm:$0xff]  }
 0x11e   : > { %14336 = vmatpush1.bf16.msra.mxu1 %v20509_v0  ;;  %v20556_v0 = vld [vmem:[#allocation7 + $0x3f94] ss:$72 sps:$4 sm:$0xff]  }
 0x11f   : > { %14508 = vmatpush1.bf16.msra.mxu0 %v20512_v2  ;;  %14337 = vmatprep.subr.bf16.mxu1 %v20517_v5  ;;  %v24211_v2 = vpack.c.bf16 %v380_v55, %v364_v54  ;;  %v24213_v5 = vpack.c.bf16 %v388_v57, %v372_v56  ;;  %v20616_v54 = vld [vmem:[#allocation7 + $0x4534] ss:$72 sps:$4 sm:$0xff]   ;;  %v20611_v55 = vld [vmem:[#allocation7 + $0x2130] ss:$72 sps:$4 sm:$0xff]   ;;  %v20619_v57 = vld [vmem:[#allocation7 + $0x21c4] ss:$72 sps:$4 sm:$0xff]  }
 0x120   : > { %14509 = vmatprep.subr.bf16.mxu0 %v20520_v7  ;;  %v20551_v7 = vld [vmem:[#allocation7 + $0x1b90] ss:$72 sps:$4 sm:$0xff]  }
 0x121   : > { %v20614_v56 = vld [vmem:[#allocation7 + $0x4530] ss:$72 sps:$4 sm:$0xff]  }
 0x122   : > { %14338 = vmatpush1.bf16.msra.mxu1 %v20515_v8  ;;  %v20554_v8 = vld [vmem:[#allocation7 + $0x3f90] ss:$72 sps:$4 sm:$0xff]  }
 0x123   : > { %14510 = vmatpush1.bf16.msra.mxu0 %v20518_v9  ;;  %14339 = vmatprep.subr.bf16.mxu1 %v20523_v10  ;;  %v20559_v9 = vld [vmem:[#allocation7 + $0x1c24] ss:$72 sps:$4 sm:$0xff]  }
 0x124   : > { %14511 = vmatprep.subr.bf16.mxu0 %v20526_v11  ;;  %v20562_v10 = vld [vmem:[#allocation7 + $0x4024] ss:$72 sps:$4 sm:$0xff]   ;;  %v20557_v11 = vld [vmem:[#allocation7 + $0x1c20] ss:$72 sps:$4 sm:$0xff]  }
 0x126   : > { %14340 = vmatpush1.bf16.msra.mxu1 %v20521_v12  ;;  %v20560_v12 = vld [vmem:[#allocation7 + $0x4020] ss:$72 sps:$4 sm:$0xff]  }
 0x127   : > { %14512 = vmatpush1.bf16.msra.mxu0 %v20524_v14  ;;  %14341 = vmatprep.subr.bf16.mxu1 %v20529_v15  ;;  %v20565_v14 = vld [vmem:[#allocation7 + $0x1cb4] ss:$72 sps:$4 sm:$0xff]  }
 0x128   : > { %14513 = vmatprep.subr.bf16.mxu0 %v20532_v16  ;;  %v20568_v15 = vld [vmem:[#allocation7 + $0x40b4] ss:$72 sps:$4 sm:$0xff]   ;;  %v20563_v16 = vld [vmem:[#allocation7 + $0x1cb0] ss:$72 sps:$4 sm:$0xff]  }
 0x12a   : > { %14342 = vmatpush1.bf16.msra.mxu1 %v20527_v19  ;;  %v20571_v19 = vld [vmem:[#allocation7 + $0x1d44] ss:$72 sps:$4 sm:$0xff]  }
 0x12b   : > { %14514 = vmatpush1.bf16.msra.mxu0 %v20530_v20  ;;  %14343 = vmatprep.subr.bf16.mxu1 %v20535_v21  ;;  %v20574_v20 = vld [vmem:[#allocation7 + $0x4144] ss:$72 sps:$4 sm:$0xff]   ;;  %v20569_v21 = vld [vmem:[#allocation7 + $0x1d40] ss:$72 sps:$4 sm:$0xff]  }
 0x12c   : > { %14515 = vmatprep.subr.bf16.mxu0 %v20538_v22  ;;  %v20572_v22 = vld [vmem:[#allocation7 + $0x4140] ss:$72 sps:$4 sm:$0xff]  }
 0x12e   : > { %14344 = vmatpush1.bf16.msra.mxu1 %v20533_v23  ;;  %v20577_v23 = vld [vmem:[#allocation7 + $0x1dd4] ss:$72 sps:$4 sm:$0xff]  }
 0x12f   : > { %14516 = vmatpush1.bf16.msra.mxu0 %v20536_v24  ;;  %14345 = vmatprep.subr.bf16.mxu1 %v20541_v26  ;;  %v20580_v24 = vld [vmem:[#allocation7 + $0x41d4] ss:$72 sps:$4 sm:$0xff]   ;;  %v20583_v26 = vld [vmem:[#allocation7 + $0x1e64] ss:$72 sps:$4 sm:$0xff]  }
 0x130   : > { %14517 = vmatprep.subr.bf16.mxu0 %v20544_v27  ;;  %v20586_v27 = vld [vmem:[#allocation7 + $0x4264] ss:$72 sps:$4 sm:$0xff]  }
 0x132   : > { %14346 = vmatpush1.bf16.msra.mxu1 %v20539_v49  ;;  %v20610_v49 = vld [vmem:[#allocation7 + $0x44a4] ss:$72 sps:$4 sm:$0xff]  }
 0x133   : > { %14518 = vmatpush1.bf16.msra.mxu0 %v20542_v50  ;;  %14358 = vmatprep.subr.bf16.mxu1 %v20547_v51  ;;  %v20605_v50 = vld [vmem:[#allocation7 + $0x20a0] ss:$72 sps:$4 sm:$0xff]  }
 0x134   : > { %14530 = vmatprep.subr.bf16.mxu0 %v20550_v52  ;;  %v20608_v51 = vld [vmem:[#allocation7 + $0x44a0] ss:$72 sps:$4 sm:$0xff]   ;;  %v20613_v52 = vld [vmem:[#allocation7 + $0x2134] ss:$72 sps:$4 sm:$0xff]  }
 0x135   : > { %14348 = vmatmul.mubr.bf16.vlgmr.msra.gmra.mrb[0].mxu1 %v24207_v58 }
 0x136   : > { %14520 = vmatmul.mubr.bf16.vlgmr.msra.gmra.mrb[0].mxu0 %v24209_v60  ;;  %14359 = vmatpush1.bf16.msra.mxu1 %v20545_v61  ;;  %v20622_v61 = vld [vmem:[#allocation7 + $0x45c4] ss:$72 sps:$4 sm:$0xff]  }
 0x137   : > { %14531 = vmatpush1.bf16.msra.mxu0 %v20548_v62  ;;  %14360 = vmatprep.subr.bf16.mxu1 %v20553_v63  ;;  %v20617_v62 = vld [vmem:[#allocation7 + $0x21c0] ss:$72 sps:$4 sm:$0xff]  }
 0x138   : > { %14532 = vmatprep.subr.bf16.mxu0 %v20556_v0  ;;  %14390 = vmatprep.mubr.bf16.mxu1 %v24211_v2  ;;  %v20620_v63 = vld [vmem:[#allocation7 + $0x45c0] ss:$72 sps:$4 sm:$0xff]   ;;  %v20625_v0 = vld [vmem:[#allocation7 + $0x2254] ss:$72 sps:$4 sm:$0xff]  }
 0x139   : > { %14562 = vmatprep.mubr.bf16.mxu0 %v24213_v5 }
 0x13a   : > { %14361 = vmatpush1.bf16.msra.mxu1 %v20551_v7  ;;  %v20628_v7 = vld [vmem:[#allocation7 + $0x4654] ss:$72 sps:$4 sm:$0xff]  }
 0x13b   : > { %14533 = vmatpush1.bf16.msra.mxu0 %v20554_v8  ;;  %14362 = vmatprep.subr.bf16.mxu1 %v20559_v9  ;;  %v303_v8 = vsub.s32 6, %v24142_v42  ;;  %v20623_v9 = vld [vmem:[#allocation7 + $0x2250] ss:$72 sps:$4 sm:$0xff]  }
 0x13c   : > { %14534 = vmatprep.subr.bf16.mxu0 %v20562_v10  ;;  %v20626_v10 = vld [vmem:[#allocation7 + $0x4650] ss:$72 sps:$4 sm:$0xff]  }
 0x13d   : > { %v271_v42 = vld [vmem:[#allocation2 + $0xf0] sm:$0xff] }
 0x13e   : > { %14363 = vmatpush1.bf16.msra.mxu1 %v20557_v11  ;;  %v20631_v11 = vld [vmem:[#allocation7 + $0x22e4] ss:$72 sps:$4 sm:$0xff]  }
 0x13f   : > { %14535 = vmatpush1.bf16.msra.mxu0 %v20560_v12  ;;  %14364 = vmatprep.subr.bf16.mxu1 %v20565_v14  ;;  %v20634_v12 = vld [vmem:[#allocation7 + $0x46e4] ss:$72 sps:$4 sm:$0xff]   ;;  %v20629_v14 = vld [vmem:[#allocation7 + $0x22e0] ss:$72 sps:$4 sm:$0xff]  }
 0x140   : > { %14536 = vmatprep.subr.bf16.mxu0 %v20568_v15  ;;  %v20632_v15 = vld [vmem:[#allocation7 + $0x46e0] ss:$72 sps:$4 sm:$0xff]  }
 0x142   : > { %14365 = vmatpush1.bf16.msra.mxu1 %v20563_v16  ;;  %v247_v16 = vld [vmem:[#allocation2 + $0x30] sm:$0xff] }
 0x143   : > { %14537 = vmatpush1.bf16.msra.mxu0 %v20566_v18  ;;  %14366 = vmatprep.subr.bf16.mxu1 %v20571_v19  ;;  %v263_v18 = vld [vmem:[#allocation2 + $0xb0] sm:$0xff]  ;;  %v304_v19 = vrot.slane %v24198_v32, %v303_v8 }
 0x144   : > { %14538 = vmatprep.subr.bf16.mxu0 %v20574_v20  ;;  %v336_v20 = vrot.slane %v24202_v34, %v303_v8  ;;  %v20643_v32 = vld [vmem:[#allocation7 + $0xc] ss:$72 sps:$4 sm:$0xff]   ;;  %v20680_v8 = vld [vmem:[#allocation7 + $0x370] ss:$72 sps:$4 sm:$0xff]  }
 0x145   : > { %v20646_v34 = vld [vmem:[#allocation7 + $0x14] ss:$72 sps:$4 sm:$0xff]  }
 0x146   : > { %14367 = vmatpush1.bf16.msra.mxu1 %v20569_v21  ;;  %v255_v21 = vld [vmem:[#allocation2 + $0x70] sm:$0xff] }
 0x147   : > { %14539 = vmatpush1.bf16.msra.mxu0 %v20572_v22  ;;  %14368 = vmatprep.subr.bf16.mxu1 %v20577_v23  ;;  %v20637_v22 = vld [vmem:[#allocation7 + $0x2374] ss:$72 sps:$4 sm:$0xff]  }
 0x148   : > { %14540 = vmatprep.subr.bf16.mxu0 %v20580_v24  ;;  %v20640_v23 = vld [vmem:[#allocation7 + $0x4774] ss:$72 sps:$4 sm:$0xff]   ;;  %v363_v24 = vmul.f32 %v304_v19, %v247_v16  ;;  %v20689_v16 = vld [vmem:[#allocation7 + $0x488] ss:$72 sps:$4 sm:$0xff]  }
 0x14a   : > { %14369 = vmatpush1.bf16.msra.mxu1 %v20575_v25  ;;  %v379_v25 = vmul.f32 %v304_v19, %v263_v18  ;;  %v20692_v18 = vld [vmem:[#allocation7 + $0x490] ss:$72 sps:$4 sm:$0xff]   ;;  %v20697_v19 = vld [vmem:[#allocation7 + $0x51c] ss:$72 sps:$4 sm:$0xff]  }
 0x14b   : > { %14541 = vmatpush1.bf16.msra.mxu0 %v20578_v53  ;;  %14370 = vmatprep.subr.bf16.mxu1 %v20583_v26  ;;  %v371_v53 = vmul.f32 %v336_v20, %v255_v21  ;;  %v387_v26 = vmul.f32 %v336_v20, %v271_v42  ;;  %v20700_v20 = vld [vmem:[#allocation7 + $0x524] ss:$72 sps:$4 sm:$0xff]   ;;  %v20695_v21 = vld [vmem:[#allocation7 + $0x518] ss:$72 sps:$4 sm:$0xff]  }
 0x14c   : > { %14542 = vmatprep.subr.bf16.mxu0 %v20586_v27  ;;  %v20635_v27 = vld [vmem:[#allocation7 + $0x2370] ss:$72 sps:$4 sm:$0xff]   ;;  %v20698_v42 = vld [vmem:[#allocation7 + $0x520] ss:$72 sps:$4 sm:$0xff]  }
 0x14e   : > { %14371 = vmatpush1.bf16.msra.mxu1 %v20581_v29  ;;  %v20638_v29 = vld [vmem:[#allocation7 + $0x4770] ss:$72 sps:$4 sm:$0xff]  }
 0x14f   : > { %14543 = vmatpush1.bf16.msra.mxu0 %v20584_v33  ;;  %14372 = vmatprep.subr.bf16.mxu1 %v20589_v35  ;;  %v24222_v33 = vpack.c.bf16 %v379_v25, %v363_v24  ;;  %v24224_v35 = vpack.c.bf16 %v387_v26, %v371_v53  ;;  %v20701_v24 = vld [vmem:[#allocation7 + $0x5a8] ss:$72 sps:$4 sm:$0xff]   ;;  %v20709_v53 = vld [vmem:[#allocation7 + $0x63c] ss:$72 sps:$4 sm:$0xff]  }
 0x150   : > { %14544 = vmatprep.subr.bf16.mxu0 %v20592_v36  ;;  %v20641_v36 = vld [vmem:[#allocation7 + $0x8] ss:$72 sps:$4 sm:$0xff]   ;;  %v20712_v26 = vld [vmem:[#allocation7 + $0x644] ss:$72 sps:$4 sm:$0xff]  }
 0x151   : > { %v20704_v25 = vld [vmem:[#allocation7 + $0x5b0] ss:$72 sps:$4 sm:$0xff]  }
 0x152   : > { %14373 = vmatpush1.bf16.msra.mxu1 %v20587_v37  ;;  %v20644_v37 = vld [vmem:[#allocation7 + $0x10] ss:$72 sps:$4 sm:$0xff]  }
 0x153   : > { %14545 = vmatpush1.bf16.msra.mxu0 %v20590_v38  ;;  %14374 = vmatprep.subr.bf16.mxu1 %v20595_v39  ;;  %v20649_v38 = vld [vmem:[#allocation7 + $0x9c] ss:$72 sps:$4 sm:$0xff]  }
 0x154   : > { %14546 = vmatprep.subr.bf16.mxu0 %v20598_v40  ;;  %v20652_v39 = vld [vmem:[#allocation7 + $0xa4] ss:$72 sps:$4 sm:$0xff]   ;;  %v20647_v40 = vld [vmem:[#allocation7 + $0x98] ss:$72 sps:$4 sm:$0xff]  }
 0x156   : > { %14375 = vmatpush1.bf16.msra.mxu1 %v20593_v41  ;;  %v20650_v41 = vld [vmem:[#allocation7 + $0xa0] ss:$72 sps:$4 sm:$0xff]  }
 0x157   : > { %14547 = vmatpush1.bf16.msra.mxu0 %v20596_v43  ;;  %14376 = vmatprep.subr.bf16.mxu1 %v20601_v44  ;;  %v20655_v43 = vld [vmem:[#allocation7 + $0x12c] ss:$72 sps:$4 sm:$0xff]  }
 0x158   : > { %14548 = vmatprep.subr.bf16.mxu0 %v20604_v45  ;;  %v20658_v44 = vld [vmem:[#allocation7 + $0x134] ss:$72 sps:$4 sm:$0xff]   ;;  %v20653_v45 = vld [vmem:[#allocation7 + $0x128] ss:$72 sps:$4 sm:$0xff]  }
 0x15a   : > { %14377 = vmatpush1.bf16.msra.mxu1 %v20599_v46  ;;  %v20656_v46 = vld [vmem:[#allocation7 + $0x130] ss:$72 sps:$4 sm:$0xff]  }
 0x15b   : > { %14549 = vmatpush1.bf16.msra.mxu0 %v20602_v47  ;;  %14378 = vmatprep.subr.bf16.mxu1 %v20607_v48  ;;  %v20661_v47 = vld [vmem:[#allocation7 + $0x1bc] ss:$72 sps:$4 sm:$0xff]  }
 0x15c   : > { %14550 = vmatprep.subr.bf16.mxu0 %v20610_v49  ;;  %v20664_v48 = vld [vmem:[#allocation7 + $0x1c4] ss:$72 sps:$4 sm:$0xff]   ;;  %v20659_v49 = vld [vmem:[#allocation7 + $0x1b8] ss:$72 sps:$4 sm:$0xff]  }
 0x15e   : > { %14379 = vmatpush1.bf16.msra.mxu1 %v20605_v50  ;;  %v20662_v50 = vld [vmem:[#allocation7 + $0x1c0] ss:$72 sps:$4 sm:$0xff]  }
 0x15f   : > { %14551 = vmatpush1.bf16.msra.mxu0 %v20608_v51  ;;  %14380 = vmatprep.subr.bf16.mxu1 %v20613_v52  ;;  %v20667_v51 = vld [vmem:[#allocation7 + $0x24c] ss:$72 sps:$4 sm:$0xff]  }
 0x160   : > { %14552 = vmatprep.subr.bf16.mxu0 %v20616_v54  ;;  %v20670_v52 = vld [vmem:[#allocation7 + $0x254] ss:$72 sps:$4 sm:$0xff]   ;;  %v20665_v54 = vld [vmem:[#allocation7 + $0x248] ss:$72 sps:$4 sm:$0xff]  }
 0x162   : > { %14381 = vmatpush1.bf16.msra.mxu1 %v20611_v55  ;;  %v20668_v55 = vld [vmem:[#allocation7 + $0x250] ss:$72 sps:$4 sm:$0xff]  }
 0x163   : > { %14553 = vmatpush1.bf16.msra.mxu0 %v20614_v56  ;;  %14382 = vmatprep.subr.bf16.mxu1 %v20619_v57  ;;  %v20673_v56 = vld [vmem:[#allocation7 + $0x2dc] ss:$72 sps:$4 sm:$0xff]  }
 0x164   : > { %14554 = vmatprep.subr.bf16.mxu0 %v20622_v61  ;;  %v20676_v57 = vld [vmem:[#allocation7 + $0x2e4] ss:$72 sps:$4 sm:$0xff]   ;;  %v20671_v61 = vld [vmem:[#allocation7 + $0x2d8] ss:$72 sps:$4 sm:$0xff]  }
 0x166   : > { %14383 = vmatpush1.bf16.msra.mxu1 %v20617_v62  ;;  %v20674_v62 = vld [vmem:[#allocation7 + $0x2e0] ss:$72 sps:$4 sm:$0xff]  }
 0x167   : > { %14555 = vmatpush1.bf16.msra.mxu0 %v20620_v63  ;;  %14384 = vmatprep.subr.bf16.mxu1 %v20625_v0  ;;  %v20679_v63 = vld [vmem:[#allocation7 + $0x36c] ss:$72 sps:$4 sm:$0xff]  }
 0x168   : > { %14556 = vmatprep.subr.bf16.mxu0 %v20628_v7  ;;  %v20682_v0 = vld [vmem:[#allocation7 + $0x374] ss:$72 sps:$4 sm:$0xff]   ;;  %v20677_v7 = vld [vmem:[#allocation7 + $0x368] ss:$72 sps:$4 sm:$0xff]  }
 0x16a   : > { %14385 = vmatpush1.bf16.msra.mxu1 %v20623_v9  ;;  %v20685_v9 = vld [vmem:[#allocation7 + $0x3fc] ss:$72 sps:$4 sm:$0xff]  }
 0x16b   : > { %14557 = vmatpush1.bf16.msra.mxu0 %v20626_v10  ;;  %14386 = vmatprep.subr.bf16.mxu1 %v20631_v11  ;;  %v20688_v10 = vld [vmem:[#allocation7 + $0x404] ss:$72 sps:$4 sm:$0xff]   ;;  %v20683_v11 = vld [vmem:[#allocation7 + $0x3f8] ss:$72 sps:$4 sm:$0xff]  }
 0x16c   : > { %14558 = vmatprep.subr.bf16.mxu0 %v20634_v12  ;;  %v20686_v12 = vld [vmem:[#allocation7 + $0x400] ss:$72 sps:$4 sm:$0xff]  }
 0x16e   : > { %14387 = vmatpush1.bf16.msra.mxu1 %v20629_v14  ;;  %v20691_v14 = vld [vmem:[#allocation7 + $0x48c] ss:$72 sps:$4 sm:$0xff]  }
 0x16f   : > { %14559 = vmatpush1.bf16.msra.mxu0 %v20632_v15  ;;  %14388 = vmatprep.subr.bf16.mxu1 %v20637_v22  ;;  %v20694_v15 = vld [vmem:[#allocation7 + $0x494] ss:$72 sps:$4 sm:$0xff]  }
 0x170   : > { %14560 = vmatprep.subr.bf16.mxu0 %v20640_v23  ;;  %v20703_v22 = vld [vmem:[#allocation7 + $0x5ac] ss:$72 sps:$4 sm:$0xff]  }
 0x171   : > { %v20706_v23 = vld [vmem:[#allocation7 + $0x5b4] ss:$72 sps:$4 sm:$0xff]  }
 0x172   : > { %14389 = vmatpush1.bf16.msra.mxu1 %v20635_v27  ;;  %v20707_v27 = vld [vmem:[#allocation7 + $0x638] ss:$72 sps:$4 sm:$0xff]  }
 0x173   : > { %14561 = vmatpush1.bf16.msra.mxu0 %v20638_v29  ;;  %14573 = vmatprep.subr.bf16.mxu1 %v20643_v32  ;;  %v20710_v29 = vld [vmem:[#allocation7 + $0x640] ss:$72 sps:$4 sm:$0xff]   ;;  %v20715_v32 = vld [vmem:[#allocation7 + $0x6cc] ss:$72 sps:$4 sm:$0xff]  }
 0x174   : > { %14917 = vmatprep.subr.bf16.mxu0 %v20646_v34  ;;  %v20718_v34 = vld [vmem:[#allocation7 + $0x6d4] ss:$72 sps:$4 sm:$0xff]  }
 0x175   : > { %14391 = vmatmul.mubr.bf16.vlgmr.msra.gmra.mrb[0].mxu1 %v24222_v33 }
 0x176   : > { %14563 = vmatmul.mubr.bf16.vlgmr.msra.gmra.mrb[0].mxu0 %v24224_v35  ;;  %14574 = vmatpush1.bf16.msra.mxu1 %v20641_v36  ;;  %v20713_v36 = vld [vmem:[#allocation7 + $0x6c8] ss:$72 sps:$4 sm:$0xff]  }
 0x177   : > { %14918 = vmatpush1.bf16.msra.mxu0 %v20644_v37  ;;  %14575 = vmatprep.subr.bf16.mxu1 %v20649_v38  ;;  %v20716_v37 = vld [vmem:[#allocation7 + $0x6d0] ss:$72 sps:$4 sm:$0xff]   ;;  %v20721_v38 = vld [vmem:[#allocation7 + $0x75c] ss:$72 sps:$4 sm:$0xff]  }
 0x178   : > { %14919 = vmatprep.subr.bf16.mxu0 %v20652_v39  ;;  %14605 = vmatprep.mubr.bf16.mxu1 %v24153_v1  ;;  %v20724_v39 = vld [vmem:[#allocation7 + $0x764] ss:$72 sps:$4 sm:$0xff]  }
 0x179   : > { %14949 = vmatprep.mubr.bf16.mxu0 %v24153_v1 }
 0x17a   : > { %14576 = vmatpush1.bf16.msra.mxu1 %v20647_v40  ;;  %v20719_v40 = vld [vmem:[#allocation7 + $0x758] ss:$72 sps:$4 sm:$0xff]  }
 0x17b   : > { %14920 = vmatpush1.bf16.msra.mxu0 %v20650_v41  ;;  %14577 = vmatprep.subr.bf16.mxu1 %v20655_v43  ;;  %v20722_v41 = vld [vmem:[#allocation7 + $0x760] ss:$72 sps:$4 sm:$0xff]   ;;  %v20727_v43 = vld [vmem:[#allocation7 + $0x7ec] ss:$72 sps:$4 sm:$0xff]  }
 0x17c   : > { %14921 = vmatprep.subr.bf16.mxu0 %v20658_v44  ;;  %v20730_v44 = vld [vmem:[#allocation7 + $0x7f4] ss:$72 sps:$4 sm:$0xff]  }
 0x17e   : > { %14578 = vmatpush1.bf16.msra.mxu1 %v20653_v45  ;;  %v20725_v45 = vld [vmem:[#allocation7 + $0x7e8] ss:$72 sps:$4 sm:$0xff]  }
 0x17f   : > { %14922 = vmatpush1.bf16.msra.mxu0 %v20656_v46  ;;  %14579 = vmatprep.subr.bf16.mxu1 %v20661_v47  ;;  %v20728_v46 = vld [vmem:[#allocation7 + $0x7f0] ss:$72 sps:$4 sm:$0xff]   ;;  %v20733_v47 = vld [vmem:[#allocation7 + $0x87c] ss:$72 sps:$4 sm:$0xff]  }
 0x180   : > { %14923 = vmatprep.subr.bf16.mxu0 %v20664_v48  ;;  %v20736_v48 = vld [vmem:[#allocation7 + $0x884] ss:$72 sps:$4 sm:$0xff]  }
 0x182   : > { %14580 = vmatpush1.bf16.msra.mxu1 %v20659_v49  ;;  %v20731_v49 = vld [vmem:[#allocation7 + $0x878] ss:$72 sps:$4 sm:$0xff]  }
 0x183   : > { %14924 = vmatpush1.bf16.msra.mxu0 %v20662_v50  ;;  %14581 = vmatprep.subr.bf16.mxu1 %v20667_v51  ;;  %v20734_v50 = vld [vmem:[#allocation7 + $0x880] ss:$72 sps:$4 sm:$0xff]   ;;  %v20739_v51 = vld [vmem:[#allocation7 + $0x90c] ss:$72 sps:$4 sm:$0xff]  }
 0x184   : > { %14925 = vmatprep.subr.bf16.mxu0 %v20670_v52  ;;  %v20742_v52 = vld [vmem:[#allocation7 + $0x914] ss:$72 sps:$4 sm:$0xff]  }
 0x186   : > { %14582 = vmatpush1.bf16.msra.mxu1 %v20665_v54  ;;  %v20737_v54 = vld [vmem:[#allocation7 + $0x908] ss:$72 sps:$4 sm:$0xff]  }
 0x187   : > { %14926 = vmatpush1.bf16.msra.mxu0 %v20668_v55  ;;  %14583 = vmatprep.subr.bf16.mxu1 %v20673_v56  ;;  %v20740_v55 = vld [vmem:[#allocation7 + $0x910] ss:$72 sps:$4 sm:$0xff]   ;;  %v20745_v56 = vld [vmem:[#allocation7 + $0x99c] ss:$72 sps:$4 sm:$0xff]  }
 0x188   : > { %14927 = vmatprep.subr.bf16.mxu0 %v20676_v57  ;;  %v20748_v57 = vld [vmem:[#allocation7 + $0x9a4] ss:$72 sps:$4 sm:$0xff]  }
 0x18a   : > { %14584 = vmatpush1.bf16.msra.mxu1 %v20671_v61  ;;  %v20743_v61 = vld [vmem:[#allocation7 + $0x998] ss:$72 sps:$4 sm:$0xff]  }
 0x18b   : > { %14928 = vmatpush1.bf16.msra.mxu0 %v20674_v62  ;;  %14585 = vmatprep.subr.bf16.mxu1 %v20679_v63  ;;  %v20746_v62 = vld [vmem:[#allocation7 + $0x9a0] ss:$72 sps:$4 sm:$0xff]   ;;  %v20751_v63 = vld [vmem:[#allocation7 + $0xa2c] ss:$72 sps:$4 sm:$0xff]  }
 0x18c   : > { %14929 = vmatprep.subr.bf16.mxu0 %v20682_v0  ;;  %v20754_v0 = vld [vmem:[#allocation7 + $0xa34] ss:$72 sps:$4 sm:$0xff]  }
 0x18e   : > { %14586 = vmatpush1.bf16.msra.mxu1 %v20677_v7  ;;  %v20749_v7 = vld [vmem:[#allocation7 + $0xa28] ss:$72 sps:$4 sm:$0xff]  }
 0x18f   : > { %14930 = vmatpush1.bf16.msra.mxu0 %v20680_v8  ;;  %14587 = vmatprep.subr.bf16.mxu1 %v20685_v9  ;;  %v20752_v8 = vld [vmem:[#allocation7 + $0xa30] ss:$72 sps:$4 sm:$0xff]   ;;  %v20757_v9 = vld [vmem:[#allocation7 + $0xabc] ss:$72 sps:$4 sm:$0xff]  }
 0x190   : > { %14931 = vmatprep.subr.bf16.mxu0 %v20688_v10  ;;  %v20760_v10 = vld [vmem:[#allocation7 + $0xac4] ss:$72 sps:$4 sm:$0xff]  }
 0x192   : > { %14588 = vmatpush1.bf16.msra.mxu1 %v20683_v11  ;;  %v20755_v11 = vld [vmem:[#allocation7 + $0xab8] ss:$72 sps:$4 sm:$0xff]  }
 0x193   : > { %14932 = vmatpush1.bf16.msra.mxu0 %v20686_v12  ;;  %14589 = vmatprep.subr.bf16.mxu1 %v20691_v14  ;;  %v20758_v12 = vld [vmem:[#allocation7 + $0xac0] ss:$72 sps:$4 sm:$0xff]   ;;  %v20763_v14 = vld [vmem:[#allocation7 + $0xb4c] ss:$72 sps:$4 sm:$0xff]  }
 0x194   : > { %14933 = vmatprep.subr.bf16.mxu0 %v20694_v15  ;;  %v20766_v15 = vld [vmem:[#allocation7 + $0xb54] ss:$72 sps:$4 sm:$0xff]  }
 0x196   : > { %14590 = vmatpush1.bf16.msra.mxu1 %v20689_v16  ;;  %v20761_v16 = vld [vmem:[#allocation7 + $0xb48] ss:$72 sps:$4 sm:$0xff]  }
 0x197   : > { %14934 = vmatpush1.bf16.msra.mxu0 %v20692_v18  ;;  %14591 = vmatprep.subr.bf16.mxu1 %v20697_v19  ;;  %v20764_v18 = vld [vmem:[#allocation7 + $0xb50] ss:$72 sps:$4 sm:$0xff]   ;;  %v20769_v19 = vld [vmem:[#allocation7 + $0xbdc] ss:$72 sps:$4 sm:$0xff]  }
 0x198   : > { %14935 = vmatprep.subr.bf16.mxu0 %v20700_v20  ;;  %v20772_v20 = vld [vmem:[#allocation7 + $0xbe4] ss:$72 sps:$4 sm:$0xff]  }
 0x19a   : > { %14592 = vmatpush1.bf16.msra.mxu1 %v20695_v21  ;;  %v20767_v21 = vld [vmem:[#allocation7 + $0xbd8] ss:$72 sps:$4 sm:$0xff]  }
 0x19b   : > { %14936 = vmatpush1.bf16.msra.mxu0 %v20698_v42  ;;  %14593 = vmatprep.subr.bf16.mxu1 %v20703_v22  ;;  %v20770_v42 = vld [vmem:[#allocation7 + $0xbe0] ss:$72 sps:$4 sm:$0xff]   ;;  %v20775_v22 = vld [vmem:[#allocation7 + $0xc6c] ss:$72 sps:$4 sm:$0xff]  }
 0x19c   : > { %14937 = vmatprep.subr.bf16.mxu0 %v20706_v23  ;;  %v20778_v23 = vld [vmem:[#allocation7 + $0xc74] ss:$72 sps:$4 sm:$0xff]  }
 0x19e   : > { %14594 = vmatpush1.bf16.msra.mxu1 %v20701_v24  ;;  %v20773_v24 = vld [vmem:[#allocation7 + $0xc68] ss:$72 sps:$4 sm:$0xff]  }
 0x19f   : > { %14938 = vmatpush1.bf16.msra.mxu0 %v20704_v25  ;;  %14595 = vmatprep.subr.bf16.mxu1 %v20709_v53  ;;  %v20776_v25 = vld [vmem:[#allocation7 + $0xc70] ss:$72 sps:$4 sm:$0xff]   ;;  %v20781_v53 = vld [vmem:[#allocation7 + $0xcfc] ss:$72 sps:$4 sm:$0xff]  }
 0x1a0   : > { %14939 = vmatprep.subr.bf16.mxu0 %v20712_v26  ;;  %v20784_v26 = vld [vmem:[#allocation7 + $0xd04] ss:$72 sps:$4 sm:$0xff]  }
 0x1a2   : > { %14596 = vmatpush1.bf16.msra.mxu1 %v20707_v27  ;;  %v20779_v27 = vld [vmem:[#allocation7 + $0xcf8] ss:$72 sps:$4 sm:$0xff]  }
 0x1a3   : > { %14940 = vmatpush1.bf16.msra.mxu0 %v20710_v29  ;;  %14597 = vmatprep.subr.bf16.mxu1 %v20715_v32  ;;  %v20782_v29 = vld [vmem:[#allocation7 + $0xd00] ss:$72 sps:$4 sm:$0xff]   ;;  %v20787_v32 = vld [vmem:[#allocation7 + $0xd8c] ss:$72 sps:$4 sm:$0xff]  }
 0x1a4   : > { %14941 = vmatprep.subr.bf16.mxu0 %v20718_v34  ;;  %v20790_v34 = vld [vmem:[#allocation7 + $0xd94] ss:$72 sps:$4 sm:$0xff]  }
 0x1a6   : > { %14598 = vmatpush1.bf16.msra.mxu1 %v20713_v36  ;;  %v20785_v36 = vld [vmem:[#allocation7 + $0xd88] ss:$72 sps:$4 sm:$0xff]  }
 0x1a7   : > { %14942 = vmatpush1.bf16.msra.mxu0 %v20716_v37  ;;  %14599 = vmatprep.subr.bf16.mxu1 %v20721_v38  ;;  %v20788_v37 = vld [vmem:[#allocation7 + $0xd90] ss:$72 sps:$4 sm:$0xff]   ;;  %v20793_v38 = vld [vmem:[#allocation7 + $0xe1c] ss:$72 sps:$4 sm:$0xff]  }
 0x1a8   : > { %14943 = vmatprep.subr.bf16.mxu0 %v20724_v39  ;;  %v20796_v39 = vld [vmem:[#allocation7 + $0xe24] ss:$72 sps:$4 sm:$0xff]  }
 0x1aa   : > { %14600 = vmatpush1.bf16.msra.mxu1 %v20719_v40  ;;  %v20791_v40 = vld [vmem:[#allocation7 + $0xe18] ss:$72 sps:$4 sm:$0xff]  }
 0x1ab   : > { %14944 = vmatpush1.bf16.msra.mxu0 %v20722_v41  ;;  %14601 = vmatprep.subr.bf16.mxu1 %v20727_v43  ;;  %v20794_v41 = vld [vmem:[#allocation7 + $0xe20] ss:$72 sps:$4 sm:$0xff]   ;;  %v20799_v43 = vld [vmem:[#allocation7 + $0xeac] ss:$72 sps:$4 sm:$0xff]  }
 0x1ac   : > { %14945 = vmatprep.subr.bf16.mxu0 %v20730_v44  ;;  %v20802_v44 = vld [vmem:[#allocation7 + $0xeb4] ss:$72 sps:$4 sm:$0xff]  }
 0x1ae   : > { %14602 = vmatpush1.bf16.msra.mxu1 %v20725_v45  ;;  %v20797_v45 = vld [vmem:[#allocation7 + $0xea8] ss:$72 sps:$4 sm:$0xff]  }
 0x1af   : > { %14946 = vmatpush1.bf16.msra.mxu0 %v20728_v46  ;;  %14603 = vmatprep.subr.bf16.mxu1 %v20733_v47  ;;  %v20800_v46 = vld [vmem:[#allocation7 + $0xeb0] ss:$72 sps:$4 sm:$0xff]   ;;  %v20805_v47 = vld [vmem:[#allocation7 + $0xf3c] ss:$72 sps:$4 sm:$0xff]  }
 0x1b0   : > { %14947 = vmatprep.subr.bf16.mxu0 %v20736_v48  ;;  %v20808_v48 = vld [vmem:[#allocation7 + $0xf44] ss:$72 sps:$4 sm:$0xff]  }
 0x1b2   : > { %14604 = vmatpush1.bf16.msra.mxu1 %v20731_v49  ;;  %v20803_v49 = vld [vmem:[#allocation7 + $0xf38] ss:$72 sps:$4 sm:$0xff]  }
 0x1b3   : > { %14948 = vmatpush1.bf16.msra.mxu0 %v20734_v50  ;;  %14616 = vmatprep.subr.bf16.mxu1 %v20739_v51  ;;  %v20806_v50 = vld [vmem:[#allocation7 + $0xf40] ss:$72 sps:$4 sm:$0xff]   ;;  %v20811_v51 = vld [vmem:[#allocation7 + $0xfcc] ss:$72 sps:$4 sm:$0xff]  }
 0x1b4   : > { %14960 = vmatprep.subr.bf16.mxu0 %v20742_v52  ;;  %v20814_v52 = vld [vmem:[#allocation7 + $0xfd4] ss:$72 sps:$4 sm:$0xff]  }
 0x1b5   : > { %14606 = vmatmul.mubr.bf16.vlgmr.msra.gmra.mrb[4].mxu1 %v24162_v30 }
 0x1b6   : > { %14950 = vmatmul.mubr.bf16.vlgmr.msra.gmra.mrb[4].mxu0 %v24162_v30  ;;  %14617 = vmatpush1.bf16.msra.mxu1 %v20737_v54  ;;  %v20809_v54 = vld [vmem:[#allocation7 + $0xfc8] ss:$72 sps:$4 sm:$0xff]  }
 0x1b7   : > { %14961 = vmatpush1.bf16.msra.mxu0 %v20740_v55  ;;  %14618 = vmatprep.subr.bf16.mxu1 %v20745_v56  ;;  %v20812_v55 = vld [vmem:[#allocation7 + $0xfd0] ss:$72 sps:$4 sm:$0xff]   ;;  %v20817_v56 = vld [vmem:[#allocation7 + $0x105c] ss:$72 sps:$4 sm:$0xff]  }
 0x1b8   : > { %14962 = vmatprep.subr.bf16.mxu0 %v20748_v57  ;;  %14648 = vmatprep.mubr.bf16.mxu1 %v24171_v13  ;;  %v20820_v57 = vld [vmem:[#allocation7 + $0x1064] ss:$72 sps:$4 sm:$0xff]  }
 0x1b9   : > { %14992 = vmatprep.mubr.bf16.mxu0 %v24171_v13 }
 0x1ba   : > { %14619 = vmatpush1.bf16.msra.mxu1 %v20743_v61  ;;  %v20815_v61 = vld [vmem:[#allocation7 + $0x1058] ss:$72 sps:$4 sm:$0xff]  }
 0x1bb   : > { %14963 = vmatpush1.bf16.msra.mxu0 %v20746_v62  ;;  %14620 = vmatprep.subr.bf16.mxu1 %v20751_v63  ;;  %v20818_v62 = vld [vmem:[#allocation7 + $0x1060] ss:$72 sps:$4 sm:$0xff]   ;;  %v20823_v63 = vld [vmem:[#allocation7 + $0x10ec] ss:$72 sps:$4 sm:$0xff]  }
 0x1bc   : > { %14964 = vmatprep.subr.bf16.mxu0 %v20754_v0  ;;  %v20826_v0 = vld [vmem:[#allocation7 + $0x10f4] ss:$72 sps:$4 sm:$0xff]  }
 0x1be   : > { %14621 = vmatpush1.bf16.msra.mxu1 %v20749_v7  ;;  %v20821_v7 = vld [vmem:[#allocation7 + $0x10e8] ss:$72 sps:$4 sm:$0xff]  }
 0x1bf   : > { %14965 = vmatpush1.bf16.msra.mxu0 %v20752_v8  ;;  %14622 = vmatprep.subr.bf16.mxu1 %v20757_v9  ;;  %v20824_v8 = vld [vmem:[#allocation7 + $0x10f0] ss:$72 sps:$4 sm:$0xff]   ;;  %v20829_v9 = vld [vmem:[#allocation7 + $0x117c] ss:$72 sps:$4 sm:$0xff]  }
 0x1c0   : > { %14966 = vmatprep.subr.bf16.mxu0 %v20760_v10  ;;  %v20832_v10 = vld [vmem:[#allocation7 + $0x1184] ss:$72 sps:$4 sm:$0xff]  }
 0x1c2   : > { %14623 = vmatpush1.bf16.msra.mxu1 %v20755_v11  ;;  %v20827_v11 = vld [vmem:[#allocation7 + $0x1178] ss:$72 sps:$4 sm:$0xff]  }
 0x1c3   : > { %14967 = vmatpush1.bf16.msra.mxu0 %v20758_v12  ;;  %14624 = vmatprep.subr.bf16.mxu1 %v20763_v14  ;;  %v20830_v12 = vld [vmem:[#allocation7 + $0x1180] ss:$72 sps:$4 sm:$0xff]   ;;  %v20835_v14 = vld [vmem:[#allocation7 + $0x120c] ss:$72 sps:$4 sm:$0xff]  }
 0x1c4   : > { %14968 = vmatprep.subr.bf16.mxu0 %v20766_v15  ;;  %v20838_v15 = vld [vmem:[#allocation7 + $0x1214] ss:$72 sps:$4 sm:$0xff]  }
 0x1c6   : > { %14625 = vmatpush1.bf16.msra.mxu1 %v20761_v16  ;;  %v20833_v16 = vld [vmem:[#allocation7 + $0x1208] ss:$72 sps:$4 sm:$0xff]  }
 0x1c7   : > { %14969 = vmatpush1.bf16.msra.mxu0 %v20764_v18  ;;  %14626 = vmatprep.subr.bf16.mxu1 %v20769_v19  ;;  %v20836_v18 = vld [vmem:[#allocation7 + $0x1210] ss:$72 sps:$4 sm:$0xff]   ;;  %v20841_v19 = vld [vmem:[#allocation7 + $0x129c] ss:$72 sps:$4 sm:$0xff]  }
 0x1c8   : > { %14970 = vmatprep.subr.bf16.mxu0 %v20772_v20  ;;  %v20844_v20 = vld [vmem:[#allocation7 + $0x12a4] ss:$72 sps:$4 sm:$0xff]  }
 0x1ca   : > { %14627 = vmatpush1.bf16.msra.mxu1 %v20767_v21  ;;  %v20839_v21 = vld [vmem:[#allocation7 + $0x1298] ss:$72 sps:$4 sm:$0xff]  }
 0x1cb   : > { %14971 = vmatpush1.bf16.msra.mxu0 %v20770_v42  ;;  %14628 = vmatprep.subr.bf16.mxu1 %v20775_v22  ;;  %v20842_v42 = vld [vmem:[#allocation7 + $0x12a0] ss:$72 sps:$4 sm:$0xff]   ;;  %v20847_v22 = vld [vmem:[#allocation7 + $0x132c] ss:$72 sps:$4 sm:$0xff]  }
 0x1cc   : > { %14972 = vmatprep.subr.bf16.mxu0 %v20778_v23  ;;  %v20850_v23 = vld [vmem:[#allocation7 + $0x1334] ss:$72 sps:$4 sm:$0xff]  }
 0x1ce   : > { %14629 = vmatpush1.bf16.msra.mxu1 %v20773_v24  ;;  %v20845_v24 = vld [vmem:[#allocation7 + $0x1328] ss:$72 sps:$4 sm:$0xff]  }
 0x1cf   : > { %14973 = vmatpush1.bf16.msra.mxu0 %v20776_v25  ;;  %14630 = vmatprep.subr.bf16.mxu1 %v20781_v53  ;;  %v20848_v25 = vld [vmem:[#allocation7 + $0x1330] ss:$72 sps:$4 sm:$0xff]   ;;  %v20853_v53 = vld [vmem:[#allocation7 + $0x13bc] ss:$72 sps:$4 sm:$0xff]  }
 0x1d0   : > { %14974 = vmatprep.subr.bf16.mxu0 %v20784_v26  ;;  %v20856_v26 = vld [vmem:[#allocation7 + $0x13c4] ss:$72 sps:$4 sm:$0xff]  }
 0x1d2   : > { %14631 = vmatpush1.bf16.msra.mxu1 %v20779_v27  ;;  %v20851_v27 = vld [vmem:[#allocation7 + $0x13b8] ss:$72 sps:$4 sm:$0xff]  }
 0x1d3   : > { %14975 = vmatpush1.bf16.msra.mxu0 %v20782_v29  ;;  %14632 = vmatprep.subr.bf16.mxu1 %v20787_v32  ;;  %v20854_v29 = vld [vmem:[#allocation7 + $0x13c0] ss:$72 sps:$4 sm:$0xff]   ;;  %v20859_v32 = vld [vmem:[#allocation7 + $0x144c] ss:$72 sps:$4 sm:$0xff]  }
 0x1d4   : > { %14976 = vmatprep.subr.bf16.mxu0 %v20790_v34  ;;  %v20862_v34 = vld [vmem:[#allocation7 + $0x1454] ss:$72 sps:$4 sm:$0xff]  }
 0x1d6   : > { %14633 = vmatpush1.bf16.msra.mxu1 %v20785_v36  ;;  %v20857_v36 = vld [vmem:[#allocation7 + $0x1448] ss:$72 sps:$4 sm:$0xff]  }
 0x1d7   : > { %14977 = vmatpush1.bf16.msra.mxu0 %v20788_v37  ;;  %14634 = vmatprep.subr.bf16.mxu1 %v20793_v38  ;;  %v20860_v37 = vld [vmem:[#allocation7 + $0x1450] ss:$72 sps:$4 sm:$0xff]   ;;  %v20865_v38 = vld [vmem:[#allocation7 + $0x14dc] ss:$72 sps:$4 sm:$0xff]  }
 0x1d8   : > { %14978 = vmatprep.subr.bf16.mxu0 %v20796_v39  ;;  %v20868_v39 = vld [vmem:[#allocation7 + $0x14e4] ss:$72 sps:$4 sm:$0xff]  }
 0x1da   : > { %14635 = vmatpush1.bf16.msra.mxu1 %v20791_v40  ;;  %v20863_v40 = vld [vmem:[#allocation7 + $0x14d8] ss:$72 sps:$4 sm:$0xff]  }
 0x1db   : > { %14979 = vmatpush1.bf16.msra.mxu0 %v20794_v41  ;;  %14636 = vmatprep.subr.bf16.mxu1 %v20799_v43  ;;  %v20866_v41 = vld [vmem:[#allocation7 + $0x14e0] ss:$72 sps:$4 sm:$0xff]   ;;  %v20871_v43 = vld [vmem:[#allocation7 + $0x156c] ss:$72 sps:$4 sm:$0xff]  }
 0x1dc   : > { %14980 = vmatprep.subr.bf16.mxu0 %v20802_v44  ;;  %v20874_v44 = vld [vmem:[#allocation7 + $0x1574] ss:$72 sps:$4 sm:$0xff]  }
 0x1de   : > { %14637 = vmatpush1.bf16.msra.mxu1 %v20797_v45  ;;  %v20869_v45 = vld [vmem:[#allocation7 + $0x1568] ss:$72 sps:$4 sm:$0xff]  }
 0x1df   : > { %14981 = vmatpush1.bf16.msra.mxu0 %v20800_v46  ;;  %14638 = vmatprep.subr.bf16.mxu1 %v20805_v47  ;;  %v20872_v46 = vld [vmem:[#allocation7 + $0x1570] ss:$72 sps:$4 sm:$0xff]   ;;  %v20877_v47 = vld [vmem:[#allocation7 + $0x15fc] ss:$72 sps:$4 sm:$0xff]  }
 0x1e0   : > { %14982 = vmatprep.subr.bf16.mxu0 %v20808_v48  ;;  %v20880_v48 = vld [vmem:[#allocation7 + $0x1604] ss:$72 sps:$4 sm:$0xff]  }
 0x1e2   : > { %14639 = vmatpush1.bf16.msra.mxu1 %v20803_v49  ;;  %v20875_v49 = vld [vmem:[#allocation7 + $0x15f8] ss:$72 sps:$4 sm:$0xff]  }
 0x1e3   : > { %14983 = vmatpush1.bf16.msra.mxu0 %v20806_v50  ;;  %14640 = vmatprep.subr.bf16.mxu1 %v20811_v51  ;;  %v20878_v50 = vld [vmem:[#allocation7 + $0x1600] ss:$72 sps:$4 sm:$0xff]   ;;  %v20883_v51 = vld [vmem:[#allocation7 + $0x168c] ss:$72 sps:$4 sm:$0xff]  }
 0x1e4   : > { %14984 = vmatprep.subr.bf16.mxu0 %v20814_v52  ;;  %v20886_v52 = vld [vmem:[#allocation7 + $0x1694] ss:$72 sps:$4 sm:$0xff]  }
 0x1e6   : > { %14641 = vmatpush1.bf16.msra.mxu1 %v20809_v54  ;;  %v20881_v54 = vld [vmem:[#allocation7 + $0x1688] ss:$72 sps:$4 sm:$0xff]  }
 0x1e7   : > { %14985 = vmatpush1.bf16.msra.mxu0 %v20812_v55  ;;  %14642 = vmatprep.subr.bf16.mxu1 %v20817_v56  ;;  %v20884_v55 = vld [vmem:[#allocation7 + $0x1690] ss:$72 sps:$4 sm:$0xff]   ;;  %v20889_v56 = vld [vmem:[#allocation7 + $0x171c] ss:$72 sps:$4 sm:$0xff]  }
 0x1e8   : > { %14986 = vmatprep.subr.bf16.mxu0 %v20820_v57  ;;  %v20892_v57 = vld [vmem:[#allocation7 + $0x1724] ss:$72 sps:$4 sm:$0xff]  }
 0x1ea   : > { %14643 = vmatpush1.bf16.msra.mxu1 %v20815_v61  ;;  %v20887_v61 = vld [vmem:[#allocation7 + $0x1718] ss:$72 sps:$4 sm:$0xff]  }
 0x1eb   : > { %14987 = vmatpush1.bf16.msra.mxu0 %v20818_v62  ;;  %14644 = vmatprep.subr.bf16.mxu1 %v20823_v63  ;;  %v20890_v62 = vld [vmem:[#allocation7 + $0x1720] ss:$72 sps:$4 sm:$0xff]   ;;  %v20895_v63 = vld [vmem:[#allocation7 + $0x17ac] ss:$72 sps:$4 sm:$0xff]  }
 0x1ec   : > { %14988 = vmatprep.subr.bf16.mxu0 %v20826_v0  ;;  %v20898_v0 = vld [vmem:[#allocation7 + $0x17b4] ss:$72 sps:$4 sm:$0xff]  }
 0x1ee   : > { %14645 = vmatpush1.bf16.msra.mxu1 %v20821_v7  ;;  %v20893_v7 = vld [vmem:[#allocation7 + $0x17a8] ss:$72 sps:$4 sm:$0xff]  }
 0x1ef   : > { %14989 = vmatpush1.bf16.msra.mxu0 %v20824_v8  ;;  %14646 = vmatprep.subr.bf16.mxu1 %v20829_v9  ;;  %v20896_v8 = vld [vmem:[#allocation7 + $0x17b0] ss:$72 sps:$4 sm:$0xff]   ;;  %v20901_v9 = vld [vmem:[#allocation7 + $0x183c] ss:$72 sps:$4 sm:$0xff]  }
 0x1f0   : > { %14990 = vmatprep.subr.bf16.mxu0 %v20832_v10  ;;  %v20904_v10 = vld [vmem:[#allocation7 + $0x1844] ss:$72 sps:$4 sm:$0xff]  }
 0x1f2   : > { %14647 = vmatpush1.bf16.msra.mxu1 %v20827_v11  ;;  %v20899_v11 = vld [vmem:[#allocation7 + $0x1838] ss:$72 sps:$4 sm:$0xff]  }
 0x1f3   : > { %14991 = vmatpush1.bf16.msra.mxu0 %v20830_v12  ;;  %14659 = vmatprep.subr.bf16.mxu1 %v20835_v14  ;;  %v20902_v12 = vld [vmem:[#allocation7 + $0x1840] ss:$72 sps:$4 sm:$0xff]   ;;  %v20907_v14 = vld [vmem:[#allocation7 + $0x18cc] ss:$72 sps:$4 sm:$0xff]  }
 0x1f4   : > { %15003 = vmatprep.subr.bf16.mxu0 %v20838_v15  ;;  %v20910_v15 = vld [vmem:[#allocation7 + $0x18d4] ss:$72 sps:$4 sm:$0xff]  }
 0x1f5   : > { %14649 = vmatmul.mubr.bf16.vlgmr.msra.gmra.mrb[4].mxu1 %v24180_v3 }
 0x1f6   : > { %14993 = vmatmul.mubr.bf16.vlgmr.msra.gmra.mrb[4].mxu0 %v24180_v3  ;;  %14660 = vmatpush1.bf16.msra.mxu1 %v20833_v16  ;;  %v20905_v16 = vld [vmem:[#allocation7 + $0x18c8] ss:$72 sps:$4 sm:$0xff]  }
 0x1f7   : > { %15004 = vmatpush1.bf16.msra.mxu0 %v20836_v18  ;;  %14661 = vmatprep.subr.bf16.mxu1 %v20841_v19  ;;  %v20908_v18 = vld [vmem:[#allocation7 + $0x18d0] ss:$72 sps:$4 sm:$0xff]   ;;  %v20913_v19 = vld [vmem:[#allocation7 + $0x195c] ss:$72 sps:$4 sm:$0xff]  }
 0x1f8   : > { %15005 = vmatprep.subr.bf16.mxu0 %v20844_v20  ;;  %14691 = vmatprep.mubr.bf16.mxu1 %v24189_v28  ;;  %v20916_v20 = vld [vmem:[#allocation7 + $0x1964] ss:$72 sps:$4 sm:$0xff]  }
 0x1f9   : > { %15035 = vmatprep.mubr.bf16.mxu0 %v24189_v28 }
 0x1fa   : > { %14662 = vmatpush1.bf16.msra.mxu1 %v20839_v21  ;;  %v20911_v21 = vld [vmem:[#allocation7 + $0x1958] ss:$72 sps:$4 sm:$0xff]  }
 0x1fb   : > { %15006 = vmatpush1.bf16.msra.mxu0 %v20842_v42  ;;  %14663 = vmatprep.subr.bf16.mxu1 %v20847_v22  ;;  %v20914_v42 = vld [vmem:[#allocation7 + $0x1960] ss:$72 sps:$4 sm:$0xff]   ;;  %v20919_v22 = vld [vmem:[#allocation7 + $0x19ec] ss:$72 sps:$4 sm:$0xff]  }
 0x1fc   : > { %15007 = vmatprep.subr.bf16.mxu0 %v20850_v23  ;;  %v20922_v23 = vld [vmem:[#allocation7 + $0x19f4] ss:$72 sps:$4 sm:$0xff]  }
 0x1fe   : > { %14664 = vmatpush1.bf16.msra.mxu1 %v20845_v24  ;;  %v20917_v24 = vld [vmem:[#allocation7 + $0x19e8] ss:$72 sps:$4 sm:$0xff]  }
 0x1ff   : > { %15008 = vmatpush1.bf16.msra.mxu0 %v20848_v25  ;;  %14665 = vmatprep.subr.bf16.mxu1 %v20853_v53  ;;  %v20920_v25 = vld [vmem:[#allocation7 + $0x19f0] ss:$72 sps:$4 sm:$0xff]   ;;  %v20925_v53 = vld [vmem:[#allocation7 + $0x1a7c] ss:$72 sps:$4 sm:$0xff]  }
 0x200   : > { %15009 = vmatprep.subr.bf16.mxu0 %v20856_v26  ;;  %v20928_v26 = vld [vmem:[#allocation7 + $0x1a84] ss:$72 sps:$4 sm:$0xff]  }
 0x202   : > { %14666 = vmatpush1.bf16.msra.mxu1 %v20851_v27  ;;  %v20923_v27 = vld [vmem:[#allocation7 + $0x1a78] ss:$72 sps:$4 sm:$0xff]  }
 0x203   : > { %15010 = vmatpush1.bf16.msra.mxu0 %v20854_v29  ;;  %14667 = vmatprep.subr.bf16.mxu1 %v20859_v32  ;;  %v20926_v29 = vld [vmem:[#allocation7 + $0x1a80] ss:$72 sps:$4 sm:$0xff]   ;;  %v20931_v32 = vld [vmem:[#allocation7 + $0x1b0c] ss:$72 sps:$4 sm:$0xff]  }
 0x204   : > { %15011 = vmatprep.subr.bf16.mxu0 %v20862_v34  ;;  %v20934_v34 = vld [vmem:[#allocation7 + $0x1b14] ss:$72 sps:$4 sm:$0xff]  }
 0x206   : > { %14668 = vmatpush1.bf16.msra.mxu1 %v20857_v36  ;;  %v20929_v36 = vld [vmem:[#allocation7 + $0x1b08] ss:$72 sps:$4 sm:$0xff]  }
 0x207   : > { %15012 = vmatpush1.bf16.msra.mxu0 %v20860_v37  ;;  %14669 = vmatprep.subr.bf16.mxu1 %v20865_v38  ;;  %v20932_v37 = vld [vmem:[#allocation7 + $0x1b10] ss:$72 sps:$4 sm:$0xff]   ;;  %v20937_v38 = vld [vmem:[#allocation7 + $0x1b9c] ss:$72 sps:$4 sm:$0xff]  }
 0x208   : > { %15013 = vmatprep.subr.bf16.mxu0 %v20868_v39  ;;  %v20940_v39 = vld [vmem:[#allocation7 + $0x1ba4] ss:$72 sps:$4 sm:$0xff]  }
 0x20a   : > { %14670 = vmatpush1.bf16.msra.mxu1 %v20863_v40  ;;  %v20935_v40 = vld [vmem:[#allocation7 + $0x1b98] ss:$72 sps:$4 sm:$0xff]  }
 0x20b   : > { %15014 = vmatpush1.bf16.msra.mxu0 %v20866_v41  ;;  %14671 = vmatprep.subr.bf16.mxu1 %v20871_v43  ;;  %v20938_v41 = vld [vmem:[#allocation7 + $0x1ba0] ss:$72 sps:$4 sm:$0xff]   ;;  %v20943_v43 = vld [vmem:[#allocation7 + $0x1c2c] ss:$72 sps:$4 sm:$0xff]  }
 0x20c   : > { %15015 = vmatprep.subr.bf16.mxu0 %v20874_v44  ;;  %v20946_v44 = vld [vmem:[#allocation7 + $0x1c34] ss:$72 sps:$4 sm:$0xff]  }
 0x20e   : > { %14672 = vmatpush1.bf16.msra.mxu1 %v20869_v45  ;;  %v20941_v45 = vld [vmem:[#allocation7 + $0x1c28] ss:$72 sps:$4 sm:$0xff]  }
 0x20f   : > { %15016 = vmatpush1.bf16.msra.mxu0 %v20872_v46  ;;  %14673 = vmatprep.subr.bf16.mxu1 %v20877_v47  ;;  %v20944_v46 = vld [vmem:[#allocation7 + $0x1c30] ss:$72 sps:$4 sm:$0xff]   ;;  %v20949_v47 = vld [vmem:[#allocation7 + $0x1cbc] ss:$72 sps:$4 sm:$0xff]  }
 0x210   : > { %15017 = vmatprep.subr.bf16.mxu0 %v20880_v48  ;;  %v20952_v48 = vld [vmem:[#allocation7 + $0x1cc4] ss:$72 sps:$4 sm:$0xff]  }
 0x212   : > { %14674 = vmatpush1.bf16.msra.mxu1 %v20875_v49  ;;  %v20947_v49 = vld [vmem:[#allocation7 + $0x1cb8] ss:$72 sps:$4 sm:$0xff]  }
 0x213   : > { %15018 = vmatpush1.bf16.msra.mxu0 %v20878_v50  ;;  %14675 = vmatprep.subr.bf16.mxu1 %v20883_v51  ;;  %v20950_v50 = vld [vmem:[#allocation7 + $0x1cc0] ss:$72 sps:$4 sm:$0xff]   ;;  %v20955_v51 = vld [vmem:[#allocation7 + $0x1d4c] ss:$72 sps:$4 sm:$0xff]  }
 0x214   : > { %15019 = vmatprep.subr.bf16.mxu0 %v20886_v52  ;;  %v20958_v52 = vld [vmem:[#allocation7 + $0x1d54] ss:$72 sps:$4 sm:$0xff]  }
 0x216   : > { %14676 = vmatpush1.bf16.msra.mxu1 %v20881_v54  ;;  %v20953_v54 = vld [vmem:[#allocation7 + $0x1d48] ss:$72 sps:$4 sm:$0xff]  }
 0x217   : > { %15020 = vmatpush1.bf16.msra.mxu0 %v20884_v55  ;;  %14677 = vmatprep.subr.bf16.mxu1 %v20889_v56  ;;  %v20956_v55 = vld [vmem:[#allocation7 + $0x1d50] ss:$72 sps:$4 sm:$0xff]   ;;  %v20961_v56 = vld [vmem:[#allocation7 + $0x1ddc] ss:$72 sps:$4 sm:$0xff]  }
 0x218   : > { %15021 = vmatprep.subr.bf16.mxu0 %v20892_v57  ;;  %v20964_v57 = vld [vmem:[#allocation7 + $0x1de4] ss:$72 sps:$4 sm:$0xff]  }
 0x21a   : > { %14678 = vmatpush1.bf16.msra.mxu1 %v20887_v61  ;;  %v20959_v61 = vld [vmem:[#allocation7 + $0x1dd8] ss:$72 sps:$4 sm:$0xff]  }
 0x21b   : > { %15022 = vmatpush1.bf16.msra.mxu0 %v20890_v62  ;;  %14679 = vmatprep.subr.bf16.mxu1 %v20895_v63  ;;  %v20962_v62 = vld [vmem:[#allocation7 + $0x1de0] ss:$72 sps:$4 sm:$0xff]   ;;  %v20967_v63 = vld [vmem:[#allocation7 + $0x1e6c] ss:$72 sps:$4 sm:$0xff]  }
 0x21c   : > { %15023 = vmatprep.subr.bf16.mxu0 %v20898_v0  ;;  %v20970_v0 = vld [vmem:[#allocation7 + $0x1e74] ss:$72 sps:$4 sm:$0xff]  }
 0x21e   : > { %14680 = vmatpush1.bf16.msra.mxu1 %v20893_v7 }
 0x21f   : > { %15024 = vmatpush1.bf16.msra.mxu0 %v20896_v8  ;;  %14681 = vmatprep.subr.bf16.mxu1 %v20901_v9 }
 0x220   : > { %15025 = vmatprep.subr.bf16.mxu0 %v20904_v10 }
 0x222   : > { %14682 = vmatpush1.bf16.msra.mxu1 %v20899_v11 }
 0x223   : > { %15026 = vmatpush1.bf16.msra.mxu0 %v20902_v12  ;;  %14683 = vmatprep.subr.bf16.mxu1 %v20907_v14 }
 0x224   : > { %15027 = vmatprep.subr.bf16.mxu0 %v20910_v15 }
 0x226   : > { %14684 = vmatpush1.bf16.msra.mxu1 %v20905_v16  ;;  %v20965_v16 = vld [vmem:[#allocation7 + $0x1e68] ss:$72 sps:$4 sm:$0xff]  }
 0x227   : > { %15028 = vmatpush1.bf16.msra.mxu0 %v20908_v18  ;;  %14685 = vmatprep.subr.bf16.mxu1 %v20913_v19  ;;  %v20968_v18 = vld [vmem:[#allocation7 + $0x1e70] ss:$72 sps:$4 sm:$0xff]  }
 0x228   : > { %15029 = vmatprep.subr.bf16.mxu0 %v20916_v20 }
 0x22a   : > { %14686 = vmatpush1.bf16.msra.mxu1 %v20911_v21 }
 0x22b   : > { %15030 = vmatpush1.bf16.msra.mxu0 %v20914_v42  ;;  %14687 = vmatprep.subr.bf16.mxu1 %v20919_v22  ;;  %v20973_v42 = vld [vmem:[#allocation7 + $0x1efc] ss:$72 sps:$4 sm:$0xff]  }
 0x22c   : > { %15031 = vmatprep.subr.bf16.mxu0 %v20922_v23  ;;  %v20976_v22 = vld [vmem:[#allocation7 + $0x1f04] ss:$72 sps:$4 sm:$0xff]  }
 0x22e   : > { %14688 = vmatpush1.bf16.msra.mxu1 %v20917_v24  ;;  %v20971_v24 = vld [vmem:[#allocation7 + $0x1ef8] ss:$72 sps:$4 sm:$0xff]  }
 0x22f   : > { %15032 = vmatpush1.bf16.msra.mxu0 %v20920_v25  ;;  %14689 = vmatprep.subr.bf16.mxu1 %v20925_v53  ;;  %v20974_v25 = vld [vmem:[#allocation7 + $0x1f00] ss:$72 sps:$4 sm:$0xff]   ;;  %v20979_v53 = vld [vmem:[#allocation7 + $0x1f8c] ss:$72 sps:$4 sm:$0xff]  }
 0x230   : > { %15033 = vmatprep.subr.bf16.mxu0 %v20928_v26  ;;  %v20982_v26 = vld [vmem:[#allocation7 + $0x1f94] ss:$72 sps:$4 sm:$0xff]  }
 0x232   : > { %14690 = vmatpush1.bf16.msra.mxu1 %v20923_v27  ;;  %v20977_v27 = vld [vmem:[#allocation7 + $0x1f88] ss:$72 sps:$4 sm:$0xff]  }
 0x233   : > { %15034 = vmatpush1.bf16.msra.mxu0 %v20926_v29  ;;  %14702 = vmatprep.subr.bf16.mxu1 %v20931_v32  ;;  %v20980_v29 = vld [vmem:[#allocation7 + $0x1f90] ss:$72 sps:$4 sm:$0xff]   ;;  %v20985_v32 = vld [vmem:[#allocation7 + $0x201c] ss:$72 sps:$4 sm:$0xff]  }
 0x234   : > { %15046 = vmatprep.subr.bf16.mxu0 %v20934_v34  ;;  %v20988_v34 = vld [vmem:[#allocation7 + $0x2024] ss:$72 sps:$4 sm:$0xff]  }
 0x235   : > { %14692 = vmatmul.mubr.bf16.vlgmr.msra.gmra.mrb[4].mxu1 %v24207_v58 }
 0x236   : > { %15036 = vmatmul.mubr.bf16.vlgmr.msra.gmra.mrb[4].mxu0 %v24207_v58  ;;  %14703 = vmatpush1.bf16.msra.mxu1 %v20929_v36  ;;  %v20983_v36 = vld [vmem:[#allocation7 + $0x2018] ss:$72 sps:$4 sm:$0xff]  }
 0x237   : > { %15047 = vmatpush1.bf16.msra.mxu0 %v20932_v37  ;;  %14704 = vmatprep.subr.bf16.mxu1 %v20937_v38  ;;  %v20986_v37 = vld [vmem:[#allocation7 + $0x2020] ss:$72 sps:$4 sm:$0xff]   ;;  %v20991_v38 = vld [vmem:[#allocation7 + $0x20ac] ss:$72 sps:$4 sm:$0xff]  }
 0x238   : > { %15048 = vmatprep.subr.bf16.mxu0 %v20940_v39  ;;  %14734 = vmatprep.mubr.bf16.mxu1 %v24211_v2  ;;  %v20994_v39 = vld [vmem:[#allocation7 + $0x20b4] ss:$72 sps:$4 sm:$0xff]  }
 0x239   : > { %15078 = vmatprep.mubr.bf16.mxu0 %v24211_v2 }
 0x23a   : > { %14705 = vmatpush1.bf16.msra.mxu1 %v20935_v40  ;;  %v20989_v40 = vld [vmem:[#allocation7 + $0x20a8] ss:$72 sps:$4 sm:$0xff]  }
 0x23b   : > { %15049 = vmatpush1.bf16.msra.mxu0 %v20938_v41  ;;  %14706 = vmatprep.subr.bf16.mxu1 %v20943_v43  ;;  %v20992_v41 = vld [vmem:[#allocation7 + $0x20b0] ss:$72 sps:$4 sm:$0xff]   ;;  %v20997_v43 = vld [vmem:[#allocation7 + $0x213c] ss:$72 sps:$4 sm:$0xff]  }
 0x23c   : > { %15050 = vmatprep.subr.bf16.mxu0 %v20946_v44  ;;  %v21000_v44 = vld [vmem:[#allocation7 + $0x2144] ss:$72 sps:$4 sm:$0xff]  }
 0x23e   : > { %14707 = vmatpush1.bf16.msra.mxu1 %v20941_v45  ;;  %v20995_v45 = vld [vmem:[#allocation7 + $0x2138] ss:$72 sps:$4 sm:$0xff]  }
 0x23f   : > { %15051 = vmatpush1.bf16.msra.mxu0 %v20944_v46  ;;  %14708 = vmatprep.subr.bf16.mxu1 %v20949_v47  ;;  %v20998_v46 = vld [vmem:[#allocation7 + $0x2140] ss:$72 sps:$4 sm:$0xff]   ;;  %v21003_v47 = vld [vmem:[#allocation7 + $0x21cc] ss:$72 sps:$4 sm:$0xff]  }
 0x240   : > { %15052 = vmatprep.subr.bf16.mxu0 %v20952_v48  ;;  %v21006_v48 = vld [vmem:[#allocation7 + $0x21d4] ss:$72 sps:$4 sm:$0xff]  }
 0x242   : > { %14709 = vmatpush1.bf16.msra.mxu1 %v20947_v49  ;;  %v21001_v49 = vld [vmem:[#allocation7 + $0x21c8] ss:$72 sps:$4 sm:$0xff]  }
 0x243   : > { %15053 = vmatpush1.bf16.msra.mxu0 %v20950_v50  ;;  %14710 = vmatprep.subr.bf16.mxu1 %v20955_v51  ;;  %v21004_v50 = vld [vmem:[#allocation7 + $0x21d0] ss:$72 sps:$4 sm:$0xff]   ;;  %v21009_v51 = vld [vmem:[#allocation7 + $0x225c] ss:$72 sps:$4 sm:$0xff]  }
 0x244   : > { %15054 = vmatprep.subr.bf16.mxu0 %v20958_v52  ;;  %v21012_v52 = vld [vmem:[#allocation7 + $0x2264] ss:$72 sps:$4 sm:$0xff]  }
 0x246   : > { %14711 = vmatpush1.bf16.msra.mxu1 %v20953_v54  ;;  %v21007_v54 = vld [vmem:[#allocation7 + $0x2258] ss:$72 sps:$4 sm:$0xff]  }
 0x247   : > { %15055 = vmatpush1.bf16.msra.mxu0 %v20956_v55  ;;  %14712 = vmatprep.subr.bf16.mxu1 %v20961_v56  ;;  %v21010_v55 = vld [vmem:[#allocation7 + $0x2260] ss:$72 sps:$4 sm:$0xff]   ;;  %v21015_v56 = vld [vmem:[#allocation7 + $0x22ec] ss:$72 sps:$4 sm:$0xff]  }
 0x248   : > { %15056 = vmatprep.subr.bf16.mxu0 %v20964_v57  ;;  %v14392_v7 = vpop.f32.mrb[0].mxu1  ;;  %v21018_v57 = vld [vmem:[#allocation7 + $0x22f4] ss:$72 sps:$4 sm:$0xff]  }
 0x249   : > { %v14564_v8 = vpop.f32.mrb[0].mxu0  ;;  %v14394_v10 = vpop.f32.mrb[1].mxu1 }
 0x24a   : > { %v24242_v9 = vadd.f32 %v14564_v8, %v14392_v7  ;;  %v14566_v11 = vpop.f32.mrb[1].mxu0  ;;  %v14396_v14 = vpop.f32.mrb[2].mxu1  ;;  %14713 = vmatpush1.bf16.msra.mxu1 %v20959_v61  ;;  %v21013_v61 = vld [vmem:[#allocation7 + $0x22e8] ss:$72 sps:$4 sm:$0xff]   ;;  %v21019_v7 = vld [vmem:[#allocation7 + $0x2378] ss:$72 sps:$4 sm:$0xff]  }
 0x24b   : > { %v24244_v12 = vadd.f32 %v14566_v11, %v14394_v10  ;;  %v14568_v15 = vpop.f32.mrb[2].mxu0  ;;  %15057 = vmatpush1.bf16.msra.mxu0 %v20962_v62  ;;  %v14398_v20 = vpop.f32.mrb[3].mxu1  ;;  %14714 = vmatprep.subr.bf16.mxu1 %v20967_v63  ;;  %v21016_v62 = vld [vmem:[#allocation7 + $0x22f0] ss:$72 sps:$4 sm:$0xff]   ;;  %v21021_v63 = vld [vmem:[#allocation7 + $0x237c] ss:$72 sps:$4 sm:$0xff]  }
 0x24c   : > { %v24246_v19 = vadd.f32 %v14568_v15, %v14396_v14  ;;  %v14570_v21 = vpop.f32.mrb[3].mxu0  ;;  %15058 = vmatprep.subr.bf16.mxu0 %v20970_v0  ;;  %v21024_v0 = vld [vmem:[#allocation7 + $0x2384] ss:$72 sps:$4 sm:$0xff]   ;;  %v21022_v8 = vld [vmem:[#allocation7 + $0x2380] ss:$72 sps:$4 sm:$0xff]  }
 0x24d   : > { %v24248_v23 = vadd.f32 %v14570_v21, %v14398_v20  ;;  %v21027_v10 = vld [vmem:[#allocation7 + $0x240c] ss:$72 sps:$4 sm:$0xff]   ;;  %v21025_v14 = vld [vmem:[#allocation7 + $0x2408] ss:$72 sps:$4 sm:$0xff]   ;;  %v21031_v20 = vld [vmem:[#allocation7 + $0x2498] ss:$72 sps:$4 sm:$0xff]  }
 0x24e   : > { %14715 = vmatpush1.bf16.msra.mxu1 %v20965_v16  ;;  %v21030_v11 = vld [vmem:[#allocation7 + $0x2414] ss:$72 sps:$4 sm:$0xff]   ;;  %v21028_v15 = vld [vmem:[#allocation7 + $0x2410] ss:$72 sps:$4 sm:$0xff]   ;;  %v21034_v21 = vld [vmem:[#allocation7 + $0x24a0] ss:$72 sps:$4 sm:$0xff]  }
 0x24f   : > { %15059 = vmatpush1.bf16.msra.mxu0 %v20968_v18  ;;  %14716 = vmatprep.subr.bf16.mxu1 %v20973_v42  ;;  %v21033_v16 = vld [vmem:[#allocation7 + $0x249c] ss:$72 sps:$4 sm:$0xff]   ;;  %v21039_v42 = vld [vmem:[#allocation7 + $0x252c] ss:$72 sps:$4 sm:$0xff]  }
 0x250   : > { %15060 = vmatprep.subr.bf16.mxu0 %v20976_v22  ;;  %v21036_v18 = vld [vmem:[#allocation7 + $0x24a4] ss:$72 sps:$4 sm:$0xff]   ;;  %v21042_v22 = vld [vmem:[#allocation7 + $0x2534] ss:$72 sps:$4 sm:$0xff]  }
 0x252   : > { %14717 = vmatpush1.bf16.msra.mxu1 %v20971_v24  ;;  %v21037_v24 = vld [vmem:[#allocation7 + $0x2528] ss:$72 sps:$4 sm:$0xff]  }
 0x253   : > { %15061 = vmatpush1.bf16.msra.mxu0 %v20974_v25  ;;  %14718 = vmatprep.subr.bf16.mxu1 %v20979_v53  ;;  %v21040_v25 = vld [vmem:[#allocation7 + $0x2530] ss:$72 sps:$4 sm:$0xff]   ;;  %v21045_v53 = vld [vmem:[#allocation7 + $0x25bc] ss:$72 sps:$4 sm:$0xff]  }
 0x254   : > { %15062 = vmatprep.subr.bf16.mxu0 %v20982_v26  ;;  %v21048_v26 = vld [vmem:[#allocation7 + $0x25c4] ss:$72 sps:$4 sm:$0xff]  }
 0x256   : > { %14719 = vmatpush1.bf16.msra.mxu1 %v20977_v27  ;;  %v21043_v27 = vld [vmem:[#allocation7 + $0x25b8] ss:$72 sps:$4 sm:$0xff]  }
 0x257   : > { %15063 = vmatpush1.bf16.msra.mxu0 %v20980_v29  ;;  %14720 = vmatprep.subr.bf16.mxu1 %v20985_v32  ;;  %v21046_v29 = vld [vmem:[#allocation7 + $0x25c0] ss:$72 sps:$4 sm:$0xff]   ;;  %v21051_v32 = vld [vmem:[#allocation7 + $0x264c] ss:$72 sps:$4 sm:$0xff]  }
 0x258   : > { %15064 = vmatprep.subr.bf16.mxu0 %v20988_v34  ;;  %v21054_v34 = vld [vmem:[#allocation7 + $0x2654] ss:$72 sps:$4 sm:$0xff]  }
 0x25a   : > { %14721 = vmatpush1.bf16.msra.mxu1 %v20983_v36  ;;  %v21049_v36 = vld [vmem:[#allocation7 + $0x2648] ss:$72 sps:$4 sm:$0xff]  }
 0x25b   : > { %15065 = vmatpush1.bf16.msra.mxu0 %v20986_v37  ;;  %14722 = vmatprep.subr.bf16.mxu1 %v20991_v38  ;;  %v21052_v37 = vld [vmem:[#allocation7 + $0x2650] ss:$72 sps:$4 sm:$0xff]   ;;  %v21057_v38 = vld [vmem:[#allocation7 + $0x26dc] ss:$72 sps:$4 sm:$0xff]  }
 0x25c   : > { %15066 = vmatprep.subr.bf16.mxu0 %v20994_v39  ;;  %v21060_v39 = vld [vmem:[#allocation7 + $0x26e4] ss:$72 sps:$4 sm:$0xff]  }
 0x25e   : > { %14723 = vmatpush1.bf16.msra.mxu1 %v20989_v40  ;;  %v21055_v40 = vld [vmem:[#allocation7 + $0x26d8] ss:$72 sps:$4 sm:$0xff]  }
 0x25f   : > { %15067 = vmatpush1.bf16.msra.mxu0 %v20992_v41  ;;  %14724 = vmatprep.subr.bf16.mxu1 %v20997_v43  ;;  %v21058_v41 = vld [vmem:[#allocation7 + $0x26e0] ss:$72 sps:$4 sm:$0xff]   ;;  %v21063_v43 = vld [vmem:[#allocation7 + $0x276c] ss:$72 sps:$4 sm:$0xff]  }
 0x260   : > { %15068 = vmatprep.subr.bf16.mxu0 %v21000_v44  ;;  %v21066_v44 = vld [vmem:[#allocation7 + $0x2774] ss:$72 sps:$4 sm:$0xff]  }
 0x262   : > { %14725 = vmatpush1.bf16.msra.mxu1 %v20995_v45  ;;  %v21061_v45 = vld [vmem:[#allocation7 + $0x2768] ss:$72 sps:$4 sm:$0xff]  }
 0x263   : > { %15069 = vmatpush1.bf16.msra.mxu0 %v20998_v46  ;;  %14726 = vmatprep.subr.bf16.mxu1 %v21003_v47  ;;  %v21064_v46 = vld [vmem:[#allocation7 + $0x2770] ss:$72 sps:$4 sm:$0xff]   ;;  %v21069_v47 = vld [vmem:[#allocation7 + $0x27fc] ss:$72 sps:$4 sm:$0xff]  }
 0x264   : > { %15070 = vmatprep.subr.bf16.mxu0 %v21006_v48  ;;  %v21072_v48 = vld [vmem:[#allocation7 + $0x2804] ss:$72 sps:$4 sm:$0xff]  }
 0x266   : > { %14727 = vmatpush1.bf16.msra.mxu1 %v21001_v49  ;;  %v21067_v49 = vld [vmem:[#allocation7 + $0x27f8] ss:$72 sps:$4 sm:$0xff]  }
 0x267   : > { %15071 = vmatpush1.bf16.msra.mxu0 %v21004_v50  ;;  %14728 = vmatprep.subr.bf16.mxu1 %v21009_v51  ;;  %v21070_v50 = vld [vmem:[#allocation7 + $0x2800] ss:$72 sps:$4 sm:$0xff]   ;;  %v21075_v51 = vld [vmem:[#allocation7 + $0x288c] ss:$72 sps:$4 sm:$0xff]  }
 0x268   : > { %15072 = vmatprep.subr.bf16.mxu0 %v21012_v52  ;;  %v21078_v52 = vld [vmem:[#allocation7 + $0x2894] ss:$72 sps:$4 sm:$0xff]  }
 0x26a   : > { %14729 = vmatpush1.bf16.msra.mxu1 %v21007_v54  ;;  %v21073_v54 = vld [vmem:[#allocation7 + $0x2888] ss:$72 sps:$4 sm:$0xff]  }
 0x26b   : > { %15073 = vmatpush1.bf16.msra.mxu0 %v21010_v55  ;;  %14730 = vmatprep.subr.bf16.mxu1 %v21015_v56  ;;  %v21076_v55 = vld [vmem:[#allocation7 + $0x2890] ss:$72 sps:$4 sm:$0xff]   ;;  %v21081_v56 = vld [vmem:[#allocation7 + $0x291c] ss:$72 sps:$4 sm:$0xff]  }
 0x26c   : > { %15074 = vmatprep.subr.bf16.mxu0 %v21018_v57  ;;  %v21084_v57 = vld [vmem:[#allocation7 + $0x2924] ss:$72 sps:$4 sm:$0xff]  }
 0x26e   : > { %14731 = vmatpush1.bf16.msra.mxu1 %v21013_v61  ;;  %v21079_v61 = vld [vmem:[#allocation7 + $0x2918] ss:$72 sps:$4 sm:$0xff]  }
 0x26f   : > { %15075 = vmatpush1.bf16.msra.mxu0 %v21016_v62  ;;  %14732 = vmatprep.subr.bf16.mxu1 %v21021_v63  ;;  %v21082_v62 = vld [vmem:[#allocation7 + $0x2920] ss:$72 sps:$4 sm:$0xff]   ;;  %v21087_v63 = vld [vmem:[#allocation7 + $0x29ac] ss:$72 sps:$4 sm:$0xff]  }
 0x270   : > { %15076 = vmatprep.subr.bf16.mxu0 %v21024_v0  ;;  %v21090_v0 = vld [vmem:[#allocation7 + $0x29b4] ss:$72 sps:$4 sm:$0xff]  }
 0x272   : > { %14733 = vmatpush1.bf16.msra.mxu1 %v21019_v7  ;;  %v21085_v7 = vld [vmem:[#allocation7 + $0x29a8] ss:$72 sps:$4 sm:$0xff]  }
 0x273   : > { %15077 = vmatpush1.bf16.msra.mxu0 %v21022_v8  ;;  %14745 = vmatprep.subr.bf16.mxu1 %v21027_v10  ;;  %v21088_v8 = vld [vmem:[#allocation7 + $0x29b0] ss:$72 sps:$4 sm:$0xff]   ;;  %v21093_v10 = vld [vmem:[#allocation7 + $0x2a3c] ss:$72 sps:$4 sm:$0xff]  }
 0x274   : > { %15089 = vmatprep.subr.bf16.mxu0 %v21030_v11  ;;  %v21096_v11 = vld [vmem:[#allocation7 + $0x2a44] ss:$72 sps:$4 sm:$0xff]  }
 0x275   : > { %14735 = vmatmul.mubr.bf16.vlgmr.msra.gmra.mrb[4].mxu1 %v24222_v33 }
 0x276   : > { %15079 = vmatmul.mubr.bf16.vlgmr.msra.gmra.mrb[4].mxu0 %v24222_v33  ;;  %14746 = vmatpush1.bf16.msra.mxu1 %v21025_v14  ;;  %v21091_v14 = vld [vmem:[#allocation7 + $0x2a38] ss:$72 sps:$4 sm:$0xff]  }
 0x277   : > { %15090 = vmatpush1.bf16.msra.mxu0 %v21028_v15  ;;  %14747 = vmatprep.subr.bf16.mxu1 %v21033_v16  ;;  %v21094_v15 = vld [vmem:[#allocation7 + $0x2a40] ss:$72 sps:$4 sm:$0xff]   ;;  %v21099_v16 = vld [vmem:[#allocation7 + $0x2acc] ss:$72 sps:$4 sm:$0xff]  }
 0x278   : > { %15091 = vmatprep.subr.bf16.mxu0 %v21036_v18  ;;  %14777 = vmatprep.mubr.bf16.mxu1 %v24156_v6  ;;  %v21102_v18 = vld [vmem:[#allocation7 + $0x2ad4] ss:$72 sps:$4 sm:$0xff]  }
 0x279   : > { %15121 = vmatprep.mubr.bf16.mxu0 %v24156_v6 }
 0x27a   : > { %14748 = vmatpush1.bf16.msra.mxu1 %v21031_v20  ;;  %v21097_v20 = vld [vmem:[#allocation7 + $0x2ac8] ss:$72 sps:$4 sm:$0xff]  }
 0x27b   : > { %15092 = vmatpush1.bf16.msra.mxu0 %v21034_v21  ;;  %14749 = vmatprep.subr.bf16.mxu1 %v21039_v42  ;;  %v21100_v21 = vld [vmem:[#allocation7 + $0x2ad0] ss:$72 sps:$4 sm:$0xff]   ;;  %v21105_v42 = vld [vmem:[#allocation7 + $0x2b5c] ss:$72 sps:$4 sm:$0xff]  }
 0x27c   : > { %15093 = vmatprep.subr.bf16.mxu0 %v21042_v22  ;;  %v21108_v22 = vld [vmem:[#allocation7 + $0x2b64] ss:$72 sps:$4 sm:$0xff]  }
 0x27e   : > { %14750 = vmatpush1.bf16.msra.mxu1 %v21037_v24  ;;  %v21103_v24 = vld [vmem:[#allocation7 + $0x2b58] ss:$72 sps:$4 sm:$0xff]  }
 0x27f   : > { %15094 = vmatpush1.bf16.msra.mxu0 %v21040_v25  ;;  %14751 = vmatprep.subr.bf16.mxu1 %v21045_v53  ;;  %v21106_v25 = vld [vmem:[#allocation7 + $0x2b60] ss:$72 sps:$4 sm:$0xff]   ;;  %v21111_v53 = vld [vmem:[#allocation7 + $0x2bec] ss:$72 sps:$4 sm:$0xff]  }
 0x280   : > { %15095 = vmatprep.subr.bf16.mxu0 %v21048_v26  ;;  %v21114_v26 = vld [vmem:[#allocation7 + $0x2bf4] ss:$72 sps:$4 sm:$0xff]  }
 0x282   : > { %14752 = vmatpush1.bf16.msra.mxu1 %v21043_v27  ;;  %v21109_v27 = vld [vmem:[#allocation7 + $0x2be8] ss:$72 sps:$4 sm:$0xff]  }
 0x283   : > { %15096 = vmatpush1.bf16.msra.mxu0 %v21046_v29  ;;  %14753 = vmatprep.subr.bf16.mxu1 %v21051_v32  ;;  %v21112_v29 = vld [vmem:[#allocation7 + $0x2bf0] ss:$72 sps:$4 sm:$0xff]   ;;  %v21117_v32 = vld [vmem:[#allocation7 + $0x2c7c] ss:$72 sps:$4 sm:$0xff]  }
 0x284   : > { %15097 = vmatprep.subr.bf16.mxu0 %v21054_v34  ;;  %v21120_v34 = vld [vmem:[#allocation7 + $0x2c84] ss:$72 sps:$4 sm:$0xff]  }
 0x286   : > { %14754 = vmatpush1.bf16.msra.mxu1 %v21049_v36  ;;  %v21115_v36 = vld [vmem:[#allocation7 + $0x2c78] ss:$72 sps:$4 sm:$0xff]  }
 0x287   : > { %15098 = vmatpush1.bf16.msra.mxu0 %v21052_v37  ;;  %14755 = vmatprep.subr.bf16.mxu1 %v21057_v38  ;;  %v21118_v37 = vld [vmem:[#allocation7 + $0x2c80] ss:$72 sps:$4 sm:$0xff]   ;;  %v21123_v38 = vld [vmem:[#allocation7 + $0x2d0c] ss:$72 sps:$4 sm:$0xff]  }
 0x288   : > { %15099 = vmatprep.subr.bf16.mxu0 %v21060_v39  ;;  %v21126_v39 = vld [vmem:[#allocation7 + $0x2d14] ss:$72 sps:$4 sm:$0xff]  }
 0x28a   : > { %14756 = vmatpush1.bf16.msra.mxu1 %v21055_v40  ;;  %v21121_v40 = vld [vmem:[#allocation7 + $0x2d08] ss:$72 sps:$4 sm:$0xff]  }
 0x28b   : > { %15100 = vmatpush1.bf16.msra.mxu0 %v21058_v41  ;;  %14757 = vmatprep.subr.bf16.mxu1 %v21063_v43  ;;  %v21124_v41 = vld [vmem:[#allocation7 + $0x2d10] ss:$72 sps:$4 sm:$0xff]   ;;  %v21129_v43 = vld [vmem:[#allocation7 + $0x2d9c] ss:$72 sps:$4 sm:$0xff]  }
 0x28c   : > { %15101 = vmatprep.subr.bf16.mxu0 %v21066_v44  ;;  %v21132_v44 = vld [vmem:[#allocation7 + $0x2da4] ss:$72 sps:$4 sm:$0xff]  }
 0x28e   : > { %14758 = vmatpush1.bf16.msra.mxu1 %v21061_v45  ;;  %v21127_v45 = vld [vmem:[#allocation7 + $0x2d98] ss:$72 sps:$4 sm:$0xff]  }
 0x28f   : > { %15102 = vmatpush1.bf16.msra.mxu0 %v21064_v46  ;;  %14759 = vmatprep.subr.bf16.mxu1 %v21069_v47  ;;  %v21130_v46 = vld [vmem:[#allocation7 + $0x2da0] ss:$72 sps:$4 sm:$0xff]   ;;  %v21135_v47 = vld [vmem:[#allocation7 + $0x2e2c] ss:$72 sps:$4 sm:$0xff]  }
 0x290   : > { %15103 = vmatprep.subr.bf16.mxu0 %v21072_v48  ;;  %v21138_v48 = vld [vmem:[#allocation7 + $0x2e34] ss:$72 sps:$4 sm:$0xff]  }
 0x292   : > { %14760 = vmatpush1.bf16.msra.mxu1 %v21067_v49  ;;  %v21133_v49 = vld [vmem:[#allocation7 + $0x2e28] ss:$72 sps:$4 sm:$0xff]  }
 0x293   : > { %15104 = vmatpush1.bf16.msra.mxu0 %v21070_v50  ;;  %14761 = vmatprep.subr.bf16.mxu1 %v21075_v51  ;;  %v21136_v50 = vld [vmem:[#allocation7 + $0x2e30] ss:$72 sps:$4 sm:$0xff]   ;;  %v21141_v51 = vld [vmem:[#allocation7 + $0x2ebc] ss:$72 sps:$4 sm:$0xff]  }
 0x294   : > { %15105 = vmatprep.subr.bf16.mxu0 %v21078_v52  ;;  %v21144_v52 = vld [vmem:[#allocation7 + $0x2ec4] ss:$72 sps:$4 sm:$0xff]  }
 0x296   : > { %14762 = vmatpush1.bf16.msra.mxu1 %v21073_v54  ;;  %v21139_v54 = vld [vmem:[#allocation7 + $0x2eb8] ss:$72 sps:$4 sm:$0xff]  }
 0x297   : > { %15106 = vmatpush1.bf16.msra.mxu0 %v21076_v55  ;;  %14763 = vmatprep.subr.bf16.mxu1 %v21081_v56  ;;  %v21142_v55 = vld [vmem:[#allocation7 + $0x2ec0] ss:$72 sps:$4 sm:$0xff]   ;;  %v21147_v56 = vld [vmem:[#allocation7 + $0x2f4c] ss:$72 sps:$4 sm:$0xff]  }
 0x298   : > { %15107 = vmatprep.subr.bf16.mxu0 %v21084_v57  ;;  %v21150_v57 = vld [vmem:[#allocation7 + $0x2f54] ss:$72 sps:$4 sm:$0xff]  }
 0x29a   : > { %14764 = vmatpush1.bf16.msra.mxu1 %v21079_v61  ;;  %v21145_v61 = vld [vmem:[#allocation7 + $0x2f48] ss:$72 sps:$4 sm:$0xff]  }
 0x29b   : > { %15108 = vmatpush1.bf16.msra.mxu0 %v21082_v62  ;;  %14765 = vmatprep.subr.bf16.mxu1 %v21087_v63  ;;  %v21148_v62 = vld [vmem:[#allocation7 + $0x2f50] ss:$72 sps:$4 sm:$0xff]   ;;  %v21153_v63 = vld [vmem:[#allocation7 + $0x2fdc] ss:$72 sps:$4 sm:$0xff]  }
 0x29c   : > { %15109 = vmatprep.subr.bf16.mxu0 %v21090_v0  ;;  %v21156_v0 = vld [vmem:[#allocation7 + $0x2fe4] ss:$72 sps:$4 sm:$0xff]  }
 0x29e   : > { %14766 = vmatpush1.bf16.msra.mxu1 %v21085_v7  ;;  %v21151_v7 = vld [vmem:[#allocation7 + $0x2fd8] ss:$72 sps:$4 sm:$0xff]  }
 0x29f   : > { %15110 = vmatpush1.bf16.msra.mxu0 %v21088_v8  ;;  %14767 = vmatprep.subr.bf16.mxu1 %v21093_v10  ;;  %v21154_v8 = vld [vmem:[#allocation7 + $0x2fe0] ss:$72 sps:$4 sm:$0xff]   ;;  %v21159_v10 = vld [vmem:[#allocation7 + $0x306c] ss:$72 sps:$4 sm:$0xff]  }
 0x2a0   : > { %15111 = vmatprep.subr.bf16.mxu0 %v21096_v11  ;;  %v21162_v11 = vld [vmem:[#allocation7 + $0x3074] ss:$72 sps:$4 sm:$0xff]  }
 0x2a2   : > { %14768 = vmatpush1.bf16.msra.mxu1 %v21091_v14  ;;  %v21157_v14 = vld [vmem:[#allocation7 + $0x3068] ss:$72 sps:$4 sm:$0xff]  }
 0x2a3   : > { %15112 = vmatpush1.bf16.msra.mxu0 %v21094_v15  ;;  %14769 = vmatprep.subr.bf16.mxu1 %v21099_v16  ;;  %v21160_v15 = vld [vmem:[#allocation7 + $0x3070] ss:$72 sps:$4 sm:$0xff]   ;;  %v21165_v16 = vld [vmem:[#allocation7 + $0x30fc] ss:$72 sps:$4 sm:$0xff]  }
 0x2a4   : > { %15113 = vmatprep.subr.bf16.mxu0 %v21102_v18  ;;  %v21168_v18 = vld [vmem:[#allocation7 + $0x3104] ss:$72 sps:$4 sm:$0xff]  }
 0x2a6   : > { %14770 = vmatpush1.bf16.msra.mxu1 %v21097_v20  ;;  %v21163_v20 = vld [vmem:[#allocation7 + $0x30f8] ss:$72 sps:$4 sm:$0xff]  }
 0x2a7   : > { %15114 = vmatpush1.bf16.msra.mxu0 %v21100_v21  ;;  %14771 = vmatprep.subr.bf16.mxu1 %v21105_v42  ;;  %v21166_v21 = vld [vmem:[#allocation7 + $0x3100] ss:$72 sps:$4 sm:$0xff]   ;;  %v21171_v42 = vld [vmem:[#allocation7 + $0x318c] ss:$72 sps:$4 sm:$0xff]  }
 0x2a8   : > { %15115 = vmatprep.subr.bf16.mxu0 %v21108_v22  ;;  %v21174_v22 = vld [vmem:[#allocation7 + $0x3194] ss:$72 sps:$4 sm:$0xff]  }
 0x2aa   : > { %14772 = vmatpush1.bf16.msra.mxu1 %v21103_v24  ;;  %v21169_v24 = vld [vmem:[#allocation7 + $0x3188] ss:$72 sps:$4 sm:$0xff]  }
 0x2ab   : > { %15116 = vmatpush1.bf16.msra.mxu0 %v21106_v25  ;;  %14773 = vmatprep.subr.bf16.mxu1 %v21111_v53  ;;  %v21172_v25 = vld [vmem:[#allocation7 + $0x3190] ss:$72 sps:$4 sm:$0xff]   ;;  %v21177_v53 = vld [vmem:[#allocation7 + $0x321c] ss:$72 sps:$4 sm:$0xff]  }
 0x2ac   : > { %15117 = vmatprep.subr.bf16.mxu0 %v21114_v26  ;;  %v21180_v26 = vld [vmem:[#allocation7 + $0x3224] ss:$72 sps:$4 sm:$0xff]  }
 0x2ae   : > { %14774 = vmatpush1.bf16.msra.mxu1 %v21109_v27  ;;  %v21175_v27 = vld [vmem:[#allocation7 + $0x3218] ss:$72 sps:$4 sm:$0xff]  }
 0x2af   : > { %15118 = vmatpush1.bf16.msra.mxu0 %v21112_v29  ;;  %14775 = vmatprep.subr.bf16.mxu1 %v21117_v32  ;;  %v21178_v29 = vld [vmem:[#allocation7 + $0x3220] ss:$72 sps:$4 sm:$0xff]   ;;  %v21183_v32 = vld [vmem:[#allocation7 + $0x32ac] ss:$72 sps:$4 sm:$0xff]  }
 0x2b0   : > { %15119 = vmatprep.subr.bf16.mxu0 %v21120_v34  ;;  %v21186_v34 = vld [vmem:[#allocation7 + $0x32b4] ss:$72 sps:$4 sm:$0xff]  }
 0x2b2   : > { %14776 = vmatpush1.bf16.msra.mxu1 %v21115_v36  ;;  %v21181_v36 = vld [vmem:[#allocation7 + $0x32a8] ss:$72 sps:$4 sm:$0xff]  }
 0x2b3   : > { %15120 = vmatpush1.bf16.msra.mxu0 %v21118_v37  ;;  %14788 = vmatprep.subr.bf16.mxu1 %v21123_v38  ;;  %v21184_v37 = vld [vmem:[#allocation7 + $0x32b0] ss:$72 sps:$4 sm:$0xff]   ;;  %v21189_v38 = vld [vmem:[#allocation7 + $0x333c] ss:$72 sps:$4 sm:$0xff]  }
 0x2b4   : > { %15132 = vmatprep.subr.bf16.mxu0 %v21126_v39  ;;  %v21192_v39 = vld [vmem:[#allocation7 + $0x3344] ss:$72 sps:$4 sm:$0xff]  }
 0x2b5   : > { %14778 = vmatmul.mubr.bf16.vlgmr.msra.gmra.mrb[4].mxu1 %v24164_v31 }
 0x2b6   : > { %15122 = vmatmul.mubr.bf16.vlgmr.msra.gmra.mrb[4].mxu0 %v24164_v31  ;;  %14789 = vmatpush1.bf16.msra.mxu1 %v21121_v40  ;;  %v21187_v40 = vld [vmem:[#allocation7 + $0x3338] ss:$72 sps:$4 sm:$0xff]  }
 0x2b7   : > { %15133 = vmatpush1.bf16.msra.mxu0 %v21124_v41  ;;  %14790 = vmatprep.subr.bf16.mxu1 %v21129_v43  ;;  %v21190_v41 = vld [vmem:[#allocation7 + $0x3340] ss:$72 sps:$4 sm:$0xff]   ;;  %v21195_v43 = vld [vmem:[#allocation7 + $0x33cc] ss:$72 sps:$4 sm:$0xff]  }
 0x2b8   : > { %15134 = vmatprep.subr.bf16.mxu0 %v21132_v44  ;;  %14820 = vmatprep.mubr.bf16.mxu1 %v24174_v17  ;;  %v21198_v44 = vld [vmem:[#allocation7 + $0x33d4] ss:$72 sps:$4 sm:$0xff]  }
 0x2b9   : > { %15164 = vmatprep.mubr.bf16.mxu0 %v24174_v17 }
 0x2ba   : > { %14791 = vmatpush1.bf16.msra.mxu1 %v21127_v45  ;;  %v21193_v45 = vld [vmem:[#allocation7 + $0x33c8] ss:$72 sps:$4 sm:$0xff]  }
 0x2bb   : > { %15135 = vmatpush1.bf16.msra.mxu0 %v21130_v46  ;;  %14792 = vmatprep.subr.bf16.mxu1 %v21135_v47  ;;  %v21196_v46 = vld [vmem:[#allocation7 + $0x33d0] ss:$72 sps:$4 sm:$0xff]   ;;  %v21201_v47 = vld [vmem:[#allocation7 + $0x345c] ss:$72 sps:$4 sm:$0xff]  }
 0x2bc   : > { %15136 = vmatprep.subr.bf16.mxu0 %v21138_v48  ;;  %v21204_v48 = vld [vmem:[#allocation7 + $0x3464] ss:$72 sps:$4 sm:$0xff]  }
 0x2be   : > { %14793 = vmatpush1.bf16.msra.mxu1 %v21133_v49  ;;  %v21199_v49 = vld [vmem:[#allocation7 + $0x3458] ss:$72 sps:$4 sm:$0xff]  }
 0x2bf   : > { %15137 = vmatpush1.bf16.msra.mxu0 %v21136_v50  ;;  %14794 = vmatprep.subr.bf16.mxu1 %v21141_v51  ;;  %v21202_v50 = vld [vmem:[#allocation7 + $0x3460] ss:$72 sps:$4 sm:$0xff]   ;;  %v21207_v51 = vld [vmem:[#allocation7 + $0x34ec] ss:$72 sps:$4 sm:$0xff]  }
 0x2c0   : > { %15138 = vmatprep.subr.bf16.mxu0 %v21144_v52  ;;  %v21210_v52 = vld [vmem:[#allocation7 + $0x34f4] ss:$72 sps:$4 sm:$0xff]  }
 0x2c2   : > { %14795 = vmatpush1.bf16.msra.mxu1 %v21139_v54  ;;  %v21205_v54 = vld [vmem:[#allocation7 + $0x34e8] ss:$72 sps:$4 sm:$0xff]  }
 0x2c3   : > { %15139 = vmatpush1.bf16.msra.mxu0 %v21142_v55  ;;  %14796 = vmatprep.subr.bf16.mxu1 %v21147_v56  ;;  %v21208_v55 = vld [vmem:[#allocation7 + $0x34f0] ss:$72 sps:$4 sm:$0xff]   ;;  %v21213_v56 = vld [vmem:[#allocation7 + $0x357c] ss:$72 sps:$4 sm:$0xff]  }
 0x2c4   : > { %15140 = vmatprep.subr.bf16.mxu0 %v21150_v57  ;;  %v21216_v57 = vld [vmem:[#allocation7 + $0x3584] ss:$72 sps:$4 sm:$0xff]  }
 0x2c6   : > { %14797 = vmatpush1.bf16.msra.mxu1 %v21145_v61  ;;  %v21211_v61 = vld [vmem:[#allocation7 + $0x3578] ss:$72 sps:$4 sm:$0xff]  }
 0x2c7   : > { %15141 = vmatpush1.bf16.msra.mxu0 %v21148_v62  ;;  %14798 = vmatprep.subr.bf16.mxu1 %v21153_v63  ;;  %v21214_v62 = vld [vmem:[#allocation7 + $0x3580] ss:$72 sps:$4 sm:$0xff]   ;;  %v21219_v63 = vld [vmem:[#allocation7 + $0x360c] ss:$72 sps:$4 sm:$0xff]  }
 0x2c8   : > { %15142 = vmatprep.subr.bf16.mxu0 %v21156_v0  ;;  %v21222_v0 = vld [vmem:[#allocation7 + $0x3614] ss:$72 sps:$4 sm:$0xff]  }
 0x2ca   : > { %14799 = vmatpush1.bf16.msra.mxu1 %v21151_v7  ;;  %v21217_v7 = vld [vmem:[#allocation7 + $0x3608] ss:$72 sps:$4 sm:$0xff]  }
 0x2cb   : > { %15143 = vmatpush1.bf16.msra.mxu0 %v21154_v8  ;;  %14800 = vmatprep.subr.bf16.mxu1 %v21159_v10  ;;  %v21220_v8 = vld [vmem:[#allocation7 + $0x3610] ss:$72 sps:$4 sm:$0xff]   ;;  %v21225_v10 = vld [vmem:[#allocation7 + $0x369c] ss:$72 sps:$4 sm:$0xff]  }
 0x2cc   : > { %15144 = vmatprep.subr.bf16.mxu0 %v21162_v11  ;;  %v21228_v11 = vld [vmem:[#allocation7 + $0x36a4] ss:$72 sps:$4 sm:$0xff]  }
 0x2ce   : > { %14801 = vmatpush1.bf16.msra.mxu1 %v21157_v14  ;;  %v21223_v14 = vld [vmem:[#allocation7 + $0x3698] ss:$72 sps:$4 sm:$0xff]  }
 0x2cf   : > { %15145 = vmatpush1.bf16.msra.mxu0 %v21160_v15  ;;  %14802 = vmatprep.subr.bf16.mxu1 %v21165_v16  ;;  %v21226_v15 = vld [vmem:[#allocation7 + $0x36a0] ss:$72 sps:$4 sm:$0xff]   ;;  %v21231_v16 = vld [vmem:[#allocation7 + $0x372c] ss:$72 sps:$4 sm:$0xff]  }
 0x2d0   : > { %15146 = vmatprep.subr.bf16.mxu0 %v21168_v18  ;;  %v21234_v18 = vld [vmem:[#allocation7 + $0x3734] ss:$72 sps:$4 sm:$0xff]  }
 0x2d2   : > { %14803 = vmatpush1.bf16.msra.mxu1 %v21163_v20  ;;  %v21229_v20 = vld [vmem:[#allocation7 + $0x3728] ss:$72 sps:$4 sm:$0xff]  }
 0x2d3   : > { %15147 = vmatpush1.bf16.msra.mxu0 %v21166_v21  ;;  %14804 = vmatprep.subr.bf16.mxu1 %v21171_v42  ;;  %v21232_v21 = vld [vmem:[#allocation7 + $0x3730] ss:$72 sps:$4 sm:$0xff]   ;;  %v21237_v42 = vld [vmem:[#allocation7 + $0x37bc] ss:$72 sps:$4 sm:$0xff]  }
 0x2d4   : > { %15148 = vmatprep.subr.bf16.mxu0 %v21174_v22  ;;  %v21240_v22 = vld [vmem:[#allocation7 + $0x37c4] ss:$72 sps:$4 sm:$0xff]  }
 0x2d6   : > { %14805 = vmatpush1.bf16.msra.mxu1 %v21169_v24  ;;  %v21235_v24 = vld [vmem:[#allocation7 + $0x37b8] ss:$72 sps:$4 sm:$0xff]  }
 0x2d7   : > { %15149 = vmatpush1.bf16.msra.mxu0 %v21172_v25  ;;  %14806 = vmatprep.subr.bf16.mxu1 %v21177_v53  ;;  %v21238_v25 = vld [vmem:[#allocation7 + $0x37c0] ss:$72 sps:$4 sm:$0xff]   ;;  %v21243_v53 = vld [vmem:[#allocation7 + $0x384c] ss:$72 sps:$4 sm:$0xff]  }
 0x2d8   : > { %15150 = vmatprep.subr.bf16.mxu0 %v21180_v26  ;;  %v21246_v26 = vld [vmem:[#allocation7 + $0x3854] ss:$72 sps:$4 sm:$0xff]  }
 0x2da   : > { %14807 = vmatpush1.bf16.msra.mxu1 %v21175_v27  ;;  %v21241_v27 = vld [vmem:[#allocation7 + $0x3848] ss:$72 sps:$4 sm:$0xff]  }
 0x2db   : > { %15151 = vmatpush1.bf16.msra.mxu0 %v21178_v29  ;;  %14808 = vmatprep.subr.bf16.mxu1 %v21183_v32  ;;  %v21244_v29 = vld [vmem:[#allocation7 + $0x3850] ss:$72 sps:$4 sm:$0xff]   ;;  %v21249_v32 = vld [vmem:[#allocation7 + $0x38dc] ss:$72 sps:$4 sm:$0xff]  }
 0x2dc   : > { %15152 = vmatprep.subr.bf16.mxu0 %v21186_v34  ;;  %v21252_v34 = vld [vmem:[#allocation7 + $0x38e4] ss:$72 sps:$4 sm:$0xff]  }
 0x2de   : > { %14809 = vmatpush1.bf16.msra.mxu1 %v21181_v36  ;;  %v21247_v36 = vld [vmem:[#allocation7 + $0x38d8] ss:$72 sps:$4 sm:$0xff]  }
 0x2df   : > { %15153 = vmatpush1.bf16.msra.mxu0 %v21184_v37  ;;  %14810 = vmatprep.subr.bf16.mxu1 %v21189_v38  ;;  %v21250_v37 = vld [vmem:[#allocation7 + $0x38e0] ss:$72 sps:$4 sm:$0xff]   ;;  %v21255_v38 = vld [vmem:[#allocation7 + $0x396c] ss:$72 sps:$4 sm:$0xff]  }
 0x2e0   : > { %15154 = vmatprep.subr.bf16.mxu0 %v21192_v39  ;;  %v21258_v39 = vld [vmem:[#allocation7 + $0x3974] ss:$72 sps:$4 sm:$0xff]  }
 0x2e2   : > { %14811 = vmatpush1.bf16.msra.mxu1 %v21187_v40  ;;  %v21253_v40 = vld [vmem:[#allocation7 + $0x3968] ss:$72 sps:$4 sm:$0xff]  }
 0x2e3   : > { %15155 = vmatpush1.bf16.msra.mxu0 %v21190_v41  ;;  %14812 = vmatprep.subr.bf16.mxu1 %v21195_v43  ;;  %v21256_v41 = vld [vmem:[#allocation7 + $0x3970] ss:$72 sps:$4 sm:$0xff]   ;;  %v21261_v43 = vld [vmem:[#allocation7 + $0x39fc] ss:$72 sps:$4 sm:$0xff]  }
 0x2e4   : > { %15156 = vmatprep.subr.bf16.mxu0 %v21198_v44  ;;  %v21264_v44 = vld [vmem:[#allocation7 + $0x3a04] ss:$72 sps:$4 sm:$0xff]  }
 0x2e6   : > { %14813 = vmatpush1.bf16.msra.mxu1 %v21193_v45  ;;  %v21259_v45 = vld [vmem:[#allocation7 + $0x39f8] ss:$72 sps:$4 sm:$0xff]  }
 0x2e7   : > { %15157 = vmatpush1.bf16.msra.mxu0 %v21196_v46  ;;  %14814 = vmatprep.subr.bf16.mxu1 %v21201_v47  ;;  %v21262_v46 = vld [vmem:[#allocation7 + $0x3a00] ss:$72 sps:$4 sm:$0xff]   ;;  %v21267_v47 = vld [vmem:[#allocation7 + $0x3a8c] ss:$72 sps:$4 sm:$0xff]  }
 0x2e8   : > { %15158 = vmatprep.subr.bf16.mxu0 %v21204_v48  ;;  %v21270_v48 = vld [vmem:[#allocation7 + $0x3a94] ss:$72 sps:$4 sm:$0xff]  }
 0x2ea   : > { %14815 = vmatpush1.bf16.msra.mxu1 %v21199_v49  ;;  %v21265_v49 = vld [vmem:[#allocation7 + $0x3a88] ss:$72 sps:$4 sm:$0xff]  }
 0x2eb   : > { %15159 = vmatpush1.bf16.msra.mxu0 %v21202_v50  ;;  %14816 = vmatprep.subr.bf16.mxu1 %v21207_v51  ;;  %v21268_v50 = vld [vmem:[#allocation7 + $0x3a90] ss:$72 sps:$4 sm:$0xff]   ;;  %v21273_v51 = vld [vmem:[#allocation7 + $0x3b1c] ss:$72 sps:$4 sm:$0xff]  }
 0x2ec   : > { %15160 = vmatprep.subr.bf16.mxu0 %v21210_v52  ;;  %v21276_v52 = vld [vmem:[#allocation7 + $0x3b24] ss:$72 sps:$4 sm:$0xff]  }
 0x2ee   : > { %14817 = vmatpush1.bf16.msra.mxu1 %v21205_v54  ;;  %v21271_v54 = vld [vmem:[#allocation7 + $0x3b18] ss:$72 sps:$4 sm:$0xff]  }
 0x2ef   : > { %15161 = vmatpush1.bf16.msra.mxu0 %v21208_v55  ;;  %14818 = vmatprep.subr.bf16.mxu1 %v21213_v56  ;;  %v21274_v55 = vld [vmem:[#allocation7 + $0x3b20] ss:$72 sps:$4 sm:$0xff]   ;;  %v21279_v56 = vld [vmem:[#allocation7 + $0x3bac] ss:$72 sps:$4 sm:$0xff]  }
 0x2f0   : > { %15162 = vmatprep.subr.bf16.mxu0 %v21216_v57  ;;  %v21282_v57 = vld [vmem:[#allocation7 + $0x3bb4] ss:$72 sps:$4 sm:$0xff]  }
 0x2f2   : > { %14819 = vmatpush1.bf16.msra.mxu1 %v21211_v61  ;;  %v21277_v61 = vld [vmem:[#allocation7 + $0x3ba8] ss:$72 sps:$4 sm:$0xff]  }
 0x2f3   : > { %15163 = vmatpush1.bf16.msra.mxu0 %v21214_v62  ;;  %14831 = vmatprep.subr.bf16.mxu1 %v21219_v63  ;;  %v21280_v62 = vld [vmem:[#allocation7 + $0x3bb0] ss:$72 sps:$4 sm:$0xff]   ;;  %v21285_v63 = vld [vmem:[#allocation7 + $0x3c3c] ss:$72 sps:$4 sm:$0xff]  }
 0x2f4   : > { %15175 = vmatprep.subr.bf16.mxu0 %v21222_v0  ;;  %v21288_v0 = vld [vmem:[#allocation7 + $0x3c44] ss:$72 sps:$4 sm:$0xff]  }
 0x2f5   : > { %14821 = vmatmul.mubr.bf16.vlgmr.msra.gmra.mrb[4].mxu1 %v24182_v4 }
 0x2f6   : > { %15165 = vmatmul.mubr.bf16.vlgmr.msra.gmra.mrb[4].mxu0 %v24182_v4  ;;  %14832 = vmatpush1.bf16.msra.mxu1 %v21217_v7  ;;  %v21283_v7 = vld [vmem:[#allocation7 + $0x3c38] ss:$72 sps:$4 sm:$0xff]  }
 0x2f7   : > { %15176 = vmatpush1.bf16.msra.mxu0 %v21220_v8  ;;  %14833 = vmatprep.subr.bf16.mxu1 %v21225_v10  ;;  %v21286_v8 = vld [vmem:[#allocation7 + $0x3c40] ss:$72 sps:$4 sm:$0xff]   ;;  %v21291_v10 = vld [vmem:[#allocation7 + $0x3ccc] ss:$72 sps:$4 sm:$0xff]  }
 0x2f8   : > { %15177 = vmatprep.subr.bf16.mxu0 %v21228_v11  ;;  %14863 = vmatprep.mubr.bf16.mxu1 %v24192_v59  ;;  %v21294_v11 = vld [vmem:[#allocation7 + $0x3cd4] ss:$72 sps:$4 sm:$0xff]  }
 0x2f9   : > { %15207 = vmatprep.mubr.bf16.mxu0 %v24192_v59 }
 0x2fa   : > { %14834 = vmatpush1.bf16.msra.mxu1 %v21223_v14  ;;  %v21289_v14 = vld [vmem:[#allocation7 + $0x3cc8] ss:$72 sps:$4 sm:$0xff]  }
 0x2fb   : > { %15178 = vmatpush1.bf16.msra.mxu0 %v21226_v15  ;;  %14835 = vmatprep.subr.bf16.mxu1 %v21231_v16  ;;  %v21292_v15 = vld [vmem:[#allocation7 + $0x3cd0] ss:$72 sps:$4 sm:$0xff]   ;;  %v21297_v16 = vld [vmem:[#allocation7 + $0x3d5c] ss:$72 sps:$4 sm:$0xff]  }
 0x2fc   : > { %15179 = vmatprep.subr.bf16.mxu0 %v21234_v18  ;;  %v21300_v18 = vld [vmem:[#allocation7 + $0x3d64] ss:$72 sps:$4 sm:$0xff]  }
 0x2fe   : > { %14836 = vmatpush1.bf16.msra.mxu1 %v21229_v20  ;;  %v21295_v20 = vld [vmem:[#allocation7 + $0x3d58] ss:$72 sps:$4 sm:$0xff]  }
 0x2ff   : > { %15180 = vmatpush1.bf16.msra.mxu0 %v21232_v21  ;;  %14837 = vmatprep.subr.bf16.mxu1 %v21237_v42  ;;  %v21298_v21 = vld [vmem:[#allocation7 + $0x3d60] ss:$72 sps:$4 sm:$0xff]   ;;  %v21303_v42 = vld [vmem:[#allocation7 + $0x3dec] ss:$72 sps:$4 sm:$0xff]  }
 0x300   : > { %15181 = vmatprep.subr.bf16.mxu0 %v21240_v22  ;;  %v21306_v22 = vld [vmem:[#allocation7 + $0x3df4] ss:$72 sps:$4 sm:$0xff]  }
 0x302   : > { %14838 = vmatpush1.bf16.msra.mxu1 %v21235_v24  ;;  %v21301_v24 = vld [vmem:[#allocation7 + $0x3de8] ss:$72 sps:$4 sm:$0xff]  }
 0x303   : > { %15182 = vmatpush1.bf16.msra.mxu0 %v21238_v25  ;;  %14839 = vmatprep.subr.bf16.mxu1 %v21243_v53  ;;  %v21304_v25 = vld [vmem:[#allocation7 + $0x3df0] ss:$72 sps:$4 sm:$0xff]   ;;  %v21309_v53 = vld [vmem:[#allocation7 + $0x3e7c] ss:$72 sps:$4 sm:$0xff]  }
 0x304   : > { %15183 = vmatprep.subr.bf16.mxu0 %v21246_v26  ;;  %v21312_v26 = vld [vmem:[#allocation7 + $0x3e84] ss:$72 sps:$4 sm:$0xff]  }
 0x306   : > { %14840 = vmatpush1.bf16.msra.mxu1 %v21241_v27  ;;  %v21307_v27 = vld [vmem:[#allocation7 + $0x3e78] ss:$72 sps:$4 sm:$0xff]  }
 0x307   : > { %15184 = vmatpush1.bf16.msra.mxu0 %v21244_v29  ;;  %14841 = vmatprep.subr.bf16.mxu1 %v21249_v32  ;;  %v21310_v29 = vld [vmem:[#allocation7 + $0x3e80] ss:$72 sps:$4 sm:$0xff]   ;;  %v21315_v32 = vld [vmem:[#allocation7 + $0x3f0c] ss:$72 sps:$4 sm:$0xff]  }
 0x308   : > { %15185 = vmatprep.subr.bf16.mxu0 %v21252_v34  ;;  %v21318_v34 = vld [vmem:[#allocation7 + $0x3f14] ss:$72 sps:$4 sm:$0xff]  }
 0x30a   : > { %14842 = vmatpush1.bf16.msra.mxu1 %v21247_v36  ;;  %v21313_v36 = vld [vmem:[#allocation7 + $0x3f08] ss:$72 sps:$4 sm:$0xff]  }
 0x30b   : > { %15186 = vmatpush1.bf16.msra.mxu0 %v21250_v37  ;;  %14843 = vmatprep.subr.bf16.mxu1 %v21255_v38  ;;  %v21316_v37 = vld [vmem:[#allocation7 + $0x3f10] ss:$72 sps:$4 sm:$0xff]   ;;  %v21321_v38 = vld [vmem:[#allocation7 + $0x3f9c] ss:$72 sps:$4 sm:$0xff]  }
 0x30c   : > { %15187 = vmatprep.subr.bf16.mxu0 %v21258_v39  ;;  %v21324_v39 = vld [vmem:[#allocation7 + $0x3fa4] ss:$72 sps:$4 sm:$0xff]  }
 0x30e   : > { %14844 = vmatpush1.bf16.msra.mxu1 %v21253_v40  ;;  %v21319_v40 = vld [vmem:[#allocation7 + $0x3f98] ss:$72 sps:$4 sm:$0xff]  }
 0x30f   : > { %15188 = vmatpush1.bf16.msra.mxu0 %v21256_v41  ;;  %14845 = vmatprep.subr.bf16.mxu1 %v21261_v43  ;;  %v21322_v41 = vld [vmem:[#allocation7 + $0x3fa0] ss:$72 sps:$4 sm:$0xff]   ;;  %v21327_v43 = vld [vmem:[#allocation7 + $0x402c] ss:$72 sps:$4 sm:$0xff]  }
 0x310   : > { %15189 = vmatprep.subr.bf16.mxu0 %v21264_v44  ;;  %v21330_v44 = vld [vmem:[#allocation7 + $0x4034] ss:$72 sps:$4 sm:$0xff]  }
 0x312   : > { %14846 = vmatpush1.bf16.msra.mxu1 %v21259_v45  ;;  %v21325_v45 = vld [vmem:[#allocation7 + $0x4028] ss:$72 sps:$4 sm:$0xff]  }
 0x313   : > { %15190 = vmatpush1.bf16.msra.mxu0 %v21262_v46  ;;  %14847 = vmatprep.subr.bf16.mxu1 %v21267_v47  ;;  %v21328_v46 = vld [vmem:[#allocation7 + $0x4030] ss:$72 sps:$4 sm:$0xff]   ;;  %v21333_v47 = vld [vmem:[#allocation7 + $0x40bc] ss:$72 sps:$4 sm:$0xff]  }
 0x314   : > { %15191 = vmatprep.subr.bf16.mxu0 %v21270_v48  ;;  %v21336_v48 = vld [vmem:[#allocation7 + $0x40c4] ss:$72 sps:$4 sm:$0xff]  }
 0x316   : > { %14848 = vmatpush1.bf16.msra.mxu1 %v21265_v49  ;;  %v21331_v49 = vld [vmem:[#allocation7 + $0x40b8] ss:$72 sps:$4 sm:$0xff]  }
 0x317   : > { %15192 = vmatpush1.bf16.msra.mxu0 %v21268_v50  ;;  %14849 = vmatprep.subr.bf16.mxu1 %v21273_v51  ;;  %v21334_v50 = vld [vmem:[#allocation7 + $0x40c0] ss:$72 sps:$4 sm:$0xff]   ;;  %v21339_v51 = vld [vmem:[#allocation7 + $0x414c] ss:$72 sps:$4 sm:$0xff]  }
 0x318   : > { %15193 = vmatprep.subr.bf16.mxu0 %v21276_v52  ;;  %v21342_v52 = vld [vmem:[#allocation7 + $0x4154] ss:$72 sps:$4 sm:$0xff]  }
 0x31a   : > { %14850 = vmatpush1.bf16.msra.mxu1 %v21271_v54  ;;  %v21337_v54 = vld [vmem:[#allocation7 + $0x4148] ss:$72 sps:$4 sm:$0xff]  }
 0x31b   : > { %15194 = vmatpush1.bf16.msra.mxu0 %v21274_v55  ;;  %14851 = vmatprep.subr.bf16.mxu1 %v21279_v56  ;;  %v21340_v55 = vld [vmem:[#allocation7 + $0x4150] ss:$72 sps:$4 sm:$0xff]   ;;  %v21345_v56 = vld [vmem:[#allocation7 + $0x41dc] ss:$72 sps:$4 sm:$0xff]  }
 0x31c   : > { %15195 = vmatprep.subr.bf16.mxu0 %v21282_v57  ;;  %v21348_v57 = vld [vmem:[#allocation7 + $0x41e4] ss:$72 sps:$4 sm:$0xff]  }
 0x31e   : > { %14852 = vmatpush1.bf16.msra.mxu1 %v21277_v61  ;;  %v21343_v61 = vld [vmem:[#allocation7 + $0x41d8] ss:$72 sps:$4 sm:$0xff]  }
 0x31f   : > { %15196 = vmatpush1.bf16.msra.mxu0 %v21280_v62  ;;  %14853 = vmatprep.subr.bf16.mxu1 %v21285_v63  ;;  %v21346_v62 = vld [vmem:[#allocation7 + $0x41e0] ss:$72 sps:$4 sm:$0xff]   ;;  %v21351_v63 = vld [vmem:[#allocation7 + $0x426c] ss:$72 sps:$4 sm:$0xff]  }
 0x320   : > { %15197 = vmatprep.subr.bf16.mxu0 %v21288_v0  ;;  %v21354_v0 = vld [vmem:[#allocation7 + $0x4274] ss:$72 sps:$4 sm:$0xff]  }
 0x322   : > { %14854 = vmatpush1.bf16.msra.mxu1 %v21283_v7  ;;  %v21349_v7 = vld [vmem:[#allocation7 + $0x4268] ss:$72 sps:$4 sm:$0xff]  }
 0x323   : > { %15198 = vmatpush1.bf16.msra.mxu0 %v21286_v8  ;;  %14855 = vmatprep.subr.bf16.mxu1 %v21291_v10  ;;  %v21352_v8 = vld [vmem:[#allocation7 + $0x4270] ss:$72 sps:$4 sm:$0xff]   ;;  %v21357_v10 = vld [vmem:[#allocation7 + $0x42fc] ss:$72 sps:$4 sm:$0xff]  }
 0x324   : > { %15199 = vmatprep.subr.bf16.mxu0 %v21294_v11  ;;  %v21360_v11 = vld [vmem:[#allocation7 + $0x4304] ss:$72 sps:$4 sm:$0xff]  }
 0x326   : > { %14856 = vmatpush1.bf16.msra.mxu1 %v21289_v14  ;;  %v21355_v14 = vld [vmem:[#allocation7 + $0x42f8] ss:$72 sps:$4 sm:$0xff]  }
 0x327   : > { %15200 = vmatpush1.bf16.msra.mxu0 %v21292_v15  ;;  %14857 = vmatprep.subr.bf16.mxu1 %v21297_v16  ;;  %v21358_v15 = vld [vmem:[#allocation7 + $0x4300] ss:$72 sps:$4 sm:$0xff]   ;;  %v21363_v16 = vld [vmem:[#allocation7 + $0x438c] ss:$72 sps:$4 sm:$0xff]  }
 0x328   : > { %15201 = vmatprep.subr.bf16.mxu0 %v21300_v18  ;;  %v21366_v18 = vld [vmem:[#allocation7 + $0x4394] ss:$72 sps:$4 sm:$0xff]  }
 0x32a   : > { %14858 = vmatpush1.bf16.msra.mxu1 %v21295_v20  ;;  %v21361_v20 = vld [vmem:[#allocation7 + $0x4388] ss:$72 sps:$4 sm:$0xff]  }
 0x32b   : > { %15202 = vmatpush1.bf16.msra.mxu0 %v21298_v21  ;;  %14859 = vmatprep.subr.bf16.mxu1 %v21303_v42  ;;  %v21364_v21 = vld [vmem:[#allocation7 + $0x4390] ss:$72 sps:$4 sm:$0xff]   ;;  %v21369_v42 = vld [vmem:[#allocation7 + $0x441c] ss:$72 sps:$4 sm:$0xff]  }
 0x32c   : > { %15203 = vmatprep.subr.bf16.mxu0 %v21306_v22  ;;  %v21372_v22 = vld [vmem:[#allocation7 + $0x4424] ss:$72 sps:$4 sm:$0xff]  }
 0x32e   : > { %14860 = vmatpush1.bf16.msra.mxu1 %v21301_v24  ;;  %v21367_v24 = vld [vmem:[#allocation7 + $0x4418] ss:$72 sps:$4 sm:$0xff]  }
 0x32f   : > { %15204 = vmatpush1.bf16.msra.mxu0 %v21304_v25  ;;  %14861 = vmatprep.subr.bf16.mxu1 %v21309_v53  ;;  %v21370_v25 = vld [vmem:[#allocation7 + $0x4420] ss:$72 sps:$4 sm:$0xff]   ;;  %v21375_v53 = vld [vmem:[#allocation7 + $0x44ac] ss:$72 sps:$4 sm:$0xff]  }
 0x330   : > { %15205 = vmatprep.subr.bf16.mxu0 %v21312_v26  ;;  %v21378_v26 = vld [vmem:[#allocation7 + $0x44b4] ss:$72 sps:$4 sm:$0xff]  }
 0x332   : > { %14862 = vmatpush1.bf16.msra.mxu1 %v21307_v27  ;;  %v21373_v27 = vld [vmem:[#allocation7 + $0x44a8] ss:$72 sps:$4 sm:$0xff]  }
 0x333   : > { %15206 = vmatpush1.bf16.msra.mxu0 %v21310_v29  ;;  %14874 = vmatprep.subr.bf16.mxu1 %v21315_v32  ;;  %v21376_v29 = vld [vmem:[#allocation7 + $0x44b0] ss:$72 sps:$4 sm:$0xff]   ;;  %v21381_v32 = vld [vmem:[#allocation7 + $0x453c] ss:$72 sps:$4 sm:$0xff]  }
 0x334   : > { %15218 = vmatprep.subr.bf16.mxu0 %v21318_v34  ;;  %v21384_v34 = vld [vmem:[#allocation7 + $0x4544] ss:$72 sps:$4 sm:$0xff]  }
 0x335   : > { %14864 = vmatmul.mubr.bf16.vlgmr.msra.gmra.mrb[4].mxu1 %v24209_v60 }
 0x336   : > { %15208 = vmatmul.mubr.bf16.vlgmr.msra.gmra.mrb[4].mxu0 %v24209_v60  ;;  %14875 = vmatpush1.bf16.msra.mxu1 %v21313_v36  ;;  %v21379_v36 = vld [vmem:[#allocation7 + $0x4538] ss:$72 sps:$4 sm:$0xff]  }
 0x337   : > { %15219 = vmatpush1.bf16.msra.mxu0 %v21316_v37  ;;  %14876 = vmatprep.subr.bf16.mxu1 %v21321_v38  ;;  %v21382_v37 = vld [vmem:[#allocation7 + $0x4540] ss:$72 sps:$4 sm:$0xff]   ;;  %v21387_v38 = vld [vmem:[#allocation7 + $0x45cc] ss:$72 sps:$4 sm:$0xff]  }
 0x338   : > { %15220 = vmatprep.subr.bf16.mxu0 %v21324_v39  ;;  %14906 = vmatprep.mubr.bf16.mxu1 %v24213_v5  ;;  %v21390_v39 = vld [vmem:[#allocation7 + $0x45d4] ss:$72 sps:$4 sm:$0xff]  }
 0x339   : > { %15250 = vmatprep.mubr.bf16.mxu0 %v24213_v5 }
 0x33a   : > { %14877 = vmatpush1.bf16.msra.mxu1 %v21319_v40  ;;  %v21385_v40 = vld [vmem:[#allocation7 + $0x45c8] ss:$72 sps:$4 sm:$0xff]  }
 0x33b   : > { %15221 = vmatpush1.bf16.msra.mxu0 %v21322_v41  ;;  %14878 = vmatprep.subr.bf16.mxu1 %v21327_v43  ;;  %v21388_v41 = vld [vmem:[#allocation7 + $0x45d0] ss:$72 sps:$4 sm:$0xff]   ;;  %v21393_v43 = vld [vmem:[#allocation7 + $0x465c] ss:$72 sps:$4 sm:$0xff]  }
 0x33c   : > { %15222 = vmatprep.subr.bf16.mxu0 %v21330_v44  ;;  %v21396_v44 = vld [vmem:[#allocation7 + $0x4664] ss:$72 sps:$4 sm:$0xff]  }
 0x33e   : > { %14879 = vmatpush1.bf16.msra.mxu1 %v21325_v45  ;;  %v21391_v45 = vld [vmem:[#allocation7 + $0x4658] ss:$72 sps:$4 sm:$0xff]  }
 0x33f   : > { %15223 = vmatpush1.bf16.msra.mxu0 %v21328_v46  ;;  %14880 = vmatprep.subr.bf16.mxu1 %v21333_v47  ;;  %v21394_v46 = vld [vmem:[#allocation7 + $0x4660] ss:$72 sps:$4 sm:$0xff]   ;;  %v21399_v47 = vld [vmem:[#allocation7 + $0x46ec] ss:$72 sps:$4 sm:$0xff]  }
 0x340   : > { %15224 = vmatprep.subr.bf16.mxu0 %v21336_v48  ;;  %v21402_v48 = vld [vmem:[#allocation7 + $0x46f4] ss:$72 sps:$4 sm:$0xff]  }
 0x342   : > { %14881 = vmatpush1.bf16.msra.mxu1 %v21331_v49  ;;  %v21397_v49 = vld [vmem:[#allocation7 + $0x46e8] ss:$72 sps:$4 sm:$0xff]  }
 0x343   : > { %15225 = vmatpush1.bf16.msra.mxu0 %v21334_v50  ;;  %14882 = vmatprep.subr.bf16.mxu1 %v21339_v51  ;;  %v21400_v50 = vld [vmem:[#allocation7 + $0x46f0] ss:$72 sps:$4 sm:$0xff]   ;;  %v21405_v51 = vld [vmem:[#allocation7 + $0x477c] ss:$72 sps:$4 sm:$0xff]  }
 0x344   : > { %15226 = vmatprep.subr.bf16.mxu0 %v21342_v52  ;;  %v21408_v52 = vld [vmem:[#allocation7 + $0x4784] ss:$72 sps:$4 sm:$0xff]  }
 0x346   : > { %14883 = vmatpush1.bf16.msra.mxu1 %v21337_v54  ;;  %v21403_v54 = vld [vmem:[#allocation7 + $0x4778] ss:$72 sps:$4 sm:$0xff]  }
 0x347   : > { %15227 = vmatpush1.bf16.msra.mxu0 %v21340_v55  ;;  %14884 = vmatprep.subr.bf16.mxu1 %v21345_v56  ;;  %v21406_v55 = vld [vmem:[#allocation7 + $0x4780] ss:$72 sps:$4 sm:$0xff]   ;;  %v21411_v56 = vld [vmem:[#allocation7 + $0x1c] ss:$72 sps:$4 sm:$0xff]  }
 0x348   : > { %15228 = vmatprep.subr.bf16.mxu0 %v21348_v57  ;;  %v21414_v57 = vld [vmem:[#allocation7 + $0x24] ss:$72 sps:$4 sm:$0xff]  }
 0x34a   : > { %14885 = vmatpush1.bf16.msra.mxu1 %v21343_v61  ;;  %v21409_v61 = vld [vmem:[#allocation7 + $0x18] ss:$72 sps:$4 sm:$0xff]  }
 0x34b   : > { %15229 = vmatpush1.bf16.msra.mxu0 %v21346_v62  ;;  %14886 = vmatprep.subr.bf16.mxu1 %v21351_v63  ;;  %v21412_v62 = vld [vmem:[#allocation7 + $0x20] ss:$72 sps:$4 sm:$0xff]   ;;  %v21417_v63 = vld [vmem:[#allocation7 + $0xac] ss:$72 sps:$4 sm:$0xff]  }
 0x34c   : > { %15230 = vmatprep.subr.bf16.mxu0 %v21354_v0  ;;  %v21420_v0 = vld [vmem:[#allocation7 + $0xb4] ss:$72 sps:$4 sm:$0xff]  }
 0x34e   : > { %14887 = vmatpush1.bf16.msra.mxu1 %v21349_v7  ;;  %v21415_v7 = vld [vmem:[#allocation7 + $0xa8] ss:$72 sps:$4 sm:$0xff]  }
 0x34f   : > { %15231 = vmatpush1.bf16.msra.mxu0 %v21352_v8  ;;  %14888 = vmatprep.subr.bf16.mxu1 %v21357_v10  ;;  %v21418_v8 = vld [vmem:[#allocation7 + $0xb0] ss:$72 sps:$4 sm:$0xff]   ;;  %v21423_v10 = vld [vmem:[#allocation7 + $0x13c] ss:$72 sps:$4 sm:$0xff]  }
 0x350   : > { %15232 = vmatprep.subr.bf16.mxu0 %v21360_v11  ;;  %v21426_v11 = vld [vmem:[#allocation7 + $0x144] ss:$72 sps:$4 sm:$0xff]  }
 0x352   : > { %14889 = vmatpush1.bf16.msra.mxu1 %v21355_v14  ;;  %v21421_v14 = vld [vmem:[#allocation7 + $0x138] ss:$72 sps:$4 sm:$0xff]  }
 0x353   : > { %15233 = vmatpush1.bf16.msra.mxu0 %v21358_v15  ;;  %14890 = vmatprep.subr.bf16.mxu1 %v21363_v16  ;;  %v21424_v15 = vld [vmem:[#allocation7 + $0x140] ss:$72 sps:$4 sm:$0xff]   ;;  %v21429_v16 = vld [vmem:[#allocation7 + $0x1cc] ss:$72 sps:$4 sm:$0xff]  }
 0x354   : > { %15234 = vmatprep.subr.bf16.mxu0 %v21366_v18  ;;  %v21432_v18 = vld [vmem:[#allocation7 + $0x1d4] ss:$72 sps:$4 sm:$0xff]  }
 0x356   : > { %14891 = vmatpush1.bf16.msra.mxu1 %v21361_v20  ;;  %v21427_v20 = vld [vmem:[#allocation7 + $0x1c8] ss:$72 sps:$4 sm:$0xff]  }
 0x357   : > { %15235 = vmatpush1.bf16.msra.mxu0 %v21364_v21  ;;  %14892 = vmatprep.subr.bf16.mxu1 %v21369_v42  ;;  %v21430_v21 = vld [vmem:[#allocation7 + $0x1d0] ss:$72 sps:$4 sm:$0xff]   ;;  %v21435_v42 = vld [vmem:[#allocation7 + $0x25c] ss:$72 sps:$4 sm:$0xff]  }
 0x358   : > { %15236 = vmatprep.subr.bf16.mxu0 %v21372_v22  ;;  %v21438_v22 = vld [vmem:[#allocation7 + $0x264] ss:$72 sps:$4 sm:$0xff]  }
 0x35a   : > { %14893 = vmatpush1.bf16.msra.mxu1 %v21367_v24  ;;  %v21433_v24 = vld [vmem:[#allocation7 + $0x258] ss:$72 sps:$4 sm:$0xff]  }
 0x35b   : > { %15237 = vmatpush1.bf16.msra.mxu0 %v21370_v25  ;;  %14894 = vmatprep.subr.bf16.mxu1 %v21375_v53  ;;  %v21436_v25 = vld [vmem:[#allocation7 + $0x260] ss:$72 sps:$4 sm:$0xff]   ;;  %v21441_v53 = vld [vmem:[#allocation7 + $0x2ec] ss:$72 sps:$4 sm:$0xff]  }
 0x35c   : > { %15238 = vmatprep.subr.bf16.mxu0 %v21378_v26  ;;  %v21444_v26 = vld [vmem:[#allocation7 + $0x2f4] ss:$72 sps:$4 sm:$0xff]  }
 0x35e   : > { %14895 = vmatpush1.bf16.msra.mxu1 %v21373_v27  ;;  %v21439_v27 = vld [vmem:[#allocation7 + $0x2e8] ss:$72 sps:$4 sm:$0xff]  }
 0x35f   : > { %15239 = vmatpush1.bf16.msra.mxu0 %v21376_v29  ;;  %14896 = vmatprep.subr.bf16.mxu1 %v21381_v32  ;;  %v21442_v29 = vld [vmem:[#allocation7 + $0x2f0] ss:$72 sps:$4 sm:$0xff]   ;;  %v21447_v32 = vld [vmem:[#allocation7 + $0x37c] ss:$72 sps:$4 sm:$0xff]  }
 0x360   : > { %15240 = vmatprep.subr.bf16.mxu0 %v21384_v34  ;;  %v21450_v34 = vld [vmem:[#allocation7 + $0x384] ss:$72 sps:$4 sm:$0xff]  }
 0x362   : > { %14897 = vmatpush1.bf16.msra.mxu1 %v21379_v36  ;;  %v21445_v36 = vld [vmem:[#allocation7 + $0x378] ss:$72 sps:$4 sm:$0xff]  }
 0x363   : > { %15241 = vmatpush1.bf16.msra.mxu0 %v21382_v37  ;;  %14898 = vmatprep.subr.bf16.mxu1 %v21387_v38  ;;  %v21448_v37 = vld [vmem:[#allocation7 + $0x380] ss:$72 sps:$4 sm:$0xff]   ;;  %v21453_v38 = vld [vmem:[#allocation7 + $0x40c] ss:$72 sps:$4 sm:$0xff]  }
 0x364   : > { %15242 = vmatprep.subr.bf16.mxu0 %v21390_v39  ;;  %v21456_v39 = vld [vmem:[#allocation7 + $0x414] ss:$72 sps:$4 sm:$0xff]  }
 0x366   : > { %14899 = vmatpush1.bf16.msra.mxu1 %v21385_v40  ;;  %v21451_v40 = vld [vmem:[#allocation7 + $0x408] ss:$72 sps:$4 sm:$0xff]  }
 0x367   : > { %15243 = vmatpush1.bf16.msra.mxu0 %v21388_v41  ;;  %14900 = vmatprep.subr.bf16.mxu1 %v21393_v43  ;;  %v21454_v41 = vld [vmem:[#allocation7 + $0x410] ss:$72 sps:$4 sm:$0xff]   ;;  %v21459_v43 = vld [vmem:[#allocation7 + $0x49c] ss:$72 sps:$4 sm:$0xff]  }
 0x368   : > { %15244 = vmatprep.subr.bf16.mxu0 %v21396_v44  ;;  %v21462_v44 = vld [vmem:[#allocation7 + $0x4a4] ss:$72 sps:$4 sm:$0xff]  }
 0x36a   : > { %14901 = vmatpush1.bf16.msra.mxu1 %v21391_v45  ;;  %v21457_v45 = vld [vmem:[#allocation7 + $0x498] ss:$72 sps:$4 sm:$0xff]  }
 0x36b   : > { %15245 = vmatpush1.bf16.msra.mxu0 %v21394_v46  ;;  %14902 = vmatprep.subr.bf16.mxu1 %v21399_v47  ;;  %v21460_v46 = vld [vmem:[#allocation7 + $0x4a0] ss:$72 sps:$4 sm:$0xff]   ;;  %v21465_v47 = vld [vmem:[#allocation7 + $0x52c] ss:$72 sps:$4 sm:$0xff]  }
 0x36c   : > { %15246 = vmatprep.subr.bf16.mxu0 %v21402_v48  ;;  %v21468_v48 = vld [vmem:[#allocation7 + $0x534] ss:$72 sps:$4 sm:$0xff]  }
 0x36e   : > { %14903 = vmatpush1.bf16.msra.mxu1 %v21397_v49  ;;  %v21463_v49 = vld [vmem:[#allocation7 + $0x528] ss:$72 sps:$4 sm:$0xff]  }
 0x36f   : > { %15247 = vmatpush1.bf16.msra.mxu0 %v21400_v50  ;;  %14904 = vmatprep.subr.bf16.mxu1 %v21405_v51  ;;  %v21466_v50 = vld [vmem:[#allocation7 + $0x530] ss:$72 sps:$4 sm:$0xff]   ;;  %v21471_v51 = vld [vmem:[#allocation7 + $0x5bc] ss:$72 sps:$4 sm:$0xff]  }
 0x370   : > { %15248 = vmatprep.subr.bf16.mxu0 %v21408_v52  ;;  %v21474_v52 = vld [vmem:[#allocation7 + $0x5c4] ss:$72 sps:$4 sm:$0xff]  }
 0x372   : > { %14905 = vmatpush1.bf16.msra.mxu1 %v21403_v54  ;;  %v21469_v54 = vld [vmem:[#allocation7 + $0x5b8] ss:$72 sps:$4 sm:$0xff]  }
 0x373   : > { %15249 = vmatpush1.bf16.msra.mxu0 %v21406_v55  ;;  %15261 = vmatprep.subr.bf16.mxu1 %v21411_v56  ;;  %v21472_v55 = vld [vmem:[#allocation7 + $0x5c0] ss:$72 sps:$4 sm:$0xff]   ;;  %v21477_v56 = vld [vmem:[#allocation7 + $0x64c] ss:$72 sps:$4 sm:$0xff]  }
 0x374   : > { %15605 = vmatprep.subr.bf16.mxu0 %v21414_v57  ;;  %v21480_v57 = vld [vmem:[#allocation7 + $0x654] ss:$72 sps:$4 sm:$0xff]  }
 0x375   : > { %14907 = vmatmul.mubr.bf16.vlgmr.msra.gmra.mrb[4].mxu1 %v24224_v35 }
 0x376   : > { %15251 = vmatmul.mubr.bf16.vlgmr.msra.gmra.mrb[4].mxu0 %v24224_v35  ;;  %15262 = vmatpush1.bf16.msra.mxu1 %v21409_v61  ;;  %v21475_v61 = vld [vmem:[#allocation7 + $0x648] ss:$72 sps:$4 sm:$0xff]  }
 0x377   : > { %15606 = vmatpush1.bf16.msra.mxu0 %v21412_v62  ;;  %15263 = vmatprep.subr.bf16.mxu1 %v21417_v63  ;;  %v21478_v62 = vld [vmem:[#allocation7 + $0x650] ss:$72 sps:$4 sm:$0xff]   ;;  %v21483_v63 = vld [vmem:[#allocation7 + $0x6dc] ss:$72 sps:$4 sm:$0xff]  }
 0x378   : > { %15607 = vmatprep.subr.bf16.mxu0 %v21420_v0  ;;  %15293 = vmatprep.mubr.bf16.mxu1 %v24153_v1  ;;  %v21486_v0 = vld [vmem:[#allocation7 + $0x6e4] ss:$72 sps:$4 sm:$0xff]  }
 0x379   : > { %15637 = vmatprep.mubr.bf16.mxu0 %v24153_v1 }
 0x37a   : > { %15264 = vmatpush1.bf16.msra.mxu1 %v21415_v7  ;;  %v21481_v7 = vld [vmem:[#allocation7 + $0x6d8] ss:$72 sps:$4 sm:$0xff]  }
 0x37b   : > { %15608 = vmatpush1.bf16.msra.mxu0 %v21418_v8  ;;  %15265 = vmatprep.subr.bf16.mxu1 %v21423_v10  ;;  %v21484_v8 = vld [vmem:[#allocation7 + $0x6e0] ss:$72 sps:$4 sm:$0xff]   ;;  %v21489_v10 = vld [vmem:[#allocation7 + $0x76c] ss:$72 sps:$4 sm:$0xff]  }
 0x37c   : > { %15609 = vmatprep.subr.bf16.mxu0 %v21426_v11  ;;  %v21492_v11 = vld [vmem:[#allocation7 + $0x774] ss:$72 sps:$4 sm:$0xff]  }
 0x37e   : > { %15266 = vmatpush1.bf16.msra.mxu1 %v21421_v14  ;;  %v21487_v14 = vld [vmem:[#allocation7 + $0x768] ss:$72 sps:$4 sm:$0xff]  }
 0x37f   : > { %15610 = vmatpush1.bf16.msra.mxu0 %v21424_v15  ;;  %15267 = vmatprep.subr.bf16.mxu1 %v21429_v16  ;;  %v21490_v15 = vld [vmem:[#allocation7 + $0x770] ss:$72 sps:$4 sm:$0xff]   ;;  %v21495_v16 = vld [vmem:[#allocation7 + $0x7fc] ss:$72 sps:$4 sm:$0xff]  }
 0x380   : > { %15611 = vmatprep.subr.bf16.mxu0 %v21432_v18  ;;  %v21498_v18 = vld [vmem:[#allocation7 + $0x804] ss:$72 sps:$4 sm:$0xff]  }
 0x382   : > { %15268 = vmatpush1.bf16.msra.mxu1 %v21427_v20  ;;  %v21493_v20 = vld [vmem:[#allocation7 + $0x7f8] ss:$72 sps:$4 sm:$0xff]  }
 0x383   : > { %15612 = vmatpush1.bf16.msra.mxu0 %v21430_v21  ;;  %15269 = vmatprep.subr.bf16.mxu1 %v21435_v42  ;;  %v21496_v21 = vld [vmem:[#allocation7 + $0x800] ss:$72 sps:$4 sm:$0xff]   ;;  %v21501_v42 = vld [vmem:[#allocation7 + $0x88c] ss:$72 sps:$4 sm:$0xff]  }
 0x384   : > { %15613 = vmatprep.subr.bf16.mxu0 %v21438_v22  ;;  %v21504_v22 = vld [vmem:[#allocation7 + $0x894] ss:$72 sps:$4 sm:$0xff]  }
 0x386   : > { %15270 = vmatpush1.bf16.msra.mxu1 %v21433_v24  ;;  %v21499_v24 = vld [vmem:[#allocation7 + $0x888] ss:$72 sps:$4 sm:$0xff]  }
 0x387   : > { %15614 = vmatpush1.bf16.msra.mxu0 %v21436_v25  ;;  %15271 = vmatprep.subr.bf16.mxu1 %v21441_v53  ;;  %v21502_v25 = vld [vmem:[#allocation7 + $0x890] ss:$72 sps:$4 sm:$0xff]   ;;  %v21507_v53 = vld [vmem:[#allocation7 + $0x91c] ss:$72 sps:$4 sm:$0xff]  }
 0x388   : > { %15615 = vmatprep.subr.bf16.mxu0 %v21444_v26  ;;  %v21510_v26 = vld [vmem:[#allocation7 + $0x924] ss:$72 sps:$4 sm:$0xff]  }
 0x38a   : > { %15272 = vmatpush1.bf16.msra.mxu1 %v21439_v27  ;;  %v21505_v27 = vld [vmem:[#allocation7 + $0x918] ss:$72 sps:$4 sm:$0xff]  }
 0x38b   : > { %15616 = vmatpush1.bf16.msra.mxu0 %v21442_v29  ;;  %15273 = vmatprep.subr.bf16.mxu1 %v21447_v32  ;;  %v21508_v29 = vld [vmem:[#allocation7 + $0x920] ss:$72 sps:$4 sm:$0xff]   ;;  %v21513_v32 = vld [vmem:[#allocation7 + $0x9ac] ss:$72 sps:$4 sm:$0xff]  }
 0x38c   : > { %15617 = vmatprep.subr.bf16.mxu0 %v21450_v34  ;;  %v21516_v34 = vld [vmem:[#allocation7 + $0x9b4] ss:$72 sps:$4 sm:$0xff]  }
 0x38e   : > { %15274 = vmatpush1.bf16.msra.mxu1 %v21445_v36  ;;  %v21511_v36 = vld [vmem:[#allocation7 + $0x9a8] ss:$72 sps:$4 sm:$0xff]  }
 0x38f   : > { %15618 = vmatpush1.bf16.msra.mxu0 %v21448_v37  ;;  %15275 = vmatprep.subr.bf16.mxu1 %v21453_v38  ;;  %v21514_v37 = vld [vmem:[#allocation7 + $0x9b0] ss:$72 sps:$4 sm:$0xff]   ;;  %v21519_v38 = vld [vmem:[#allocation7 + $0xa3c] ss:$72 sps:$4 sm:$0xff]  }
 0x390   : > { %15619 = vmatprep.subr.bf16.mxu0 %v21456_v39  ;;  %v21522_v39 = vld [vmem:[#allocation7 + $0xa44] ss:$72 sps:$4 sm:$0xff]  }
 0x392   : > { %15276 = vmatpush1.bf16.msra.mxu1 %v21451_v40  ;;  %v21517_v40 = vld [vmem:[#allocation7 + $0xa38] ss:$72 sps:$4 sm:$0xff]  }
 0x393   : > { %15620 = vmatpush1.bf16.msra.mxu0 %v21454_v41  ;;  %15277 = vmatprep.subr.bf16.mxu1 %v21459_v43  ;;  %v21520_v41 = vld [vmem:[#allocation7 + $0xa40] ss:$72 sps:$4 sm:$0xff]   ;;  %v21525_v43 = vld [vmem:[#allocation7 + $0xacc] ss:$72 sps:$4 sm:$0xff]  }
 0x394   : > { %15621 = vmatprep.subr.bf16.mxu0 %v21462_v44  ;;  %v21528_v44 = vld [vmem:[#allocation7 + $0xad4] ss:$72 sps:$4 sm:$0xff]  }
 0x396   : > { %15278 = vmatpush1.bf16.msra.mxu1 %v21457_v45  ;;  %v21523_v45 = vld [vmem:[#allocation7 + $0xac8] ss:$72 sps:$4 sm:$0xff]  }
 0x397   : > { %15622 = vmatpush1.bf16.msra.mxu0 %v21460_v46  ;;  %15279 = vmatprep.subr.bf16.mxu1 %v21465_v47  ;;  %v21526_v46 = vld [vmem:[#allocation7 + $0xad0] ss:$72 sps:$4 sm:$0xff]   ;;  %v21531_v47 = vld [vmem:[#allocation7 + $0xb5c] ss:$72 sps:$4 sm:$0xff]  }
 0x398   : > { %15623 = vmatprep.subr.bf16.mxu0 %v21468_v48  ;;  %v21534_v48 = vld [vmem:[#allocation7 + $0xb64] ss:$72 sps:$4 sm:$0xff]  }
 0x39a   : > { %15280 = vmatpush1.bf16.msra.mxu1 %v21463_v49  ;;  %v21529_v49 = vld [vmem:[#allocation7 + $0xb58] ss:$72 sps:$4 sm:$0xff]  }
 0x39b   : > { %15624 = vmatpush1.bf16.msra.mxu0 %v21466_v50  ;;  %15281 = vmatprep.subr.bf16.mxu1 %v21471_v51  ;;  %v21532_v50 = vld [vmem:[#allocation7 + $0xb60] ss:$72 sps:$4 sm:$0xff]   ;;  %v21537_v51 = vld [vmem:[#allocation7 + $0xbec] ss:$72 sps:$4 sm:$0xff]  }
 0x39c   : > { %15625 = vmatprep.subr.bf16.mxu0 %v21474_v52  ;;  %v21540_v52 = vld [vmem:[#allocation7 + $0xbf4] ss:$72 sps:$4 sm:$0xff]  }
 0x39e   : > { %15282 = vmatpush1.bf16.msra.mxu1 %v21469_v54  ;;  %v21535_v54 = vld [vmem:[#allocation7 + $0xbe8] ss:$72 sps:$4 sm:$0xff]  }
 0x39f   : > { %15626 = vmatpush1.bf16.msra.mxu0 %v21472_v55  ;;  %15283 = vmatprep.subr.bf16.mxu1 %v21477_v56  ;;  %v21538_v55 = vld [vmem:[#allocation7 + $0xbf0] ss:$72 sps:$4 sm:$0xff]   ;;  %v21543_v56 = vld [vmem:[#allocation7 + $0xc7c] ss:$72 sps:$4 sm:$0xff]  }
 0x3a0   : > { %15627 = vmatprep.subr.bf16.mxu0 %v21480_v57  ;;  %v21546_v57 = vld [vmem:[#allocation7 + $0xc84] ss:$72 sps:$4 sm:$0xff]  }
 0x3a2   : > { %15284 = vmatpush1.bf16.msra.mxu1 %v21475_v61  ;;  %v21541_v61 = vld [vmem:[#allocation7 + $0xc78] ss:$72 sps:$4 sm:$0xff]  }
 0x3a3   : > { %15628 = vmatpush1.bf16.msra.mxu0 %v21478_v62  ;;  %15285 = vmatprep.subr.bf16.mxu1 %v21483_v63  ;;  %v21544_v62 = vld [vmem:[#allocation7 + $0xc80] ss:$72 sps:$4 sm:$0xff]   ;;  %v21549_v63 = vld [vmem:[#allocation7 + $0xd0c] ss:$72 sps:$4 sm:$0xff]  }
 0x3a4   : > { %15629 = vmatprep.subr.bf16.mxu0 %v21486_v0  ;;  %v21552_v0 = vld [vmem:[#allocation7 + $0xd14] ss:$72 sps:$4 sm:$0xff]  }
 0x3a6   : > { %15286 = vmatpush1.bf16.msra.mxu1 %v21481_v7  ;;  %v21547_v7 = vld [vmem:[#allocation7 + $0xd08] ss:$72 sps:$4 sm:$0xff]  }
 0x3a7   : > { %15630 = vmatpush1.bf16.msra.mxu0 %v21484_v8  ;;  %15287 = vmatprep.subr.bf16.mxu1 %v21489_v10  ;;  %v21550_v8 = vld [vmem:[#allocation7 + $0xd10] ss:$72 sps:$4 sm:$0xff]   ;;  %v21555_v10 = vld [vmem:[#allocation7 + $0xd9c] ss:$72 sps:$4 sm:$0xff]  }
 0x3a8   : > { %15631 = vmatprep.subr.bf16.mxu0 %v21492_v11  ;;  %v21558_v11 = vld [vmem:[#allocation7 + $0xda4] ss:$72 sps:$4 sm:$0xff]  }
 0x3aa   : > { %15288 = vmatpush1.bf16.msra.mxu1 %v21487_v14  ;;  %v21553_v14 = vld [vmem:[#allocation7 + $0xd98] ss:$72 sps:$4 sm:$0xff]  }
 0x3ab   : > { %15632 = vmatpush1.bf16.msra.mxu0 %v21490_v15  ;;  %15289 = vmatprep.subr.bf16.mxu1 %v21495_v16  ;;  %v21556_v15 = vld [vmem:[#allocation7 + $0xda0] ss:$72 sps:$4 sm:$0xff]   ;;  %v21561_v16 = vld [vmem:[#allocation7 + $0xe2c] ss:$72 sps:$4 sm:$0xff]  }
 0x3ac   : > { %15633 = vmatprep.subr.bf16.mxu0 %v21498_v18  ;;  %v21564_v18 = vld [vmem:[#allocation7 + $0xe34] ss:$72 sps:$4 sm:$0xff]  }
 0x3ae   : > { %15290 = vmatpush1.bf16.msra.mxu1 %v21493_v20  ;;  %v21559_v20 = vld [vmem:[#allocation7 + $0xe28] ss:$72 sps:$4 sm:$0xff]  }
 0x3af   : > { %15634 = vmatpush1.bf16.msra.mxu0 %v21496_v21  ;;  %15291 = vmatprep.subr.bf16.mxu1 %v21501_v42  ;;  %v21562_v21 = vld [vmem:[#allocation7 + $0xe30] ss:$72 sps:$4 sm:$0xff]   ;;  %v21567_v42 = vld [vmem:[#allocation7 + $0xebc] ss:$72 sps:$4 sm:$0xff]  }
 0x3b0   : > { %15635 = vmatprep.subr.bf16.mxu0 %v21504_v22  ;;  %v21570_v22 = vld [vmem:[#allocation7 + $0xec4] ss:$72 sps:$4 sm:$0xff]  }
 0x3b2   : > { %15292 = vmatpush1.bf16.msra.mxu1 %v21499_v24  ;;  %v21565_v24 = vld [vmem:[#allocation7 + $0xeb8] ss:$72 sps:$4 sm:$0xff]  }
 0x3b3   : > { %15636 = vmatpush1.bf16.msra.mxu0 %v21502_v25  ;;  %15304 = vmatprep.subr.bf16.mxu1 %v21507_v53  ;;  %v21568_v25 = vld [vmem:[#allocation7 + $0xec0] ss:$72 sps:$4 sm:$0xff]   ;;  %v21573_v53 = vld [vmem:[#allocation7 + $0xf4c] ss:$72 sps:$4 sm:$0xff]  }
 0x3b4   : > { %15648 = vmatprep.subr.bf16.mxu0 %v21510_v26  ;;  %v21576_v26 = vld [vmem:[#allocation7 + $0xf54] ss:$72 sps:$4 sm:$0xff]  }
 0x3b5   : > { %15294 = vmatmul.mubr.bf16.vlgmr.msra.gmra.mrb[8].mxu1 %v24162_v30 }
 0x3b6   : > { %15638 = vmatmul.mubr.bf16.vlgmr.msra.gmra.mrb[8].mxu0 %v24162_v30  ;;  %15305 = vmatpush1.bf16.msra.mxu1 %v21505_v27  ;;  %v21571_v27 = vld [vmem:[#allocation7 + $0xf48] ss:$72 sps:$4 sm:$0xff]  }
 0x3b7   : > { %15649 = vmatpush1.bf16.msra.mxu0 %v21508_v29  ;;  %15306 = vmatprep.subr.bf16.mxu1 %v21513_v32  ;;  %v21574_v29 = vld [vmem:[#allocation7 + $0xf50] ss:$72 sps:$4 sm:$0xff]   ;;  %v21579_v32 = vld [vmem:[#allocation7 + $0xfdc] ss:$72 sps:$4 sm:$0xff]  }
 0x3b8   : > { %15650 = vmatprep.subr.bf16.mxu0 %v21516_v34  ;;  %15336 = vmatprep.mubr.bf16.mxu1 %v24171_v13  ;;  %v21582_v34 = vld [vmem:[#allocation7 + $0xfe4] ss:$72 sps:$4 sm:$0xff]  }
 0x3b9   : > { %15680 = vmatprep.mubr.bf16.mxu0 %v24171_v13 }
 0x3ba   : > { %15307 = vmatpush1.bf16.msra.mxu1 %v21511_v36  ;;  %v21577_v36 = vld [vmem:[#allocation7 + $0xfd8] ss:$72 sps:$4 sm:$0xff]  }
 0x3bb   : > { %15651 = vmatpush1.bf16.msra.mxu0 %v21514_v37  ;;  %15308 = vmatprep.subr.bf16.mxu1 %v21519_v38  ;;  %v21580_v37 = vld [vmem:[#allocation7 + $0xfe0] ss:$72 sps:$4 sm:$0xff]   ;;  %v21585_v38 = vld [vmem:[#allocation7 + $0x106c] ss:$72 sps:$4 sm:$0xff]  }
 0x3bc   : > { %15652 = vmatprep.subr.bf16.mxu0 %v21522_v39  ;;  %v21588_v39 = vld [vmem:[#allocation7 + $0x1074] ss:$72 sps:$4 sm:$0xff]  }
 0x3be   : > { %15309 = vmatpush1.bf16.msra.mxu1 %v21517_v40  ;;  %v21583_v40 = vld [vmem:[#allocation7 + $0x1068] ss:$72 sps:$4 sm:$0xff]  }
 0x3bf   : > { %15653 = vmatpush1.bf16.msra.mxu0 %v21520_v41  ;;  %15310 = vmatprep.subr.bf16.mxu1 %v21525_v43  ;;  %v21586_v41 = vld [vmem:[#allocation7 + $0x1070] ss:$72 sps:$4 sm:$0xff]   ;;  %v21591_v43 = vld [vmem:[#allocation7 + $0x10fc] ss:$72 sps:$4 sm:$0xff]  }
 0x3c0   : > { %15654 = vmatprep.subr.bf16.mxu0 %v21528_v44  ;;  %v21594_v44 = vld [vmem:[#allocation7 + $0x1104] ss:$72 sps:$4 sm:$0xff]  }
 0x3c2   : > { %15311 = vmatpush1.bf16.msra.mxu1 %v21523_v45  ;;  %v21589_v45 = vld [vmem:[#allocation7 + $0x10f8] ss:$72 sps:$4 sm:$0xff]  }
 0x3c3   : > { %15655 = vmatpush1.bf16.msra.mxu0 %v21526_v46  ;;  %15312 = vmatprep.subr.bf16.mxu1 %v21531_v47  ;;  %v21592_v46 = vld [vmem:[#allocation7 + $0x1100] ss:$72 sps:$4 sm:$0xff]   ;;  %v21597_v47 = vld [vmem:[#allocation7 + $0x118c] ss:$72 sps:$4 sm:$0xff]  }
 0x3c4   : > { %15656 = vmatprep.subr.bf16.mxu0 %v21534_v48  ;;  %v21600_v48 = vld [vmem:[#allocation7 + $0x1194] ss:$72 sps:$4 sm:$0xff]  }
 0x3c6   : > { %15313 = vmatpush1.bf16.msra.mxu1 %v21529_v49  ;;  %v21595_v49 = vld [vmem:[#allocation7 + $0x1188] ss:$72 sps:$4 sm:$0xff]  }
 0x3c7   : > { %15657 = vmatpush1.bf16.msra.mxu0 %v21532_v50  ;;  %15314 = vmatprep.subr.bf16.mxu1 %v21537_v51  ;;  %v21598_v50 = vld [vmem:[#allocation7 + $0x1190] ss:$72 sps:$4 sm:$0xff]   ;;  %v21603_v51 = vld [vmem:[#allocation7 + $0x121c] ss:$72 sps:$4 sm:$0xff]  }
 0x3c8   : > { %15658 = vmatprep.subr.bf16.mxu0 %v21540_v52  ;;  %v21606_v52 = vld [vmem:[#allocation7 + $0x1224] ss:$72 sps:$4 sm:$0xff]  }
 0x3ca   : > { %15315 = vmatpush1.bf16.msra.mxu1 %v21535_v54  ;;  %v21601_v54 = vld [vmem:[#allocation7 + $0x1218] ss:$72 sps:$4 sm:$0xff]  }
 0x3cb   : > { %15659 = vmatpush1.bf16.msra.mxu0 %v21538_v55  ;;  %15316 = vmatprep.subr.bf16.mxu1 %v21543_v56  ;;  %v21604_v55 = vld [vmem:[#allocation7 + $0x1220] ss:$72 sps:$4 sm:$0xff]   ;;  %v21609_v56 = vld [vmem:[#allocation7 + $0x12ac] ss:$72 sps:$4 sm:$0xff]  }
 0x3cc   : > { %15660 = vmatprep.subr.bf16.mxu0 %v21546_v57  ;;  %v21612_v57 = vld [vmem:[#allocation7 + $0x12b4] ss:$72 sps:$4 sm:$0xff]  }
 0x3ce   : > { %15317 = vmatpush1.bf16.msra.mxu1 %v21541_v61  ;;  %v21607_v61 = vld [vmem:[#allocation7 + $0x12a8] ss:$72 sps:$4 sm:$0xff]  }
 0x3cf   : > { %15661 = vmatpush1.bf16.msra.mxu0 %v21544_v62  ;;  %15318 = vmatprep.subr.bf16.mxu1 %v21549_v63  ;;  %v21610_v62 = vld [vmem:[#allocation7 + $0x12b0] ss:$72 sps:$4 sm:$0xff]   ;;  %v21615_v63 = vld [vmem:[#allocation7 + $0x133c] ss:$72 sps:$4 sm:$0xff]  }
 0x3d0   : > { %15662 = vmatprep.subr.bf16.mxu0 %v21552_v0  ;;  %v21618_v0 = vld [vmem:[#allocation7 + $0x1344] ss:$72 sps:$4 sm:$0xff]  }
 0x3d2   : > { %15319 = vmatpush1.bf16.msra.mxu1 %v21547_v7  ;;  %v21613_v7 = vld [vmem:[#allocation7 + $0x1338] ss:$72 sps:$4 sm:$0xff]  }
 0x3d3   : > { %15663 = vmatpush1.bf16.msra.mxu0 %v21550_v8  ;;  %15320 = vmatprep.subr.bf16.mxu1 %v21555_v10  ;;  %v21616_v8 = vld [vmem:[#allocation7 + $0x1340] ss:$72 sps:$4 sm:$0xff]   ;;  %v21621_v10 = vld [vmem:[#allocation7 + $0x13cc] ss:$72 sps:$4 sm:$0xff]  }
 0x3d4   : > { %15664 = vmatprep.subr.bf16.mxu0 %v21558_v11  ;;  %v21624_v11 = vld [vmem:[#allocation7 + $0x13d4] ss:$72 sps:$4 sm:$0xff]  }
 0x3d6   : > { %15321 = vmatpush1.bf16.msra.mxu1 %v21553_v14  ;;  %v21619_v14 = vld [vmem:[#allocation7 + $0x13c8] ss:$72 sps:$4 sm:$0xff]  }
 0x3d7   : > { %15665 = vmatpush1.bf16.msra.mxu0 %v21556_v15  ;;  %15322 = vmatprep.subr.bf16.mxu1 %v21561_v16  ;;  %v21622_v15 = vld [vmem:[#allocation7 + $0x13d0] ss:$72 sps:$4 sm:$0xff]   ;;  %v21627_v16 = vld [vmem:[#allocation7 + $0x145c] ss:$72 sps:$4 sm:$0xff]  }
 0x3d8   : > { %15666 = vmatprep.subr.bf16.mxu0 %v21564_v18  ;;  %v21630_v18 = vld [vmem:[#allocation7 + $0x1464] ss:$72 sps:$4 sm:$0xff]  }
 0x3da   : > { %15323 = vmatpush1.bf16.msra.mxu1 %v21559_v20  ;;  %v21625_v20 = vld [vmem:[#allocation7 + $0x1458] ss:$72 sps:$4 sm:$0xff]  }
 0x3db   : > { %15667 = vmatpush1.bf16.msra.mxu0 %v21562_v21  ;;  %15324 = vmatprep.subr.bf16.mxu1 %v21567_v42  ;;  %v21628_v21 = vld [vmem:[#allocation7 + $0x1460] ss:$72 sps:$4 sm:$0xff]   ;;  %v21633_v42 = vld [vmem:[#allocation7 + $0x14ec] ss:$72 sps:$4 sm:$0xff]  }
 0x3dc   : > { %15668 = vmatprep.subr.bf16.mxu0 %v21570_v22  ;;  %v21636_v22 = vld [vmem:[#allocation7 + $0x14f4] ss:$72 sps:$4 sm:$0xff]  }
 0x3de   : > { %15325 = vmatpush1.bf16.msra.mxu1 %v21565_v24  ;;  %v21631_v24 = vld [vmem:[#allocation7 + $0x14e8] ss:$72 sps:$4 sm:$0xff]  }
 0x3df   : > { %15669 = vmatpush1.bf16.msra.mxu0 %v21568_v25  ;;  %15326 = vmatprep.subr.bf16.mxu1 %v21573_v53  ;;  %v21634_v25 = vld [vmem:[#allocation7 + $0x14f0] ss:$72 sps:$4 sm:$0xff]   ;;  %v21639_v53 = vld [vmem:[#allocation7 + $0x157c] ss:$72 sps:$4 sm:$0xff]  }
 0x3e0   : > { %15670 = vmatprep.subr.bf16.mxu0 %v21576_v26  ;;  %v21642_v26 = vld [vmem:[#allocation7 + $0x1584] ss:$72 sps:$4 sm:$0xff]  }
 0x3e2   : > { %15327 = vmatpush1.bf16.msra.mxu1 %v21571_v27  ;;  %v21637_v27 = vld [vmem:[#allocation7 + $0x1578] ss:$72 sps:$4 sm:$0xff]  }
 0x3e3   : > { %15671 = vmatpush1.bf16.msra.mxu0 %v21574_v29  ;;  %15328 = vmatprep.subr.bf16.mxu1 %v21579_v32  ;;  %v21640_v29 = vld [vmem:[#allocation7 + $0x1580] ss:$72 sps:$4 sm:$0xff]   ;;  %v21645_v32 = vld [vmem:[#allocation7 + $0x160c] ss:$72 sps:$4 sm:$0xff]  }
 0x3e4   : > { %15672 = vmatprep.subr.bf16.mxu0 %v21582_v34  ;;  %v21648_v34 = vld [vmem:[#allocation7 + $0x1614] ss:$72 sps:$4 sm:$0xff]  }
 0x3e6   : > { %15329 = vmatpush1.bf16.msra.mxu1 %v21577_v36  ;;  %v21643_v36 = vld [vmem:[#allocation7 + $0x1608] ss:$72 sps:$4 sm:$0xff]  }
 0x3e7   : > { %15673 = vmatpush1.bf16.msra.mxu0 %v21580_v37  ;;  %15330 = vmatprep.subr.bf16.mxu1 %v21585_v38  ;;  %v21646_v37 = vld [vmem:[#allocation7 + $0x1610] ss:$72 sps:$4 sm:$0xff]   ;;  %v21651_v38 = vld [vmem:[#allocation7 + $0x169c] ss:$72 sps:$4 sm:$0xff]  }
 0x3e8   : > { %15674 = vmatprep.subr.bf16.mxu0 %v21588_v39  ;;  %v21654_v39 = vld [vmem:[#allocation7 + $0x16a4] ss:$72 sps:$4 sm:$0xff]  }
 0x3ea   : > { %15331 = vmatpush1.bf16.msra.mxu1 %v21583_v40  ;;  %v21649_v40 = vld [vmem:[#allocation7 + $0x1698] ss:$72 sps:$4 sm:$0xff]  }
 0x3eb   : > { %15675 = vmatpush1.bf16.msra.mxu0 %v21586_v41  ;;  %15332 = vmatprep.subr.bf16.mxu1 %v21591_v43  ;;  %v21652_v41 = vld [vmem:[#allocation7 + $0x16a0] ss:$72 sps:$4 sm:$0xff]   ;;  %v21657_v43 = vld [vmem:[#allocation7 + $0x172c] ss:$72 sps:$4 sm:$0xff]  }
 0x3ec   : > { %15676 = vmatprep.subr.bf16.mxu0 %v21594_v44  ;;  %v21660_v44 = vld [vmem:[#allocation7 + $0x1734] ss:$72 sps:$4 sm:$0xff]  }
 0x3ee   : > { %15333 = vmatpush1.bf16.msra.mxu1 %v21589_v45  ;;  %v21655_v45 = vld [vmem:[#allocation7 + $0x1728] ss:$72 sps:$4 sm:$0xff]  }
 0x3ef   : > { %15677 = vmatpush1.bf16.msra.mxu0 %v21592_v46  ;;  %15334 = vmatprep.subr.bf16.mxu1 %v21597_v47  ;;  %v21658_v46 = vld [vmem:[#allocation7 + $0x1730] ss:$72 sps:$4 sm:$0xff]   ;;  %v21663_v47 = vld [vmem:[#allocation7 + $0x17bc] ss:$72 sps:$4 sm:$0xff]  }
 0x3f0   : > { %15678 = vmatprep.subr.bf16.mxu0 %v21600_v48  ;;  %v21666_v48 = vld [vmem:[#allocation7 + $0x17c4] ss:$72 sps:$4 sm:$0xff]  }
 0x3f2   : > { %15335 = vmatpush1.bf16.msra.mxu1 %v21595_v49  ;;  %v21661_v49 = vld [vmem:[#allocation7 + $0x17b8] ss:$72 sps:$4 sm:$0xff]  }
 0x3f3   : > { %15679 = vmatpush1.bf16.msra.mxu0 %v21598_v50  ;;  %15347 = vmatprep.subr.bf16.mxu1 %v21603_v51  ;;  %v21664_v50 = vld [vmem:[#allocation7 + $0x17c0] ss:$72 sps:$4 sm:$0xff]   ;;  %v21669_v51 = vld [vmem:[#allocation7 + $0x184c] ss:$72 sps:$4 sm:$0xff]  }
 0x3f4   : > { %15691 = vmatprep.subr.bf16.mxu0 %v21606_v52  ;;  %v21672_v52 = vld [vmem:[#allocation7 + $0x1854] ss:$72 sps:$4 sm:$0xff]  }
 0x3f5   : > { %15337 = vmatmul.mubr.bf16.vlgmr.msra.gmra.mrb[8].mxu1 %v24180_v3 }
 0x3f6   : > { %15681 = vmatmul.mubr.bf16.vlgmr.msra.gmra.mrb[8].mxu0 %v24180_v3  ;;  %15348 = vmatpush1.bf16.msra.mxu1 %v21601_v54  ;;  %v21667_v54 = vld [vmem:[#allocation7 + $0x1848] ss:$72 sps:$4 sm:$0xff]  }
 0x3f7   : > { %15692 = vmatpush1.bf16.msra.mxu0 %v21604_v55  ;;  %15349 = vmatprep.subr.bf16.mxu1 %v21609_v56  ;;  %v21670_v55 = vld [vmem:[#allocation7 + $0x1850] ss:$72 sps:$4 sm:$0xff]   ;;  %v21675_v56 = vld [vmem:[#allocation7 + $0x18dc] ss:$72 sps:$4 sm:$0xff]  }
 0x3f8   : > { %15693 = vmatprep.subr.bf16.mxu0 %v21612_v57  ;;  %15379 = vmatprep.mubr.bf16.mxu1 %v24189_v28  ;;  %v21678_v57 = vld [vmem:[#allocation7 + $0x18e4] ss:$72 sps:$4 sm:$0xff]  }
 0x3f9   : > { %15723 = vmatprep.mubr.bf16.mxu0 %v24189_v28 }
 0x3fa   : > { %15350 = vmatpush1.bf16.msra.mxu1 %v21607_v61  ;;  %v21673_v61 = vld [vmem:[#allocation7 + $0x18d8] ss:$72 sps:$4 sm:$0xff]  }
 0x3fb   : > { %15694 = vmatpush1.bf16.msra.mxu0 %v21610_v62  ;;  %15351 = vmatprep.subr.bf16.mxu1 %v21615_v63  ;;  %v21676_v62 = vld [vmem:[#allocation7 + $0x18e0] ss:$72 sps:$4 sm:$0xff]   ;;  %v21681_v63 = vld [vmem:[#allocation7 + $0x196c] ss:$72 sps:$4 sm:$0xff]  }
 0x3fc   : > { %15695 = vmatprep.subr.bf16.mxu0 %v21618_v0  ;;  %v21684_v0 = vld [vmem:[#allocation7 + $0x1974] ss:$72 sps:$4 sm:$0xff]  }
 0x3fe   : > { %15352 = vmatpush1.bf16.msra.mxu1 %v21613_v7  ;;  %v21679_v7 = vld [vmem:[#allocation7 + $0x1968] ss:$72 sps:$4 sm:$0xff]  }
 0x3ff   : > { %15696 = vmatpush1.bf16.msra.mxu0 %v21616_v8  ;;  %15353 = vmatprep.subr.bf16.mxu1 %v21621_v10  ;;  %v21682_v8 = vld [vmem:[#allocation7 + $0x1970] ss:$72 sps:$4 sm:$0xff]   ;;  %v21687_v10 = vld [vmem:[#allocation7 + $0x19fc] ss:$72 sps:$4 sm:$0xff]  }
 0x400   : > { %15697 = vmatprep.subr.bf16.mxu0 %v21624_v11  ;;  %v21690_v11 = vld [vmem:[#allocation7 + $0x1a04] ss:$72 sps:$4 sm:$0xff]  }
 0x402   : > { %15354 = vmatpush1.bf16.msra.mxu1 %v21619_v14  ;;  %v21685_v14 = vld [vmem:[#allocation7 + $0x19f8] ss:$72 sps:$4 sm:$0xff]  }
 0x403   : > { %15698 = vmatpush1.bf16.msra.mxu0 %v21622_v15  ;;  %15355 = vmatprep.subr.bf16.mxu1 %v21627_v16  ;;  %v21688_v15 = vld [vmem:[#allocation7 + $0x1a00] ss:$72 sps:$4 sm:$0xff]   ;;  %v21693_v16 = vld [vmem:[#allocation7 + $0x1a8c] ss:$72 sps:$4 sm:$0xff]  }
 0x404   : > { %15699 = vmatprep.subr.bf16.mxu0 %v21630_v18  ;;  %v21696_v18 = vld [vmem:[#allocation7 + $0x1a94] ss:$72 sps:$4 sm:$0xff]  }
 0x406   : > { %15356 = vmatpush1.bf16.msra.mxu1 %v21625_v20  ;;  %v21691_v20 = vld [vmem:[#allocation7 + $0x1a88] ss:$72 sps:$4 sm:$0xff]  }
 0x407   : > { %15700 = vmatpush1.bf16.msra.mxu0 %v21628_v21  ;;  %15357 = vmatprep.subr.bf16.mxu1 %v21633_v42  ;;  %v21694_v21 = vld [vmem:[#allocation7 + $0x1a90] ss:$72 sps:$4 sm:$0xff]   ;;  %v21699_v42 = vld [vmem:[#allocation7 + $0x1b1c] ss:$72 sps:$4 sm:$0xff]  }
 0x408   : > { %15701 = vmatprep.subr.bf16.mxu0 %v21636_v22  ;;  %v21702_v22 = vld [vmem:[#allocation7 + $0x1b24] ss:$72 sps:$4 sm:$0xff]  }
 0x40a   : > { %15358 = vmatpush1.bf16.msra.mxu1 %v21631_v24  ;;  %v21697_v24 = vld [vmem:[#allocation7 + $0x1b18] ss:$72 sps:$4 sm:$0xff]  }
 0x40b   : > { %15702 = vmatpush1.bf16.msra.mxu0 %v21634_v25  ;;  %15359 = vmatprep.subr.bf16.mxu1 %v21639_v53  ;;  %v21700_v25 = vld [vmem:[#allocation7 + $0x1b20] ss:$72 sps:$4 sm:$0xff]   ;;  %v21705_v53 = vld [vmem:[#allocation7 + $0x1bac] ss:$72 sps:$4 sm:$0xff]  }
 0x40c   : > { %15703 = vmatprep.subr.bf16.mxu0 %v21642_v26  ;;  %v21708_v26 = vld [vmem:[#allocation7 + $0x1bb4] ss:$72 sps:$4 sm:$0xff]  }
 0x40e   : > { %15360 = vmatpush1.bf16.msra.mxu1 %v21637_v27  ;;  %v21703_v27 = vld [vmem:[#allocation7 + $0x1ba8] ss:$72 sps:$4 sm:$0xff]  }
 0x40f   : > { %15704 = vmatpush1.bf16.msra.mxu0 %v21640_v29  ;;  %15361 = vmatprep.subr.bf16.mxu1 %v21645_v32  ;;  %v21706_v29 = vld [vmem:[#allocation7 + $0x1bb0] ss:$72 sps:$4 sm:$0xff]   ;;  %v21711_v32 = vld [vmem:[#allocation7 + $0x1c3c] ss:$72 sps:$4 sm:$0xff]  }
 0x410   : > { %15705 = vmatprep.subr.bf16.mxu0 %v21648_v34  ;;  %v21714_v34 = vld [vmem:[#allocation7 + $0x1c44] ss:$72 sps:$4 sm:$0xff]  }
 0x412   : > { %15362 = vmatpush1.bf16.msra.mxu1 %v21643_v36  ;;  %v21709_v36 = vld [vmem:[#allocation7 + $0x1c38] ss:$72 sps:$4 sm:$0xff]  }
 0x413   : > { %15706 = vmatpush1.bf16.msra.mxu0 %v21646_v37  ;;  %15363 = vmatprep.subr.bf16.mxu1 %v21651_v38  ;;  %v21712_v37 = vld [vmem:[#allocation7 + $0x1c40] ss:$72 sps:$4 sm:$0xff]   ;;  %v21717_v38 = vld [vmem:[#allocation7 + $0x1ccc] ss:$72 sps:$4 sm:$0xff]  }
 0x414   : > { %15707 = vmatprep.subr.bf16.mxu0 %v21654_v39  ;;  %v21720_v39 = vld [vmem:[#allocation7 + $0x1cd4] ss:$72 sps:$4 sm:$0xff]  }
 0x416   : > { %15364 = vmatpush1.bf16.msra.mxu1 %v21649_v40  ;;  %v21715_v40 = vld [vmem:[#allocation7 + $0x1cc8] ss:$72 sps:$4 sm:$0xff]  }
 0x417   : > { %15708 = vmatpush1.bf16.msra.mxu0 %v21652_v41  ;;  %15365 = vmatprep.subr.bf16.mxu1 %v21657_v43  ;;  %v21718_v41 = vld [vmem:[#allocation7 + $0x1cd0] ss:$72 sps:$4 sm:$0xff]   ;;  %v21723_v43 = vld [vmem:[#allocation7 + $0x1d5c] ss:$72 sps:$4 sm:$0xff]  }
 0x418   : > { %15709 = vmatprep.subr.bf16.mxu0 %v21660_v44  ;;  %v21726_v44 = vld [vmem:[#allocation7 + $0x1d64] ss:$72 sps:$4 sm:$0xff]  }
 0x41a   : > { %15366 = vmatpush1.bf16.msra.mxu1 %v21655_v45  ;;  %v21721_v45 = vld [vmem:[#allocation7 + $0x1d58] ss:$72 sps:$4 sm:$0xff]  }
 0x41b   : > { %15710 = vmatpush1.bf16.msra.mxu0 %v21658_v46  ;;  %15367 = vmatprep.subr.bf16.mxu1 %v21663_v47  ;;  %v21724_v46 = vld [vmem:[#allocation7 + $0x1d60] ss:$72 sps:$4 sm:$0xff]   ;;  %v21729_v47 = vld [vmem:[#allocation7 + $0x1dec] ss:$72 sps:$4 sm:$0xff]  }
 0x41c   : > { %15711 = vmatprep.subr.bf16.mxu0 %v21666_v48  ;;  %v21732_v48 = vld [vmem:[#allocation7 + $0x1df4] ss:$72 sps:$4 sm:$0xff]  }
 0x41e   : > { %15368 = vmatpush1.bf16.msra.mxu1 %v21661_v49  ;;  %v21727_v49 = vld [vmem:[#allocation7 + $0x1de8] ss:$72 sps:$4 sm:$0xff]  }
 0x41f   : > { %15712 = vmatpush1.bf16.msra.mxu0 %v21664_v50  ;;  %15369 = vmatprep.subr.bf16.mxu1 %v21669_v51  ;;  %v21730_v50 = vld [vmem:[#allocation7 + $0x1df0] ss:$72 sps:$4 sm:$0xff]   ;;  %v21735_v51 = vld [vmem:[#allocation7 + $0x1e7c] ss:$72 sps:$4 sm:$0xff]  }
 0x420   : > { %15713 = vmatprep.subr.bf16.mxu0 %v21672_v52  ;;  %v21738_v52 = vld [vmem:[#allocation7 + $0x1e84] ss:$72 sps:$4 sm:$0xff]  }
 0x422   : > { %15370 = vmatpush1.bf16.msra.mxu1 %v21667_v54 }
 0x423   : > { %15714 = vmatpush1.bf16.msra.mxu0 %v21670_v55  ;;  %15371 = vmatprep.subr.bf16.mxu1 %v21675_v56 }
 0x424   : > { %15715 = vmatprep.subr.bf16.mxu0 %v21678_v57 }
 0x426   : > { %15372 = vmatpush1.bf16.msra.mxu1 %v21673_v61 }
 0x427   : > { %15716 = vmatpush1.bf16.msra.mxu0 %v21676_v62  ;;  %15373 = vmatprep.subr.bf16.mxu1 %v21681_v63  ;;  %v21733_v63 = vld [vmem:[#allocation7 + $0x1e78] ss:$72 sps:$4 sm:$0xff]  }
 0x428   : > { %15717 = vmatprep.subr.bf16.mxu0 %v21684_v0  ;;  %v21736_v0 = vld [vmem:[#allocation7 + $0x1e80] ss:$72 sps:$4 sm:$0xff]  }
 0x42a   : > { %15374 = vmatpush1.bf16.msra.mxu1 %v21679_v7 }
 0x42b   : > { %15718 = vmatpush1.bf16.msra.mxu0 %v21682_v8  ;;  %15375 = vmatprep.subr.bf16.mxu1 %v21687_v10  ;;  %v21741_v10 = vld [vmem:[#allocation7 + $0x1f0c] ss:$72 sps:$4 sm:$0xff]  }
 0x42c   : > { %15719 = vmatprep.subr.bf16.mxu0 %v21690_v11  ;;  %v21744_v11 = vld [vmem:[#allocation7 + $0x1f14] ss:$72 sps:$4 sm:$0xff]  }
 0x42e   : > { %15376 = vmatpush1.bf16.msra.mxu1 %v21685_v14  ;;  %v21739_v14 = vld [vmem:[#allocation7 + $0x1f08] ss:$72 sps:$4 sm:$0xff]  }
 0x42f   : > { %15720 = vmatpush1.bf16.msra.mxu0 %v21688_v15  ;;  %15377 = vmatprep.subr.bf16.mxu1 %v21693_v16  ;;  %v21742_v15 = vld [vmem:[#allocation7 + $0x1f10] ss:$72 sps:$4 sm:$0xff]   ;;  %v21747_v16 = vld [vmem:[#allocation7 + $0x1f9c] ss:$72 sps:$4 sm:$0xff]  }
 0x430   : > { %15721 = vmatprep.subr.bf16.mxu0 %v21696_v18  ;;  %v21750_v18 = vld [vmem:[#allocation7 + $0x1fa4] ss:$72 sps:$4 sm:$0xff]  }
 0x432   : > { %15378 = vmatpush1.bf16.msra.mxu1 %v21691_v20  ;;  %v21745_v20 = vld [vmem:[#allocation7 + $0x1f98] ss:$72 sps:$4 sm:$0xff]  }
 0x433   : > { %15722 = vmatpush1.bf16.msra.mxu0 %v21694_v21  ;;  %15390 = vmatprep.subr.bf16.mxu1 %v21699_v42  ;;  %v21748_v21 = vld [vmem:[#allocation7 + $0x1fa0] ss:$72 sps:$4 sm:$0xff]   ;;  %v21753_v42 = vld [vmem:[#allocation7 + $0x202c] ss:$72 sps:$4 sm:$0xff]  }
 0x434   : > { %15734 = vmatprep.subr.bf16.mxu0 %v21702_v22  ;;  %v21756_v22 = vld [vmem:[#allocation7 + $0x2034] ss:$72 sps:$4 sm:$0xff]  }
 0x435   : > { %15380 = vmatmul.mubr.bf16.vlgmr.msra.gmra.mrb[8].mxu1 %v24207_v58 }
 0x436   : > { %15724 = vmatmul.mubr.bf16.vlgmr.msra.gmra.mrb[8].mxu0 %v24207_v58  ;;  %15391 = vmatpush1.bf16.msra.mxu1 %v21697_v24  ;;  %v21751_v24 = vld [vmem:[#allocation7 + $0x2028] ss:$72 sps:$4 sm:$0xff]  }
 0x437   : > { %15735 = vmatpush1.bf16.msra.mxu0 %v21700_v25  ;;  %15392 = vmatprep.subr.bf16.mxu1 %v21705_v53  ;;  %v21754_v25 = vld [vmem:[#allocation7 + $0x2030] ss:$72 sps:$4 sm:$0xff]   ;;  %v21759_v53 = vld [vmem:[#allocation7 + $0x20bc] ss:$72 sps:$4 sm:$0xff]  }
 0x438   : > { %15736 = vmatprep.subr.bf16.mxu0 %v21708_v26  ;;  %15422 = vmatprep.mubr.bf16.mxu1 %v24211_v2  ;;  %v21762_v26 = vld [vmem:[#allocation7 + $0x20c4] ss:$72 sps:$4 sm:$0xff]  }
 0x439   : > { %15766 = vmatprep.mubr.bf16.mxu0 %v24211_v2 }
 0x43a   : > { %15393 = vmatpush1.bf16.msra.mxu1 %v21703_v27  ;;  %v21757_v27 = vld [vmem:[#allocation7 + $0x20b8] ss:$72 sps:$4 sm:$0xff]  }
 0x43b   : > { %15737 = vmatpush1.bf16.msra.mxu0 %v21706_v29  ;;  %15394 = vmatprep.subr.bf16.mxu1 %v21711_v32  ;;  %v21760_v29 = vld [vmem:[#allocation7 + $0x20c0] ss:$72 sps:$4 sm:$0xff]   ;;  %v21765_v32 = vld [vmem:[#allocation7 + $0x214c] ss:$72 sps:$4 sm:$0xff]  }
 0x43c   : > { %15738 = vmatprep.subr.bf16.mxu0 %v21714_v34  ;;  %v21768_v34 = vld [vmem:[#allocation7 + $0x2154] ss:$72 sps:$4 sm:$0xff]  }
 0x43e   : > { %15395 = vmatpush1.bf16.msra.mxu1 %v21709_v36  ;;  %v21763_v36 = vld [vmem:[#allocation7 + $0x2148] ss:$72 sps:$4 sm:$0xff]  }
 0x43f   : > { %15739 = vmatpush1.bf16.msra.mxu0 %v21712_v37  ;;  %15396 = vmatprep.subr.bf16.mxu1 %v21717_v38  ;;  %v21766_v37 = vld [vmem:[#allocation7 + $0x2150] ss:$72 sps:$4 sm:$0xff]   ;;  %v21771_v38 = vld [vmem:[#allocation7 + $0x21dc] ss:$72 sps:$4 sm:$0xff]  }
 0x440   : > { %15740 = vmatprep.subr.bf16.mxu0 %v21720_v39  ;;  %v21774_v39 = vld [vmem:[#allocation7 + $0x21e4] ss:$72 sps:$4 sm:$0xff]  }
 0x442   : > { %15397 = vmatpush1.bf16.msra.mxu1 %v21715_v40  ;;  %v21769_v40 = vld [vmem:[#allocation7 + $0x21d8] ss:$72 sps:$4 sm:$0xff]  }
 0x443   : > { %15741 = vmatpush1.bf16.msra.mxu0 %v21718_v41  ;;  %15398 = vmatprep.subr.bf16.mxu1 %v21723_v43  ;;  %v21772_v41 = vld [vmem:[#allocation7 + $0x21e0] ss:$72 sps:$4 sm:$0xff]   ;;  %v21777_v43 = vld [vmem:[#allocation7 + $0x226c] ss:$72 sps:$4 sm:$0xff]  }
 0x444   : > { %15742 = vmatprep.subr.bf16.mxu0 %v21726_v44  ;;  %v21780_v44 = vld [vmem:[#allocation7 + $0x2274] ss:$72 sps:$4 sm:$0xff]  }
 0x446   : > { %15399 = vmatpush1.bf16.msra.mxu1 %v21721_v45  ;;  %v21775_v45 = vld [vmem:[#allocation7 + $0x2268] ss:$72 sps:$4 sm:$0xff]  }
 0x447   : > { %15743 = vmatpush1.bf16.msra.mxu0 %v21724_v46  ;;  %15400 = vmatprep.subr.bf16.mxu1 %v21729_v47  ;;  %v21778_v46 = vld [vmem:[#allocation7 + $0x2270] ss:$72 sps:$4 sm:$0xff]   ;;  %v21783_v47 = vld [vmem:[#allocation7 + $0x22fc] ss:$72 sps:$4 sm:$0xff]  }
 0x448   : > { %15744 = vmatprep.subr.bf16.mxu0 %v21732_v48  ;;  %v24282_v54 = vpop.f32.mrb[4].mxu1  ;;  %v21786_v48 = vld [vmem:[#allocation7 + $0x2304] ss:$72 sps:$4 sm:$0xff]  }
 0x449   : > { %v24284_v55 = vpop.f32.mrb[4].mxu0  ;;  %v24286_v56 = vpop.f32.mrb[5].mxu1 }
 0x44a   : > { %v24288_v57 = vpop.f32.mrb[5].mxu0  ;;  %v24290_v61 = vpop.f32.mrb[6].mxu1  ;;  %15401 = vmatpush1.bf16.msra.mxu1 %v21727_v49  ;;  %v21781_v49 = vld [vmem:[#allocation7 + $0x22f8] ss:$72 sps:$4 sm:$0xff]  }
 0x44b   : > { %v24292_v62 = vpop.f32.mrb[6].mxu0  ;;  %15745 = vmatpush1.bf16.msra.mxu0 %v21730_v50  ;;  %v24294_v7 = vpop.f32.mrb[7].mxu1  ;;  %15402 = vmatprep.subr.bf16.mxu1 %v21735_v51  ;;  %v21784_v50 = vld [vmem:[#allocation7 + $0x2300] ss:$72 sps:$4 sm:$0xff]   ;;  %v21789_v51 = vld [vmem:[#allocation7 + $0x238c] ss:$72 sps:$4 sm:$0xff]  }
 0x44c   : > { %v24296_v8 = vpop.f32.mrb[7].mxu0  ;;  %15746 = vmatprep.subr.bf16.mxu0 %v21738_v52  ;;  %v21792_v52 = vld [vmem:[#allocation7 + $0x2394] ss:$72 sps:$4 sm:$0xff]  }
 0x44e   : > { %15403 = vmatpush1.bf16.msra.mxu1 %v21733_v63  ;;  %v21787_v63 = vld [vmem:[#allocation7 + $0x2388] ss:$72 sps:$4 sm:$0xff]  }
 0x44f   : > { %15747 = vmatpush1.bf16.msra.mxu0 %v21736_v0  ;;  %15404 = vmatprep.subr.bf16.mxu1 %v21741_v10  ;;  %v21790_v0 = vld [vmem:[#allocation7 + $0x2390] ss:$72 sps:$4 sm:$0xff]   ;;  %v21795_v10 = vld [vmem:[#allocation7 + $0x241c] ss:$72 sps:$4 sm:$0xff]  }
 0x450   : > { %15748 = vmatprep.subr.bf16.mxu0 %v21744_v11  ;;  %v21798_v11 = vld [vmem:[#allocation7 + $0x2424] ss:$72 sps:$4 sm:$0xff]  }
 0x452   : > { %15405 = vmatpush1.bf16.msra.mxu1 %v21739_v14  ;;  %v21793_v14 = vld [vmem:[#allocation7 + $0x2418] ss:$72 sps:$4 sm:$0xff]  }
 0x453   : > { %15749 = vmatpush1.bf16.msra.mxu0 %v21742_v15  ;;  %15406 = vmatprep.subr.bf16.mxu1 %v21747_v16  ;;  %v21796_v15 = vld [vmem:[#allocation7 + $0x2420] ss:$72 sps:$4 sm:$0xff]   ;;  %v21801_v16 = vld [vmem:[#allocation7 + $0x24ac] ss:$72 sps:$4 sm:$0xff]  }
 0x454   : > { %15750 = vmatprep.subr.bf16.mxu0 %v21750_v18  ;;  %v21804_v18 = vld [vmem:[#allocation7 + $0x24b4] ss:$72 sps:$4 sm:$0xff]  }
 0x456   : > { %15407 = vmatpush1.bf16.msra.mxu1 %v21745_v20  ;;  %v21799_v20 = vld [vmem:[#allocation7 + $0x24a8] ss:$72 sps:$4 sm:$0xff]  }
 0x457   : > { %15751 = vmatpush1.bf16.msra.mxu0 %v21748_v21  ;;  %15408 = vmatprep.subr.bf16.mxu1 %v21753_v42  ;;  %v21802_v21 = vld [vmem:[#allocation7 + $0x24b0] ss:$72 sps:$4 sm:$0xff]   ;;  %v21807_v42 = vld [vmem:[#allocation7 + $0x253c] ss:$72 sps:$4 sm:$0xff]  }
 0x458   : > { %15752 = vmatprep.subr.bf16.mxu0 %v21756_v22  ;;  %v21810_v22 = vld [vmem:[#allocation7 + $0x2544] ss:$72 sps:$4 sm:$0xff]  }
 0x45a   : > { %15409 = vmatpush1.bf16.msra.mxu1 %v21751_v24  ;;  %v21805_v24 = vld [vmem:[#allocation7 + $0x2538] ss:$72 sps:$4 sm:$0xff]  }
 0x45b   : > { %15753 = vmatpush1.bf16.msra.mxu0 %v21754_v25  ;;  %15410 = vmatprep.subr.bf16.mxu1 %v21759_v53  ;;  %v21808_v25 = vld [vmem:[#allocation7 + $0x2540] ss:$72 sps:$4 sm:$0xff]   ;;  %v21813_v53 = vld [vmem:[#allocation7 + $0x25cc] ss:$72 sps:$4 sm:$0xff]  }
 0x45c   : > { %15754 = vmatprep.subr.bf16.mxu0 %v21762_v26  ;;  %v21816_v26 = vld [vmem:[#allocation7 + $0x25d4] ss:$72 sps:$4 sm:$0xff]  }
 0x45e   : > { %15411 = vmatpush1.bf16.msra.mxu1 %v21757_v27  ;;  %v21811_v27 = vld [vmem:[#allocation7 + $0x25c8] ss:$72 sps:$4 sm:$0xff]  }
 0x45f   : > { %15755 = vmatpush1.bf16.msra.mxu0 %v21760_v29  ;;  %15412 = vmatprep.subr.bf16.mxu1 %v21765_v32  ;;  %v21814_v29 = vld [vmem:[#allocation7 + $0x25d0] ss:$72 sps:$4 sm:$0xff]   ;;  %v21819_v32 = vld [vmem:[#allocation7 + $0x265c] ss:$72 sps:$4 sm:$0xff]  }
 0x460   : > { %15756 = vmatprep.subr.bf16.mxu0 %v21768_v34  ;;  %v21822_v34 = vld [vmem:[#allocation7 + $0x2664] ss:$72 sps:$4 sm:$0xff]  }
 0x462   : > { %15413 = vmatpush1.bf16.msra.mxu1 %v21763_v36  ;;  %v21817_v36 = vld [vmem:[#allocation7 + $0x2658] ss:$72 sps:$4 sm:$0xff]  }
 0x463   : > { %15757 = vmatpush1.bf16.msra.mxu0 %v21766_v37  ;;  %15414 = vmatprep.subr.bf16.mxu1 %v21771_v38  ;;  %v21820_v37 = vld [vmem:[#allocation7 + $0x2660] ss:$72 sps:$4 sm:$0xff]   ;;  %v21825_v38 = vld [vmem:[#allocation7 + $0x26ec] ss:$72 sps:$4 sm:$0xff]  }
 0x464   : > { %15758 = vmatprep.subr.bf16.mxu0 %v21774_v39  ;;  %v21828_v39 = vld [vmem:[#allocation7 + $0x26f4] ss:$72 sps:$4 sm:$0xff]  }
 0x466   : > { %15415 = vmatpush1.bf16.msra.mxu1 %v21769_v40  ;;  %v21823_v40 = vld [vmem:[#allocation7 + $0x26e8] ss:$72 sps:$4 sm:$0xff]  }
 0x467   : > { %15759 = vmatpush1.bf16.msra.mxu0 %v21772_v41  ;;  %15416 = vmatprep.subr.bf16.mxu1 %v21777_v43  ;;  %v21826_v41 = vld [vmem:[#allocation7 + $0x26f0] ss:$72 sps:$4 sm:$0xff]   ;;  %v21831_v43 = vld [vmem:[#allocation7 + $0x277c] ss:$72 sps:$4 sm:$0xff]  }
 0x468   : > { %15760 = vmatprep.subr.bf16.mxu0 %v21780_v44  ;;  %v21834_v44 = vld [vmem:[#allocation7 + $0x2784] ss:$72 sps:$4 sm:$0xff]  }
 0x46a   : > { %15417 = vmatpush1.bf16.msra.mxu1 %v21775_v45  ;;  %v21829_v45 = vld [vmem:[#allocation7 + $0x2778] ss:$72 sps:$4 sm:$0xff]  }
 0x46b   : > { %15761 = vmatpush1.bf16.msra.mxu0 %v21778_v46  ;;  %15418 = vmatprep.subr.bf16.mxu1 %v21783_v47  ;;  %v21832_v46 = vld [vmem:[#allocation7 + $0x2780] ss:$72 sps:$4 sm:$0xff]   ;;  %v21837_v47 = vld [vmem:[#allocation7 + $0x280c] ss:$72 sps:$4 sm:$0xff]  }
 0x46c   : > { %15762 = vmatprep.subr.bf16.mxu0 %v21786_v48  ;;  %v21840_v48 = vld [vmem:[#allocation7 + $0x2814] ss:$72 sps:$4 sm:$0xff]  }
 0x46e   : > { %15419 = vmatpush1.bf16.msra.mxu1 %v21781_v49  ;;  %v21835_v49 = vld [vmem:[#allocation7 + $0x2808] ss:$72 sps:$4 sm:$0xff]  }
 0x46f   : > { %15763 = vmatpush1.bf16.msra.mxu0 %v21784_v50  ;;  %15420 = vmatprep.subr.bf16.mxu1 %v21789_v51  ;;  %v21838_v50 = vld [vmem:[#allocation7 + $0x2810] ss:$72 sps:$4 sm:$0xff]   ;;  %v21843_v51 = vld [vmem:[#allocation7 + $0x289c] ss:$72 sps:$4 sm:$0xff]  }
 0x470   : > { %15764 = vmatprep.subr.bf16.mxu0 %v21792_v52  ;;  %v21846_v52 = vld [vmem:[#allocation7 + $0x28a4] ss:$72 sps:$4 sm:$0xff]  }
 0x472   : > { %15421 = vmatpush1.bf16.msra.mxu1 %v21787_v63  ;;  %v21841_v63 = vld [vmem:[#allocation7 + $0x2898] ss:$72 sps:$4 sm:$0xff]  }
 0x473   : > { %15765 = vmatpush1.bf16.msra.mxu0 %v21790_v0  ;;  %15433 = vmatprep.subr.bf16.mxu1 %v21795_v10  ;;  %v21844_v0 = vld [vmem:[#allocation7 + $0x28a0] ss:$72 sps:$4 sm:$0xff]   ;;  %v21849_v10 = vld [vmem:[#allocation7 + $0x292c] ss:$72 sps:$4 sm:$0xff]  }
 0x474   : > { %15777 = vmatprep.subr.bf16.mxu0 %v21798_v11  ;;  %v21852_v11 = vld [vmem:[#allocation7 + $0x2934] ss:$72 sps:$4 sm:$0xff]  }
 0x475   : > { %15423 = vmatmul.mubr.bf16.vlgmr.msra.gmra.mrb[8].mxu1 %v24222_v33 }
 0x476   : > { %15767 = vmatmul.mubr.bf16.vlgmr.msra.gmra.mrb[8].mxu0 %v24222_v33  ;;  %15434 = vmatpush1.bf16.msra.mxu1 %v21793_v14  ;;  %v21847_v14 = vld [vmem:[#allocation7 + $0x2928] ss:$72 sps:$4 sm:$0xff]  }
 0x477   : > { %15778 = vmatpush1.bf16.msra.mxu0 %v21796_v15  ;;  %15435 = vmatprep.subr.bf16.mxu1 %v21801_v16  ;;  %v21850_v15 = vld [vmem:[#allocation7 + $0x2930] ss:$72 sps:$4 sm:$0xff]   ;;  %v21855_v16 = vld [vmem:[#allocation7 + $0x29bc] ss:$72 sps:$4 sm:$0xff]  }
 0x478   : > { %15779 = vmatprep.subr.bf16.mxu0 %v21804_v18  ;;  %15465 = vmatprep.mubr.bf16.mxu1 %v24156_v6  ;;  %v21858_v18 = vld [vmem:[#allocation7 + $0x29c4] ss:$72 sps:$4 sm:$0xff]  }
 0x479   : > { %15809 = vmatprep.mubr.bf16.mxu0 %v24156_v6 }
 0x47a   : > { %15436 = vmatpush1.bf16.msra.mxu1 %v21799_v20  ;;  %v21853_v20 = vld [vmem:[#allocation7 + $0x29b8] ss:$72 sps:$4 sm:$0xff]  }
 0x47b   : > { %15780 = vmatpush1.bf16.msra.mxu0 %v21802_v21  ;;  %15437 = vmatprep.subr.bf16.mxu1 %v21807_v42  ;;  %v21856_v21 = vld [vmem:[#allocation7 + $0x29c0] ss:$72 sps:$4 sm:$0xff]   ;;  %v21861_v42 = vld [vmem:[#allocation7 + $0x2a4c] ss:$72 sps:$4 sm:$0xff]  }
 0x47c   : > { %15781 = vmatprep.subr.bf16.mxu0 %v21810_v22  ;;  %v21864_v22 = vld [vmem:[#allocation7 + $0x2a54] ss:$72 sps:$4 sm:$0xff]  }
 0x47e   : > { %15438 = vmatpush1.bf16.msra.mxu1 %v21805_v24  ;;  %v21859_v24 = vld [vmem:[#allocation7 + $0x2a48] ss:$72 sps:$4 sm:$0xff]  }
 0x47f   : > { %15782 = vmatpush1.bf16.msra.mxu0 %v21808_v25  ;;  %15439 = vmatprep.subr.bf16.mxu1 %v21813_v53  ;;  %v21862_v25 = vld [vmem:[#allocation7 + $0x2a50] ss:$72 sps:$4 sm:$0xff]   ;;  %v21867_v53 = vld [vmem:[#allocation7 + $0x2adc] ss:$72 sps:$4 sm:$0xff]  }
 0x480   : > { %15783 = vmatprep.subr.bf16.mxu0 %v21816_v26  ;;  %v21870_v26 = vld [vmem:[#allocation7 + $0x2ae4] ss:$72 sps:$4 sm:$0xff]  }
 0x482   : > { %15440 = vmatpush1.bf16.msra.mxu1 %v21811_v27  ;;  %v21865_v27 = vld [vmem:[#allocation7 + $0x2ad8] ss:$72 sps:$4 sm:$0xff]  }
 0x483   : > { %15784 = vmatpush1.bf16.msra.mxu0 %v21814_v29  ;;  %15441 = vmatprep.subr.bf16.mxu1 %v21819_v32  ;;  %v21868_v29 = vld [vmem:[#allocation7 + $0x2ae0] ss:$72 sps:$4 sm:$0xff]   ;;  %v21873_v32 = vld [vmem:[#allocation7 + $0x2b6c] ss:$72 sps:$4 sm:$0xff]  }
 0x484   : > { %15785 = vmatprep.subr.bf16.mxu0 %v21822_v34  ;;  %v21876_v34 = vld [vmem:[#allocation7 + $0x2b74] ss:$72 sps:$4 sm:$0xff]  }
 0x486   : > { %15442 = vmatpush1.bf16.msra.mxu1 %v21817_v36  ;;  %v21871_v36 = vld [vmem:[#allocation7 + $0x2b68] ss:$72 sps:$4 sm:$0xff]  }
 0x487   : > { %15786 = vmatpush1.bf16.msra.mxu0 %v21820_v37  ;;  %15443 = vmatprep.subr.bf16.mxu1 %v21825_v38  ;;  %v21874_v37 = vld [vmem:[#allocation7 + $0x2b70] ss:$72 sps:$4 sm:$0xff]   ;;  %v21879_v38 = vld [vmem:[#allocation7 + $0x2bfc] ss:$72 sps:$4 sm:$0xff]  }
 0x488   : > { %15787 = vmatprep.subr.bf16.mxu0 %v21828_v39  ;;  %v21882_v39 = vld [vmem:[#allocation7 + $0x2c04] ss:$72 sps:$4 sm:$0xff]  }
 0x48a   : > { %15444 = vmatpush1.bf16.msra.mxu1 %v21823_v40  ;;  %v21877_v40 = vld [vmem:[#allocation7 + $0x2bf8] ss:$72 sps:$4 sm:$0xff]  }
 0x48b   : > { %15788 = vmatpush1.bf16.msra.mxu0 %v21826_v41  ;;  %15445 = vmatprep.subr.bf16.mxu1 %v21831_v43  ;;  %v21880_v41 = vld [vmem:[#allocation7 + $0x2c00] ss:$72 sps:$4 sm:$0xff]   ;;  %v21885_v43 = vld [vmem:[#allocation7 + $0x2c8c] ss:$72 sps:$4 sm:$0xff]  }
 0x48c   : > { %15789 = vmatprep.subr.bf16.mxu0 %v21834_v44  ;;  %v21888_v44 = vld [vmem:[#allocation7 + $0x2c94] ss:$72 sps:$4 sm:$0xff]  }
 0x48e   : > { %15446 = vmatpush1.bf16.msra.mxu1 %v21829_v45  ;;  %v21883_v45 = vld [vmem:[#allocation7 + $0x2c88] ss:$72 sps:$4 sm:$0xff]  }
 0x48f   : > { %15790 = vmatpush1.bf16.msra.mxu0 %v21832_v46  ;;  %15447 = vmatprep.subr.bf16.mxu1 %v21837_v47  ;;  %v21886_v46 = vld [vmem:[#allocation7 + $0x2c90] ss:$72 sps:$4 sm:$0xff]   ;;  %v21891_v47 = vld [vmem:[#allocation7 + $0x2d1c] ss:$72 sps:$4 sm:$0xff]  }
 0x490   : > { %15791 = vmatprep.subr.bf16.mxu0 %v21840_v48  ;;  %v21894_v48 = vld [vmem:[#allocation7 + $0x2d24] ss:$72 sps:$4 sm:$0xff]  }
 0x492   : > { %15448 = vmatpush1.bf16.msra.mxu1 %v21835_v49  ;;  %v21889_v49 = vld [vmem:[#allocation7 + $0x2d18] ss:$72 sps:$4 sm:$0xff]  }
 0x493   : > { %15792 = vmatpush1.bf16.msra.mxu0 %v21838_v50  ;;  %15449 = vmatprep.subr.bf16.mxu1 %v21843_v51  ;;  %v21892_v50 = vld [vmem:[#allocation7 + $0x2d20] ss:$72 sps:$4 sm:$0xff]   ;;  %v21897_v51 = vld [vmem:[#allocation7 + $0x2dac] ss:$72 sps:$4 sm:$0xff]  }
 0x494   : > { %15793 = vmatprep.subr.bf16.mxu0 %v21846_v52  ;;  %v21900_v52 = vld [vmem:[#allocation7 + $0x2db4] ss:$72 sps:$4 sm:$0xff]  }
 0x496   : > { %15450 = vmatpush1.bf16.msra.mxu1 %v21841_v63  ;;  %v21895_v63 = vld [vmem:[#allocation7 + $0x2da8] ss:$72 sps:$4 sm:$0xff]  }
 0x497   : > { %15794 = vmatpush1.bf16.msra.mxu0 %v21844_v0  ;;  %15451 = vmatprep.subr.bf16.mxu1 %v21849_v10  ;;  %v21898_v0 = vld [vmem:[#allocation7 + $0x2db0] ss:$72 sps:$4 sm:$0xff]   ;;  %v21903_v10 = vld [vmem:[#allocation7 + $0x2e3c] ss:$72 sps:$4 sm:$0xff]  }
 0x498   : > { %15795 = vmatprep.subr.bf16.mxu0 %v21852_v11  ;;  %v21906_v11 = vld [vmem:[#allocation7 + $0x2e44] ss:$72 sps:$4 sm:$0xff]  }
 0x49a   : > { %15452 = vmatpush1.bf16.msra.mxu1 %v21847_v14  ;;  %v21901_v14 = vld [vmem:[#allocation7 + $0x2e38] ss:$72 sps:$4 sm:$0xff]  }
 0x49b   : > { %15796 = vmatpush1.bf16.msra.mxu0 %v21850_v15  ;;  %15453 = vmatprep.subr.bf16.mxu1 %v21855_v16  ;;  %v21904_v15 = vld [vmem:[#allocation7 + $0x2e40] ss:$72 sps:$4 sm:$0xff]   ;;  %v21909_v16 = vld [vmem:[#allocation7 + $0x2ecc] ss:$72 sps:$4 sm:$0xff]  }
 0x49c   : > { %15797 = vmatprep.subr.bf16.mxu0 %v21858_v18  ;;  %v21912_v18 = vld [vmem:[#allocation7 + $0x2ed4] ss:$72 sps:$4 sm:$0xff]  }
 0x49e   : > { %15454 = vmatpush1.bf16.msra.mxu1 %v21853_v20  ;;  %v21907_v20 = vld [vmem:[#allocation7 + $0x2ec8] ss:$72 sps:$4 sm:$0xff]  }
 0x49f   : > { %15798 = vmatpush1.bf16.msra.mxu0 %v21856_v21  ;;  %15455 = vmatprep.subr.bf16.mxu1 %v21861_v42  ;;  %v21910_v21 = vld [vmem:[#allocation7 + $0x2ed0] ss:$72 sps:$4 sm:$0xff]   ;;  %v21915_v42 = vld [vmem:[#allocation7 + $0x2f5c] ss:$72 sps:$4 sm:$0xff]  }
 0x4a0   : > { %15799 = vmatprep.subr.bf16.mxu0 %v21864_v22  ;;  %v21918_v22 = vld [vmem:[#allocation7 + $0x2f64] ss:$72 sps:$4 sm:$0xff]  }
 0x4a2   : > { %15456 = vmatpush1.bf16.msra.mxu1 %v21859_v24  ;;  %v21913_v24 = vld [vmem:[#allocation7 + $0x2f58] ss:$72 sps:$4 sm:$0xff]  }
 0x4a3   : > { %15800 = vmatpush1.bf16.msra.mxu0 %v21862_v25  ;;  %15457 = vmatprep.subr.bf16.mxu1 %v21867_v53  ;;  %v21916_v25 = vld [vmem:[#allocation7 + $0x2f60] ss:$72 sps:$4 sm:$0xff]   ;;  %v21921_v53 = vld [vmem:[#allocation7 + $0x2fec] ss:$72 sps:$4 sm:$0xff]  }
 0x4a4   : > { %15801 = vmatprep.subr.bf16.mxu0 %v21870_v26  ;;  %v21924_v26 = vld [vmem:[#allocation7 + $0x2ff4] ss:$72 sps:$4 sm:$0xff]  }
 0x4a6   : > { %15458 = vmatpush1.bf16.msra.mxu1 %v21865_v27  ;;  %v21919_v27 = vld [vmem:[#allocation7 + $0x2fe8] ss:$72 sps:$4 sm:$0xff]  }
 0x4a7   : > { %15802 = vmatpush1.bf16.msra.mxu0 %v21868_v29  ;;  %15459 = vmatprep.subr.bf16.mxu1 %v21873_v32  ;;  %v21922_v29 = vld [vmem:[#allocation7 + $0x2ff0] ss:$72 sps:$4 sm:$0xff]   ;;  %v21927_v32 = vld [vmem:[#allocation7 + $0x307c] ss:$72 sps:$4 sm:$0xff]  }
 0x4a8   : > { %15803 = vmatprep.subr.bf16.mxu0 %v21876_v34  ;;  %v21930_v34 = vld [vmem:[#allocation7 + $0x3084] ss:$72 sps:$4 sm:$0xff]  }
 0x4aa   : > { %15460 = vmatpush1.bf16.msra.mxu1 %v21871_v36  ;;  %v21925_v36 = vld [vmem:[#allocation7 + $0x3078] ss:$72 sps:$4 sm:$0xff]  }
 0x4ab   : > { %15804 = vmatpush1.bf16.msra.mxu0 %v21874_v37  ;;  %15461 = vmatprep.subr.bf16.mxu1 %v21879_v38  ;;  %v21928_v37 = vld [vmem:[#allocation7 + $0x3080] ss:$72 sps:$4 sm:$0xff]   ;;  %v21933_v38 = vld [vmem:[#allocation7 + $0x310c] ss:$72 sps:$4 sm:$0xff]  }
 0x4ac   : > { %15805 = vmatprep.subr.bf16.mxu0 %v21882_v39  ;;  %v21936_v39 = vld [vmem:[#allocation7 + $0x3114] ss:$72 sps:$4 sm:$0xff]  }
 0x4ae   : > { %15462 = vmatpush1.bf16.msra.mxu1 %v21877_v40  ;;  %v21931_v40 = vld [vmem:[#allocation7 + $0x3108] ss:$72 sps:$4 sm:$0xff]  }
 0x4af   : > { %15806 = vmatpush1.bf16.msra.mxu0 %v21880_v41  ;;  %15463 = vmatprep.subr.bf16.mxu1 %v21885_v43  ;;  %v21934_v41 = vld [vmem:[#allocation7 + $0x3110] ss:$72 sps:$4 sm:$0xff]   ;;  %v21939_v43 = vld [vmem:[#allocation7 + $0x319c] ss:$72 sps:$4 sm:$0xff]  }
 0x4b0   : > { %15807 = vmatprep.subr.bf16.mxu0 %v21888_v44  ;;  %v21942_v44 = vld [vmem:[#allocation7 + $0x31a4] ss:$72 sps:$4 sm:$0xff]  }
 0x4b2   : > { %15464 = vmatpush1.bf16.msra.mxu1 %v21883_v45  ;;  %v21937_v45 = vld [vmem:[#allocation7 + $0x3198] ss:$72 sps:$4 sm:$0xff]  }
 0x4b3   : > { %15808 = vmatpush1.bf16.msra.mxu0 %v21886_v46  ;;  %15476 = vmatprep.subr.bf16.mxu1 %v21891_v47  ;;  %v21940_v46 = vld [vmem:[#allocation7 + $0x31a0] ss:$72 sps:$4 sm:$0xff]   ;;  %v21945_v47 = vld [vmem:[#allocation7 + $0x322c] ss:$72 sps:$4 sm:$0xff]  }
 0x4b4   : > { %15820 = vmatprep.subr.bf16.mxu0 %v21894_v48  ;;  %v21948_v48 = vld [vmem:[#allocation7 + $0x3234] ss:$72 sps:$4 sm:$0xff]  }
 0x4b5   : > { %15466 = vmatmul.mubr.bf16.vlgmr.msra.gmra.mrb[8].mxu1 %v24164_v31 }
 0x4b6   : > { %15810 = vmatmul.mubr.bf16.vlgmr.msra.gmra.mrb[8].mxu0 %v24164_v31  ;;  %15477 = vmatpush1.bf16.msra.mxu1 %v21889_v49  ;;  %v21943_v49 = vld [vmem:[#allocation7 + $0x3228] ss:$72 sps:$4 sm:$0xff]  }
 0x4b7   : > { %15821 = vmatpush1.bf16.msra.mxu0 %v21892_v50  ;;  %15478 = vmatprep.subr.bf16.mxu1 %v21897_v51  ;;  %v21946_v50 = vld [vmem:[#allocation7 + $0x3230] ss:$72 sps:$4 sm:$0xff]   ;;  %v21951_v51 = vld [vmem:[#allocation7 + $0x32bc] ss:$72 sps:$4 sm:$0xff]  }
 0x4b8   : > { %15822 = vmatprep.subr.bf16.mxu0 %v21900_v52  ;;  %15508 = vmatprep.mubr.bf16.mxu1 %v24174_v17  ;;  %v21954_v52 = vld [vmem:[#allocation7 + $0x32c4] ss:$72 sps:$4 sm:$0xff]  }
 0x4b9   : > { %15852 = vmatprep.mubr.bf16.mxu0 %v24174_v17 }
 0x4ba   : > { %15479 = vmatpush1.bf16.msra.mxu1 %v21895_v63  ;;  %v21949_v63 = vld [vmem:[#allocation7 + $0x32b8] ss:$72 sps:$4 sm:$0xff]  }
 0x4bb   : > { %15823 = vmatpush1.bf16.msra.mxu0 %v21898_v0  ;;  %15480 = vmatprep.subr.bf16.mxu1 %v21903_v10  ;;  %v21952_v0 = vld [vmem:[#allocation7 + $0x32c0] ss:$72 sps:$4 sm:$0xff]   ;;  %v21957_v10 = vld [vmem:[#allocation7 + $0x334c] ss:$72 sps:$4 sm:$0xff]  }
 0x4bc   : > { %15824 = vmatprep.subr.bf16.mxu0 %v21906_v11  ;;  %v21960_v11 = vld [vmem:[#allocation7 + $0x3354] ss:$72 sps:$4 sm:$0xff]  }
 0x4be   : > { %15481 = vmatpush1.bf16.msra.mxu1 %v21901_v14  ;;  %v21955_v14 = vld [vmem:[#allocation7 + $0x3348] ss:$72 sps:$4 sm:$0xff]  }
 0x4bf   : > { %15825 = vmatpush1.bf16.msra.mxu0 %v21904_v15  ;;  %15482 = vmatprep.subr.bf16.mxu1 %v21909_v16  ;;  %v21958_v15 = vld [vmem:[#allocation7 + $0x3350] ss:$72 sps:$4 sm:$0xff]   ;;  %v21963_v16 = vld [vmem:[#allocation7 + $0x33dc] ss:$72 sps:$4 sm:$0xff]  }
 0x4c0   : > { %15826 = vmatprep.subr.bf16.mxu0 %v21912_v18  ;;  %v21966_v18 = vld [vmem:[#allocation7 + $0x33e4] ss:$72 sps:$4 sm:$0xff]  }
 0x4c2   : > { %15483 = vmatpush1.bf16.msra.mxu1 %v21907_v20  ;;  %v21961_v20 = vld [vmem:[#allocation7 + $0x33d8] ss:$72 sps:$4 sm:$0xff]  }
 0x4c3   : > { %15827 = vmatpush1.bf16.msra.mxu0 %v21910_v21  ;;  %15484 = vmatprep.subr.bf16.mxu1 %v21915_v42  ;;  %v21964_v21 = vld [vmem:[#allocation7 + $0x33e0] ss:$72 sps:$4 sm:$0xff]   ;;  %v21969_v42 = vld [vmem:[#allocation7 + $0x346c] ss:$72 sps:$4 sm:$0xff]  }
 0x4c4   : > { %15828 = vmatprep.subr.bf16.mxu0 %v21918_v22  ;;  %v21972_v22 = vld [vmem:[#allocation7 + $0x3474] ss:$72 sps:$4 sm:$0xff]  }
 0x4c6   : > { %15485 = vmatpush1.bf16.msra.mxu1 %v21913_v24  ;;  %v21967_v24 = vld [vmem:[#allocation7 + $0x3468] ss:$72 sps:$4 sm:$0xff]  }
 0x4c7   : > { %15829 = vmatpush1.bf16.msra.mxu0 %v21916_v25  ;;  %15486 = vmatprep.subr.bf16.mxu1 %v21921_v53  ;;  %v21970_v25 = vld [vmem:[#allocation7 + $0x3470] ss:$72 sps:$4 sm:$0xff]   ;;  %v21975_v53 = vld [vmem:[#allocation7 + $0x34fc] ss:$72 sps:$4 sm:$0xff]  }
 0x4c8   : > { %15830 = vmatprep.subr.bf16.mxu0 %v21924_v26  ;;  %v21978_v26 = vld [vmem:[#allocation7 + $0x3504] ss:$72 sps:$4 sm:$0xff]  }
 0x4ca   : > { %15487 = vmatpush1.bf16.msra.mxu1 %v21919_v27  ;;  %v21973_v27 = vld [vmem:[#allocation7 + $0x34f8] ss:$72 sps:$4 sm:$0xff]  }
 0x4cb   : > { %15831 = vmatpush1.bf16.msra.mxu0 %v21922_v29  ;;  %15488 = vmatprep.subr.bf16.mxu1 %v21927_v32  ;;  %v21976_v29 = vld [vmem:[#allocation7 + $0x3500] ss:$72 sps:$4 sm:$0xff]   ;;  %v21981_v32 = vld [vmem:[#allocation7 + $0x358c] ss:$72 sps:$4 sm:$0xff]  }
 0x4cc   : > { %15832 = vmatprep.subr.bf16.mxu0 %v21930_v34  ;;  %v21984_v34 = vld [vmem:[#allocation7 + $0x3594] ss:$72 sps:$4 sm:$0xff]  }
 0x4ce   : > { %15489 = vmatpush1.bf16.msra.mxu1 %v21925_v36  ;;  %v21979_v36 = vld [vmem:[#allocation7 + $0x3588] ss:$72 sps:$4 sm:$0xff]  }
 0x4cf   : > { %15833 = vmatpush1.bf16.msra.mxu0 %v21928_v37  ;;  %15490 = vmatprep.subr.bf16.mxu1 %v21933_v38  ;;  %v21982_v37 = vld [vmem:[#allocation7 + $0x3590] ss:$72 sps:$4 sm:$0xff]   ;;  %v21987_v38 = vld [vmem:[#allocation7 + $0x361c] ss:$72 sps:$4 sm:$0xff]  }
 0x4d0   : > { %15834 = vmatprep.subr.bf16.mxu0 %v21936_v39  ;;  %v21990_v39 = vld [vmem:[#allocation7 + $0x3624] ss:$72 sps:$4 sm:$0xff]  }
 0x4d2   : > { %15491 = vmatpush1.bf16.msra.mxu1 %v21931_v40  ;;  %v21985_v40 = vld [vmem:[#allocation7 + $0x3618] ss:$72 sps:$4 sm:$0xff]  }
 0x4d3   : > { %15835 = vmatpush1.bf16.msra.mxu0 %v21934_v41  ;;  %15492 = vmatprep.subr.bf16.mxu1 %v21939_v43  ;;  %v21988_v41 = vld [vmem:[#allocation7 + $0x3620] ss:$72 sps:$4 sm:$0xff]   ;;  %v21993_v43 = vld [vmem:[#allocation7 + $0x36ac] ss:$72 sps:$4 sm:$0xff]  }
 0x4d4   : > { %15836 = vmatprep.subr.bf16.mxu0 %v21942_v44  ;;  %v21996_v44 = vld [vmem:[#allocation7 + $0x36b4] ss:$72 sps:$4 sm:$0xff]  }
 0x4d6   : > { %15493 = vmatpush1.bf16.msra.mxu1 %v21937_v45  ;;  %v21991_v45 = vld [vmem:[#allocation7 + $0x36a8] ss:$72 sps:$4 sm:$0xff]  }
 0x4d7   : > { %15837 = vmatpush1.bf16.msra.mxu0 %v21940_v46  ;;  %15494 = vmatprep.subr.bf16.mxu1 %v21945_v47  ;;  %v21994_v46 = vld [vmem:[#allocation7 + $0x36b0] ss:$72 sps:$4 sm:$0xff]   ;;  %v21999_v47 = vld [vmem:[#allocation7 + $0x373c] ss:$72 sps:$4 sm:$0xff]  }
 0x4d8   : > { %15838 = vmatprep.subr.bf16.mxu0 %v21948_v48  ;;  %v22002_v48 = vld [vmem:[#allocation7 + $0x3744] ss:$72 sps:$4 sm:$0xff]  }
 0x4da   : > { %15495 = vmatpush1.bf16.msra.mxu1 %v21943_v49  ;;  %v21997_v49 = vld [vmem:[#allocation7 + $0x3738] ss:$72 sps:$4 sm:$0xff]  }
 0x4db   : > { %15839 = vmatpush1.bf16.msra.mxu0 %v21946_v50  ;;  %15496 = vmatprep.subr.bf16.mxu1 %v21951_v51  ;;  %v22000_v50 = vld [vmem:[#allocation7 + $0x3740] ss:$72 sps:$4 sm:$0xff]   ;;  %v22005_v51 = vld [vmem:[#allocation7 + $0x37cc] ss:$72 sps:$4 sm:$0xff]  }
 0x4dc   : > { %15840 = vmatprep.subr.bf16.mxu0 %v21954_v52  ;;  %v22008_v52 = vld [vmem:[#allocation7 + $0x37d4] ss:$72 sps:$4 sm:$0xff]  }
 0x4de   : > { %15497 = vmatpush1.bf16.msra.mxu1 %v21949_v63  ;;  %v22003_v63 = vld [vmem:[#allocation7 + $0x37c8] ss:$72 sps:$4 sm:$0xff]  }
 0x4df   : > { %15841 = vmatpush1.bf16.msra.mxu0 %v21952_v0  ;;  %15498 = vmatprep.subr.bf16.mxu1 %v21957_v10  ;;  %v22006_v0 = vld [vmem:[#allocation7 + $0x37d0] ss:$72 sps:$4 sm:$0xff]   ;;  %v22011_v10 = vld [vmem:[#allocation7 + $0x385c] ss:$72 sps:$4 sm:$0xff]  }
 0x4e0   : > { %15842 = vmatprep.subr.bf16.mxu0 %v21960_v11  ;;  %v22014_v11 = vld [vmem:[#allocation7 + $0x3864] ss:$72 sps:$4 sm:$0xff]  }
 0x4e2   : > { %15499 = vmatpush1.bf16.msra.mxu1 %v21955_v14  ;;  %v22009_v14 = vld [vmem:[#allocation7 + $0x3858] ss:$72 sps:$4 sm:$0xff]  }
 0x4e3   : > { %15843 = vmatpush1.bf16.msra.mxu0 %v21958_v15  ;;  %15500 = vmatprep.subr.bf16.mxu1 %v21963_v16  ;;  %v22012_v15 = vld [vmem:[#allocation7 + $0x3860] ss:$72 sps:$4 sm:$0xff]   ;;  %v22017_v16 = vld [vmem:[#allocation7 + $0x38ec] ss:$72 sps:$4 sm:$0xff]  }
 0x4e4   : > { %15844 = vmatprep.subr.bf16.mxu0 %v21966_v18  ;;  %v22020_v18 = vld [vmem:[#allocation7 + $0x38f4] ss:$72 sps:$4 sm:$0xff]  }
 0x4e6   : > { %15501 = vmatpush1.bf16.msra.mxu1 %v21961_v20  ;;  %v22015_v20 = vld [vmem:[#allocation7 + $0x38e8] ss:$72 sps:$4 sm:$0xff]  }
 0x4e7   : > { %15845 = vmatpush1.bf16.msra.mxu0 %v21964_v21  ;;  %15502 = vmatprep.subr.bf16.mxu1 %v21969_v42  ;;  %v22018_v21 = vld [vmem:[#allocation7 + $0x38f0] ss:$72 sps:$4 sm:$0xff]   ;;  %v22023_v42 = vld [vmem:[#allocation7 + $0x397c] ss:$72 sps:$4 sm:$0xff]  }
 0x4e8   : > { %15846 = vmatprep.subr.bf16.mxu0 %v21972_v22  ;;  %v22026_v22 = vld [vmem:[#allocation7 + $0x3984] ss:$72 sps:$4 sm:$0xff]  }
 0x4ea   : > { %15503 = vmatpush1.bf16.msra.mxu1 %v21967_v24  ;;  %v22021_v24 = vld [vmem:[#allocation7 + $0x3978] ss:$72 sps:$4 sm:$0xff]  }
 0x4eb   : > { %15847 = vmatpush1.bf16.msra.mxu0 %v21970_v25  ;;  %15504 = vmatprep.subr.bf16.mxu1 %v21975_v53  ;;  %v22024_v25 = vld [vmem:[#allocation7 + $0x3980] ss:$72 sps:$4 sm:$0xff]   ;;  %v22029_v53 = vld [vmem:[#allocation7 + $0x3a0c] ss:$72 sps:$4 sm:$0xff]  }
 0x4ec   : > { %15848 = vmatprep.subr.bf16.mxu0 %v21978_v26  ;;  %v22032_v26 = vld [vmem:[#allocation7 + $0x3a14] ss:$72 sps:$4 sm:$0xff]  }
 0x4ee   : > { %15505 = vmatpush1.bf16.msra.mxu1 %v21973_v27  ;;  %v22027_v27 = vld [vmem:[#allocation7 + $0x3a08] ss:$72 sps:$4 sm:$0xff]  }
 0x4ef   : > { %15849 = vmatpush1.bf16.msra.mxu0 %v21976_v29  ;;  %15506 = vmatprep.subr.bf16.mxu1 %v21981_v32  ;;  %v22030_v29 = vld [vmem:[#allocation7 + $0x3a10] ss:$72 sps:$4 sm:$0xff]   ;;  %v22035_v32 = vld [vmem:[#allocation7 + $0x3a9c] ss:$72 sps:$4 sm:$0xff]  }
 0x4f0   : > { %15850 = vmatprep.subr.bf16.mxu0 %v21984_v34  ;;  %v22038_v34 = vld [vmem:[#allocation7 + $0x3aa4] ss:$72 sps:$4 sm:$0xff]  }
 0x4f2   : > { %15507 = vmatpush1.bf16.msra.mxu1 %v21979_v36  ;;  %v22033_v36 = vld [vmem:[#allocation7 + $0x3a98] ss:$72 sps:$4 sm:$0xff]  }
 0x4f3   : > { %15851 = vmatpush1.bf16.msra.mxu0 %v21982_v37  ;;  %15519 = vmatprep.subr.bf16.mxu1 %v21987_v38  ;;  %v22036_v37 = vld [vmem:[#allocation7 + $0x3aa0] ss:$72 sps:$4 sm:$0xff]   ;;  %v22041_v38 = vld [vmem:[#allocation7 + $0x3b2c] ss:$72 sps:$4 sm:$0xff]  }
 0x4f4   : > { %15863 = vmatprep.subr.bf16.mxu0 %v21990_v39  ;;  %v22044_v39 = vld [vmem:[#allocation7 + $0x3b34] ss:$72 sps:$4 sm:$0xff]  }
 0x4f5   : > { %15509 = vmatmul.mubr.bf16.vlgmr.msra.gmra.mrb[8].mxu1 %v24182_v4 }
 0x4f6   : > { %15853 = vmatmul.mubr.bf16.vlgmr.msra.gmra.mrb[8].mxu0 %v24182_v4  ;;  %15520 = vmatpush1.bf16.msra.mxu1 %v21985_v40  ;;  %v22039_v40 = vld [vmem:[#allocation7 + $0x3b28] ss:$72 sps:$4 sm:$0xff]  }
 0x4f7   : > { %15864 = vmatpush1.bf16.msra.mxu0 %v21988_v41  ;;  %15521 = vmatprep.subr.bf16.mxu1 %v21993_v43  ;;  %v22042_v41 = vld [vmem:[#allocation7 + $0x3b30] ss:$72 sps:$4 sm:$0xff]   ;;  %v22047_v43 = vld [vmem:[#allocation7 + $0x3bbc] ss:$72 sps:$4 sm:$0xff]  }
 0x4f8   : > { %15865 = vmatprep.subr.bf16.mxu0 %v21996_v44  ;;  %15551 = vmatprep.mubr.bf16.mxu1 %v24192_v59  ;;  %v22050_v44 = vld [vmem:[#allocation7 + $0x3bc4] ss:$72 sps:$4 sm:$0xff]  }
 0x4f9   : > { %15895 = vmatprep.mubr.bf16.mxu0 %v24192_v59 }
 0x4fa   : > { %15522 = vmatpush1.bf16.msra.mxu1 %v21991_v45  ;;  %v22045_v45 = vld [vmem:[#allocation7 + $0x3bb8] ss:$72 sps:$4 sm:$0xff]  }
 0x4fb   : > { %15866 = vmatpush1.bf16.msra.mxu0 %v21994_v46  ;;  %15523 = vmatprep.subr.bf16.mxu1 %v21999_v47  ;;  %v22048_v46 = vld [vmem:[#allocation7 + $0x3bc0] ss:$72 sps:$4 sm:$0xff]   ;;  %v22053_v47 = vld [vmem:[#allocation7 + $0x3c4c] ss:$72 sps:$4 sm:$0xff]  }
 0x4fc   : > { %15867 = vmatprep.subr.bf16.mxu0 %v22002_v48  ;;  %v22056_v48 = vld [vmem:[#allocation7 + $0x3c54] ss:$72 sps:$4 sm:$0xff]  }
 0x4fe   : > { %15524 = vmatpush1.bf16.msra.mxu1 %v21997_v49  ;;  %v22051_v49 = vld [vmem:[#allocation7 + $0x3c48] ss:$72 sps:$4 sm:$0xff]  }
 0x4ff   : > { %15868 = vmatpush1.bf16.msra.mxu0 %v22000_v50  ;;  %15525 = vmatprep.subr.bf16.mxu1 %v22005_v51  ;;  %v22054_v50 = vld [vmem:[#allocation7 + $0x3c50] ss:$72 sps:$4 sm:$0xff]   ;;  %v22059_v51 = vld [vmem:[#allocation7 + $0x3cdc] ss:$72 sps:$4 sm:$0xff]  }
 0x500   : > { %15869 = vmatprep.subr.bf16.mxu0 %v22008_v52  ;;  %v22062_v52 = vld [vmem:[#allocation7 + $0x3ce4] ss:$72 sps:$4 sm:$0xff]  }
 0x502   : > { %15526 = vmatpush1.bf16.msra.mxu1 %v22003_v63  ;;  %v22057_v63 = vld [vmem:[#allocation7 + $0x3cd8] ss:$72 sps:$4 sm:$0xff]  }
 0x503   : > { %15870 = vmatpush1.bf16.msra.mxu0 %v22006_v0  ;;  %15527 = vmatprep.subr.bf16.mxu1 %v22011_v10  ;;  %v22060_v0 = vld [vmem:[#allocation7 + $0x3ce0] ss:$72 sps:$4 sm:$0xff]   ;;  %v22065_v10 = vld [vmem:[#allocation7 + $0x3d6c] ss:$72 sps:$4 sm:$0xff]  }
 0x504   : > { %15871 = vmatprep.subr.bf16.mxu0 %v22014_v11  ;;  %v22068_v11 = vld [vmem:[#allocation7 + $0x3d74] ss:$72 sps:$4 sm:$0xff]  }
 0x506   : > { %15528 = vmatpush1.bf16.msra.mxu1 %v22009_v14  ;;  %v22063_v14 = vld [vmem:[#allocation7 + $0x3d68] ss:$72 sps:$4 sm:$0xff]  }
 0x507   : > { %15872 = vmatpush1.bf16.msra.mxu0 %v22012_v15  ;;  %15529 = vmatprep.subr.bf16.mxu1 %v22017_v16  ;;  %v22066_v15 = vld [vmem:[#allocation7 + $0x3d70] ss:$72 sps:$4 sm:$0xff]   ;;  %v22071_v16 = vld [vmem:[#allocation7 + $0x3dfc] ss:$72 sps:$4 sm:$0xff]  }
 0x508   : > { %15873 = vmatprep.subr.bf16.mxu0 %v22020_v18  ;;  %v22074_v18 = vld [vmem:[#allocation7 + $0x3e04] ss:$72 sps:$4 sm:$0xff]  }
 0x50a   : > { %15530 = vmatpush1.bf16.msra.mxu1 %v22015_v20  ;;  %v22069_v20 = vld [vmem:[#allocation7 + $0x3df8] ss:$72 sps:$4 sm:$0xff]  }
 0x50b   : > { %15874 = vmatpush1.bf16.msra.mxu0 %v22018_v21  ;;  %15531 = vmatprep.subr.bf16.mxu1 %v22023_v42  ;;  %v22072_v21 = vld [vmem:[#allocation7 + $0x3e00] ss:$72 sps:$4 sm:$0xff]   ;;  %v22077_v42 = vld [vmem:[#allocation7 + $0x3e8c] ss:$72 sps:$4 sm:$0xff]  }
 0x50c   : > { %15875 = vmatprep.subr.bf16.mxu0 %v22026_v22  ;;  %v22080_v22 = vld [vmem:[#allocation7 + $0x3e94] ss:$72 sps:$4 sm:$0xff]  }
 0x50e   : > { %15532 = vmatpush1.bf16.msra.mxu1 %v22021_v24  ;;  %v22075_v24 = vld [vmem:[#allocation7 + $0x3e88] ss:$72 sps:$4 sm:$0xff]  }
 0x50f   : > { %15876 = vmatpush1.bf16.msra.mxu0 %v22024_v25  ;;  %15533 = vmatprep.subr.bf16.mxu1 %v22029_v53  ;;  %v22078_v25 = vld [vmem:[#allocation7 + $0x3e90] ss:$72 sps:$4 sm:$0xff]   ;;  %v22083_v53 = vld [vmem:[#allocation7 + $0x3f1c] ss:$72 sps:$4 sm:$0xff]  }
 0x510   : > { %15877 = vmatprep.subr.bf16.mxu0 %v22032_v26  ;;  %v22086_v26 = vld [vmem:[#allocation7 + $0x3f24] ss:$72 sps:$4 sm:$0xff]  }
 0x512   : > { %15534 = vmatpush1.bf16.msra.mxu1 %v22027_v27  ;;  %v22081_v27 = vld [vmem:[#allocation7 + $0x3f18] ss:$72 sps:$4 sm:$0xff]  }
 0x513   : > { %15878 = vmatpush1.bf16.msra.mxu0 %v22030_v29  ;;  %15535 = vmatprep.subr.bf16.mxu1 %v22035_v32  ;;  %v22084_v29 = vld [vmem:[#allocation7 + $0x3f20] ss:$72 sps:$4 sm:$0xff]   ;;  %v22089_v32 = vld [vmem:[#allocation7 + $0x3fac] ss:$72 sps:$4 sm:$0xff]  }
 0x514   : > { %15879 = vmatprep.subr.bf16.mxu0 %v22038_v34  ;;  %v22092_v34 = vld [vmem:[#allocation7 + $0x3fb4] ss:$72 sps:$4 sm:$0xff]  }
 0x516   : > { %15536 = vmatpush1.bf16.msra.mxu1 %v22033_v36  ;;  %v22087_v36 = vld [vmem:[#allocation7 + $0x3fa8] ss:$72 sps:$4 sm:$0xff]  }
 0x517   : > { %15880 = vmatpush1.bf16.msra.mxu0 %v22036_v37  ;;  %15537 = vmatprep.subr.bf16.mxu1 %v22041_v38  ;;  %v22090_v37 = vld [vmem:[#allocation7 + $0x3fb0] ss:$72 sps:$4 sm:$0xff]   ;;  %v22095_v38 = vld [vmem:[#allocation7 + $0x403c] ss:$72 sps:$4 sm:$0xff]  }
 0x518   : > { %15881 = vmatprep.subr.bf16.mxu0 %v22044_v39  ;;  %v22098_v39 = vld [vmem:[#allocation7 + $0x4044] ss:$72 sps:$4 sm:$0xff]  }
 0x51a   : > { %15538 = vmatpush1.bf16.msra.mxu1 %v22039_v40  ;;  %v22093_v40 = vld [vmem:[#allocation7 + $0x4038] ss:$72 sps:$4 sm:$0xff]  }
 0x51b   : > { %15882 = vmatpush1.bf16.msra.mxu0 %v22042_v41  ;;  %15539 = vmatprep.subr.bf16.mxu1 %v22047_v43  ;;  %v22096_v41 = vld [vmem:[#allocation7 + $0x4040] ss:$72 sps:$4 sm:$0xff]   ;;  %v22101_v43 = vld [vmem:[#allocation7 + $0x40cc] ss:$72 sps:$4 sm:$0xff]  }
 0x51c   : > { %15883 = vmatprep.subr.bf16.mxu0 %v22050_v44  ;;  %v22104_v44 = vld [vmem:[#allocation7 + $0x40d4] ss:$72 sps:$4 sm:$0xff]  }
 0x51e   : > { %15540 = vmatpush1.bf16.msra.mxu1 %v22045_v45  ;;  %v22099_v45 = vld [vmem:[#allocation7 + $0x40c8] ss:$72 sps:$4 sm:$0xff]  }
 0x51f   : > { %15884 = vmatpush1.bf16.msra.mxu0 %v22048_v46  ;;  %15541 = vmatprep.subr.bf16.mxu1 %v22053_v47  ;;  %v22102_v46 = vld [vmem:[#allocation7 + $0x40d0] ss:$72 sps:$4 sm:$0xff]   ;;  %v22107_v47 = vld [vmem:[#allocation7 + $0x415c] ss:$72 sps:$4 sm:$0xff]  }
 0x520   : > { %15885 = vmatprep.subr.bf16.mxu0 %v22056_v48  ;;  %v22110_v48 = vld [vmem:[#allocation7 + $0x4164] ss:$72 sps:$4 sm:$0xff]  }
 0x522   : > { %15542 = vmatpush1.bf16.msra.mxu1 %v22051_v49  ;;  %v22105_v49 = vld [vmem:[#allocation7 + $0x4158] ss:$72 sps:$4 sm:$0xff]  }
 0x523   : > { %15886 = vmatpush1.bf16.msra.mxu0 %v22054_v50  ;;  %15543 = vmatprep.subr.bf16.mxu1 %v22059_v51  ;;  %v22108_v50 = vld [vmem:[#allocation7 + $0x4160] ss:$72 sps:$4 sm:$0xff]   ;;  %v22113_v51 = vld [vmem:[#allocation7 + $0x41ec] ss:$72 sps:$4 sm:$0xff]  }
 0x524   : > { %15887 = vmatprep.subr.bf16.mxu0 %v22062_v52  ;;  %v22116_v52 = vld [vmem:[#allocation7 + $0x41f4] ss:$72 sps:$4 sm:$0xff]  }
 0x526   : > { %15544 = vmatpush1.bf16.msra.mxu1 %v22057_v63  ;;  %v22111_v63 = vld [vmem:[#allocation7 + $0x41e8] ss:$72 sps:$4 sm:$0xff]  }
 0x527   : > { %15888 = vmatpush1.bf16.msra.mxu0 %v22060_v0  ;;  %15545 = vmatprep.subr.bf16.mxu1 %v22065_v10  ;;  %v22114_v0 = vld [vmem:[#allocation7 + $0x41f0] ss:$72 sps:$4 sm:$0xff]   ;;  %v22119_v10 = vld [vmem:[#allocation7 + $0x427c] ss:$72 sps:$4 sm:$0xff]  }
 0x528   : > { %15889 = vmatprep.subr.bf16.mxu0 %v22068_v11  ;;  %v22122_v11 = vld [vmem:[#allocation7 + $0x4284] ss:$72 sps:$4 sm:$0xff]  }
 0x52a   : > { %15546 = vmatpush1.bf16.msra.mxu1 %v22063_v14  ;;  %v22117_v14 = vld [vmem:[#allocation7 + $0x4278] ss:$72 sps:$4 sm:$0xff]  }
 0x52b   : > { %15890 = vmatpush1.bf16.msra.mxu0 %v22066_v15  ;;  %15547 = vmatprep.subr.bf16.mxu1 %v22071_v16  ;;  %v22120_v15 = vld [vmem:[#allocation7 + $0x4280] ss:$72 sps:$4 sm:$0xff]   ;;  %v22125_v16 = vld [vmem:[#allocation7 + $0x430c] ss:$72 sps:$4 sm:$0xff]  }
 0x52c   : > { %15891 = vmatprep.subr.bf16.mxu0 %v22074_v18  ;;  %v22128_v18 = vld [vmem:[#allocation7 + $0x4314] ss:$72 sps:$4 sm:$0xff]  }
 0x52e   : > { %15548 = vmatpush1.bf16.msra.mxu1 %v22069_v20  ;;  %v22123_v20 = vld [vmem:[#allocation7 + $0x4308] ss:$72 sps:$4 sm:$0xff]  }
 0x52f   : > { %15892 = vmatpush1.bf16.msra.mxu0 %v22072_v21  ;;  %15549 = vmatprep.subr.bf16.mxu1 %v22077_v42  ;;  %v22126_v21 = vld [vmem:[#allocation7 + $0x4310] ss:$72 sps:$4 sm:$0xff]   ;;  %v22131_v42 = vld [vmem:[#allocation7 + $0x439c] ss:$72 sps:$4 sm:$0xff]  }
 0x530   : > { %15893 = vmatprep.subr.bf16.mxu0 %v22080_v22  ;;  %v22134_v22 = vld [vmem:[#allocation7 + $0x43a4] ss:$72 sps:$4 sm:$0xff]  }
 0x532   : > { %15550 = vmatpush1.bf16.msra.mxu1 %v22075_v24  ;;  %v22129_v24 = vld [vmem:[#allocation7 + $0x4398] ss:$72 sps:$4 sm:$0xff]  }
 0x533   : > { %15894 = vmatpush1.bf16.msra.mxu0 %v22078_v25  ;;  %15562 = vmatprep.subr.bf16.mxu1 %v22083_v53  ;;  %v22132_v25 = vld [vmem:[#allocation7 + $0x43a0] ss:$72 sps:$4 sm:$0xff]   ;;  %v22137_v53 = vld [vmem:[#allocation7 + $0x442c] ss:$72 sps:$4 sm:$0xff]  }
 0x534   : > { %15906 = vmatprep.subr.bf16.mxu0 %v22086_v26  ;;  %v22140_v26 = vld [vmem:[#allocation7 + $0x4434] ss:$72 sps:$4 sm:$0xff]  }
 0x535   : > { %15552 = vmatmul.mubr.bf16.vlgmr.msra.gmra.mrb[8].mxu1 %v24209_v60 }
 0x536   : > { %15896 = vmatmul.mubr.bf16.vlgmr.msra.gmra.mrb[8].mxu0 %v24209_v60  ;;  %15563 = vmatpush1.bf16.msra.mxu1 %v22081_v27  ;;  %v22135_v27 = vld [vmem:[#allocation7 + $0x4428] ss:$72 sps:$4 sm:$0xff]  }
 0x537   : > { %15907 = vmatpush1.bf16.msra.mxu0 %v22084_v29  ;;  %15564 = vmatprep.subr.bf16.mxu1 %v22089_v32  ;;  %v22138_v29 = vld [vmem:[#allocation7 + $0x4430] ss:$72 sps:$4 sm:$0xff]   ;;  %v22143_v32 = vld [vmem:[#allocation7 + $0x44bc] ss:$72 sps:$4 sm:$0xff]  }
 0x538   : > { %15908 = vmatprep.subr.bf16.mxu0 %v22092_v34  ;;  %15594 = vmatprep.mubr.bf16.mxu1 %v24213_v5  ;;  %v22146_v34 = vld [vmem:[#allocation7 + $0x44c4] ss:$72 sps:$4 sm:$0xff]  }
 0x539   : > { %15938 = vmatprep.mubr.bf16.mxu0 %v24213_v5 }
 0x53a   : > { %15565 = vmatpush1.bf16.msra.mxu1 %v22087_v36  ;;  %v22141_v36 = vld [vmem:[#allocation7 + $0x44b8] ss:$72 sps:$4 sm:$0xff]  }
 0x53b   : > { %15909 = vmatpush1.bf16.msra.mxu0 %v22090_v37  ;;  %15566 = vmatprep.subr.bf16.mxu1 %v22095_v38  ;;  %v22144_v37 = vld [vmem:[#allocation7 + $0x44c0] ss:$72 sps:$4 sm:$0xff]   ;;  %v22149_v38 = vld [vmem:[#allocation7 + $0x454c] ss:$72 sps:$4 sm:$0xff]  }
 0x53c   : > { %15910 = vmatprep.subr.bf16.mxu0 %v22098_v39  ;;  %v22152_v39 = vld [vmem:[#allocation7 + $0x4554] ss:$72 sps:$4 sm:$0xff]  }
 0x53e   : > { %15567 = vmatpush1.bf16.msra.mxu1 %v22093_v40  ;;  %v22147_v40 = vld [vmem:[#allocation7 + $0x4548] ss:$72 sps:$4 sm:$0xff]  }
 0x53f   : > { %15911 = vmatpush1.bf16.msra.mxu0 %v22096_v41  ;;  %15568 = vmatprep.subr.bf16.mxu1 %v22101_v43  ;;  %v22150_v41 = vld [vmem:[#allocation7 + $0x4550] ss:$72 sps:$4 sm:$0xff]   ;;  %v22155_v43 = vld [vmem:[#allocation7 + $0x45dc] ss:$72 sps:$4 sm:$0xff]  }
 0x540   : > { %15912 = vmatprep.subr.bf16.mxu0 %v22104_v44  ;;  %v22158_v44 = vld [vmem:[#allocation7 + $0x45e4] ss:$72 sps:$4 sm:$0xff]  }
 0x542   : > { %15569 = vmatpush1.bf16.msra.mxu1 %v22099_v45  ;;  %v22153_v45 = vld [vmem:[#allocation7 + $0x45d8] ss:$72 sps:$4 sm:$0xff]  }
 0x543   : > { %15913 = vmatpush1.bf16.msra.mxu0 %v22102_v46  ;;  %15570 = vmatprep.subr.bf16.mxu1 %v22107_v47  ;;  %v22156_v46 = vld [vmem:[#allocation7 + $0x45e0] ss:$72 sps:$4 sm:$0xff]   ;;  %v22161_v47 = vld [vmem:[#allocation7 + $0x466c] ss:$72 sps:$4 sm:$0xff]  }
 0x544   : > { %15914 = vmatprep.subr.bf16.mxu0 %v22110_v48  ;;  %v22164_v48 = vld [vmem:[#allocation7 + $0x4674] ss:$72 sps:$4 sm:$0xff]  }
 0x546   : > { %15571 = vmatpush1.bf16.msra.mxu1 %v22105_v49  ;;  %v22159_v49 = vld [vmem:[#allocation7 + $0x4668] ss:$72 sps:$4 sm:$0xff]  }
 0x547   : > { %15915 = vmatpush1.bf16.msra.mxu0 %v22108_v50  ;;  %15572 = vmatprep.subr.bf16.mxu1 %v22113_v51  ;;  %v22162_v50 = vld [vmem:[#allocation7 + $0x4670] ss:$72 sps:$4 sm:$0xff]   ;;  %v22167_v51 = vld [vmem:[#allocation7 + $0x46fc] ss:$72 sps:$4 sm:$0xff]  }
 0x548   : > { %15916 = vmatprep.subr.bf16.mxu0 %v22116_v52  ;;  %v22170_v52 = vld [vmem:[#allocation7 + $0x4704] ss:$72 sps:$4 sm:$0xff]  }
 0x54a   : > { %15573 = vmatpush1.bf16.msra.mxu1 %v22111_v63  ;;  %v22165_v63 = vld [vmem:[#allocation7 + $0x46f8] ss:$72 sps:$4 sm:$0xff]  }
 0x54b   : > { %15917 = vmatpush1.bf16.msra.mxu0 %v22114_v0  ;;  %15574 = vmatprep.subr.bf16.mxu1 %v22119_v10  ;;  %v22168_v0 = vld [vmem:[#allocation7 + $0x4700] ss:$72 sps:$4 sm:$0xff]   ;;  %v22173_v10 = vld [vmem:[#allocation7 + $0x478c] ss:$72 sps:$4 sm:$0xff]  }
 0x54c   : > { %15918 = vmatprep.subr.bf16.mxu0 %v22122_v11  ;;  %v22176_v11 = vld [vmem:[#allocation7 + $0x4794] ss:$72 sps:$4 sm:$0xff]  }
 0x54e   : > { %15575 = vmatpush1.bf16.msra.mxu1 %v22117_v14  ;;  %v22171_v14 = vld [vmem:[#allocation7 + $0x4788] ss:$72 sps:$4 sm:$0xff]  }
 0x54f   : > { %15919 = vmatpush1.bf16.msra.mxu0 %v22120_v15  ;;  %15576 = vmatprep.subr.bf16.mxu1 %v22125_v16  ;;  %v22174_v15 = vld [vmem:[#allocation7 + $0x4790] ss:$72 sps:$4 sm:$0xff]   ;;  %v22179_v16 = vld [vmem:[#allocation7 + $0x2c] ss:$72 sps:$4 sm:$0xff]  }
 0x550   : > { %15920 = vmatprep.subr.bf16.mxu0 %v22128_v18  ;;  %v22182_v18 = vld [vmem:[#allocation7 + $0x34] ss:$72 sps:$4 sm:$0xff]  }
 0x552   : > { %15577 = vmatpush1.bf16.msra.mxu1 %v22123_v20  ;;  %v22177_v20 = vld [vmem:[#allocation7 + $0x28] ss:$72 sps:$4 sm:$0xff]  }
 0x553   : > { %15921 = vmatpush1.bf16.msra.mxu0 %v22126_v21  ;;  %15578 = vmatprep.subr.bf16.mxu1 %v22131_v42  ;;  %v22180_v21 = vld [vmem:[#allocation7 + $0x30] ss:$72 sps:$4 sm:$0xff]   ;;  %v22185_v42 = vld [vmem:[#allocation7 + $0xbc] ss:$72 sps:$4 sm:$0xff]  }
 0x554   : > { %15922 = vmatprep.subr.bf16.mxu0 %v22134_v22  ;;  %v22188_v22 = vld [vmem:[#allocation7 + $0xc4] ss:$72 sps:$4 sm:$0xff]  }
 0x556   : > { %15579 = vmatpush1.bf16.msra.mxu1 %v22129_v24  ;;  %v22183_v24 = vld [vmem:[#allocation7 + $0xb8] ss:$72 sps:$4 sm:$0xff]  }
 0x557   : > { %15923 = vmatpush1.bf16.msra.mxu0 %v22132_v25  ;;  %15580 = vmatprep.subr.bf16.mxu1 %v22137_v53  ;;  %v22186_v25 = vld [vmem:[#allocation7 + $0xc0] ss:$72 sps:$4 sm:$0xff]   ;;  %v22191_v53 = vld [vmem:[#allocation7 + $0x14c] ss:$72 sps:$4 sm:$0xff]  }
 0x558   : > { %15924 = vmatprep.subr.bf16.mxu0 %v22140_v26  ;;  %v22194_v26 = vld [vmem:[#allocation7 + $0x154] ss:$72 sps:$4 sm:$0xff]  }
 0x55a   : > { %15581 = vmatpush1.bf16.msra.mxu1 %v22135_v27  ;;  %v22189_v27 = vld [vmem:[#allocation7 + $0x148] ss:$72 sps:$4 sm:$0xff]  }
 0x55b   : > { %15925 = vmatpush1.bf16.msra.mxu0 %v22138_v29  ;;  %15582 = vmatprep.subr.bf16.mxu1 %v22143_v32  ;;  %v22192_v29 = vld [vmem:[#allocation7 + $0x150] ss:$72 sps:$4 sm:$0xff]   ;;  %v22197_v32 = vld [vmem:[#allocation7 + $0x1dc] ss:$72 sps:$4 sm:$0xff]  }
 0x55c   : > { %15926 = vmatprep.subr.bf16.mxu0 %v22146_v34  ;;  %v22200_v34 = vld [vmem:[#allocation7 + $0x1e4] ss:$72 sps:$4 sm:$0xff]  }
 0x55e   : > { %15583 = vmatpush1.bf16.msra.mxu1 %v22141_v36  ;;  %v22195_v36 = vld [vmem:[#allocation7 + $0x1d8] ss:$72 sps:$4 sm:$0xff]  }
 0x55f   : > { %15927 = vmatpush1.bf16.msra.mxu0 %v22144_v37  ;;  %15584 = vmatprep.subr.bf16.mxu1 %v22149_v38  ;;  %v22198_v37 = vld [vmem:[#allocation7 + $0x1e0] ss:$72 sps:$4 sm:$0xff]   ;;  %v22203_v38 = vld [vmem:[#allocation7 + $0x26c] ss:$72 sps:$4 sm:$0xff]  }
 0x560   : > { %15928 = vmatprep.subr.bf16.mxu0 %v22152_v39  ;;  %v22206_v39 = vld [vmem:[#allocation7 + $0x274] ss:$72 sps:$4 sm:$0xff]  }
 0x562   : > { %15585 = vmatpush1.bf16.msra.mxu1 %v22147_v40  ;;  %v22201_v40 = vld [vmem:[#allocation7 + $0x268] ss:$72 sps:$4 sm:$0xff]  }
 0x563   : > { %15929 = vmatpush1.bf16.msra.mxu0 %v22150_v41  ;;  %15586 = vmatprep.subr.bf16.mxu1 %v22155_v43  ;;  %v22204_v41 = vld [vmem:[#allocation7 + $0x270] ss:$72 sps:$4 sm:$0xff]   ;;  %v22209_v43 = vld [vmem:[#allocation7 + $0x2fc] ss:$72 sps:$4 sm:$0xff]  }
 0x564   : > { %15930 = vmatprep.subr.bf16.mxu0 %v22158_v44  ;;  %v22212_v44 = vld [vmem:[#allocation7 + $0x304] ss:$72 sps:$4 sm:$0xff]  }
 0x566   : > { %15587 = vmatpush1.bf16.msra.mxu1 %v22153_v45  ;;  %v22207_v45 = vld [vmem:[#allocation7 + $0x2f8] ss:$72 sps:$4 sm:$0xff]  }
 0x567   : > { %15931 = vmatpush1.bf16.msra.mxu0 %v22156_v46  ;;  %15588 = vmatprep.subr.bf16.mxu1 %v22161_v47  ;;  %v22210_v46 = vld [vmem:[#allocation7 + $0x300] ss:$72 sps:$4 sm:$0xff]   ;;  %v22215_v47 = vld [vmem:[#allocation7 + $0x38c] ss:$72 sps:$4 sm:$0xff]  }
 0x568   : > { %15932 = vmatprep.subr.bf16.mxu0 %v22164_v48  ;;  %v22218_v48 = vld [vmem:[#allocation7 + $0x394] ss:$72 sps:$4 sm:$0xff]  }
 0x56a   : > { %15589 = vmatpush1.bf16.msra.mxu1 %v22159_v49  ;;  %v22213_v49 = vld [vmem:[#allocation7 + $0x388] ss:$72 sps:$4 sm:$0xff]  }
 0x56b   : > { %15933 = vmatpush1.bf16.msra.mxu0 %v22162_v50  ;;  %15590 = vmatprep.subr.bf16.mxu1 %v22167_v51  ;;  %v22216_v50 = vld [vmem:[#allocation7 + $0x390] ss:$72 sps:$4 sm:$0xff]   ;;  %v22221_v51 = vld [vmem:[#allocation7 + $0x41c] ss:$72 sps:$4 sm:$0xff]  }
 0x56c   : > { %15934 = vmatprep.subr.bf16.mxu0 %v22170_v52  ;;  %v22224_v52 = vld [vmem:[#allocation7 + $0x424] ss:$72 sps:$4 sm:$0xff]  }
 0x56e   : > { %15591 = vmatpush1.bf16.msra.mxu1 %v22165_v63  ;;  %v22219_v63 = vld [vmem:[#allocation7 + $0x418] ss:$72 sps:$4 sm:$0xff]  }
 0x56f   : > { %15935 = vmatpush1.bf16.msra.mxu0 %v22168_v0  ;;  %15592 = vmatprep.subr.bf16.mxu1 %v22173_v10  ;;  %v22222_v0 = vld [vmem:[#allocation7 + $0x420] ss:$72 sps:$4 sm:$0xff]   ;;  %v22227_v10 = vld [vmem:[#allocation7 + $0x4ac] ss:$72 sps:$4 sm:$0xff]  }
 0x570   : > { %15936 = vmatprep.subr.bf16.mxu0 %v22176_v11  ;;  %v22230_v11 = vld [vmem:[#allocation7 + $0x4b4] ss:$72 sps:$4 sm:$0xff]  }
 0x572   : > { %15593 = vmatpush1.bf16.msra.mxu1 %v22171_v14  ;;  %v22225_v14 = vld [vmem:[#allocation7 + $0x4a8] ss:$72 sps:$4 sm:$0xff]  }
 0x573   : > { %15937 = vmatpush1.bf16.msra.mxu0 %v22174_v15  ;;  %15949 = vmatprep.subr.bf16.mxu1 %v22179_v16  ;;  %v22228_v15 = vld [vmem:[#allocation7 + $0x4b0] ss:$72 sps:$4 sm:$0xff]   ;;  %v22233_v16 = vld [vmem:[#allocation7 + $0x53c] ss:$72 sps:$4 sm:$0xff]  }
 0x574   : > { %16293 = vmatprep.subr.bf16.mxu0 %v22182_v18  ;;  %v22236_v18 = vld [vmem:[#allocation7 + $0x544] ss:$72 sps:$4 sm:$0xff]  }
 0x575   : > { %15595 = vmatmul.mubr.bf16.vlgmr.msra.gmra.mrb[8].mxu1 %v24224_v35 }
 0x576   : > { %15939 = vmatmul.mubr.bf16.vlgmr.msra.gmra.mrb[8].mxu0 %v24224_v35  ;;  %15950 = vmatpush1.bf16.msra.mxu1 %v22177_v20  ;;  %v22231_v20 = vld [vmem:[#allocation7 + $0x538] ss:$72 sps:$4 sm:$0xff]  }
 0x577   : > { %16294 = vmatpush1.bf16.msra.mxu0 %v22180_v21  ;;  %15951 = vmatprep.subr.bf16.mxu1 %v22185_v42  ;;  %v22234_v21 = vld [vmem:[#allocation7 + $0x540] ss:$72 sps:$4 sm:$0xff]   ;;  %v22239_v42 = vld [vmem:[#allocation7 + $0x5cc] ss:$72 sps:$4 sm:$0xff]  }
 0x578   : > { %16295 = vmatprep.subr.bf16.mxu0 %v22188_v22  ;;  %15981 = vmatprep.mubr.bf16.mxu1 %v24153_v1  ;;  %v22242_v22 = vld [vmem:[#allocation7 + $0x5d4] ss:$72 sps:$4 sm:$0xff]  }
 0x579   : > { %16325 = vmatprep.mubr.bf16.mxu0 %v24153_v1 }
 0x57a   : > { %15952 = vmatpush1.bf16.msra.mxu1 %v22183_v24  ;;  %v22237_v24 = vld [vmem:[#allocation7 + $0x5c8] ss:$72 sps:$4 sm:$0xff]  }
 0x57b   : > { %16296 = vmatpush1.bf16.msra.mxu0 %v22186_v25  ;;  %15953 = vmatprep.subr.bf16.mxu1 %v22191_v53  ;;  %v22240_v25 = vld [vmem:[#allocation7 + $0x5d0] ss:$72 sps:$4 sm:$0xff]   ;;  %v22245_v53 = vld [vmem:[#allocation7 + $0x65c] ss:$72 sps:$4 sm:$0xff]  }
 0x57c   : > { %16297 = vmatprep.subr.bf16.mxu0 %v22194_v26  ;;  %v22248_v26 = vld [vmem:[#allocation7 + $0x664] ss:$72 sps:$4 sm:$0xff]  }
 0x57e   : > { %15954 = vmatpush1.bf16.msra.mxu1 %v22189_v27  ;;  %v22243_v27 = vld [vmem:[#allocation7 + $0x658] ss:$72 sps:$4 sm:$0xff]  }
 0x57f   : > { %16298 = vmatpush1.bf16.msra.mxu0 %v22192_v29  ;;  %15955 = vmatprep.subr.bf16.mxu1 %v22197_v32  ;;  %v22246_v29 = vld [vmem:[#allocation7 + $0x660] ss:$72 sps:$4 sm:$0xff]   ;;  %v22251_v32 = vld [vmem:[#allocation7 + $0x6ec] ss:$72 sps:$4 sm:$0xff]  }
 0x580   : > { %16299 = vmatprep.subr.bf16.mxu0 %v22200_v34  ;;  %v22254_v34 = vld [vmem:[#allocation7 + $0x6f4] ss:$72 sps:$4 sm:$0xff]  }
 0x582   : > { %15956 = vmatpush1.bf16.msra.mxu1 %v22195_v36  ;;  %v22249_v36 = vld [vmem:[#allocation7 + $0x6e8] ss:$72 sps:$4 sm:$0xff]  }
 0x583   : > { %16300 = vmatpush1.bf16.msra.mxu0 %v22198_v37  ;;  %15957 = vmatprep.subr.bf16.mxu1 %v22203_v38  ;;  %v22252_v37 = vld [vmem:[#allocation7 + $0x6f0] ss:$72 sps:$4 sm:$0xff]   ;;  %v22257_v38 = vld [vmem:[#allocation7 + $0x77c] ss:$72 sps:$4 sm:$0xff]  }
 0x584   : > { %16301 = vmatprep.subr.bf16.mxu0 %v22206_v39  ;;  %v22260_v39 = vld [vmem:[#allocation7 + $0x784] ss:$72 sps:$4 sm:$0xff]  }
 0x586   : > { %15958 = vmatpush1.bf16.msra.mxu1 %v22201_v40  ;;  %v22255_v40 = vld [vmem:[#allocation7 + $0x778] ss:$72 sps:$4 sm:$0xff]  }
 0x587   : > { %16302 = vmatpush1.bf16.msra.mxu0 %v22204_v41  ;;  %15959 = vmatprep.subr.bf16.mxu1 %v22209_v43  ;;  %v22258_v41 = vld [vmem:[#allocation7 + $0x780] ss:$72 sps:$4 sm:$0xff]   ;;  %v22263_v43 = vld [vmem:[#allocation7 + $0x80c] ss:$72 sps:$4 sm:$0xff]  }
 0x588   : > { %16303 = vmatprep.subr.bf16.mxu0 %v22212_v44  ;;  %v22266_v44 = vld [vmem:[#allocation7 + $0x814] ss:$72 sps:$4 sm:$0xff]  }
 0x58a   : > { %15960 = vmatpush1.bf16.msra.mxu1 %v22207_v45  ;;  %v22261_v45 = vld [vmem:[#allocation7 + $0x808] ss:$72 sps:$4 sm:$0xff]  }
 0x58b   : > { %16304 = vmatpush1.bf16.msra.mxu0 %v22210_v46  ;;  %15961 = vmatprep.subr.bf16.mxu1 %v22215_v47  ;;  %v22264_v46 = vld [vmem:[#allocation7 + $0x810] ss:$72 sps:$4 sm:$0xff]   ;;  %v22269_v47 = vld [vmem:[#allocation7 + $0x89c] ss:$72 sps:$4 sm:$0xff]  }
 0x58c   : > { %16305 = vmatprep.subr.bf16.mxu0 %v22218_v48  ;;  %v22272_v48 = vld [vmem:[#allocation7 + $0x8a4] ss:$72 sps:$4 sm:$0xff]  }
 0x58e   : > { %15962 = vmatpush1.bf16.msra.mxu1 %v22213_v49  ;;  %v22267_v49 = vld [vmem:[#allocation7 + $0x898] ss:$72 sps:$4 sm:$0xff]  }
 0x58f   : > { %16306 = vmatpush1.bf16.msra.mxu0 %v22216_v50  ;;  %15963 = vmatprep.subr.bf16.mxu1 %v22221_v51  ;;  %v22270_v50 = vld [vmem:[#allocation7 + $0x8a0] ss:$72 sps:$4 sm:$0xff]   ;;  %v22275_v51 = vld [vmem:[#allocation7 + $0x92c] ss:$72 sps:$4 sm:$0xff]  }
 0x590   : > { %16307 = vmatprep.subr.bf16.mxu0 %v22224_v52  ;;  %v22278_v52 = vld [vmem:[#allocation7 + $0x934] ss:$72 sps:$4 sm:$0xff]  }
 0x592   : > { %15964 = vmatpush1.bf16.msra.mxu1 %v22219_v63  ;;  %v22273_v63 = vld [vmem:[#allocation7 + $0x928] ss:$72 sps:$4 sm:$0xff]  }
 0x593   : > { %16308 = vmatpush1.bf16.msra.mxu0 %v22222_v0  ;;  %15965 = vmatprep.subr.bf16.mxu1 %v22227_v10  ;;  %v22276_v0 = vld [vmem:[#allocation7 + $0x930] ss:$72 sps:$4 sm:$0xff]   ;;  %v22281_v10 = vld [vmem:[#allocation7 + $0x9bc] ss:$72 sps:$4 sm:$0xff]  }
 0x594   : > { %16309 = vmatprep.subr.bf16.mxu0 %v22230_v11  ;;  %v22284_v11 = vld [vmem:[#allocation7 + $0x9c4] ss:$72 sps:$4 sm:$0xff]  }
 0x596   : > { %15966 = vmatpush1.bf16.msra.mxu1 %v22225_v14  ;;  %v22279_v14 = vld [vmem:[#allocation7 + $0x9b8] ss:$72 sps:$4 sm:$0xff]  }
 0x597   : > { %16310 = vmatpush1.bf16.msra.mxu0 %v22228_v15  ;;  %15967 = vmatprep.subr.bf16.mxu1 %v22233_v16  ;;  %v22282_v15 = vld [vmem:[#allocation7 + $0x9c0] ss:$72 sps:$4 sm:$0xff]   ;;  %v22287_v16 = vld [vmem:[#allocation7 + $0xa4c] ss:$72 sps:$4 sm:$0xff]  }
 0x598   : > { %16311 = vmatprep.subr.bf16.mxu0 %v22236_v18  ;;  %v22290_v18 = vld [vmem:[#allocation7 + $0xa54] ss:$72 sps:$4 sm:$0xff]  }
 0x59a   : > { %15968 = vmatpush1.bf16.msra.mxu1 %v22231_v20  ;;  %v22285_v20 = vld [vmem:[#allocation7 + $0xa48] ss:$72 sps:$4 sm:$0xff]  }
 0x59b   : > { %16312 = vmatpush1.bf16.msra.mxu0 %v22234_v21  ;;  %15969 = vmatprep.subr.bf16.mxu1 %v22239_v42  ;;  %v22288_v21 = vld [vmem:[#allocation7 + $0xa50] ss:$72 sps:$4 sm:$0xff]   ;;  %v22293_v42 = vld [vmem:[#allocation7 + $0xadc] ss:$72 sps:$4 sm:$0xff]  }
 0x59c   : > { %16313 = vmatprep.subr.bf16.mxu0 %v22242_v22  ;;  %v22296_v22 = vld [vmem:[#allocation7 + $0xae4] ss:$72 sps:$4 sm:$0xff]  }
 0x59e   : > { %15970 = vmatpush1.bf16.msra.mxu1 %v22237_v24  ;;  %v22291_v24 = vld [vmem:[#allocation7 + $0xad8] ss:$72 sps:$4 sm:$0xff]  }
 0x59f   : > { %16314 = vmatpush1.bf16.msra.mxu0 %v22240_v25  ;;  %15971 = vmatprep.subr.bf16.mxu1 %v22245_v53  ;;  %v22294_v25 = vld [vmem:[#allocation7 + $0xae0] ss:$72 sps:$4 sm:$0xff]   ;;  %v22299_v53 = vld [vmem:[#allocation7 + $0xb6c] ss:$72 sps:$4 sm:$0xff]  }
 0x5a0   : > { %16315 = vmatprep.subr.bf16.mxu0 %v22248_v26  ;;  %v22302_v26 = vld [vmem:[#allocation7 + $0xb74] ss:$72 sps:$4 sm:$0xff]  }
 0x5a2   : > { %15972 = vmatpush1.bf16.msra.mxu1 %v22243_v27  ;;  %v22297_v27 = vld [vmem:[#allocation7 + $0xb68] ss:$72 sps:$4 sm:$0xff]  }
 0x5a3   : > { %16316 = vmatpush1.bf16.msra.mxu0 %v22246_v29  ;;  %15973 = vmatprep.subr.bf16.mxu1 %v22251_v32  ;;  %v22300_v29 = vld [vmem:[#allocation7 + $0xb70] ss:$72 sps:$4 sm:$0xff]   ;;  %v22305_v32 = vld [vmem:[#allocation7 + $0xbfc] ss:$72 sps:$4 sm:$0xff]  }
 0x5a4   : > { %16317 = vmatprep.subr.bf16.mxu0 %v22254_v34  ;;  %v22308_v34 = vld [vmem:[#allocation7 + $0xc04] ss:$72 sps:$4 sm:$0xff]  }
 0x5a6   : > { %15974 = vmatpush1.bf16.msra.mxu1 %v22249_v36  ;;  %v22303_v36 = vld [vmem:[#allocation7 + $0xbf8] ss:$72 sps:$4 sm:$0xff]  }
 0x5a7   : > { %16318 = vmatpush1.bf16.msra.mxu0 %v22252_v37  ;;  %15975 = vmatprep.subr.bf16.mxu1 %v22257_v38  ;;  %v22306_v37 = vld [vmem:[#allocation7 + $0xc00] ss:$72 sps:$4 sm:$0xff]   ;;  %v22311_v38 = vld [vmem:[#allocation7 + $0xc8c] ss:$72 sps:$4 sm:$0xff]  }
 0x5a8   : > { %16319 = vmatprep.subr.bf16.mxu0 %v22260_v39  ;;  %v22314_v39 = vld [vmem:[#allocation7 + $0xc94] ss:$72 sps:$4 sm:$0xff]  }
 0x5aa   : > { %15976 = vmatpush1.bf16.msra.mxu1 %v22255_v40  ;;  %v22309_v40 = vld [vmem:[#allocation7 + $0xc88] ss:$72 sps:$4 sm:$0xff]  }
 0x5ab   : > { %16320 = vmatpush1.bf16.msra.mxu0 %v22258_v41  ;;  %15977 = vmatprep.subr.bf16.mxu1 %v22263_v43  ;;  %v22312_v41 = vld [vmem:[#allocation7 + $0xc90] ss:$72 sps:$4 sm:$0xff]   ;;  %v22317_v43 = vld [vmem:[#allocation7 + $0xd1c] ss:$72 sps:$4 sm:$0xff]  }
 0x5ac   : > { %16321 = vmatprep.subr.bf16.mxu0 %v22266_v44  ;;  %v22320_v44 = vld [vmem:[#allocation7 + $0xd24] ss:$72 sps:$4 sm:$0xff]  }
 0x5ae   : > { %15978 = vmatpush1.bf16.msra.mxu1 %v22261_v45  ;;  %v22315_v45 = vld [vmem:[#allocation7 + $0xd18] ss:$72 sps:$4 sm:$0xff]  }
 0x5af   : > { %16322 = vmatpush1.bf16.msra.mxu0 %v22264_v46  ;;  %15979 = vmatprep.subr.bf16.mxu1 %v22269_v47  ;;  %v22318_v46 = vld [vmem:[#allocation7 + $0xd20] ss:$72 sps:$4 sm:$0xff]   ;;  %v22323_v47 = vld [vmem:[#allocation7 + $0xdac] ss:$72 sps:$4 sm:$0xff]  }
 0x5b0   : > { %16323 = vmatprep.subr.bf16.mxu0 %v22272_v48  ;;  %v22326_v48 = vld [vmem:[#allocation7 + $0xdb4] ss:$72 sps:$4 sm:$0xff]  }
 0x5b2   : > { %15980 = vmatpush1.bf16.msra.mxu1 %v22267_v49  ;;  %v22321_v49 = vld [vmem:[#allocation7 + $0xda8] ss:$72 sps:$4 sm:$0xff]  }
 0x5b3   : > { %16324 = vmatpush1.bf16.msra.mxu0 %v22270_v50  ;;  %15992 = vmatprep.subr.bf16.mxu1 %v22275_v51  ;;  %v22324_v50 = vld [vmem:[#allocation7 + $0xdb0] ss:$72 sps:$4 sm:$0xff]   ;;  %v22329_v51 = vld [vmem:[#allocation7 + $0xe3c] ss:$72 sps:$4 sm:$0xff]  }
 0x5b4   : > { %16336 = vmatprep.subr.bf16.mxu0 %v22278_v52  ;;  %v22332_v52 = vld [vmem:[#allocation7 + $0xe44] ss:$72 sps:$4 sm:$0xff]  }
 0x5b5   : > { %15982 = vmatmul.mubr.bf16.vlgmr.msra.gmra.mrb[12].mxu1 %v24162_v30 }
 0x5b6   : > { %16326 = vmatmul.mubr.bf16.vlgmr.msra.gmra.mrb[12].mxu0 %v24162_v30  ;;  %15993 = vmatpush1.bf16.msra.mxu1 %v22273_v63  ;;  %v22327_v63 = vld [vmem:[#allocation7 + $0xe38] ss:$72 sps:$4 sm:$0xff]  }
 0x5b7   : > { %16337 = vmatpush1.bf16.msra.mxu0 %v22276_v0  ;;  %15994 = vmatprep.subr.bf16.mxu1 %v22281_v10  ;;  %v22330_v0 = vld [vmem:[#allocation7 + $0xe40] ss:$72 sps:$4 sm:$0xff]   ;;  %v22335_v10 = vld [vmem:[#allocation7 + $0xecc] ss:$72 sps:$4 sm:$0xff]  }
 0x5b8   : > { %16338 = vmatprep.subr.bf16.mxu0 %v22284_v11  ;;  %16024 = vmatprep.mubr.bf16.mxu1 %v24171_v13  ;;  %v22338_v11 = vld [vmem:[#allocation7 + $0xed4] ss:$72 sps:$4 sm:$0xff]  }
 0x5b9   : > { %16368 = vmatprep.mubr.bf16.mxu0 %v24171_v13 }
 0x5ba   : > { %15995 = vmatpush1.bf16.msra.mxu1 %v22279_v14  ;;  %v22333_v14 = vld [vmem:[#allocation7 + $0xec8] ss:$72 sps:$4 sm:$0xff]  }
 0x5bb   : > { %16339 = vmatpush1.bf16.msra.mxu0 %v22282_v15  ;;  %15996 = vmatprep.subr.bf16.mxu1 %v22287_v16  ;;  %v22336_v15 = vld [vmem:[#allocation7 + $0xed0] ss:$72 sps:$4 sm:$0xff]   ;;  %v22341_v16 = vld [vmem:[#allocation7 + $0xf5c] ss:$72 sps:$4 sm:$0xff]  }
 0x5bc   : > { %16340 = vmatprep.subr.bf16.mxu0 %v22290_v18  ;;  %v22344_v18 = vld [vmem:[#allocation7 + $0xf64] ss:$72 sps:$4 sm:$0xff]  }
 0x5be   : > { %15997 = vmatpush1.bf16.msra.mxu1 %v22285_v20  ;;  %v22339_v20 = vld [vmem:[#allocation7 + $0xf58] ss:$72 sps:$4 sm:$0xff]  }
 0x5bf   : > { %16341 = vmatpush1.bf16.msra.mxu0 %v22288_v21  ;;  %15998 = vmatprep.subr.bf16.mxu1 %v22293_v42  ;;  %v22342_v21 = vld [vmem:[#allocation7 + $0xf60] ss:$72 sps:$4 sm:$0xff]   ;;  %v22347_v42 = vld [vmem:[#allocation7 + $0xfec] ss:$72 sps:$4 sm:$0xff]  }
 0x5c0   : > { %16342 = vmatprep.subr.bf16.mxu0 %v22296_v22  ;;  %v22350_v22 = vld [vmem:[#allocation7 + $0xff4] ss:$72 sps:$4 sm:$0xff]  }
 0x5c2   : > { %15999 = vmatpush1.bf16.msra.mxu1 %v22291_v24  ;;  %v22345_v24 = vld [vmem:[#allocation7 + $0xfe8] ss:$72 sps:$4 sm:$0xff]  }
 0x5c3   : > { %16343 = vmatpush1.bf16.msra.mxu0 %v22294_v25  ;;  %16000 = vmatprep.subr.bf16.mxu1 %v22299_v53  ;;  %v22348_v25 = vld [vmem:[#allocation7 + $0xff0] ss:$72 sps:$4 sm:$0xff]   ;;  %v22353_v53 = vld [vmem:[#allocation7 + $0x107c] ss:$72 sps:$4 sm:$0xff]  }
 0x5c4   : > { %16344 = vmatprep.subr.bf16.mxu0 %v22302_v26  ;;  %v22356_v26 = vld [vmem:[#allocation7 + $0x1084] ss:$72 sps:$4 sm:$0xff]  }
 0x5c6   : > { %16001 = vmatpush1.bf16.msra.mxu1 %v22297_v27  ;;  %v22351_v27 = vld [vmem:[#allocation7 + $0x1078] ss:$72 sps:$4 sm:$0xff]  }
 0x5c7   : > { %16345 = vmatpush1.bf16.msra.mxu0 %v22300_v29  ;;  %16002 = vmatprep.subr.bf16.mxu1 %v22305_v32  ;;  %v22354_v29 = vld [vmem:[#allocation7 + $0x1080] ss:$72 sps:$4 sm:$0xff]   ;;  %v22359_v32 = vld [vmem:[#allocation7 + $0x110c] ss:$72 sps:$4 sm:$0xff]  }
 0x5c8   : > { %16346 = vmatprep.subr.bf16.mxu0 %v22308_v34  ;;  %v22362_v34 = vld [vmem:[#allocation7 + $0x1114] ss:$72 sps:$4 sm:$0xff]  }
 0x5ca   : > { %16003 = vmatpush1.bf16.msra.mxu1 %v22303_v36  ;;  %v22357_v36 = vld [vmem:[#allocation7 + $0x1108] ss:$72 sps:$4 sm:$0xff]  }
 0x5cb   : > { %16347 = vmatpush1.bf16.msra.mxu0 %v22306_v37  ;;  %16004 = vmatprep.subr.bf16.mxu1 %v22311_v38  ;;  %v22360_v37 = vld [vmem:[#allocation7 + $0x1110] ss:$72 sps:$4 sm:$0xff]   ;;  %v22365_v38 = vld [vmem:[#allocation7 + $0x119c] ss:$72 sps:$4 sm:$0xff]  }
 0x5cc   : > { %16348 = vmatprep.subr.bf16.mxu0 %v22314_v39  ;;  %v22368_v39 = vld [vmem:[#allocation7 + $0x11a4] ss:$72 sps:$4 sm:$0xff]  }
 0x5ce   : > { %16005 = vmatpush1.bf16.msra.mxu1 %v22309_v40  ;;  %v22363_v40 = vld [vmem:[#allocation7 + $0x1198] ss:$72 sps:$4 sm:$0xff]  }
 0x5cf   : > { %16349 = vmatpush1.bf16.msra.mxu0 %v22312_v41  ;;  %16006 = vmatprep.subr.bf16.mxu1 %v22317_v43  ;;  %v22366_v41 = vld [vmem:[#allocation7 + $0x11a0] ss:$72 sps:$4 sm:$0xff]   ;;  %v22371_v43 = vld [vmem:[#allocation7 + $0x122c] ss:$72 sps:$4 sm:$0xff]  }
 0x5d0   : > { %16350 = vmatprep.subr.bf16.mxu0 %v22320_v44  ;;  %v22374_v44 = vld [vmem:[#allocation7 + $0x1234] ss:$72 sps:$4 sm:$0xff]  }
 0x5d2   : > { %16007 = vmatpush1.bf16.msra.mxu1 %v22315_v45  ;;  %v22369_v45 = vld [vmem:[#allocation7 + $0x1228] ss:$72 sps:$4 sm:$0xff]  }
 0x5d3   : > { %16351 = vmatpush1.bf16.msra.mxu0 %v22318_v46  ;;  %16008 = vmatprep.subr.bf16.mxu1 %v22323_v47  ;;  %v22372_v46 = vld [vmem:[#allocation7 + $0x1230] ss:$72 sps:$4 sm:$0xff]   ;;  %v22377_v47 = vld [vmem:[#allocation7 + $0x12bc] ss:$72 sps:$4 sm:$0xff]  }
 0x5d4   : > { %16352 = vmatprep.subr.bf16.mxu0 %v22326_v48  ;;  %v22380_v48 = vld [vmem:[#allocation7 + $0x12c4] ss:$72 sps:$4 sm:$0xff]  }
 0x5d6   : > { %16009 = vmatpush1.bf16.msra.mxu1 %v22321_v49  ;;  %v22375_v49 = vld [vmem:[#allocation7 + $0x12b8] ss:$72 sps:$4 sm:$0xff]  }
 0x5d7   : > { %16353 = vmatpush1.bf16.msra.mxu0 %v22324_v50  ;;  %16010 = vmatprep.subr.bf16.mxu1 %v22329_v51  ;;  %v22378_v50 = vld [vmem:[#allocation7 + $0x12c0] ss:$72 sps:$4 sm:$0xff]   ;;  %v22383_v51 = vld [vmem:[#allocation7 + $0x134c] ss:$72 sps:$4 sm:$0xff]  }
 0x5d8   : > { %16354 = vmatprep.subr.bf16.mxu0 %v22332_v52  ;;  %v22386_v52 = vld [vmem:[#allocation7 + $0x1354] ss:$72 sps:$4 sm:$0xff]  }
 0x5da   : > { %16011 = vmatpush1.bf16.msra.mxu1 %v22327_v63  ;;  %v22381_v63 = vld [vmem:[#allocation7 + $0x1348] ss:$72 sps:$4 sm:$0xff]  }
 0x5db   : > { %16355 = vmatpush1.bf16.msra.mxu0 %v22330_v0  ;;  %16012 = vmatprep.subr.bf16.mxu1 %v22335_v10  ;;  %v22384_v0 = vld [vmem:[#allocation7 + $0x1350] ss:$72 sps:$4 sm:$0xff]   ;;  %v22389_v10 = vld [vmem:[#allocation7 + $0x13dc] ss:$72 sps:$4 sm:$0xff]  }
 0x5dc   : > { %16356 = vmatprep.subr.bf16.mxu0 %v22338_v11  ;;  %v22392_v11 = vld [vmem:[#allocation7 + $0x13e4] ss:$72 sps:$4 sm:$0xff]  }
 0x5de   : > { %16013 = vmatpush1.bf16.msra.mxu1 %v22333_v14  ;;  %v22387_v14 = vld [vmem:[#allocation7 + $0x13d8] ss:$72 sps:$4 sm:$0xff]  }
 0x5df   : > { %16357 = vmatpush1.bf16.msra.mxu0 %v22336_v15  ;;  %16014 = vmatprep.subr.bf16.mxu1 %v22341_v16  ;;  %v22390_v15 = vld [vmem:[#allocation7 + $0x13e0] ss:$72 sps:$4 sm:$0xff]   ;;  %v22395_v16 = vld [vmem:[#allocation7 + $0x146c] ss:$72 sps:$4 sm:$0xff]  }
 0x5e0   : > { %16358 = vmatprep.subr.bf16.mxu0 %v22344_v18  ;;  %v22398_v18 = vld [vmem:[#allocation7 + $0x1474] ss:$72 sps:$4 sm:$0xff]  }
 0x5e2   : > { %16015 = vmatpush1.bf16.msra.mxu1 %v22339_v20  ;;  %v22393_v20 = vld [vmem:[#allocation7 + $0x1468] ss:$72 sps:$4 sm:$0xff]  }
 0x5e3   : > { %16359 = vmatpush1.bf16.msra.mxu0 %v22342_v21  ;;  %16016 = vmatprep.subr.bf16.mxu1 %v22347_v42  ;;  %v22396_v21 = vld [vmem:[#allocation7 + $0x1470] ss:$72 sps:$4 sm:$0xff]   ;;  %v22401_v42 = vld [vmem:[#allocation7 + $0x14fc] ss:$72 sps:$4 sm:$0xff]  }
 0x5e4   : > { %16360 = vmatprep.subr.bf16.mxu0 %v22350_v22  ;;  %v22404_v22 = vld [vmem:[#allocation7 + $0x1504] ss:$72 sps:$4 sm:$0xff]  }
 0x5e6   : > { %16017 = vmatpush1.bf16.msra.mxu1 %v22345_v24  ;;  %v22399_v24 = vld [vmem:[#allocation7 + $0x14f8] ss:$72 sps:$4 sm:$0xff]  }
 0x5e7   : > { %16361 = vmatpush1.bf16.msra.mxu0 %v22348_v25  ;;  %16018 = vmatprep.subr.bf16.mxu1 %v22353_v53  ;;  %v22402_v25 = vld [vmem:[#allocation7 + $0x1500] ss:$72 sps:$4 sm:$0xff]   ;;  %v22407_v53 = vld [vmem:[#allocation7 + $0x158c] ss:$72 sps:$4 sm:$0xff]  }
 0x5e8   : > { %16362 = vmatprep.subr.bf16.mxu0 %v22356_v26  ;;  %v22410_v26 = vld [vmem:[#allocation7 + $0x1594] ss:$72 sps:$4 sm:$0xff]  }
 0x5ea   : > { %16019 = vmatpush1.bf16.msra.mxu1 %v22351_v27  ;;  %v22405_v27 = vld [vmem:[#allocation7 + $0x1588] ss:$72 sps:$4 sm:$0xff]  }
 0x5eb   : > { %16363 = vmatpush1.bf16.msra.mxu0 %v22354_v29  ;;  %16020 = vmatprep.subr.bf16.mxu1 %v22359_v32  ;;  %v22408_v29 = vld [vmem:[#allocation7 + $0x1590] ss:$72 sps:$4 sm:$0xff]   ;;  %v22413_v32 = vld [vmem:[#allocation7 + $0x161c] ss:$72 sps:$4 sm:$0xff]  }
 0x5ec   : > { %16364 = vmatprep.subr.bf16.mxu0 %v22362_v34  ;;  %v22416_v34 = vld [vmem:[#allocation7 + $0x1624] ss:$72 sps:$4 sm:$0xff]  }
 0x5ee   : > { %16021 = vmatpush1.bf16.msra.mxu1 %v22357_v36  ;;  %v22411_v36 = vld [vmem:[#allocation7 + $0x1618] ss:$72 sps:$4 sm:$0xff]  }
 0x5ef   : > { %16365 = vmatpush1.bf16.msra.mxu0 %v22360_v37  ;;  %16022 = vmatprep.subr.bf16.mxu1 %v22365_v38  ;;  %v22414_v37 = vld [vmem:[#allocation7 + $0x1620] ss:$72 sps:$4 sm:$0xff]   ;;  %v22419_v38 = vld [vmem:[#allocation7 + $0x16ac] ss:$72 sps:$4 sm:$0xff]  }
 0x5f0   : > { %16366 = vmatprep.subr.bf16.mxu0 %v22368_v39  ;;  %v22422_v39 = vld [vmem:[#allocation7 + $0x16b4] ss:$72 sps:$4 sm:$0xff]  }
 0x5f2   : > { %16023 = vmatpush1.bf16.msra.mxu1 %v22363_v40  ;;  %v22417_v40 = vld [vmem:[#allocation7 + $0x16a8] ss:$72 sps:$4 sm:$0xff]  }
 0x5f3   : > { %16367 = vmatpush1.bf16.msra.mxu0 %v22366_v41  ;;  %16035 = vmatprep.subr.bf16.mxu1 %v22371_v43  ;;  %v22420_v41 = vld [vmem:[#allocation7 + $0x16b0] ss:$72 sps:$4 sm:$0xff]   ;;  %v22425_v43 = vld [vmem:[#allocation7 + $0x173c] ss:$72 sps:$4 sm:$0xff]  }
 0x5f4   : > { %16379 = vmatprep.subr.bf16.mxu0 %v22374_v44  ;;  %v22428_v44 = vld [vmem:[#allocation7 + $0x1744] ss:$72 sps:$4 sm:$0xff]  }
 0x5f5   : > { %16025 = vmatmul.mubr.bf16.vlgmr.msra.gmra.mrb[12].mxu1 %v24180_v3 }
 0x5f6   : > { %16369 = vmatmul.mubr.bf16.vlgmr.msra.gmra.mrb[12].mxu0 %v24180_v3  ;;  %16036 = vmatpush1.bf16.msra.mxu1 %v22369_v45  ;;  %v22423_v45 = vld [vmem:[#allocation7 + $0x1738] ss:$72 sps:$4 sm:$0xff]  }
 0x5f7   : > { %16380 = vmatpush1.bf16.msra.mxu0 %v22372_v46  ;;  %16037 = vmatprep.subr.bf16.mxu1 %v22377_v47  ;;  %v22426_v46 = vld [vmem:[#allocation7 + $0x1740] ss:$72 sps:$4 sm:$0xff]   ;;  %v22431_v47 = vld [vmem:[#allocation7 + $0x17cc] ss:$72 sps:$4 sm:$0xff]  }
 0x5f8   : > { %16381 = vmatprep.subr.bf16.mxu0 %v22380_v48  ;;  %16067 = vmatprep.mubr.bf16.mxu1 %v24189_v28  ;;  %v22434_v48 = vld [vmem:[#allocation7 + $0x17d4] ss:$72 sps:$4 sm:$0xff]  }
 0x5f9   : > { %16411 = vmatprep.mubr.bf16.mxu0 %v24189_v28 }
 0x5fa   : > { %16038 = vmatpush1.bf16.msra.mxu1 %v22375_v49  ;;  %v22429_v49 = vld [vmem:[#allocation7 + $0x17c8] ss:$72 sps:$4 sm:$0xff]  }
 0x5fb   : > { %16382 = vmatpush1.bf16.msra.mxu0 %v22378_v50  ;;  %16039 = vmatprep.subr.bf16.mxu1 %v22383_v51  ;;  %v22432_v50 = vld [vmem:[#allocation7 + $0x17d0] ss:$72 sps:$4 sm:$0xff]   ;;  %v22437_v51 = vld [vmem:[#allocation7 + $0x185c] ss:$72 sps:$4 sm:$0xff]  }
 0x5fc   : > { %16383 = vmatprep.subr.bf16.mxu0 %v22386_v52  ;;  %v22440_v52 = vld [vmem:[#allocation7 + $0x1864] ss:$72 sps:$4 sm:$0xff]  }
 0x5fe   : > { %16040 = vmatpush1.bf16.msra.mxu1 %v22381_v63  ;;  %v22435_v63 = vld [vmem:[#allocation7 + $0x1858] ss:$72 sps:$4 sm:$0xff]  }
 0x5ff   : > { %16384 = vmatpush1.bf16.msra.mxu0 %v22384_v0  ;;  %16041 = vmatprep.subr.bf16.mxu1 %v22389_v10  ;;  %v22438_v0 = vld [vmem:[#allocation7 + $0x1860] ss:$72 sps:$4 sm:$0xff]   ;;  %v22443_v10 = vld [vmem:[#allocation7 + $0x18ec] ss:$72 sps:$4 sm:$0xff]  }
 0x600   : > { %16385 = vmatprep.subr.bf16.mxu0 %v22392_v11  ;;  %v22446_v11 = vld [vmem:[#allocation7 + $0x18f4] ss:$72 sps:$4 sm:$0xff]  }
 0x602   : > { %16042 = vmatpush1.bf16.msra.mxu1 %v22387_v14  ;;  %v22441_v14 = vld [vmem:[#allocation7 + $0x18e8] ss:$72 sps:$4 sm:$0xff]  }
 0x603   : > { %16386 = vmatpush1.bf16.msra.mxu0 %v22390_v15  ;;  %16043 = vmatprep.subr.bf16.mxu1 %v22395_v16  ;;  %v22444_v15 = vld [vmem:[#allocation7 + $0x18f0] ss:$72 sps:$4 sm:$0xff]   ;;  %v22449_v16 = vld [vmem:[#allocation7 + $0x197c] ss:$72 sps:$4 sm:$0xff]  }
 0x604   : > { %16387 = vmatprep.subr.bf16.mxu0 %v22398_v18  ;;  %v22452_v18 = vld [vmem:[#allocation7 + $0x1984] ss:$72 sps:$4 sm:$0xff]  }
 0x606   : > { %16044 = vmatpush1.bf16.msra.mxu1 %v22393_v20  ;;  %v22447_v20 = vld [vmem:[#allocation7 + $0x1978] ss:$72 sps:$4 sm:$0xff]  }
 0x607   : > { %16388 = vmatpush1.bf16.msra.mxu0 %v22396_v21  ;;  %16045 = vmatprep.subr.bf16.mxu1 %v22401_v42  ;;  %v22450_v21 = vld [vmem:[#allocation7 + $0x1980] ss:$72 sps:$4 sm:$0xff]   ;;  %v22455_v42 = vld [vmem:[#allocation7 + $0x1a0c] ss:$72 sps:$4 sm:$0xff]  }
 0x608   : > { %16389 = vmatprep.subr.bf16.mxu0 %v22404_v22  ;;  %v22458_v22 = vld [vmem:[#allocation7 + $0x1a14] ss:$72 sps:$4 sm:$0xff]  }
 0x60a   : > { %16046 = vmatpush1.bf16.msra.mxu1 %v22399_v24  ;;  %v22453_v24 = vld [vmem:[#allocation7 + $0x1a08] ss:$72 sps:$4 sm:$0xff]  }
 0x60b   : > { %16390 = vmatpush1.bf16.msra.mxu0 %v22402_v25  ;;  %16047 = vmatprep.subr.bf16.mxu1 %v22407_v53  ;;  %v22456_v25 = vld [vmem:[#allocation7 + $0x1a10] ss:$72 sps:$4 sm:$0xff]   ;;  %v22461_v53 = vld [vmem:[#allocation7 + $0x1a9c] ss:$72 sps:$4 sm:$0xff]  }
 0x60c   : > { %16391 = vmatprep.subr.bf16.mxu0 %v22410_v26  ;;  %v22464_v26 = vld [vmem:[#allocation7 + $0x1aa4] ss:$72 sps:$4 sm:$0xff]  }
 0x60e   : > { %16048 = vmatpush1.bf16.msra.mxu1 %v22405_v27  ;;  %v22459_v27 = vld [vmem:[#allocation7 + $0x1a98] ss:$72 sps:$4 sm:$0xff]  }
 0x60f   : > { %16392 = vmatpush1.bf16.msra.mxu0 %v22408_v29  ;;  %16049 = vmatprep.subr.bf16.mxu1 %v22413_v32  ;;  %v22462_v29 = vld [vmem:[#allocation7 + $0x1aa0] ss:$72 sps:$4 sm:$0xff]   ;;  %v22467_v32 = vld [vmem:[#allocation7 + $0x1b2c] ss:$72 sps:$4 sm:$0xff]  }
 0x610   : > { %16393 = vmatprep.subr.bf16.mxu0 %v22416_v34  ;;  %v22470_v34 = vld [vmem:[#allocation7 + $0x1b34] ss:$72 sps:$4 sm:$0xff]  }
 0x612   : > { %16050 = vmatpush1.bf16.msra.mxu1 %v22411_v36  ;;  %v22465_v36 = vld [vmem:[#allocation7 + $0x1b28] ss:$72 sps:$4 sm:$0xff]  }
 0x613   : > { %16394 = vmatpush1.bf16.msra.mxu0 %v22414_v37  ;;  %16051 = vmatprep.subr.bf16.mxu1 %v22419_v38  ;;  %v22468_v37 = vld [vmem:[#allocation7 + $0x1b30] ss:$72 sps:$4 sm:$0xff]   ;;  %v22473_v38 = vld [vmem:[#allocation7 + $0x1bbc] ss:$72 sps:$4 sm:$0xff]  }
 0x614   : > { %16395 = vmatprep.subr.bf16.mxu0 %v22422_v39  ;;  %v22476_v39 = vld [vmem:[#allocation7 + $0x1bc4] ss:$72 sps:$4 sm:$0xff]  }
 0x616   : > { %16052 = vmatpush1.bf16.msra.mxu1 %v22417_v40  ;;  %v22471_v40 = vld [vmem:[#allocation7 + $0x1bb8] ss:$72 sps:$4 sm:$0xff]  }
 0x617   : > { %16396 = vmatpush1.bf16.msra.mxu0 %v22420_v41  ;;  %16053 = vmatprep.subr.bf16.mxu1 %v22425_v43  ;;  %v22474_v41 = vld [vmem:[#allocation7 + $0x1bc0] ss:$72 sps:$4 sm:$0xff]   ;;  %v22479_v43 = vld [vmem:[#allocation7 + $0x1c4c] ss:$72 sps:$4 sm:$0xff]  }
 0x618   : > { %16397 = vmatprep.subr.bf16.mxu0 %v22428_v44  ;;  %v22482_v44 = vld [vmem:[#allocation7 + $0x1c54] ss:$72 sps:$4 sm:$0xff]  }
 0x61a   : > { %16054 = vmatpush1.bf16.msra.mxu1 %v22423_v45  ;;  %v22477_v45 = vld [vmem:[#allocation7 + $0x1c48] ss:$72 sps:$4 sm:$0xff]  }
 0x61b   : > { %16398 = vmatpush1.bf16.msra.mxu0 %v22426_v46  ;;  %16055 = vmatprep.subr.bf16.mxu1 %v22431_v47  ;;  %v22480_v46 = vld [vmem:[#allocation7 + $0x1c50] ss:$72 sps:$4 sm:$0xff]   ;;  %v22485_v47 = vld [vmem:[#allocation7 + $0x1cdc] ss:$72 sps:$4 sm:$0xff]  }
 0x61c   : > { %16399 = vmatprep.subr.bf16.mxu0 %v22434_v48  ;;  %v22488_v48 = vld [vmem:[#allocation7 + $0x1ce4] ss:$72 sps:$4 sm:$0xff]  }
 0x61e   : > { %16056 = vmatpush1.bf16.msra.mxu1 %v22429_v49  ;;  %v22483_v49 = vld [vmem:[#allocation7 + $0x1cd8] ss:$72 sps:$4 sm:$0xff]  }
 0x61f   : > { %16400 = vmatpush1.bf16.msra.mxu0 %v22432_v50  ;;  %16057 = vmatprep.subr.bf16.mxu1 %v22437_v51  ;;  %v22486_v50 = vld [vmem:[#allocation7 + $0x1ce0] ss:$72 sps:$4 sm:$0xff]   ;;  %v22491_v51 = vld [vmem:[#allocation7 + $0x1d6c] ss:$72 sps:$4 sm:$0xff]  }
 0x620   : > { %16401 = vmatprep.subr.bf16.mxu0 %v22440_v52  ;;  %v22494_v52 = vld [vmem:[#allocation7 + $0x1d74] ss:$72 sps:$4 sm:$0xff]  }
 0x622   : > { %16058 = vmatpush1.bf16.msra.mxu1 %v22435_v63  ;;  %v22489_v63 = vld [vmem:[#allocation7 + $0x1d68] ss:$72 sps:$4 sm:$0xff]  }
 0x623   : > { %16402 = vmatpush1.bf16.msra.mxu0 %v22438_v0  ;;  %16059 = vmatprep.subr.bf16.mxu1 %v22443_v10  ;;  %v22492_v0 = vld [vmem:[#allocation7 + $0x1d70] ss:$72 sps:$4 sm:$0xff]   ;;  %v22497_v10 = vld [vmem:[#allocation7 + $0x1dfc] ss:$72 sps:$4 sm:$0xff]  }
 0x624   : > { %16403 = vmatprep.subr.bf16.mxu0 %v22446_v11  ;;  %v22500_v11 = vld [vmem:[#allocation7 + $0x1e04] ss:$72 sps:$4 sm:$0xff]  }
 0x626   : > { %16060 = vmatpush1.bf16.msra.mxu1 %v22441_v14  ;;  %v22495_v14 = vld [vmem:[#allocation7 + $0x1df8] ss:$72 sps:$4 sm:$0xff]  }
 0x627   : > { %16404 = vmatpush1.bf16.msra.mxu0 %v22444_v15  ;;  %16061 = vmatprep.subr.bf16.mxu1 %v22449_v16  ;;  %v22498_v15 = vld [vmem:[#allocation7 + $0x1e00] ss:$72 sps:$4 sm:$0xff]   ;;  %v22503_v16 = vld [vmem:[#allocation7 + $0x1e8c] ss:$72 sps:$4 sm:$0xff]  }
 0x628   : > { %16405 = vmatprep.subr.bf16.mxu0 %v22452_v18  ;;  %v22506_v18 = vld [vmem:[#allocation7 + $0x1e94] ss:$72 sps:$4 sm:$0xff]  }
 0x62a   : > { %16062 = vmatpush1.bf16.msra.mxu1 %v22447_v20 }
 0x62b   : > { %16406 = vmatpush1.bf16.msra.mxu0 %v22450_v21  ;;  %16063 = vmatprep.subr.bf16.mxu1 %v22455_v42 }
 0x62c   : > { %16407 = vmatprep.subr.bf16.mxu0 %v22458_v22 }
 0x62e   : > { %16064 = vmatpush1.bf16.msra.mxu1 %v22453_v24  ;;  %v17325_v24 = vmul.f32 %v24242_v9, %v24242_v9 }
 0x62f   : > { %16408 = vmatpush1.bf16.msra.mxu0 %v22456_v25  ;;  %16065 = vmatprep.subr.bf16.mxu1 %v22461_v53 }
 0x630   : > { %16409 = vmatprep.subr.bf16.mxu0 %v22464_v26 }
 0x632   : > { %16066 = vmatpush1.bf16.msra.mxu1 %v22459_v27  ;;  %v22501_v27 = vld [vmem:[#allocation7 + $0x1e88] ss:$72 sps:$4 sm:$0xff]  }
 0x633   : > { %16410 = vmatpush1.bf16.msra.mxu0 %v22462_v29  ;;  %16078 = vmatprep.subr.bf16.mxu1 %v22467_v32  ;;  %v22504_v29 = vld [vmem:[#allocation7 + $0x1e90] ss:$72 sps:$4 sm:$0xff]  }
 0x634   : > { %16422 = vmatprep.subr.bf16.mxu0 %v22470_v34 }
 0x635   : > { %16068 = vmatmul.mubr.bf16.vlgmr.msra.gmra.mrb[12].mxu1 %v24207_v58 }
 0x636   : > { %16412 = vmatmul.mubr.bf16.vlgmr.msra.gmra.mrb[12].mxu0 %v24207_v58  ;;  %16079 = vmatpush1.bf16.msra.mxu1 %v22465_v36  ;;  %v22509_v36 = vld [vmem:[#allocation7 + $0x1f1c] ss:$72 sps:$4 sm:$0xff]  }
 0x637   : > { %16423 = vmatpush1.bf16.msra.mxu0 %v22468_v37  ;;  %16080 = vmatprep.subr.bf16.mxu1 %v22473_v38  ;;  %v22512_v37 = vld [vmem:[#allocation7 + $0x1f24] ss:$72 sps:$4 sm:$0xff]   ;;  %v17334_v38 = vmul.f32 %v24246_v19, %v24246_v19  ;;  %v22516_v19 = vld [vmem:[#allocation7 + $0x1fb0] ss:$72 sps:$4 sm:$0xff]  }
 0x638   : > { %16424 = vmatprep.subr.bf16.mxu0 %v22476_v39  ;;  %16110 = vmatprep.mubr.bf16.mxu1 %v24211_v2 }
 0x639   : > { %16454 = vmatprep.mubr.bf16.mxu0 %v24211_v2 }
 0x63a   : > { %16081 = vmatpush1.bf16.msra.mxu1 %v22471_v40 }
 0x63b   : > { %16425 = vmatpush1.bf16.msra.mxu0 %v22474_v41  ;;  %16082 = vmatprep.subr.bf16.mxu1 %v22479_v43  ;;  %v22507_v43 = vld [vmem:[#allocation7 + $0x1f18] ss:$72 sps:$4 sm:$0xff]  }
 0x63c   : > { %16426 = vmatprep.subr.bf16.mxu0 %v22482_v44  ;;  %v22510_v44 = vld [vmem:[#allocation7 + $0x1f20] ss:$72 sps:$4 sm:$0xff]  }
 0x63e   : > { %16083 = vmatpush1.bf16.msra.mxu1 %v22477_v45  ;;  %v22515_v45 = vld [vmem:[#allocation7 + $0x1fac] ss:$72 sps:$4 sm:$0xff]  }
 0x63f   : > { %16427 = vmatpush1.bf16.msra.mxu0 %v22480_v46  ;;  %16084 = vmatprep.subr.bf16.mxu1 %v22485_v47  ;;  %v22518_v46 = vld [vmem:[#allocation7 + $0x1fb4] ss:$72 sps:$4 sm:$0xff]  }
 0x640   : > { %16428 = vmatprep.subr.bf16.mxu0 %v22488_v48  ;;  %v22513_v48 = vld [vmem:[#allocation7 + $0x1fa8] ss:$72 sps:$4 sm:$0xff]  }
 0x642   : > { %16085 = vmatpush1.bf16.msra.mxu1 %v22483_v49  ;;  %v22521_v49 = vld [vmem:[#allocation7 + $0x203c] ss:$72 sps:$4 sm:$0xff]  }
 0x643   : > { %16429 = vmatpush1.bf16.msra.mxu0 %v22486_v50  ;;  %16086 = vmatprep.subr.bf16.mxu1 %v22491_v51  ;;  %v22524_v50 = vld [vmem:[#allocation7 + $0x2044] ss:$72 sps:$4 sm:$0xff]   ;;  %v22519_v51 = vld [vmem:[#allocation7 + $0x2038] ss:$72 sps:$4 sm:$0xff]  }
 0x644   : > { %16430 = vmatprep.subr.bf16.mxu0 %v22494_v52  ;;  %v22522_v52 = vld [vmem:[#allocation7 + $0x2040] ss:$72 sps:$4 sm:$0xff]  }
 0x646   : > { %16087 = vmatpush1.bf16.msra.mxu1 %v22489_v63  ;;  %v22527_v63 = vld [vmem:[#allocation7 + $0x20cc] ss:$72 sps:$4 sm:$0xff]  }
 0x647   : > { %16431 = vmatpush1.bf16.msra.mxu0 %v22492_v0  ;;  %16088 = vmatprep.subr.bf16.mxu1 %v22497_v10  ;;  %v22530_v0 = vld [vmem:[#allocation7 + $0x20d4] ss:$72 sps:$4 sm:$0xff]  }
 0x648   : > { %16432 = vmatprep.subr.bf16.mxu0 %v22500_v11  ;;  %v24330_v20 = vpop.f32.mrb[8].mxu1  ;;  %v22525_v11 = vld [vmem:[#allocation7 + $0x20c8] ss:$72 sps:$4 sm:$0xff]  }
 0x649   : > { %v24332_v21 = vpop.f32.mrb[8].mxu0  ;;  %v24334_v42 = vpop.f32.mrb[9].mxu1 }
 0x64a   : > { %v15942_v22 = vpop.f32.mrb[9].mxu0  ;;  %v24338_v53 = vpop.f32.mrb[10].mxu1  ;;  %16089 = vmatpush1.bf16.msra.mxu1 %v22495_v14  ;;  %v22528_v14 = vld [vmem:[#allocation7 + $0x20d0] ss:$72 sps:$4 sm:$0xff]  }
 0x64b   : > { %v17343_v25 = vmul.f32 %v15942_v22, %v15942_v22  ;;  %v24340_v26 = vpop.f32.mrb[10].mxu0  ;;  %16433 = vmatpush1.bf16.msra.mxu0 %v22498_v15  ;;  %v24342_v32 = vpop.f32.mrb[11].mxu1  ;;  %16090 = vmatprep.subr.bf16.mxu1 %v22503_v16  ;;  %v22533_v16 = vld [vmem:[#allocation7 + $0x215c] ss:$72 sps:$4 sm:$0xff]  }
 0x64c   : > { %v15946_v34 = vpop.f32.mrb[11].mxu0  ;;  %16434 = vmatprep.subr.bf16.mxu0 %v22506_v18  ;;  %v22536_v18 = vld [vmem:[#allocation7 + $0x2164] ss:$72 sps:$4 sm:$0xff]  }
 0x64d   : > { %v17361_v9 = vadd.f32 %v17343_v25, %v17325_v24  ;;  %v17352_v39 = vmul.f32 %v15946_v34, %v15946_v34 }
 0x64e   : > { %16091 = vmatpush1.bf16.msra.mxu1 %v22501_v27  ;;  %v22531_v27 = vld [vmem:[#allocation7 + $0x2158] ss:$72 sps:$4 sm:$0xff]  }
 0x64f   : > { %v17379_v40 = vmax.f32 %v17361_v9, 1e-20  ;;  %v17370_v41 = vadd.f32 %v17352_v39, %v17334_v38  ;;  %16435 = vmatpush1.bf16.msra.mxu0 %v22504_v29  ;;  %16092 = vmatprep.subr.bf16.mxu1 %v22509_v36  ;;  %v22534_v29 = vld [vmem:[#allocation7 + $0x2160] ss:$72 sps:$4 sm:$0xff]   ;;  %v22539_v36 = vld [vmem:[#allocation7 + $0x21ec] ss:$72 sps:$4 sm:$0xff]  }
 0x650   : > { %16436 = vmatprep.subr.bf16.mxu0 %v22512_v37  ;;  %v22542_v37 = vld [vmem:[#allocation7 + $0x21f4] ss:$72 sps:$4 sm:$0xff]   ;;  %v22537_v38 = vld [vmem:[#allocation7 + $0x21e8] ss:$72 sps:$4 sm:$0xff]  }
 0x651   : > { %23713 = vlog2.f32 %v17379_v40  ;;  %v17388_v47 = vmax.f32 %v17370_v41, 1e-20  ;;  %v22540_v9 = vld [vmem:[#allocation7 + $0x21f0] ss:$72 sps:$4 sm:$0xff]   ;;  %v22545_v39 = vld [vmem:[#allocation7 + $0x227c] ss:$72 sps:$4 sm:$0xff]  }
 0x652   : > { %16093 = vmatpush1.bf16.msra.mxu1 %v22507_v43  ;;  %v22548_v40 = vld [vmem:[#allocation7 + $0x2284] ss:$72 sps:$4 sm:$0xff]   ;;  %v22543_v41 = vld [vmem:[#allocation7 + $0x2278] ss:$72 sps:$4 sm:$0xff]  }
 0x653   : > { %23715 = vlog2.f32 %v17388_v47  ;;  %16437 = vmatpush1.bf16.msra.mxu0 %v22510_v44  ;;  %16094 = vmatprep.subr.bf16.mxu1 %v22515_v45  ;;  %v22546_v43 = vld [vmem:[#allocation7 + $0x2280] ss:$72 sps:$4 sm:$0xff]   ;;  %v22551_v44 = vld [vmem:[#allocation7 + $0x230c] ss:$72 sps:$4 sm:$0xff]   ;;  %v22552_v47 = vld [vmem:[#allocation7 + $0x2310] ss:$72 sps:$4 sm:$0xff]  }
 0x654   : > { %16438 = vmatprep.subr.bf16.mxu0 %v22518_v46  ;;  %v22554_v45 = vld [vmem:[#allocation7 + $0x2314] ss:$72 sps:$4 sm:$0xff]   ;;  %v22549_v46 = vld [vmem:[#allocation7 + $0x2308] ss:$72 sps:$4 sm:$0xff]  }
 0x656   : > { %16095 = vmatpush1.bf16.msra.mxu1 %v22513_v48  ;;  %v22557_v48 = vld [vmem:[#allocation7 + $0x239c] ss:$72 sps:$4 sm:$0xff]  }
 0x657   : > { %16439 = vmatpush1.bf16.msra.mxu0 %v22516_v19  ;;  %16096 = vmatprep.subr.bf16.mxu1 %v22521_v49  ;;  %v22560_v19 = vld [vmem:[#allocation7 + $0x23a4] ss:$72 sps:$4 sm:$0xff]   ;;  %v22555_v49 = vld [vmem:[#allocation7 + $0x2398] ss:$72 sps:$4 sm:$0xff]  }
 0x658   : > { %16440 = vmatprep.subr.bf16.mxu0 %v22524_v50  ;;  %v22558_v50 = vld [vmem:[#allocation7 + $0x23a0] ss:$72 sps:$4 sm:$0xff]  }
 0x65a   : > { %16097 = vmatpush1.bf16.msra.mxu1 %v22519_v51  ;;  %v22563_v51 = vld [vmem:[#allocation7 + $0x242c] ss:$72 sps:$4 sm:$0xff]  }
 0x65b   : > { %v23714_v10 = vpop.eup %23713  ;;  %16441 = vmatpush1.bf16.msra.mxu0 %v22522_v52  ;;  %16098 = vmatprep.subr.bf16.mxu1 %v22527_v63  ;;  %v22566_v52 = vld [vmem:[#allocation7 + $0x2434] ss:$72 sps:$4 sm:$0xff]   ;;  %v22561_v63 = vld [vmem:[#allocation7 + $0x2428] ss:$72 sps:$4 sm:$0xff]  }
 0x65c   : > { %v17398_v15 = vmul.f32 0.6931472, %v23714_v10  ;;  %16442 = vmatprep.subr.bf16.mxu0 %v22530_v0  ;;  %v22564_v0 = vld [vmem:[#allocation7 + $0x2430] ss:$72 sps:$4 sm:$0xff]   ;;  %v22569_v10 = vld [vmem:[#allocation7 + $0x24bc] ss:$72 sps:$4 sm:$0xff]  }
 0x65d   : > { %v23716_v22 = vpop.eup %23715 }
 0x65e   : > { %v17433_v24 = vmul.f32 2.1714723, %v17398_v15  ;;  %v17416_v25 = vmul.f32 0.6931472, %v23716_v22  ;;  %16099 = vmatpush1.bf16.msra.mxu1 %v22525_v11  ;;  %v22572_v11 = vld [vmem:[#allocation7 + $0x24c4] ss:$72 sps:$4 sm:$0xff]  }
 0x65f   : > { %16443 = vmatpush1.bf16.msra.mxu0 %v22528_v14  ;;  %16100 = vmatprep.subr.bf16.mxu1 %v22533_v16  ;;  %v22567_v14 = vld [vmem:[#allocation7 + $0x24b8] ss:$72 sps:$4 sm:$0xff]   ;;  %v22575_v16 = vld [vmem:[#allocation7 + $0x254c] ss:$72 sps:$4 sm:$0xff]   ;;  %v22573_v22 = vld [vmem:[#allocation7 + $0x2548] ss:$72 sps:$4 sm:$0xff]  }
 0x660   : > { %17451 = vst [vmem:[%s24347_s20] sm:$0xff] %v17433_v24  ;;  %v17442_v34 = vmul.f32 2.1714723, %v17416_v25  ;;  %16444 = vmatprep.subr.bf16.mxu0 %v22536_v18  ;;  %v22570_v15 = vld [vmem:[#allocation7 + $0x24c0] ss:$72 sps:$4 sm:$0xff]   ;;  %v22578_v18 = vld [vmem:[#allocation7 + $0x2554] ss:$72 sps:$4 sm:$0xff]  }
 0x661   : > { %v22576_v24 = vld [vmem:[#allocation7 + $0x2550] ss:$72 sps:$4 sm:$0xff]   ;;  %v22581_v25 = vld [vmem:[#allocation7 + $0x25dc] ss:$72 sps:$4 sm:$0xff]  }
 0x662   : > { %17460 = vst [vmem:[%s24347_s20 + $0x48] sm:$0xff] %v17442_v34  ;;  %16101 = vmatpush1.bf16.msra.mxu1 %v22531_v27  ;;  %v22584_v27 = vld [vmem:[#allocation7 + $0x25e4] ss:$72 sps:$4 sm:$0xff]   ;;  %v22582_v34 = vld [vmem:[#allocation7 + $0x25e0] ss:$72 sps:$4 sm:$0xff]  }
 0x663   : > { %16445 = vmatpush1.bf16.msra.mxu0 %v22534_v29  ;;  %16102 = vmatprep.subr.bf16.mxu1 %v22539_v36  ;;  %v22579_v29 = vld [vmem:[#allocation7 + $0x25d8] ss:$72 sps:$4 sm:$0xff]   ;;  %v22587_v36 = vld [vmem:[#allocation7 + $0x266c] ss:$72 sps:$4 sm:$0xff]  }
 0x664   : > { %16446 = vmatprep.subr.bf16.mxu0 %v22542_v37  ;;  %v22590_v37 = vld [vmem:[#allocation7 + $0x2674] ss:$72 sps:$4 sm:$0xff]  }
 0x666   : > { %16103 = vmatpush1.bf16.msra.mxu1 %v22537_v38  ;;  %v22585_v38 = vld [vmem:[#allocation7 + $0x2668] ss:$72 sps:$4 sm:$0xff]  }
 0x667   : > { %16447 = vmatpush1.bf16.msra.mxu0 %v22540_v9  ;;  %16104 = vmatprep.subr.bf16.mxu1 %v22545_v39  ;;  %v22588_v9 = vld [vmem:[#allocation7 + $0x2670] ss:$72 sps:$4 sm:$0xff]   ;;  %v22593_v39 = vld [vmem:[#allocation7 + $0x26fc] ss:$72 sps:$4 sm:$0xff]  }
 0x668   : > { %16448 = vmatprep.subr.bf16.mxu0 %v22548_v40  ;;  %v22596_v40 = vld [vmem:[#allocation7 + $0x2704] ss:$72 sps:$4 sm:$0xff]  }
 0x66a   : > { %16105 = vmatpush1.bf16.msra.mxu1 %v22543_v41  ;;  %v22591_v41 = vld [vmem:[#allocation7 + $0x26f8] ss:$72 sps:$4 sm:$0xff]  }
 0x66b   : > { %16449 = vmatpush1.bf16.msra.mxu0 %v22546_v43  ;;  %16106 = vmatprep.subr.bf16.mxu1 %v22551_v44  ;;  %v22594_v43 = vld [vmem:[#allocation7 + $0x2700] ss:$72 sps:$4 sm:$0xff]   ;;  %v22599_v44 = vld [vmem:[#allocation7 + $0x278c] ss:$72 sps:$4 sm:$0xff]  }
 0x66c   : > { %16450 = vmatprep.subr.bf16.mxu0 %v22554_v45  ;;  %v22602_v45 = vld [vmem:[#allocation7 + $0x2794] ss:$72 sps:$4 sm:$0xff]  }
 0x66e   : > { %16107 = vmatpush1.bf16.msra.mxu1 %v22549_v46  ;;  %v22597_v46 = vld [vmem:[#allocation7 + $0x2788] ss:$72 sps:$4 sm:$0xff]  }
 0x66f   : > { %16451 = vmatpush1.bf16.msra.mxu0 %v22552_v47  ;;  %16108 = vmatprep.subr.bf16.mxu1 %v22557_v48  ;;  %v22600_v47 = vld [vmem:[#allocation7 + $0x2790] ss:$72 sps:$4 sm:$0xff]   ;;  %v22605_v48 = vld [vmem:[#allocation7 + $0x281c] ss:$72 sps:$4 sm:$0xff]  }
 0x670   : > { %16452 = vmatprep.subr.bf16.mxu0 %v22560_v19  ;;  %v22608_v19 = vld [vmem:[#allocation7 + $0x2824] ss:$72 sps:$4 sm:$0xff]  }
 0x672   : > { %16109 = vmatpush1.bf16.msra.mxu1 %v22555_v49  ;;  %v22603_v49 = vld [vmem:[#allocation7 + $0x2818] ss:$72 sps:$4 sm:$0xff]  }
 0x673   : > { %16453 = vmatpush1.bf16.msra.mxu0 %v22558_v50  ;;  %16121 = vmatprep.subr.bf16.mxu1 %v22563_v51  ;;  %v22606_v50 = vld [vmem:[#allocation7 + $0x2820] ss:$72 sps:$4 sm:$0xff]   ;;  %v22611_v51 = vld [vmem:[#allocation7 + $0x28ac] ss:$72 sps:$4 sm:$0xff]  }
 0x674   : > { %16465 = vmatprep.subr.bf16.mxu0 %v22566_v52  ;;  %v22614_v52 = vld [vmem:[#allocation7 + $0x28b4] ss:$72 sps:$4 sm:$0xff]  }
 0x675   : > { %16111 = vmatmul.mubr.bf16.vlgmr.msra.gmra.mrb[12].mxu1 %v24222_v33 }
 0x676   : > { %16455 = vmatmul.mubr.bf16.vlgmr.msra.gmra.mrb[12].mxu0 %v24222_v33  ;;  %16122 = vmatpush1.bf16.msra.mxu1 %v22561_v63  ;;  %v22609_v63 = vld [vmem:[#allocation7 + $0x28a8] ss:$72 sps:$4 sm:$0xff]  }
 0x677   : > { %16466 = vmatpush1.bf16.msra.mxu0 %v22564_v0  ;;  %16123 = vmatprep.subr.bf16.mxu1 %v22569_v10  ;;  %v22612_v0 = vld [vmem:[#allocation7 + $0x28b0] ss:$72 sps:$4 sm:$0xff]   ;;  %v22617_v10 = vld [vmem:[#allocation7 + $0x293c] ss:$72 sps:$4 sm:$0xff]  }
 0x678   : > { %16467 = vmatprep.subr.bf16.mxu0 %v22572_v11  ;;  %16153 = vmatprep.mubr.bf16.mxu1 %v24156_v6  ;;  %v22620_v11 = vld [vmem:[#allocation7 + $0x2944] ss:$72 sps:$4 sm:$0xff]  }
 0x679   : > { %16497 = vmatprep.mubr.bf16.mxu0 %v24156_v6 }
 0x67a   : > { %16124 = vmatpush1.bf16.msra.mxu1 %v22567_v14  ;;  %v22615_v14 = vld [vmem:[#allocation7 + $0x2938] ss:$72 sps:$4 sm:$0xff]  }
 0x67b   : > { %16468 = vmatpush1.bf16.msra.mxu0 %v22570_v15  ;;  %16125 = vmatprep.subr.bf16.mxu1 %v22575_v16  ;;  %v22618_v15 = vld [vmem:[#allocation7 + $0x2940] ss:$72 sps:$4 sm:$0xff]   ;;  %v22623_v16 = vld [vmem:[#allocation7 + $0x29cc] ss:$72 sps:$4 sm:$0xff]  }
 0x67c   : > { %16469 = vmatprep.subr.bf16.mxu0 %v22578_v18  ;;  %v22626_v18 = vld [vmem:[#allocation7 + $0x29d4] ss:$72 sps:$4 sm:$0xff]  }
 0x67e   : > { %16126 = vmatpush1.bf16.msra.mxu1 %v22573_v22  ;;  %v22621_v22 = vld [vmem:[#allocation7 + $0x29c8] ss:$72 sps:$4 sm:$0xff]  }
 0x67f   : > { %16470 = vmatpush1.bf16.msra.mxu0 %v22576_v24  ;;  %16127 = vmatprep.subr.bf16.mxu1 %v22581_v25  ;;  %v22624_v24 = vld [vmem:[#allocation7 + $0x29d0] ss:$72 sps:$4 sm:$0xff]   ;;  %v22629_v25 = vld [vmem:[#allocation7 + $0x2a5c] ss:$72 sps:$4 sm:$0xff]  }
 0x680   : > { %16471 = vmatprep.subr.bf16.mxu0 %v22584_v27  ;;  %v22632_v27 = vld [vmem:[#allocation7 + $0x2a64] ss:$72 sps:$4 sm:$0xff]  }
 0x682   : > { %16128 = vmatpush1.bf16.msra.mxu1 %v22579_v29  ;;  %v22627_v29 = vld [vmem:[#allocation7 + $0x2a58] ss:$72 sps:$4 sm:$0xff]  }
 0x683   : > { %16472 = vmatpush1.bf16.msra.mxu0 %v22582_v34  ;;  %16129 = vmatprep.subr.bf16.mxu1 %v22587_v36  ;;  %v22630_v34 = vld [vmem:[#allocation7 + $0x2a60] ss:$72 sps:$4 sm:$0xff]   ;;  %v22635_v36 = vld [vmem:[#allocation7 + $0x2aec] ss:$72 sps:$4 sm:$0xff]  }
 0x684   : > { %16473 = vmatprep.subr.bf16.mxu0 %v22590_v37  ;;  %v22638_v37 = vld [vmem:[#allocation7 + $0x2af4] ss:$72 sps:$4 sm:$0xff]  }
 0x686   : > { %16130 = vmatpush1.bf16.msra.mxu1 %v22585_v38  ;;  %v22633_v38 = vld [vmem:[#allocation7 + $0x2ae8] ss:$72 sps:$4 sm:$0xff]  }
 0x687   : > { %16474 = vmatpush1.bf16.msra.mxu0 %v22588_v9  ;;  %16131 = vmatprep.subr.bf16.mxu1 %v22593_v39  ;;  %v22636_v9 = vld [vmem:[#allocation7 + $0x2af0] ss:$72 sps:$4 sm:$0xff]   ;;  %v22641_v39 = vld [vmem:[#allocation7 + $0x2b7c] ss:$72 sps:$4 sm:$0xff]  }
 0x688   : > { %16475 = vmatprep.subr.bf16.mxu0 %v22596_v40  ;;  %v22644_v40 = vld [vmem:[#allocation7 + $0x2b84] ss:$72 sps:$4 sm:$0xff]  }
 0x68a   : > { %16132 = vmatpush1.bf16.msra.mxu1 %v22591_v41  ;;  %v22639_v41 = vld [vmem:[#allocation7 + $0x2b78] ss:$72 sps:$4 sm:$0xff]  }
 0x68b   : > { %16476 = vmatpush1.bf16.msra.mxu0 %v22594_v43  ;;  %16133 = vmatprep.subr.bf16.mxu1 %v22599_v44  ;;  %v22642_v43 = vld [vmem:[#allocation7 + $0x2b80] ss:$72 sps:$4 sm:$0xff]   ;;  %v22647_v44 = vld [vmem:[#allocation7 + $0x2c0c] ss:$72 sps:$4 sm:$0xff]  }
 0x68c   : > { %16477 = vmatprep.subr.bf16.mxu0 %v22602_v45  ;;  %v22650_v45 = vld [vmem:[#allocation7 + $0x2c14] ss:$72 sps:$4 sm:$0xff]  }
 0x68e   : > { %16134 = vmatpush1.bf16.msra.mxu1 %v22597_v46  ;;  %v22645_v46 = vld [vmem:[#allocation7 + $0x2c08] ss:$72 sps:$4 sm:$0xff]  }
 0x68f   : > { %16478 = vmatpush1.bf16.msra.mxu0 %v22600_v47  ;;  %16135 = vmatprep.subr.bf16.mxu1 %v22605_v48  ;;  %v22648_v47 = vld [vmem:[#allocation7 + $0x2c10] ss:$72 sps:$4 sm:$0xff]   ;;  %v22653_v48 = vld [vmem:[#allocation7 + $0x2c9c] ss:$72 sps:$4 sm:$0xff]  }
 0x690   : > { %16479 = vmatprep.subr.bf16.mxu0 %v22608_v19  ;;  %v22656_v19 = vld [vmem:[#allocation7 + $0x2ca4] ss:$72 sps:$4 sm:$0xff]  }
 0x692   : > { %16136 = vmatpush1.bf16.msra.mxu1 %v22603_v49  ;;  %v22651_v49 = vld [vmem:[#allocation7 + $0x2c98] ss:$72 sps:$4 sm:$0xff]  }
 0x693   : > { %16480 = vmatpush1.bf16.msra.mxu0 %v22606_v50  ;;  %16137 = vmatprep.subr.bf16.mxu1 %v22611_v51  ;;  %v22654_v50 = vld [vmem:[#allocation7 + $0x2ca0] ss:$72 sps:$4 sm:$0xff]   ;;  %v22659_v51 = vld [vmem:[#allocation7 + $0x2d2c] ss:$72 sps:$4 sm:$0xff]  }
 0x694   : > { %16481 = vmatprep.subr.bf16.mxu0 %v22614_v52  ;;  %v22662_v52 = vld [vmem:[#allocation7 + $0x2d34] ss:$72 sps:$4 sm:$0xff]  }
 0x696   : > { %16138 = vmatpush1.bf16.msra.mxu1 %v22609_v63  ;;  %v22657_v63 = vld [vmem:[#allocation7 + $0x2d28] ss:$72 sps:$4 sm:$0xff]  }
 0x697   : > { %16482 = vmatpush1.bf16.msra.mxu0 %v22612_v0  ;;  %16139 = vmatprep.subr.bf16.mxu1 %v22617_v10  ;;  %v22660_v0 = vld [vmem:[#allocation7 + $0x2d30] ss:$72 sps:$4 sm:$0xff]   ;;  %v22665_v10 = vld [vmem:[#allocation7 + $0x2dbc] ss:$72 sps:$4 sm:$0xff]  }
 0x698   : > { %16483 = vmatprep.subr.bf16.mxu0 %v22620_v11  ;;  %v22668_v11 = vld [vmem:[#allocation7 + $0x2dc4] ss:$72 sps:$4 sm:$0xff]  }
 0x69a   : > { %16140 = vmatpush1.bf16.msra.mxu1 %v22615_v14  ;;  %v22663_v14 = vld [vmem:[#allocation7 + $0x2db8] ss:$72 sps:$4 sm:$0xff]  }
 0x69b   : > { %16484 = vmatpush1.bf16.msra.mxu0 %v22618_v15  ;;  %16141 = vmatprep.subr.bf16.mxu1 %v22623_v16  ;;  %v22666_v15 = vld [vmem:[#allocation7 + $0x2dc0] ss:$72 sps:$4 sm:$0xff]   ;;  %v22671_v16 = vld [vmem:[#allocation7 + $0x2e4c] ss:$72 sps:$4 sm:$0xff]  }
 0x69c   : > { %16485 = vmatprep.subr.bf16.mxu0 %v22626_v18  ;;  %v22674_v18 = vld [vmem:[#allocation7 + $0x2e54] ss:$72 sps:$4 sm:$0xff]  }
 0x69e   : > { %16142 = vmatpush1.bf16.msra.mxu1 %v22621_v22  ;;  %v22669_v22 = vld [vmem:[#allocation7 + $0x2e48] ss:$72 sps:$4 sm:$0xff]  }
 0x69f   : > { %16486 = vmatpush1.bf16.msra.mxu0 %v22624_v24  ;;  %16143 = vmatprep.subr.bf16.mxu1 %v22629_v25  ;;  %v22672_v24 = vld [vmem:[#allocation7 + $0x2e50] ss:$72 sps:$4 sm:$0xff]   ;;  %v22677_v25 = vld [vmem:[#allocation7 + $0x2edc] ss:$72 sps:$4 sm:$0xff]  }
 0x6a0   : > { %16487 = vmatprep.subr.bf16.mxu0 %v22632_v27  ;;  %v22680_v27 = vld [vmem:[#allocation7 + $0x2ee4] ss:$72 sps:$4 sm:$0xff]  }
 0x6a2   : > { %16144 = vmatpush1.bf16.msra.mxu1 %v22627_v29  ;;  %v22675_v29 = vld [vmem:[#allocation7 + $0x2ed8] ss:$72 sps:$4 sm:$0xff]  }
 0x6a3   : > { %16488 = vmatpush1.bf16.msra.mxu0 %v22630_v34  ;;  %16145 = vmatprep.subr.bf16.mxu1 %v22635_v36  ;;  %v22678_v34 = vld [vmem:[#allocation7 + $0x2ee0] ss:$72 sps:$4 sm:$0xff]   ;;  %v22683_v36 = vld [vmem:[#allocation7 + $0x2f6c] ss:$72 sps:$4 sm:$0xff]  }
 0x6a4   : > { %16489 = vmatprep.subr.bf16.mxu0 %v22638_v37  ;;  %v22686_v37 = vld [vmem:[#allocation7 + $0x2f74] ss:$72 sps:$4 sm:$0xff]  }
 0x6a6   : > { %16146 = vmatpush1.bf16.msra.mxu1 %v22633_v38  ;;  %v22681_v38 = vld [vmem:[#allocation7 + $0x2f68] ss:$72 sps:$4 sm:$0xff]  }
 0x6a7   : > { %16490 = vmatpush1.bf16.msra.mxu0 %v22636_v9  ;;  %16147 = vmatprep.subr.bf16.mxu1 %v22641_v39  ;;  %v22684_v9 = vld [vmem:[#allocation7 + $0x2f70] ss:$72 sps:$4 sm:$0xff]   ;;  %v22689_v39 = vld [vmem:[#allocation7 + $0x2ffc] ss:$72 sps:$4 sm:$0xff]  }
 0x6a8   : > { %16491 = vmatprep.subr.bf16.mxu0 %v22644_v40  ;;  %v22692_v40 = vld [vmem:[#allocation7 + $0x3004] ss:$72 sps:$4 sm:$0xff]  }
 0x6aa   : > { %16148 = vmatpush1.bf16.msra.mxu1 %v22639_v41  ;;  %v22687_v41 = vld [vmem:[#allocation7 + $0x2ff8] ss:$72 sps:$4 sm:$0xff]  }
 0x6ab   : > { %16492 = vmatpush1.bf16.msra.mxu0 %v22642_v43  ;;  %16149 = vmatprep.subr.bf16.mxu1 %v22647_v44  ;;  %v22690_v43 = vld [vmem:[#allocation7 + $0x3000] ss:$72 sps:$4 sm:$0xff]   ;;  %v22695_v44 = vld [vmem:[#allocation7 + $0x308c] ss:$72 sps:$4 sm:$0xff]  }
 0x6ac   : > { %16493 = vmatprep.subr.bf16.mxu0 %v22650_v45  ;;  %v22698_v45 = vld [vmem:[#allocation7 + $0x3094] ss:$72 sps:$4 sm:$0xff]  }
 0x6ae   : > { %16150 = vmatpush1.bf16.msra.mxu1 %v22645_v46  ;;  %v22693_v46 = vld [vmem:[#allocation7 + $0x3088] ss:$72 sps:$4 sm:$0xff]  }
 0x6af   : > { %16494 = vmatpush1.bf16.msra.mxu0 %v22648_v47  ;;  %16151 = vmatprep.subr.bf16.mxu1 %v22653_v48  ;;  %v22696_v47 = vld [vmem:[#allocation7 + $0x3090] ss:$72 sps:$4 sm:$0xff]   ;;  %v22701_v48 = vld [vmem:[#allocation7 + $0x311c] ss:$72 sps:$4 sm:$0xff]  }
 0x6b0   : > { %16495 = vmatprep.subr.bf16.mxu0 %v22656_v19  ;;  %v22704_v19 = vld [vmem:[#allocation7 + $0x3124] ss:$72 sps:$4 sm:$0xff]  }
 0x6b2   : > { %16152 = vmatpush1.bf16.msra.mxu1 %v22651_v49  ;;  %v22699_v49 = vld [vmem:[#allocation7 + $0x3118] ss:$72 sps:$4 sm:$0xff]  }
 0x6b3   : > { %16496 = vmatpush1.bf16.msra.mxu0 %v22654_v50  ;;  %16164 = vmatprep.subr.bf16.mxu1 %v22659_v51  ;;  %v22702_v50 = vld [vmem:[#allocation7 + $0x3120] ss:$72 sps:$4 sm:$0xff]   ;;  %v22707_v51 = vld [vmem:[#allocation7 + $0x31ac] ss:$72 sps:$4 sm:$0xff]  }
 0x6b4   : > { %16508 = vmatprep.subr.bf16.mxu0 %v22662_v52  ;;  %v22710_v52 = vld [vmem:[#allocation7 + $0x31b4] ss:$72 sps:$4 sm:$0xff]  }
 0x6b5   : > { %16154 = vmatmul.mubr.bf16.vlgmr.msra.gmra.mrb[12].mxu1 %v24164_v31 }
 0x6b6   : > { %16498 = vmatmul.mubr.bf16.vlgmr.msra.gmra.mrb[12].mxu0 %v24164_v31  ;;  %16165 = vmatpush1.bf16.msra.mxu1 %v22657_v63  ;;  %v22705_v63 = vld [vmem:[#allocation7 + $0x31a8] ss:$72 sps:$4 sm:$0xff]  }
 0x6b7   : > { %16509 = vmatpush1.bf16.msra.mxu0 %v22660_v0  ;;  %16166 = vmatprep.subr.bf16.mxu1 %v22665_v10  ;;  %v22708_v0 = vld [vmem:[#allocation7 + $0x31b0] ss:$72 sps:$4 sm:$0xff]   ;;  %v22713_v10 = vld [vmem:[#allocation7 + $0x323c] ss:$72 sps:$4 sm:$0xff]  }
 0x6b8   : > { %16510 = vmatprep.subr.bf16.mxu0 %v22668_v11  ;;  %16196 = vmatprep.mubr.bf16.mxu1 %v24174_v17  ;;  %v22716_v11 = vld [vmem:[#allocation7 + $0x3244] ss:$72 sps:$4 sm:$0xff]  }
 0x6b9   : > { %16540 = vmatprep.mubr.bf16.mxu0 %v24174_v17 }
 0x6ba   : > { %16167 = vmatpush1.bf16.msra.mxu1 %v22663_v14  ;;  %v22711_v14 = vld [vmem:[#allocation7 + $0x3238] ss:$72 sps:$4 sm:$0xff]  }
 0x6bb   : > { %16511 = vmatpush1.bf16.msra.mxu0 %v22666_v15  ;;  %16168 = vmatprep.subr.bf16.mxu1 %v22671_v16  ;;  %v22714_v15 = vld [vmem:[#allocation7 + $0x3240] ss:$72 sps:$4 sm:$0xff]   ;;  %v22719_v16 = vld [vmem:[#allocation7 + $0x32cc] ss:$72 sps:$4 sm:$0xff]  }
 0x6bc   : > { %16512 = vmatprep.subr.bf16.mxu0 %v22674_v18  ;;  %v22722_v18 = vld [vmem:[#allocation7 + $0x32d4] ss:$72 sps:$4 sm:$0xff]  }
 0x6be   : > { %16169 = vmatpush1.bf16.msra.mxu1 %v22669_v22  ;;  %v22717_v22 = vld [vmem:[#allocation7 + $0x32c8] ss:$72 sps:$4 sm:$0xff]  }
 0x6bf   : > { %16513 = vmatpush1.bf16.msra.mxu0 %v22672_v24  ;;  %16170 = vmatprep.subr.bf16.mxu1 %v22677_v25  ;;  %v22720_v24 = vld [vmem:[#allocation7 + $0x32d0] ss:$72 sps:$4 sm:$0xff]   ;;  %v22725_v25 = vld [vmem:[#allocation7 + $0x335c] ss:$72 sps:$4 sm:$0xff]  }
 0x6c0   : > { %16514 = vmatprep.subr.bf16.mxu0 %v22680_v27  ;;  %v22728_v27 = vld [vmem:[#allocation7 + $0x3364] ss:$72 sps:$4 sm:$0xff]  }
 0x6c2   : > { %16171 = vmatpush1.bf16.msra.mxu1 %v22675_v29  ;;  %v22723_v29 = vld [vmem:[#allocation7 + $0x3358] ss:$72 sps:$4 sm:$0xff]  }
 0x6c3   : > { %16515 = vmatpush1.bf16.msra.mxu0 %v22678_v34  ;;  %16172 = vmatprep.subr.bf16.mxu1 %v22683_v36  ;;  %v22726_v34 = vld [vmem:[#allocation7 + $0x3360] ss:$72 sps:$4 sm:$0xff]   ;;  %v22731_v36 = vld [vmem:[#allocation7 + $0x33ec] ss:$72 sps:$4 sm:$0xff]  }
 0x6c4   : > { %16516 = vmatprep.subr.bf16.mxu0 %v22686_v37  ;;  %v22734_v37 = vld [vmem:[#allocation7 + $0x33f4] ss:$72 sps:$4 sm:$0xff]  }
 0x6c6   : > { %16173 = vmatpush1.bf16.msra.mxu1 %v22681_v38  ;;  %v22729_v38 = vld [vmem:[#allocation7 + $0x33e8] ss:$72 sps:$4 sm:$0xff]  }
 0x6c7   : > { %16517 = vmatpush1.bf16.msra.mxu0 %v22684_v9  ;;  %16174 = vmatprep.subr.bf16.mxu1 %v22689_v39  ;;  %v22732_v9 = vld [vmem:[#allocation7 + $0x33f0] ss:$72 sps:$4 sm:$0xff]   ;;  %v22737_v39 = vld [vmem:[#allocation7 + $0x347c] ss:$72 sps:$4 sm:$0xff]  }
 0x6c8   : > { %16518 = vmatprep.subr.bf16.mxu0 %v22692_v40  ;;  %v22740_v40 = vld [vmem:[#allocation7 + $0x3484] ss:$72 sps:$4 sm:$0xff]  }
 0x6ca   : > { %16175 = vmatpush1.bf16.msra.mxu1 %v22687_v41  ;;  %v22735_v41 = vld [vmem:[#allocation7 + $0x3478] ss:$72 sps:$4 sm:$0xff]  }
 0x6cb   : > { %16519 = vmatpush1.bf16.msra.mxu0 %v22690_v43  ;;  %16176 = vmatprep.subr.bf16.mxu1 %v22695_v44  ;;  %v22738_v43 = vld [vmem:[#allocation7 + $0x3480] ss:$72 sps:$4 sm:$0xff]   ;;  %v22743_v44 = vld [vmem:[#allocation7 + $0x350c] ss:$72 sps:$4 sm:$0xff]  }
 0x6cc   : > { %16520 = vmatprep.subr.bf16.mxu0 %v22698_v45  ;;  %v22746_v45 = vld [vmem:[#allocation7 + $0x3514] ss:$72 sps:$4 sm:$0xff]  }
 0x6ce   : > { %16177 = vmatpush1.bf16.msra.mxu1 %v22693_v46  ;;  %v22741_v46 = vld [vmem:[#allocation7 + $0x3508] ss:$72 sps:$4 sm:$0xff]  }
 0x6cf   : > { %16521 = vmatpush1.bf16.msra.mxu0 %v22696_v47  ;;  %16178 = vmatprep.subr.bf16.mxu1 %v22701_v48  ;;  %v22744_v47 = vld [vmem:[#allocation7 + $0x3510] ss:$72 sps:$4 sm:$0xff]   ;;  %v22749_v48 = vld [vmem:[#allocation7 + $0x359c] ss:$72 sps:$4 sm:$0xff]  }
 0x6d0   : > { %16522 = vmatprep.subr.bf16.mxu0 %v22704_v19  ;;  %v22752_v19 = vld [vmem:[#allocation7 + $0x35a4] ss:$72 sps:$4 sm:$0xff]  }
 0x6d2   : > { %16179 = vmatpush1.bf16.msra.mxu1 %v22699_v49  ;;  %v22747_v49 = vld [vmem:[#allocation7 + $0x3598] ss:$72 sps:$4 sm:$0xff]  }
 0x6d3   : > { %16523 = vmatpush1.bf16.msra.mxu0 %v22702_v50  ;;  %16180 = vmatprep.subr.bf16.mxu1 %v22707_v51  ;;  %v22750_v50 = vld [vmem:[#allocation7 + $0x35a0] ss:$72 sps:$4 sm:$0xff]   ;;  %v22755_v51 = vld [vmem:[#allocation7 + $0x362c] ss:$72 sps:$4 sm:$0xff]  }
 0x6d4   : > { %16524 = vmatprep.subr.bf16.mxu0 %v22710_v52  ;;  %v22758_v52 = vld [vmem:[#allocation7 + $0x3634] ss:$72 sps:$4 sm:$0xff]  }
 0x6d6   : > { %16181 = vmatpush1.bf16.msra.mxu1 %v22705_v63  ;;  %v22753_v63 = vld [vmem:[#allocation7 + $0x3628] ss:$72 sps:$4 sm:$0xff]  }
 0x6d7   : > { %16525 = vmatpush1.bf16.msra.mxu0 %v22708_v0  ;;  %16182 = vmatprep.subr.bf16.mxu1 %v22713_v10  ;;  %v22756_v0 = vld [vmem:[#allocation7 + $0x3630] ss:$72 sps:$4 sm:$0xff]   ;;  %v22761_v10 = vld [vmem:[#allocation7 + $0x36bc] ss:$72 sps:$4 sm:$0xff]  }
 0x6d8   : > { %16526 = vmatprep.subr.bf16.mxu0 %v22716_v11  ;;  %v22764_v11 = vld [vmem:[#allocation7 + $0x36c4] ss:$72 sps:$4 sm:$0xff]  }
 0x6da   : > { %16183 = vmatpush1.bf16.msra.mxu1 %v22711_v14  ;;  %v22759_v14 = vld [vmem:[#allocation7 + $0x36b8] ss:$72 sps:$4 sm:$0xff]  }
 0x6db   : > { %16527 = vmatpush1.bf16.msra.mxu0 %v22714_v15  ;;  %16184 = vmatprep.subr.bf16.mxu1 %v22719_v16  ;;  %v22762_v15 = vld [vmem:[#allocation7 + $0x36c0] ss:$72 sps:$4 sm:$0xff]   ;;  %v22767_v16 = vld [vmem:[#allocation7 + $0x374c] ss:$72 sps:$4 sm:$0xff]  }
 0x6dc   : > { %16528 = vmatprep.subr.bf16.mxu0 %v22722_v18  ;;  %v22770_v18 = vld [vmem:[#allocation7 + $0x3754] ss:$72 sps:$4 sm:$0xff]  }
 0x6de   : > { %16185 = vmatpush1.bf16.msra.mxu1 %v22717_v22  ;;  %v22765_v22 = vld [vmem:[#allocation7 + $0x3748] ss:$72 sps:$4 sm:$0xff]  }
 0x6df   : > { %16529 = vmatpush1.bf16.msra.mxu0 %v22720_v24  ;;  %16186 = vmatprep.subr.bf16.mxu1 %v22725_v25  ;;  %v22768_v24 = vld [vmem:[#allocation7 + $0x3750] ss:$72 sps:$4 sm:$0xff]   ;;  %v22773_v25 = vld [vmem:[#allocation7 + $0x37dc] ss:$72 sps:$4 sm:$0xff]  }
 0x6e0   : > { %16530 = vmatprep.subr.bf16.mxu0 %v22728_v27  ;;  %v22776_v27 = vld [vmem:[#allocation7 + $0x37e4] ss:$72 sps:$4 sm:$0xff]  }
 0x6e2   : > { %16187 = vmatpush1.bf16.msra.mxu1 %v22723_v29  ;;  %v22771_v29 = vld [vmem:[#allocation7 + $0x37d8] ss:$72 sps:$4 sm:$0xff]  }
 0x6e3   : > { %16531 = vmatpush1.bf16.msra.mxu0 %v22726_v34  ;;  %16188 = vmatprep.subr.bf16.mxu1 %v22731_v36  ;;  %v22774_v34 = vld [vmem:[#allocation7 + $0x37e0] ss:$72 sps:$4 sm:$0xff]   ;;  %v22779_v36 = vld [vmem:[#allocation7 + $0x386c] ss:$72 sps:$4 sm:$0xff]  }
 0x6e4   : > { %16532 = vmatprep.subr.bf16.mxu0 %v22734_v37  ;;  %v22782_v37 = vld [vmem:[#allocation7 + $0x3874] ss:$72 sps:$4 sm:$0xff]  }
 0x6e6   : > { %16189 = vmatpush1.bf16.msra.mxu1 %v22729_v38  ;;  %v22777_v38 = vld [vmem:[#allocation7 + $0x3868] ss:$72 sps:$4 sm:$0xff]  }
 0x6e7   : > { %16533 = vmatpush1.bf16.msra.mxu0 %v22732_v9  ;;  %16190 = vmatprep.subr.bf16.mxu1 %v22737_v39  ;;  %v22780_v9 = vld [vmem:[#allocation7 + $0x3870] ss:$72 sps:$4 sm:$0xff]   ;;  %v22785_v39 = vld [vmem:[#allocation7 + $0x38fc] ss:$72 sps:$4 sm:$0xff]  }
 0x6e8   : > { %16534 = vmatprep.subr.bf16.mxu0 %v22740_v40  ;;  %v22788_v40 = vld [vmem:[#allocation7 + $0x3904] ss:$72 sps:$4 sm:$0xff]  }
 0x6ea   : > { %16191 = vmatpush1.bf16.msra.mxu1 %v22735_v41  ;;  %v22783_v41 = vld [vmem:[#allocation7 + $0x38f8] ss:$72 sps:$4 sm:$0xff]  }
 0x6eb   : > { %16535 = vmatpush1.bf16.msra.mxu0 %v22738_v43  ;;  %16192 = vmatprep.subr.bf16.mxu1 %v22743_v44  ;;  %v22786_v43 = vld [vmem:[#allocation7 + $0x3900] ss:$72 sps:$4 sm:$0xff]   ;;  %v22791_v44 = vld [vmem:[#allocation7 + $0x398c] ss:$72 sps:$4 sm:$0xff]  }
 0x6ec   : > { %16536 = vmatprep.subr.bf16.mxu0 %v22746_v45  ;;  %v22794_v45 = vld [vmem:[#allocation7 + $0x3994] ss:$72 sps:$4 sm:$0xff]  }
 0x6ee   : > { %16193 = vmatpush1.bf16.msra.mxu1 %v22741_v46  ;;  %v22789_v46 = vld [vmem:[#allocation7 + $0x3988] ss:$72 sps:$4 sm:$0xff]  }
 0x6ef   : > { %16537 = vmatpush1.bf16.msra.mxu0 %v22744_v47  ;;  %16194 = vmatprep.subr.bf16.mxu1 %v22749_v48  ;;  %v22792_v47 = vld [vmem:[#allocation7 + $0x3990] ss:$72 sps:$4 sm:$0xff]   ;;  %v22797_v48 = vld [vmem:[#allocation7 + $0x3a1c] ss:$72 sps:$4 sm:$0xff]  }
 0x6f0   : > { %16538 = vmatprep.subr.bf16.mxu0 %v22752_v19  ;;  %v22800_v19 = vld [vmem:[#allocation7 + $0x3a24] ss:$72 sps:$4 sm:$0xff]  }
 0x6f2   : > { %16195 = vmatpush1.bf16.msra.mxu1 %v22747_v49  ;;  %v22795_v49 = vld [vmem:[#allocation7 + $0x3a18] ss:$72 sps:$4 sm:$0xff]  }
 0x6f3   : > { %16539 = vmatpush1.bf16.msra.mxu0 %v22750_v50  ;;  %16207 = vmatprep.subr.bf16.mxu1 %v22755_v51  ;;  %v22798_v50 = vld [vmem:[#allocation7 + $0x3a20] ss:$72 sps:$4 sm:$0xff]   ;;  %v22803_v51 = vld [vmem:[#allocation7 + $0x3aac] ss:$72 sps:$4 sm:$0xff]  }
 0x6f4   : > { %16551 = vmatprep.subr.bf16.mxu0 %v22758_v52  ;;  %v22806_v52 = vld [vmem:[#allocation7 + $0x3ab4] ss:$72 sps:$4 sm:$0xff]  }
 0x6f5   : > { %16197 = vmatmul.mubr.bf16.vlgmr.msra.gmra.mrb[12].mxu1 %v24182_v4 }
 0x6f6   : > { %16541 = vmatmul.mubr.bf16.vlgmr.msra.gmra.mrb[12].mxu0 %v24182_v4  ;;  %16208 = vmatpush1.bf16.msra.mxu1 %v22753_v63  ;;  %v22801_v63 = vld [vmem:[#allocation7 + $0x3aa8] ss:$72 sps:$4 sm:$0xff]  }
 0x6f7   : > { %16552 = vmatpush1.bf16.msra.mxu0 %v22756_v0  ;;  %16209 = vmatprep.subr.bf16.mxu1 %v22761_v10  ;;  %v22804_v0 = vld [vmem:[#allocation7 + $0x3ab0] ss:$72 sps:$4 sm:$0xff]   ;;  %v22809_v10 = vld [vmem:[#allocation7 + $0x3b3c] ss:$72 sps:$4 sm:$0xff]  }
 0x6f8   : > { %16553 = vmatprep.subr.bf16.mxu0 %v22764_v11  ;;  %16239 = vmatprep.mubr.bf16.mxu1 %v24192_v59  ;;  %v22812_v11 = vld [vmem:[#allocation7 + $0x3b44] ss:$72 sps:$4 sm:$0xff]  }
 0x6f9   : > { %16583 = vmatprep.mubr.bf16.mxu0 %v24192_v59 }
 0x6fa   : > { %16210 = vmatpush1.bf16.msra.mxu1 %v22759_v14  ;;  %v22807_v14 = vld [vmem:[#allocation7 + $0x3b38] ss:$72 sps:$4 sm:$0xff]  }
 0x6fb   : > { %16554 = vmatpush1.bf16.msra.mxu0 %v22762_v15  ;;  %16211 = vmatprep.subr.bf16.mxu1 %v22767_v16  ;;  %v22810_v15 = vld [vmem:[#allocation7 + $0x3b40] ss:$72 sps:$4 sm:$0xff]   ;;  %v22815_v16 = vld [vmem:[#allocation7 + $0x3bcc] ss:$72 sps:$4 sm:$0xff]  }
 0x6fc   : > { %16555 = vmatprep.subr.bf16.mxu0 %v22770_v18  ;;  %v22818_v18 = vld [vmem:[#allocation7 + $0x3bd4] ss:$72 sps:$4 sm:$0xff]  }
 0x6fe   : > { %16212 = vmatpush1.bf16.msra.mxu1 %v22765_v22  ;;  %v22813_v22 = vld [vmem:[#allocation7 + $0x3bc8] ss:$72 sps:$4 sm:$0xff]  }
 0x6ff   : > { %16556 = vmatpush1.bf16.msra.mxu0 %v22768_v24  ;;  %16213 = vmatprep.subr.bf16.mxu1 %v22773_v25  ;;  %v22816_v24 = vld [vmem:[#allocation7 + $0x3bd0] ss:$72 sps:$4 sm:$0xff]   ;;  %v22821_v25 = vld [vmem:[#allocation7 + $0x3c5c] ss:$72 sps:$4 sm:$0xff]  }
 0x700   : > { %16557 = vmatprep.subr.bf16.mxu0 %v22776_v27  ;;  %v22824_v27 = vld [vmem:[#allocation7 + $0x3c64] ss:$72 sps:$4 sm:$0xff]  }
 0x702   : > { %16214 = vmatpush1.bf16.msra.mxu1 %v22771_v29  ;;  %v22819_v29 = vld [vmem:[#allocation7 + $0x3c58] ss:$72 sps:$4 sm:$0xff]  }
 0x703   : > { %16558 = vmatpush1.bf16.msra.mxu0 %v22774_v34  ;;  %16215 = vmatprep.subr.bf16.mxu1 %v22779_v36  ;;  %v22822_v34 = vld [vmem:[#allocation7 + $0x3c60] ss:$72 sps:$4 sm:$0xff]   ;;  %v22827_v36 = vld [vmem:[#allocation7 + $0x3cec] ss:$72 sps:$4 sm:$0xff]  }
 0x704   : > { %16559 = vmatprep.subr.bf16.mxu0 %v22782_v37  ;;  %v22830_v37 = vld [vmem:[#allocation7 + $0x3cf4] ss:$72 sps:$4 sm:$0xff]  }
 0x706   : > { %16216 = vmatpush1.bf16.msra.mxu1 %v22777_v38  ;;  %v22825_v38 = vld [vmem:[#allocation7 + $0x3ce8] ss:$72 sps:$4 sm:$0xff]  }
 0x707   : > { %16560 = vmatpush1.bf16.msra.mxu0 %v22780_v9  ;;  %16217 = vmatprep.subr.bf16.mxu1 %v22785_v39  ;;  %v22828_v9 = vld [vmem:[#allocation7 + $0x3cf0] ss:$72 sps:$4 sm:$0xff]   ;;  %v22833_v39 = vld [vmem:[#allocation7 + $0x3d7c] ss:$72 sps:$4 sm:$0xff]  }
 0x708   : > { %16561 = vmatprep.subr.bf16.mxu0 %v22788_v40  ;;  %v22836_v40 = vld [vmem:[#allocation7 + $0x3d84] ss:$72 sps:$4 sm:$0xff]  }
 0x70a   : > { %16218 = vmatpush1.bf16.msra.mxu1 %v22783_v41  ;;  %v22831_v41 = vld [vmem:[#allocation7 + $0x3d78] ss:$72 sps:$4 sm:$0xff]  }
 0x70b   : > { %16562 = vmatpush1.bf16.msra.mxu0 %v22786_v43  ;;  %16219 = vmatprep.subr.bf16.mxu1 %v22791_v44  ;;  %v22834_v43 = vld [vmem:[#allocation7 + $0x3d80] ss:$72 sps:$4 sm:$0xff]   ;;  %v22839_v44 = vld [vmem:[#allocation7 + $0x3e0c] ss:$72 sps:$4 sm:$0xff]  }
 0x70c   : > { %16563 = vmatprep.subr.bf16.mxu0 %v22794_v45  ;;  %v22842_v45 = vld [vmem:[#allocation7 + $0x3e14] ss:$72 sps:$4 sm:$0xff]  }
 0x70e   : > { %16220 = vmatpush1.bf16.msra.mxu1 %v22789_v46  ;;  %v22837_v46 = vld [vmem:[#allocation7 + $0x3e08] ss:$72 sps:$4 sm:$0xff]  }
 0x70f   : > { %16564 = vmatpush1.bf16.msra.mxu0 %v22792_v47  ;;  %16221 = vmatprep.subr.bf16.mxu1 %v22797_v48  ;;  %v22840_v47 = vld [vmem:[#allocation7 + $0x3e10] ss:$72 sps:$4 sm:$0xff]   ;;  %v22845_v48 = vld [vmem:[#allocation7 + $0x3e9c] ss:$72 sps:$4 sm:$0xff]  }
 0x710   : > { %16565 = vmatprep.subr.bf16.mxu0 %v22800_v19  ;;  %v22848_v19 = vld [vmem:[#allocation7 + $0x3ea4] ss:$72 sps:$4 sm:$0xff]  }
 0x712   : > { %16222 = vmatpush1.bf16.msra.mxu1 %v22795_v49  ;;  %v22843_v49 = vld [vmem:[#allocation7 + $0x3e98] ss:$72 sps:$4 sm:$0xff]  }
 0x713   : > { %16566 = vmatpush1.bf16.msra.mxu0 %v22798_v50  ;;  %16223 = vmatprep.subr.bf16.mxu1 %v22803_v51  ;;  %v22846_v50 = vld [vmem:[#allocation7 + $0x3ea0] ss:$72 sps:$4 sm:$0xff]   ;;  %v22851_v51 = vld [vmem:[#allocation7 + $0x3f2c] ss:$72 sps:$4 sm:$0xff]  }
 0x714   : > { %16567 = vmatprep.subr.bf16.mxu0 %v22806_v52  ;;  %v22854_v52 = vld [vmem:[#allocation7 + $0x3f34] ss:$72 sps:$4 sm:$0xff]  }
 0x716   : > { %16224 = vmatpush1.bf16.msra.mxu1 %v22801_v63  ;;  %v22849_v63 = vld [vmem:[#allocation7 + $0x3f28] ss:$72 sps:$4 sm:$0xff]  }
 0x717   : > { %16568 = vmatpush1.bf16.msra.mxu0 %v22804_v0  ;;  %16225 = vmatprep.subr.bf16.mxu1 %v22809_v10  ;;  %v22852_v0 = vld [vmem:[#allocation7 + $0x3f30] ss:$72 sps:$4 sm:$0xff]   ;;  %v22857_v10 = vld [vmem:[#allocation7 + $0x3fbc] ss:$72 sps:$4 sm:$0xff]  }
 0x718   : > { %16569 = vmatprep.subr.bf16.mxu0 %v22812_v11  ;;  %v22860_v11 = vld [vmem:[#allocation7 + $0x3fc4] ss:$72 sps:$4 sm:$0xff]  }
 0x71a   : > { %16226 = vmatpush1.bf16.msra.mxu1 %v22807_v14  ;;  %v22855_v14 = vld [vmem:[#allocation7 + $0x3fb8] ss:$72 sps:$4 sm:$0xff]  }
 0x71b   : > { %16570 = vmatpush1.bf16.msra.mxu0 %v22810_v15  ;;  %16227 = vmatprep.subr.bf16.mxu1 %v22815_v16  ;;  %v22858_v15 = vld [vmem:[#allocation7 + $0x3fc0] ss:$72 sps:$4 sm:$0xff]   ;;  %v22863_v16 = vld [vmem:[#allocation7 + $0x404c] ss:$72 sps:$4 sm:$0xff]  }
 0x71c   : > { %16571 = vmatprep.subr.bf16.mxu0 %v22818_v18  ;;  %v22866_v18 = vld [vmem:[#allocation7 + $0x4054] ss:$72 sps:$4 sm:$0xff]  }
 0x71e   : > { %16228 = vmatpush1.bf16.msra.mxu1 %v22813_v22  ;;  %v22861_v22 = vld [vmem:[#allocation7 + $0x4048] ss:$72 sps:$4 sm:$0xff]  }
 0x71f   : > { %16572 = vmatpush1.bf16.msra.mxu0 %v22816_v24  ;;  %16229 = vmatprep.subr.bf16.mxu1 %v22821_v25  ;;  %v22864_v24 = vld [vmem:[#allocation7 + $0x4050] ss:$72 sps:$4 sm:$0xff]   ;;  %v22869_v25 = vld [vmem:[#allocation7 + $0x40dc] ss:$72 sps:$4 sm:$0xff]  }
 0x720   : > { %16573 = vmatprep.subr.bf16.mxu0 %v22824_v27  ;;  %v22872_v27 = vld [vmem:[#allocation7 + $0x40e4] ss:$72 sps:$4 sm:$0xff]  }
 0x722   : > { %16230 = vmatpush1.bf16.msra.mxu1 %v22819_v29  ;;  %v22867_v29 = vld [vmem:[#allocation7 + $0x40d8] ss:$72 sps:$4 sm:$0xff]  }
 0x723   : > { %16574 = vmatpush1.bf16.msra.mxu0 %v22822_v34  ;;  %16231 = vmatprep.subr.bf16.mxu1 %v22827_v36  ;;  %v22870_v34 = vld [vmem:[#allocation7 + $0x40e0] ss:$72 sps:$4 sm:$0xff]   ;;  %v22875_v36 = vld [vmem:[#allocation7 + $0x416c] ss:$72 sps:$4 sm:$0xff]  }
 0x724   : > { %16575 = vmatprep.subr.bf16.mxu0 %v22830_v37  ;;  %v22878_v37 = vld [vmem:[#allocation7 + $0x4174] ss:$72 sps:$4 sm:$0xff]  }
 0x726   : > { %16232 = vmatpush1.bf16.msra.mxu1 %v22825_v38  ;;  %v22873_v38 = vld [vmem:[#allocation7 + $0x4168] ss:$72 sps:$4 sm:$0xff]  }
 0x727   : > { %16576 = vmatpush1.bf16.msra.mxu0 %v22828_v9  ;;  %16233 = vmatprep.subr.bf16.mxu1 %v22833_v39  ;;  %v22876_v9 = vld [vmem:[#allocation7 + $0x4170] ss:$72 sps:$4 sm:$0xff]   ;;  %v22881_v39 = vld [vmem:[#allocation7 + $0x41fc] ss:$72 sps:$4 sm:$0xff]  }
 0x728   : > { %16577 = vmatprep.subr.bf16.mxu0 %v22836_v40  ;;  %v22884_v40 = vld [vmem:[#allocation7 + $0x4204] ss:$72 sps:$4 sm:$0xff]  }
 0x72a   : > { %16234 = vmatpush1.bf16.msra.mxu1 %v22831_v41  ;;  %v22879_v41 = vld [vmem:[#allocation7 + $0x41f8] ss:$72 sps:$4 sm:$0xff]  }
 0x72b   : > { %16578 = vmatpush1.bf16.msra.mxu0 %v22834_v43  ;;  %16235 = vmatprep.subr.bf16.mxu1 %v22839_v44  ;;  %v22882_v43 = vld [vmem:[#allocation7 + $0x4200] ss:$72 sps:$4 sm:$0xff]   ;;  %v22887_v44 = vld [vmem:[#allocation7 + $0x428c] ss:$72 sps:$4 sm:$0xff]  }
 0x72c   : > { %16579 = vmatprep.subr.bf16.mxu0 %v22842_v45  ;;  %v22890_v45 = vld [vmem:[#allocation7 + $0x4294] ss:$72 sps:$4 sm:$0xff]  }
 0x72e   : > { %16236 = vmatpush1.bf16.msra.mxu1 %v22837_v46  ;;  %v22885_v46 = vld [vmem:[#allocation7 + $0x4288] ss:$72 sps:$4 sm:$0xff]  }
 0x72f   : > { %16580 = vmatpush1.bf16.msra.mxu0 %v22840_v47  ;;  %16237 = vmatprep.subr.bf16.mxu1 %v22845_v48  ;;  %v22888_v47 = vld [vmem:[#allocation7 + $0x4290] ss:$72 sps:$4 sm:$0xff]   ;;  %v22893_v48 = vld [vmem:[#allocation7 + $0x431c] ss:$72 sps:$4 sm:$0xff]  }
 0x730   : > { %16581 = vmatprep.subr.bf16.mxu0 %v22848_v19  ;;  %v22896_v19 = vld [vmem:[#allocation7 + $0x4324] ss:$72 sps:$4 sm:$0xff]  }
 0x732   : > { %16238 = vmatpush1.bf16.msra.mxu1 %v22843_v49  ;;  %v22891_v49 = vld [vmem:[#allocation7 + $0x4318] ss:$72 sps:$4 sm:$0xff]  }
 0x733   : > { %16582 = vmatpush1.bf16.msra.mxu0 %v22846_v50  ;;  %16250 = vmatprep.subr.bf16.mxu1 %v22851_v51  ;;  %v22894_v50 = vld [vmem:[#allocation7 + $0x4320] ss:$72 sps:$4 sm:$0xff]   ;;  %v22899_v51 = vld [vmem:[#allocation7 + $0x43ac] ss:$72 sps:$4 sm:$0xff]  }
 0x734   : > { %16594 = vmatprep.subr.bf16.mxu0 %v22854_v52  ;;  %v22902_v52 = vld [vmem:[#allocation7 + $0x43b4] ss:$72 sps:$4 sm:$0xff]  }
 0x735   : > { %16240 = vmatmul.mubr.bf16.vlgmr.msra.gmra.mrb[12].mxu1 %v24209_v60 }
 0x736   : > { %16584 = vmatmul.mubr.bf16.vlgmr.msra.gmra.mrb[12].mxu0 %v24209_v60  ;;  %16251 = vmatpush1.bf16.msra.mxu1 %v22849_v63  ;;  %v22897_v63 = vld [vmem:[#allocation7 + $0x43a8] ss:$72 sps:$4 sm:$0xff]  }
 0x737   : > { %16595 = vmatpush1.bf16.msra.mxu0 %v22852_v0  ;;  %16252 = vmatprep.subr.bf16.mxu1 %v22857_v10  ;;  %v22900_v0 = vld [vmem:[#allocation7 + $0x43b0] ss:$72 sps:$4 sm:$0xff]   ;;  %v22905_v10 = vld [vmem:[#allocation7 + $0x443c] ss:$72 sps:$4 sm:$0xff]  }
 0x738   : > { %16596 = vmatprep.subr.bf16.mxu0 %v22860_v11  ;;  %16282 = vmatprep.mubr.bf16.mxu1 %v24213_v5  ;;  %v22908_v11 = vld [vmem:[#allocation7 + $0x4444] ss:$72 sps:$4 sm:$0xff]  }
 0x739   : > { %16626 = vmatprep.mubr.bf16.mxu0 %v24213_v5 }
 0x73a   : > { %16253 = vmatpush1.bf16.msra.mxu1 %v22855_v14  ;;  %v22903_v14 = vld [vmem:[#allocation7 + $0x4438] ss:$72 sps:$4 sm:$0xff]  }
 0x73b   : > { %16597 = vmatpush1.bf16.msra.mxu0 %v22858_v15  ;;  %16254 = vmatprep.subr.bf16.mxu1 %v22863_v16  ;;  %v22906_v15 = vld [vmem:[#allocation7 + $0x4440] ss:$72 sps:$4 sm:$0xff]   ;;  %v22911_v16 = vld [vmem:[#allocation7 + $0x44cc] ss:$72 sps:$4 sm:$0xff]  }
 0x73c   : > { %16598 = vmatprep.subr.bf16.mxu0 %v22866_v18  ;;  %v22914_v18 = vld [vmem:[#allocation7 + $0x44d4] ss:$72 sps:$4 sm:$0xff]  }
 0x73e   : > { %16255 = vmatpush1.bf16.msra.mxu1 %v22861_v22  ;;  %v22909_v22 = vld [vmem:[#allocation7 + $0x44c8] ss:$72 sps:$4 sm:$0xff]  }
 0x73f   : > { %16599 = vmatpush1.bf16.msra.mxu0 %v22864_v24  ;;  %16256 = vmatprep.subr.bf16.mxu1 %v22869_v25  ;;  %v22912_v24 = vld [vmem:[#allocation7 + $0x44d0] ss:$72 sps:$4 sm:$0xff]   ;;  %v22917_v25 = vld [vmem:[#allocation7 + $0x455c] ss:$72 sps:$4 sm:$0xff]  }
 0x740   : > { %16600 = vmatprep.subr.bf16.mxu0 %v22872_v27  ;;  %v22920_v27 = vld [vmem:[#allocation7 + $0x4564] ss:$72 sps:$4 sm:$0xff]  }
 0x742   : > { %16257 = vmatpush1.bf16.msra.mxu1 %v22867_v29  ;;  %v22915_v29 = vld [vmem:[#allocation7 + $0x4558] ss:$72 sps:$4 sm:$0xff]  }
 0x743   : > { %16601 = vmatpush1.bf16.msra.mxu0 %v22870_v34  ;;  %16258 = vmatprep.subr.bf16.mxu1 %v22875_v36  ;;  %v22918_v34 = vld [vmem:[#allocation7 + $0x4560] ss:$72 sps:$4 sm:$0xff]   ;;  %v22923_v36 = vld [vmem:[#allocation7 + $0x45ec] ss:$72 sps:$4 sm:$0xff]  }
 0x744   : > { %16602 = vmatprep.subr.bf16.mxu0 %v22878_v37  ;;  %v22926_v37 = vld [vmem:[#allocation7 + $0x45f4] ss:$72 sps:$4 sm:$0xff]  }
 0x746   : > { %16259 = vmatpush1.bf16.msra.mxu1 %v22873_v38  ;;  %v22921_v38 = vld [vmem:[#allocation7 + $0x45e8] ss:$72 sps:$4 sm:$0xff]  }
 0x747   : > { %16603 = vmatpush1.bf16.msra.mxu0 %v22876_v9  ;;  %16260 = vmatprep.subr.bf16.mxu1 %v22881_v39  ;;  %v22924_v9 = vld [vmem:[#allocation7 + $0x45f0] ss:$72 sps:$4 sm:$0xff]   ;;  %v22929_v39 = vld [vmem:[#allocation7 + $0x467c] ss:$72 sps:$4 sm:$0xff]  }
 0x748   : > { %16604 = vmatprep.subr.bf16.mxu0 %v22884_v40  ;;  %v22932_v40 = vld [vmem:[#allocation7 + $0x4684] ss:$72 sps:$4 sm:$0xff]  }
 0x74a   : > { %16261 = vmatpush1.bf16.msra.mxu1 %v22879_v41  ;;  %v22927_v41 = vld [vmem:[#allocation7 + $0x4678] ss:$72 sps:$4 sm:$0xff]  }
 0x74b   : > { %16605 = vmatpush1.bf16.msra.mxu0 %v22882_v43  ;;  %16262 = vmatprep.subr.bf16.mxu1 %v22887_v44  ;;  %v22930_v43 = vld [vmem:[#allocation7 + $0x4680] ss:$72 sps:$4 sm:$0xff]   ;;  %v22935_v44 = vld [vmem:[#allocation7 + $0x470c] ss:$72 sps:$4 sm:$0xff]  }
 0x74c   : > { %16606 = vmatprep.subr.bf16.mxu0 %v22890_v45  ;;  %v22938_v45 = vld [vmem:[#allocation7 + $0x4714] ss:$72 sps:$4 sm:$0xff]  }
 0x74e   : > { %16263 = vmatpush1.bf16.msra.mxu1 %v22885_v46  ;;  %v22933_v46 = vld [vmem:[#allocation7 + $0x4708] ss:$72 sps:$4 sm:$0xff]  }
 0x74f   : > { %16607 = vmatpush1.bf16.msra.mxu0 %v22888_v47  ;;  %16264 = vmatprep.subr.bf16.mxu1 %v22893_v48  ;;  %v22936_v47 = vld [vmem:[#allocation7 + $0x4710] ss:$72 sps:$4 sm:$0xff]   ;;  %v22941_v48 = vld [vmem:[#allocation7 + $0x479c] ss:$72 sps:$4 sm:$0xff]  }
 0x750   : > { %16608 = vmatprep.subr.bf16.mxu0 %v22896_v19  ;;  %v22944_v19 = vld [vmem:[#allocation7 + $0x47a4] ss:$72 sps:$4 sm:$0xff]  }
 0x752   : > { %16265 = vmatpush1.bf16.msra.mxu1 %v22891_v49  ;;  %v22939_v49 = vld [vmem:[#allocation7 + $0x4798] ss:$72 sps:$4 sm:$0xff]  }
 0x753   : > { %16609 = vmatpush1.bf16.msra.mxu0 %v22894_v50  ;;  %16266 = vmatprep.subr.bf16.mxu1 %v22899_v51  ;;  %v22942_v50 = vld [vmem:[#allocation7 + $0x47a0] ss:$72 sps:$4 sm:$0xff]   ;;  %v22947_v51 = vld [vmem:[#allocation7 + $0x3c] ss:$72 sps:$4 sm:$0xff]  }
 0x754   : > { %16610 = vmatprep.subr.bf16.mxu0 %v22902_v52  ;;  %v22950_v52 = vld [vmem:[#allocation7 + $0x44] ss:$72 sps:$4 sm:$0xff]  }
 0x756   : > { %16267 = vmatpush1.bf16.msra.mxu1 %v22897_v63  ;;  %v22945_v63 = vld [vmem:[#allocation7 + $0x38] ss:$72 sps:$4 sm:$0xff]  }
 0x757   : > { %16611 = vmatpush1.bf16.msra.mxu0 %v22900_v0  ;;  %16268 = vmatprep.subr.bf16.mxu1 %v22905_v10  ;;  %v22948_v0 = vld [vmem:[#allocation7 + $0x40] ss:$72 sps:$4 sm:$0xff]   ;;  %v22953_v10 = vld [vmem:[#allocation7 + $0xcc] ss:$72 sps:$4 sm:$0xff]  }
 0x758   : > { %16612 = vmatprep.subr.bf16.mxu0 %v22908_v11  ;;  %v22956_v11 = vld [vmem:[#allocation7 + $0xd4] ss:$72 sps:$4 sm:$0xff]  }
 0x75a   : > { %16269 = vmatpush1.bf16.msra.mxu1 %v22903_v14  ;;  %v22951_v14 = vld [vmem:[#allocation7 + $0xc8] ss:$72 sps:$4 sm:$0xff]  }
 0x75b   : > { %16613 = vmatpush1.bf16.msra.mxu0 %v22906_v15  ;;  %16270 = vmatprep.subr.bf16.mxu1 %v22911_v16  ;;  %v22954_v15 = vld [vmem:[#allocation7 + $0xd0] ss:$72 sps:$4 sm:$0xff]   ;;  %v22959_v16 = vld [vmem:[#allocation7 + $0x15c] ss:$72 sps:$4 sm:$0xff]  }
 0x75c   : > { %16614 = vmatprep.subr.bf16.mxu0 %v22914_v18  ;;  %v22962_v18 = vld [vmem:[#allocation7 + $0x164] ss:$72 sps:$4 sm:$0xff]  }
 0x75e   : > { %16271 = vmatpush1.bf16.msra.mxu1 %v22909_v22  ;;  %v22957_v22 = vld [vmem:[#allocation7 + $0x158] ss:$72 sps:$4 sm:$0xff]  }
 0x75f   : > { %16615 = vmatpush1.bf16.msra.mxu0 %v22912_v24  ;;  %16272 = vmatprep.subr.bf16.mxu1 %v22917_v25  ;;  %v22960_v24 = vld [vmem:[#allocation7 + $0x160] ss:$72 sps:$4 sm:$0xff]   ;;  %v22965_v25 = vld [vmem:[#allocation7 + $0x1ec] ss:$72 sps:$4 sm:$0xff]  }
 0x760   : > { %16616 = vmatprep.subr.bf16.mxu0 %v22920_v27  ;;  %v22968_v27 = vld [vmem:[#allocation7 + $0x1f4] ss:$72 sps:$4 sm:$0xff]  }
 0x762   : > { %16273 = vmatpush1.bf16.msra.mxu1 %v22915_v29  ;;  %v22963_v29 = vld [vmem:[#allocation7 + $0x1e8] ss:$72 sps:$4 sm:$0xff]  }
 0x763   : > { %16617 = vmatpush1.bf16.msra.mxu0 %v22918_v34  ;;  %16274 = vmatprep.subr.bf16.mxu1 %v22923_v36  ;;  %v22966_v34 = vld [vmem:[#allocation7 + $0x1f0] ss:$72 sps:$4 sm:$0xff]   ;;  %v22971_v36 = vld [vmem:[#allocation7 + $0x27c] ss:$72 sps:$4 sm:$0xff]  }
 0x764   : > { %16618 = vmatprep.subr.bf16.mxu0 %v22926_v37  ;;  %v22974_v37 = vld [vmem:[#allocation7 + $0x284] ss:$72 sps:$4 sm:$0xff]  }
 0x766   : > { %16275 = vmatpush1.bf16.msra.mxu1 %v22921_v38  ;;  %v22969_v38 = vld [vmem:[#allocation7 + $0x278] ss:$72 sps:$4 sm:$0xff]  }
 0x767   : > { %16619 = vmatpush1.bf16.msra.mxu0 %v22924_v9  ;;  %16276 = vmatprep.subr.bf16.mxu1 %v22929_v39  ;;  %v22977_v9 = vld [vmem:[#allocation7 + $0x30c] ss:$72 sps:$4 sm:$0xff]  }
 0x768   : > { %16620 = vmatprep.subr.bf16.mxu0 %v22932_v40  ;;  %v22980_v39 = vld [vmem:[#allocation7 + $0x314] ss:$72 sps:$4 sm:$0xff]   ;;  %v22975_v40 = vld [vmem:[#allocation7 + $0x308] ss:$72 sps:$4 sm:$0xff]  }
 0x76a   : > { %16277 = vmatpush1.bf16.msra.mxu1 %v22927_v41  ;;  %v22978_v41 = vld [vmem:[#allocation7 + $0x310] ss:$72 sps:$4 sm:$0xff]  }
 0x76b   : > { %16621 = vmatpush1.bf16.msra.mxu0 %v22930_v43  ;;  %16278 = vmatprep.subr.bf16.mxu1 %v22935_v44  ;;  %v22983_v43 = vld [vmem:[#allocation7 + $0x39c] ss:$72 sps:$4 sm:$0xff]  }
 0x76c   : > { %16622 = vmatprep.subr.bf16.mxu0 %v22938_v45  ;;  %v22986_v44 = vld [vmem:[#allocation7 + $0x3a4] ss:$72 sps:$4 sm:$0xff]   ;;  %v22981_v45 = vld [vmem:[#allocation7 + $0x398] ss:$72 sps:$4 sm:$0xff]  }
 0x76e   : > { %16279 = vmatpush1.bf16.msra.mxu1 %v22933_v46  ;;  %v22984_v46 = vld [vmem:[#allocation7 + $0x3a0] ss:$72 sps:$4 sm:$0xff]  }
 0x76f   : > { %16623 = vmatpush1.bf16.msra.mxu0 %v22936_v47  ;;  %16280 = vmatprep.subr.bf16.mxu1 %v22941_v48  ;;  %v22989_v47 = vld [vmem:[#allocation7 + $0x42c] ss:$72 sps:$4 sm:$0xff]  }
 0x770   : > { %16624 = vmatprep.subr.bf16.mxu0 %v22944_v19  ;;  %v22992_v48 = vld [vmem:[#allocation7 + $0x434] ss:$72 sps:$4 sm:$0xff]   ;;  %v22987_v19 = vld [vmem:[#allocation7 + $0x428] ss:$72 sps:$4 sm:$0xff]  }
 0x772   : > { %16281 = vmatpush1.bf16.msra.mxu1 %v22939_v49  ;;  %v22990_v49 = vld [vmem:[#allocation7 + $0x430] ss:$72 sps:$4 sm:$0xff]  }
 0x773   : > { %16625 = vmatpush1.bf16.msra.mxu0 %v22942_v50  ;;  %16637 = vmatprep.subr.bf16.mxu1 %v22947_v51  ;;  %v22995_v50 = vld [vmem:[#allocation7 + $0x4bc] ss:$72 sps:$4 sm:$0xff]  }
 0x774   : > { %16981 = vmatprep.subr.bf16.mxu0 %v22950_v52  ;;  %v22998_v51 = vld [vmem:[#allocation7 + $0x4c4] ss:$72 sps:$4 sm:$0xff]   ;;  %v22993_v52 = vld [vmem:[#allocation7 + $0x4b8] ss:$72 sps:$4 sm:$0xff]  }
 0x775   : > { %16283 = vmatmul.mubr.bf16.vlgmr.msra.gmra.mrb[12].mxu1 %v24224_v35 }
 0x776   : > { %16627 = vmatmul.mubr.bf16.vlgmr.msra.gmra.mrb[12].mxu0 %v24224_v35  ;;  %16638 = vmatpush1.bf16.msra.mxu1 %v22945_v63  ;;  %v22996_v63 = vld [vmem:[#allocation7 + $0x4c0] ss:$72 sps:$4 sm:$0xff]  }
 0x777   : > { %16982 = vmatpush1.bf16.msra.mxu0 %v22948_v0  ;;  %16639 = vmatprep.subr.bf16.mxu1 %v22953_v10  ;;  %v23001_v0 = vld [vmem:[#allocation7 + $0x54c] ss:$72 sps:$4 sm:$0xff]  }
 0x778   : > { %16983 = vmatprep.subr.bf16.mxu0 %v22956_v11  ;;  %16669 = vmatprep.mubr.bf16.mxu1 %v24153_v1  ;;  %v23004_v10 = vld [vmem:[#allocation7 + $0x554] ss:$72 sps:$4 sm:$0xff]   ;;  %v22999_v11 = vld [vmem:[#allocation7 + $0x548] ss:$72 sps:$4 sm:$0xff]  }
 0x779   : > { %17013 = vmatprep.mubr.bf16.mxu0 %v24153_v1  ;;  %v22972_v1 = vld [vmem:[#allocation7 + $0x280] ss:$72 sps:$4 sm:$0xff]  }
 0x77a   : > { %16640 = vmatpush1.bf16.msra.mxu1 %v22951_v14  ;;  %v23002_v14 = vld [vmem:[#allocation7 + $0x550] ss:$72 sps:$4 sm:$0xff]  }
 0x77b   : > { %16984 = vmatpush1.bf16.msra.mxu0 %v22954_v15  ;;  %16641 = vmatprep.subr.bf16.mxu1 %v22959_v16  ;;  %v23007_v15 = vld [vmem:[#allocation7 + $0x5dc] ss:$72 sps:$4 sm:$0xff]  }
 0x77c   : > { %16985 = vmatprep.subr.bf16.mxu0 %v22962_v18  ;;  %v23010_v16 = vld [vmem:[#allocation7 + $0x5e4] ss:$72 sps:$4 sm:$0xff]   ;;  %v23005_v18 = vld [vmem:[#allocation7 + $0x5d8] ss:$72 sps:$4 sm:$0xff]  }
 0x77e   : > { %16642 = vmatpush1.bf16.msra.mxu1 %v22957_v22  ;;  %v23008_v22 = vld [vmem:[#allocation7 + $0x5e0] ss:$72 sps:$4 sm:$0xff]  }
 0x77f   : > { %16986 = vmatpush1.bf16.msra.mxu0 %v22960_v24  ;;  %16643 = vmatprep.subr.bf16.mxu1 %v22965_v25  ;;  %v23013_v24 = vld [vmem:[#allocation7 + $0x66c] ss:$72 sps:$4 sm:$0xff]  }
 0x780   : > { %16987 = vmatprep.subr.bf16.mxu0 %v22968_v27  ;;  %v23016_v25 = vld [vmem:[#allocation7 + $0x674] ss:$72 sps:$4 sm:$0xff]   ;;  %v23011_v27 = vld [vmem:[#allocation7 + $0x668] ss:$72 sps:$4 sm:$0xff]  }
 0x782   : > { %16644 = vmatpush1.bf16.msra.mxu1 %v22963_v29  ;;  %v23014_v29 = vld [vmem:[#allocation7 + $0x670] ss:$72 sps:$4 sm:$0xff]  }
 0x783   : > { %16988 = vmatpush1.bf16.msra.mxu0 %v22966_v34  ;;  %16645 = vmatprep.subr.bf16.mxu1 %v22971_v36  ;;  %v23019_v34 = vld [vmem:[#allocation7 + $0x6fc] ss:$72 sps:$4 sm:$0xff]  }
 0x784   : > { %16989 = vmatprep.subr.bf16.mxu0 %v22974_v37  ;;  %v23022_v36 = vld [vmem:[#allocation7 + $0x704] ss:$72 sps:$4 sm:$0xff]   ;;  %v23017_v37 = vld [vmem:[#allocation7 + $0x6f8] ss:$72 sps:$4 sm:$0xff]  }
 0x786   : > { %16646 = vmatpush1.bf16.msra.mxu1 %v22969_v38  ;;  %v23020_v38 = vld [vmem:[#allocation7 + $0x700] ss:$72 sps:$4 sm:$0xff]  }
 0x787   : > { %16990 = vmatpush1.bf16.msra.mxu0 %v22972_v1  ;;  %16647 = vmatprep.subr.bf16.mxu1 %v22977_v9  ;;  %v23025_v1 = vld [vmem:[#allocation7 + $0x78c] ss:$72 sps:$4 sm:$0xff]  }
 0x788   : > { %16991 = vmatprep.subr.bf16.mxu0 %v22980_v39  ;;  %v23028_v9 = vld [vmem:[#allocation7 + $0x794] ss:$72 sps:$4 sm:$0xff]   ;;  %v23023_v39 = vld [vmem:[#allocation7 + $0x788] ss:$72 sps:$4 sm:$0xff]  }
 0x78a   : > { %16648 = vmatpush1.bf16.msra.mxu1 %v22975_v40  ;;  %v23026_v40 = vld [vmem:[#allocation7 + $0x790] ss:$72 sps:$4 sm:$0xff]  }
 0x78b   : > { %16992 = vmatpush1.bf16.msra.mxu0 %v22978_v41  ;;  %16649 = vmatprep.subr.bf16.mxu1 %v22983_v43  ;;  %v23031_v41 = vld [vmem:[#allocation7 + $0x81c] ss:$72 sps:$4 sm:$0xff]  }
 0x78c   : > { %16993 = vmatprep.subr.bf16.mxu0 %v22986_v44  ;;  %v23034_v43 = vld [vmem:[#allocation7 + $0x824] ss:$72 sps:$4 sm:$0xff]   ;;  %v23029_v44 = vld [vmem:[#allocation7 + $0x818] ss:$72 sps:$4 sm:$0xff]  }
 0x78e   : > { %16650 = vmatpush1.bf16.msra.mxu1 %v22981_v45  ;;  %v23032_v45 = vld [vmem:[#allocation7 + $0x820] ss:$72 sps:$4 sm:$0xff]  }
 0x78f   : > { %16994 = vmatpush1.bf16.msra.mxu0 %v22984_v46  ;;  %16651 = vmatprep.subr.bf16.mxu1 %v22989_v47  ;;  %v23037_v46 = vld [vmem:[#allocation7 + $0x8ac] ss:$72 sps:$4 sm:$0xff]  }
 0x790   : > { %16995 = vmatprep.subr.bf16.mxu0 %v22992_v48  ;;  %v23040_v47 = vld [vmem:[#allocation7 + $0x8b4] ss:$72 sps:$4 sm:$0xff]   ;;  %v23035_v48 = vld [vmem:[#allocation7 + $0x8a8] ss:$72 sps:$4 sm:$0xff]  }
 0x792   : > { %16652 = vmatpush1.bf16.msra.mxu1 %v22987_v19  ;;  %v23038_v19 = vld [vmem:[#allocation7 + $0x8b0] ss:$72 sps:$4 sm:$0xff]  }
 0x793   : > { %16996 = vmatpush1.bf16.msra.mxu0 %v22990_v49  ;;  %16653 = vmatprep.subr.bf16.mxu1 %v22995_v50  ;;  %v23043_v49 = vld [vmem:[#allocation7 + $0x93c] ss:$72 sps:$4 sm:$0xff]  }
 0x794   : > { %16997 = vmatprep.subr.bf16.mxu0 %v22998_v51  ;;  %v23046_v50 = vld [vmem:[#allocation7 + $0x944] ss:$72 sps:$4 sm:$0xff]   ;;  %v23041_v51 = vld [vmem:[#allocation7 + $0x938] ss:$72 sps:$4 sm:$0xff]  }
 0x796   : > { %16654 = vmatpush1.bf16.msra.mxu1 %v22993_v52  ;;  %v23044_v52 = vld [vmem:[#allocation7 + $0x940] ss:$72 sps:$4 sm:$0xff]  }
 0x797   : > { %16998 = vmatpush1.bf16.msra.mxu0 %v22996_v63  ;;  %16655 = vmatprep.subr.bf16.mxu1 %v23001_v0  ;;  %v23049_v63 = vld [vmem:[#allocation7 + $0x9cc] ss:$72 sps:$4 sm:$0xff]  }
 0x798   : > { %16999 = vmatprep.subr.bf16.mxu0 %v23004_v10  ;;  %v23052_v0 = vld [vmem:[#allocation7 + $0x9d4] ss:$72 sps:$4 sm:$0xff]   ;;  %v23047_v10 = vld [vmem:[#allocation7 + $0x9c8] ss:$72 sps:$4 sm:$0xff]  }
 0x79a   : > { %16656 = vmatpush1.bf16.msra.mxu1 %v22999_v11  ;;  %v23050_v11 = vld [vmem:[#allocation7 + $0x9d0] ss:$72 sps:$4 sm:$0xff]  }
 0x79b   : > { %17000 = vmatpush1.bf16.msra.mxu0 %v23002_v14  ;;  %16657 = vmatprep.subr.bf16.mxu1 %v23007_v15  ;;  %v23055_v14 = vld [vmem:[#allocation7 + $0xa5c] ss:$72 sps:$4 sm:$0xff]  }
 0x79c   : > { %17001 = vmatprep.subr.bf16.mxu0 %v23010_v16  ;;  %v23058_v15 = vld [vmem:[#allocation7 + $0xa64] ss:$72 sps:$4 sm:$0xff]   ;;  %v23053_v16 = vld [vmem:[#allocation7 + $0xa58] ss:$72 sps:$4 sm:$0xff]  }
 0x79e   : > { %16658 = vmatpush1.bf16.msra.mxu1 %v23005_v18  ;;  %v23056_v18 = vld [vmem:[#allocation7 + $0xa60] ss:$72 sps:$4 sm:$0xff]  }
 0x79f   : > { %17002 = vmatpush1.bf16.msra.mxu0 %v23008_v22  ;;  %16659 = vmatprep.subr.bf16.mxu1 %v23013_v24  ;;  %v23061_v22 = vld [vmem:[#allocation7 + $0xaec] ss:$72 sps:$4 sm:$0xff]   ;;  %v23059_v24 = vld [vmem:[#allocation7 + $0xae8] ss:$72 sps:$4 sm:$0xff]  }
 0x7a0   : > { %17003 = vmatprep.subr.bf16.mxu0 %v23016_v25  ;;  %v23062_v25 = vld [vmem:[#allocation7 + $0xaf0] ss:$72 sps:$4 sm:$0xff]  }
 0x7a2   : > { %16660 = vmatpush1.bf16.msra.mxu1 %v23011_v27  ;;  %v23067_v27 = vld [vmem:[#allocation7 + $0xb7c] ss:$72 sps:$4 sm:$0xff]  }
 0x7a3   : > { %17004 = vmatpush1.bf16.msra.mxu0 %v23014_v29  ;;  %16661 = vmatprep.subr.bf16.mxu1 %v23019_v34  ;;  %v23070_v29 = vld [vmem:[#allocation7 + $0xb84] ss:$72 sps:$4 sm:$0xff]   ;;  %v23065_v34 = vld [vmem:[#allocation7 + $0xb78] ss:$72 sps:$4 sm:$0xff]  }
 0x7a4   : > { %17005 = vmatprep.subr.bf16.mxu0 %v23022_v36  ;;  %v23073_v36 = vld [vmem:[#allocation7 + $0xc0c] ss:$72 sps:$4 sm:$0xff]  }
 0x7a6   : > { %16662 = vmatpush1.bf16.msra.mxu1 %v23017_v37  ;;  %v23076_v37 = vld [vmem:[#allocation7 + $0xc14] ss:$72 sps:$4 sm:$0xff]  }
 0x7a7   : > { %17006 = vmatpush1.bf16.msra.mxu0 %v23020_v38  ;;  %16663 = vmatprep.subr.bf16.mxu1 %v23025_v1  ;;  %v23071_v38 = vld [vmem:[#allocation7 + $0xc08] ss:$72 sps:$4 sm:$0xff]  }
 0x7a8   : > { %17007 = vmatprep.subr.bf16.mxu0 %v23028_v9  ;;  %v23074_v1 = vld [vmem:[#allocation7 + $0xc10] ss:$72 sps:$4 sm:$0xff]   ;;  %v23079_v9 = vld [vmem:[#allocation7 + $0xc9c] ss:$72 sps:$4 sm:$0xff]  }
 0x7aa   : > { %16664 = vmatpush1.bf16.msra.mxu1 %v23023_v39  ;;  %v23082_v39 = vld [vmem:[#allocation7 + $0xca4] ss:$72 sps:$4 sm:$0xff]  }
 0x7ab   : > { %17008 = vmatpush1.bf16.msra.mxu0 %v23026_v40  ;;  %16665 = vmatprep.subr.bf16.mxu1 %v23031_v41  ;;  %v23077_v40 = vld [vmem:[#allocation7 + $0xc98] ss:$72 sps:$4 sm:$0xff]  }
 0x7ac   : > { %17009 = vmatprep.subr.bf16.mxu0 %v23034_v43  ;;  %v23080_v41 = vld [vmem:[#allocation7 + $0xca0] ss:$72 sps:$4 sm:$0xff]   ;;  %v23085_v43 = vld [vmem:[#allocation7 + $0xd2c] ss:$72 sps:$4 sm:$0xff]  }
 0x7ae   : > { %16666 = vmatpush1.bf16.msra.mxu1 %v23029_v44  ;;  %v23088_v44 = vld [vmem:[#allocation7 + $0xd34] ss:$72 sps:$4 sm:$0xff]  }
 0x7af   : > { %17010 = vmatpush1.bf16.msra.mxu0 %v23032_v45  ;;  %16667 = vmatprep.subr.bf16.mxu1 %v23037_v46  ;;  %v23083_v45 = vld [vmem:[#allocation7 + $0xd28] ss:$72 sps:$4 sm:$0xff]  }
 0x7b0   : > { %17011 = vmatprep.subr.bf16.mxu0 %v23040_v47  ;;  %v23086_v46 = vld [vmem:[#allocation7 + $0xd30] ss:$72 sps:$4 sm:$0xff]   ;;  %v23091_v47 = vld [vmem:[#allocation7 + $0xdbc] ss:$72 sps:$4 sm:$0xff]  }
 0x7b2   : > { %16668 = vmatpush1.bf16.msra.mxu1 %v23035_v48  ;;  %v23094_v48 = vld [vmem:[#allocation7 + $0xdc4] ss:$72 sps:$4 sm:$0xff]  }
 0x7b3   : > { %17012 = vmatpush1.bf16.msra.mxu0 %v23038_v19  ;;  %16680 = vmatprep.subr.bf16.mxu1 %v23043_v49  ;;  %v23089_v19 = vld [vmem:[#allocation7 + $0xdb8] ss:$72 sps:$4 sm:$0xff]  }
 0x7b4   : > { %17024 = vmatprep.subr.bf16.mxu0 %v23046_v50  ;;  %v23092_v49 = vld [vmem:[#allocation7 + $0xdc0] ss:$72 sps:$4 sm:$0xff]   ;;  %v23097_v50 = vld [vmem:[#allocation7 + $0xe4c] ss:$72 sps:$4 sm:$0xff]  }
 0x7b5   : > { %16670 = vmatmul.mubr.bf16.vlgmr.msra.gmra.mrb[16].mxu1 %v24162_v30 }
 0x7b6   : > { %17014 = vmatmul.mubr.bf16.vlgmr.msra.gmra.mrb[16].mxu0 %v24162_v30  ;;  %16681 = vmatpush1.bf16.msra.mxu1 %v23041_v51  ;;  %v23064_v30 = vld [vmem:[#allocation7 + $0xaf4] ss:$72 sps:$4 sm:$0xff]  }
 0x7b7   : > { %17025 = vmatpush1.bf16.msra.mxu0 %v23044_v52  ;;  %16682 = vmatprep.subr.bf16.mxu1 %v23049_v63  ;;  %v23100_v51 = vld [vmem:[#allocation7 + $0xe54] ss:$72 sps:$4 sm:$0xff]   ;;  %v23095_v52 = vld [vmem:[#allocation7 + $0xe48] ss:$72 sps:$4 sm:$0xff]  }
 0x7b8   : > { %17026 = vmatprep.subr.bf16.mxu0 %v23052_v0  ;;  %16712 = vmatprep.mubr.bf16.mxu1 %v24171_v13  ;;  %v23098_v63 = vld [vmem:[#allocation7 + $0xe50] ss:$72 sps:$4 sm:$0xff]   ;;  %v23103_v0 = vld [vmem:[#allocation7 + $0xedc] ss:$72 sps:$4 sm:$0xff]  }
 0x7b9   : > { %17056 = vmatprep.mubr.bf16.mxu0 %v24171_v13  ;;  %v23068_v13 = vld [vmem:[#allocation7 + $0xb80] ss:$72 sps:$4 sm:$0xff]  }
 0x7ba   : > { %16683 = vmatpush1.bf16.msra.mxu1 %v23047_v10  ;;  %v23106_v10 = vld [vmem:[#allocation7 + $0xee4] ss:$72 sps:$4 sm:$0xff]  }
 0x7bb   : > { %17027 = vmatpush1.bf16.msra.mxu0 %v23050_v11  ;;  %16684 = vmatprep.subr.bf16.mxu1 %v23055_v14  ;;  %v23101_v11 = vld [vmem:[#allocation7 + $0xed8] ss:$72 sps:$4 sm:$0xff]  }
 0x7bc   : > { %17028 = vmatprep.subr.bf16.mxu0 %v23058_v15  ;;  %v23104_v14 = vld [vmem:[#allocation7 + $0xee0] ss:$72 sps:$4 sm:$0xff]   ;;  %v23109_v15 = vld [vmem:[#allocation7 + $0xf6c] ss:$72 sps:$4 sm:$0xff]  }
 0x7be   : > { %16685 = vmatpush1.bf16.msra.mxu1 %v23053_v16  ;;  %v23112_v16 = vld [vmem:[#allocation7 + $0xf74] ss:$72 sps:$4 sm:$0xff]  }
 0x7bf   : > { %17029 = vmatpush1.bf16.msra.mxu0 %v23056_v18  ;;  %16686 = vmatprep.subr.bf16.mxu1 %v23061_v22  ;;  %v23107_v18 = vld [vmem:[#allocation7 + $0xf68] ss:$72 sps:$4 sm:$0xff]  }
 0x7c0   : > { %17030 = vmatprep.subr.bf16.mxu0 %v23064_v30  ;;  %v23110_v22 = vld [vmem:[#allocation7 + $0xf70] ss:$72 sps:$4 sm:$0xff]   ;;  %v23115_v30 = vld [vmem:[#allocation7 + $0xffc] ss:$72 sps:$4 sm:$0xff]  }
 0x7c2   : > { %16687 = vmatpush1.bf16.msra.mxu1 %v23059_v24  ;;  %v23118_v24 = vld [vmem:[#allocation7 + $0x1004] ss:$72 sps:$4 sm:$0xff]  }
 0x7c3   : > { %17031 = vmatpush1.bf16.msra.mxu0 %v23062_v25  ;;  %16688 = vmatprep.subr.bf16.mxu1 %v23067_v27  ;;  %v23113_v25 = vld [vmem:[#allocation7 + $0xff8] ss:$72 sps:$4 sm:$0xff]  }
 0x7c4   : > { %17032 = vmatprep.subr.bf16.mxu0 %v23070_v29  ;;  %v23116_v27 = vld [vmem:[#allocation7 + $0x1000] ss:$72 sps:$4 sm:$0xff]   ;;  %v23121_v29 = vld [vmem:[#allocation7 + $0x108c] ss:$72 sps:$4 sm:$0xff]  }
 0x7c6   : > { %16689 = vmatpush1.bf16.msra.mxu1 %v23065_v34  ;;  %v23124_v34 = vld [vmem:[#allocation7 + $0x1094] ss:$72 sps:$4 sm:$0xff]  }
 0x7c7   : > { %17033 = vmatpush1.bf16.msra.mxu0 %v23068_v13  ;;  %16690 = vmatprep.subr.bf16.mxu1 %v23073_v36  ;;  %v23119_v13 = vld [vmem:[#allocation7 + $0x1088] ss:$72 sps:$4 sm:$0xff]  }
 0x7c8   : > { %17034 = vmatprep.subr.bf16.mxu0 %v23076_v37  ;;  %v23122_v36 = vld [vmem:[#allocation7 + $0x1090] ss:$72 sps:$4 sm:$0xff]   ;;  %v23127_v37 = vld [vmem:[#allocation7 + $0x111c] ss:$72 sps:$4 sm:$0xff]  }
 0x7ca   : > { %16691 = vmatpush1.bf16.msra.mxu1 %v23071_v38  ;;  %v23130_v38 = vld [vmem:[#allocation7 + $0x1124] ss:$72 sps:$4 sm:$0xff]  }
 0x7cb   : > { %17035 = vmatpush1.bf16.msra.mxu0 %v23074_v1  ;;  %16692 = vmatprep.subr.bf16.mxu1 %v23079_v9  ;;  %v23125_v1 = vld [vmem:[#allocation7 + $0x1118] ss:$72 sps:$4 sm:$0xff]  }
 0x7cc   : > { %17036 = vmatprep.subr.bf16.mxu0 %v23082_v39  ;;  %v23128_v9 = vld [vmem:[#allocation7 + $0x1120] ss:$72 sps:$4 sm:$0xff]   ;;  %v23133_v39 = vld [vmem:[#allocation7 + $0x11ac] ss:$72 sps:$4 sm:$0xff]  }
 0x7ce   : > { %16693 = vmatpush1.bf16.msra.mxu1 %v23077_v40  ;;  %v23136_v40 = vld [vmem:[#allocation7 + $0x11b4] ss:$72 sps:$4 sm:$0xff]  }
 0x7cf   : > { %17037 = vmatpush1.bf16.msra.mxu0 %v23080_v41  ;;  %16694 = vmatprep.subr.bf16.mxu1 %v23085_v43  ;;  %v23131_v41 = vld [vmem:[#allocation7 + $0x11a8] ss:$72 sps:$4 sm:$0xff]  }
 0x7d0   : > { %17038 = vmatprep.subr.bf16.mxu0 %v23088_v44  ;;  %v23134_v43 = vld [vmem:[#allocation7 + $0x11b0] ss:$72 sps:$4 sm:$0xff]   ;;  %v23139_v44 = vld [vmem:[#allocation7 + $0x123c] ss:$72 sps:$4 sm:$0xff]  }
 0x7d2   : > { %16695 = vmatpush1.bf16.msra.mxu1 %v23083_v45  ;;  %v23142_v45 = vld [vmem:[#allocation7 + $0x1244] ss:$72 sps:$4 sm:$0xff]  }
 0x7d3   : > { %17039 = vmatpush1.bf16.msra.mxu0 %v23086_v46  ;;  %16696 = vmatprep.subr.bf16.mxu1 %v23091_v47  ;;  %v23137_v46 = vld [vmem:[#allocation7 + $0x1238] ss:$72 sps:$4 sm:$0xff]  }
 0x7d4   : > { %17040 = vmatprep.subr.bf16.mxu0 %v23094_v48  ;;  %v23140_v47 = vld [vmem:[#allocation7 + $0x1240] ss:$72 sps:$4 sm:$0xff]   ;;  %v23145_v48 = vld [vmem:[#allocation7 + $0x12cc] ss:$72 sps:$4 sm:$0xff]  }
 0x7d6   : > { %16697 = vmatpush1.bf16.msra.mxu1 %v23089_v19  ;;  %v23148_v19 = vld [vmem:[#allocation7 + $0x12d4] ss:$72 sps:$4 sm:$0xff]  }
 0x7d7   : > { %17041 = vmatpush1.bf16.msra.mxu0 %v23092_v49  ;;  %16698 = vmatprep.subr.bf16.mxu1 %v23097_v50  ;;  %v23143_v49 = vld [vmem:[#allocation7 + $0x12c8] ss:$72 sps:$4 sm:$0xff]  }
 0x7d8   : > { %17042 = vmatprep.subr.bf16.mxu0 %v23100_v51  ;;  %v23146_v50 = vld [vmem:[#allocation7 + $0x12d0] ss:$72 sps:$4 sm:$0xff]   ;;  %v23151_v51 = vld [vmem:[#allocation7 + $0x135c] ss:$72 sps:$4 sm:$0xff]  }
 0x7da   : > { %16699 = vmatpush1.bf16.msra.mxu1 %v23095_v52  ;;  %v23154_v52 = vld [vmem:[#allocation7 + $0x1364] ss:$72 sps:$4 sm:$0xff]  }
 0x7db   : > { %17043 = vmatpush1.bf16.msra.mxu0 %v23098_v63  ;;  %16700 = vmatprep.subr.bf16.mxu1 %v23103_v0  ;;  %v23149_v63 = vld [vmem:[#allocation7 + $0x1358] ss:$72 sps:$4 sm:$0xff]  }
 0x7dc   : > { %17044 = vmatprep.subr.bf16.mxu0 %v23106_v10  ;;  %v23152_v0 = vld [vmem:[#allocation7 + $0x1360] ss:$72 sps:$4 sm:$0xff]   ;;  %v23157_v10 = vld [vmem:[#allocation7 + $0x13ec] ss:$72 sps:$4 sm:$0xff]  }
 0x7de   : > { %16701 = vmatpush1.bf16.msra.mxu1 %v23101_v11  ;;  %v23155_v11 = vld [vmem:[#allocation7 + $0x13e8] ss:$72 sps:$4 sm:$0xff]  }
 0x7df   : > { %17045 = vmatpush1.bf16.msra.mxu0 %v23104_v14  ;;  %16702 = vmatprep.subr.bf16.mxu1 %v23109_v15  ;;  %v23158_v14 = vld [vmem:[#allocation7 + $0x13f0] ss:$72 sps:$4 sm:$0xff]   ;;  %v23163_v15 = vld [vmem:[#allocation7 + $0x147c] ss:$72 sps:$4 sm:$0xff]  }
 0x7e0   : > { %17046 = vmatprep.subr.bf16.mxu0 %v23112_v16  ;;  %v23166_v16 = vld [vmem:[#allocation7 + $0x1484] ss:$72 sps:$4 sm:$0xff]  }
 0x7e2   : > { %16703 = vmatpush1.bf16.msra.mxu1 %v23107_v18  ;;  %v23161_v18 = vld [vmem:[#allocation7 + $0x1478] ss:$72 sps:$4 sm:$0xff]  }
 0x7e3   : > { %17047 = vmatpush1.bf16.msra.mxu0 %v23110_v22  ;;  %16704 = vmatprep.subr.bf16.mxu1 %v23115_v30  ;;  %v23169_v22 = vld [vmem:[#allocation7 + $0x150c] ss:$72 sps:$4 sm:$0xff]  }
 0x7e4   : > { %17048 = vmatprep.subr.bf16.mxu0 %v23118_v24  ;;  %v23172_v30 = vld [vmem:[#allocation7 + $0x1514] ss:$72 sps:$4 sm:$0xff]   ;;  %v23167_v24 = vld [vmem:[#allocation7 + $0x1508] ss:$72 sps:$4 sm:$0xff]  }
 0x7e6   : > { %16705 = vmatpush1.bf16.msra.mxu1 %v23113_v25  ;;  %v23170_v25 = vld [vmem:[#allocation7 + $0x1510] ss:$72 sps:$4 sm:$0xff]  }
 0x7e7   : > { %17049 = vmatpush1.bf16.msra.mxu0 %v23116_v27  ;;  %16706 = vmatprep.subr.bf16.mxu1 %v23121_v29  ;;  %v23175_v27 = vld [vmem:[#allocation7 + $0x159c] ss:$72 sps:$4 sm:$0xff]  }
 0x7e8   : > { %17050 = vmatprep.subr.bf16.mxu0 %v23124_v34  ;;  %v23178_v29 = vld [vmem:[#allocation7 + $0x15a4] ss:$72 sps:$4 sm:$0xff]   ;;  %v23173_v34 = vld [vmem:[#allocation7 + $0x1598] ss:$72 sps:$4 sm:$0xff]  }
 0x7ea   : > { %16707 = vmatpush1.bf16.msra.mxu1 %v23119_v13  ;;  %v23176_v13 = vld [vmem:[#allocation7 + $0x15a0] ss:$72 sps:$4 sm:$0xff]  }
 0x7eb   : > { %17051 = vmatpush1.bf16.msra.mxu0 %v23122_v36  ;;  %16708 = vmatprep.subr.bf16.mxu1 %v23127_v37  ;;  %v23181_v36 = vld [vmem:[#allocation7 + $0x162c] ss:$72 sps:$4 sm:$0xff]  }
 0x7ec   : > { %17052 = vmatprep.subr.bf16.mxu0 %v23130_v38  ;;  %v23184_v37 = vld [vmem:[#allocation7 + $0x1634] ss:$72 sps:$4 sm:$0xff]   ;;  %v23179_v38 = vld [vmem:[#allocation7 + $0x1628] ss:$72 sps:$4 sm:$0xff]  }
 0x7ee   : > { %16709 = vmatpush1.bf16.msra.mxu1 %v23125_v1  ;;  %v23182_v1 = vld [vmem:[#allocation7 + $0x1630] ss:$72 sps:$4 sm:$0xff]  }
 0x7ef   : > { %17053 = vmatpush1.bf16.msra.mxu0 %v23128_v9  ;;  %16710 = vmatprep.subr.bf16.mxu1 %v23133_v39  ;;  %v23187_v9 = vld [vmem:[#allocation7 + $0x16bc] ss:$72 sps:$4 sm:$0xff]  }
 0x7f0   : > { %17054 = vmatprep.subr.bf16.mxu0 %v23136_v40  ;;  %v23190_v39 = vld [vmem:[#allocation7 + $0x16c4] ss:$72 sps:$4 sm:$0xff]   ;;  %v23185_v40 = vld [vmem:[#allocation7 + $0x16b8] ss:$72 sps:$4 sm:$0xff]  }
 0x7f2   : > { %16711 = vmatpush1.bf16.msra.mxu1 %v23131_v41  ;;  %v23188_v41 = vld [vmem:[#allocation7 + $0x16c0] ss:$72 sps:$4 sm:$0xff]  }
 0x7f3   : > { %17055 = vmatpush1.bf16.msra.mxu0 %v23134_v43  ;;  %16723 = vmatprep.subr.bf16.mxu1 %v23139_v44  ;;  %v23193_v43 = vld [vmem:[#allocation7 + $0x174c] ss:$72 sps:$4 sm:$0xff]  }
 0x7f4   : > { %17067 = vmatprep.subr.bf16.mxu0 %v23142_v45  ;;  %v23196_v44 = vld [vmem:[#allocation7 + $0x1754] ss:$72 sps:$4 sm:$0xff]   ;;  %v23191_v45 = vld [vmem:[#allocation7 + $0x1748] ss:$72 sps:$4 sm:$0xff]  }
 0x7f5   : > { %16713 = vmatmul.mubr.bf16.vlgmr.msra.gmra.mrb[16].mxu1 %v24180_v3 }
 0x7f6   : > { %17057 = vmatmul.mubr.bf16.vlgmr.msra.gmra.mrb[16].mxu0 %v24180_v3  ;;  %16724 = vmatpush1.bf16.msra.mxu1 %v23137_v46  ;;  %v23160_v3 = vld [vmem:[#allocation7 + $0x13f4] ss:$72 sps:$4 sm:$0xff]   ;;  %v23194_v46 = vld [vmem:[#allocation7 + $0x1750] ss:$72 sps:$4 sm:$0xff]  }
 0x7f7   : > { %17068 = vmatpush1.bf16.msra.mxu0 %v23140_v47  ;;  %16725 = vmatprep.subr.bf16.mxu1 %v23145_v48  ;;  %v23199_v47 = vld [vmem:[#allocation7 + $0x17dc] ss:$72 sps:$4 sm:$0xff]  }
 0x7f8   : > { %17069 = vmatprep.subr.bf16.mxu0 %v23148_v19  ;;  %16755 = vmatprep.mubr.bf16.mxu1 %v24189_v28  ;;  %v23202_v48 = vld [vmem:[#allocation7 + $0x17e4] ss:$72 sps:$4 sm:$0xff]   ;;  %v23197_v19 = vld [vmem:[#allocation7 + $0x17d8] ss:$72 sps:$4 sm:$0xff]  }
 0x7f9   : > { %17099 = vmatprep.mubr.bf16.mxu0 %v24189_v28  ;;  %v23164_v28 = vld [vmem:[#allocation7 + $0x1480] ss:$72 sps:$4 sm:$0xff]  }
 0x7fa   : > { %16726 = vmatpush1.bf16.msra.mxu1 %v23143_v49  ;;  %v23200_v49 = vld [vmem:[#allocation7 + $0x17e0] ss:$72 sps:$4 sm:$0xff]  }
 0x7fb   : > { %17070 = vmatpush1.bf16.msra.mxu0 %v23146_v50  ;;  %16727 = vmatprep.subr.bf16.mxu1 %v23151_v51  ;;  %v23205_v50 = vld [vmem:[#allocation7 + $0x186c] ss:$72 sps:$4 sm:$0xff]  }
 0x7fc   : > { %17071 = vmatprep.subr.bf16.mxu0 %v23154_v52  ;;  %v23208_v51 = vld [vmem:[#allocation7 + $0x1874] ss:$72 sps:$4 sm:$0xff]   ;;  %v23203_v52 = vld [vmem:[#allocation7 + $0x1868] ss:$72 sps:$4 sm:$0xff]  }
 0x7fe   : > { %16728 = vmatpush1.bf16.msra.mxu1 %v23149_v63  ;;  %v23206_v63 = vld [vmem:[#allocation7 + $0x1870] ss:$72 sps:$4 sm:$0xff]  }
 0x7ff   : > { %17072 = vmatpush1.bf16.msra.mxu0 %v23152_v0  ;;  %16729 = vmatprep.subr.bf16.mxu1 %v23157_v10  ;;  %v23211_v0 = vld [vmem:[#allocation7 + $0x18fc] ss:$72 sps:$4 sm:$0xff]  }
 0x800   : > { %17073 = vmatprep.subr.bf16.mxu0 %v23160_v3  ;;  %v23214_v10 = vld [vmem:[#allocation7 + $0x1904] ss:$72 sps:$4 sm:$0xff]   ;;  %v23209_v3 = vld [vmem:[#allocation7 + $0x18f8] ss:$72 sps:$4 sm:$0xff]  }
 0x802   : > { %16730 = vmatpush1.bf16.msra.mxu1 %v23155_v11  ;;  %v23212_v11 = vld [vmem:[#allocation7 + $0x1900] ss:$72 sps:$4 sm:$0xff]  }
 0x803   : > { %17074 = vmatpush1.bf16.msra.mxu0 %v23158_v14  ;;  %16731 = vmatprep.subr.bf16.mxu1 %v23163_v15  ;;  %v23217_v14 = vld [vmem:[#allocation7 + $0x198c] ss:$72 sps:$4 sm:$0xff]  }
 0x804   : > { %17075 = vmatprep.subr.bf16.mxu0 %v23166_v16  ;;  %v23220_v15 = vld [vmem:[#allocation7 + $0x1994] ss:$72 sps:$4 sm:$0xff]   ;;  %v23215_v16 = vld [vmem:[#allocation7 + $0x1988] ss:$72 sps:$4 sm:$0xff]  }
 0x806   : > { %16732 = vmatpush1.bf16.msra.mxu1 %v23161_v18  ;;  %v23218_v18 = vld [vmem:[#allocation7 + $0x1990] ss:$72 sps:$4 sm:$0xff]  }
 0x807   : > { %17076 = vmatpush1.bf16.msra.mxu0 %v23164_v28  ;;  %16733 = vmatprep.subr.bf16.mxu1 %v23169_v22  ;;  %v23223_v28 = vld [vmem:[#allocation7 + $0x1a1c] ss:$72 sps:$4 sm:$0xff]  }
 0x808   : > { %17077 = vmatprep.subr.bf16.mxu0 %v23172_v30  ;;  %v23226_v22 = vld [vmem:[#allocation7 + $0x1a24] ss:$72 sps:$4 sm:$0xff]   ;;  %v23221_v30 = vld [vmem:[#allocation7 + $0x1a18] ss:$72 sps:$4 sm:$0xff]  }
 0x80a   : > { %16734 = vmatpush1.bf16.msra.mxu1 %v23167_v24  ;;  %v23224_v24 = vld [vmem:[#allocation7 + $0x1a20] ss:$72 sps:$4 sm:$0xff]  }
 0x80b   : > { %17078 = vmatpush1.bf16.msra.mxu0 %v23170_v25  ;;  %16735 = vmatprep.subr.bf16.mxu1 %v23175_v27  ;;  %v23229_v25 = vld [vmem:[#allocation7 + $0x1aac] ss:$72 sps:$4 sm:$0xff]  }
 0x80c   : > { %17079 = vmatprep.subr.bf16.mxu0 %v23178_v29  ;;  %v23232_v27 = vld [vmem:[#allocation7 + $0x1ab4] ss:$72 sps:$4 sm:$0xff]   ;;  %v23227_v29 = vld [vmem:[#allocation7 + $0x1aa8] ss:$72 sps:$4 sm:$0xff]  }
 0x80e   : > { %16736 = vmatpush1.bf16.msra.mxu1 %v23173_v34  ;;  %v23230_v34 = vld [vmem:[#allocation7 + $0x1ab0] ss:$72 sps:$4 sm:$0xff]  }
 0x80f   : > { %17080 = vmatpush1.bf16.msra.mxu0 %v23176_v13  ;;  %16737 = vmatprep.subr.bf16.mxu1 %v23181_v36  ;;  %v23235_v13 = vld [vmem:[#allocation7 + $0x1b3c] ss:$72 sps:$4 sm:$0xff]  }
 0x810   : > { %17081 = vmatprep.subr.bf16.mxu0 %v23184_v37  ;;  %v23238_v36 = vld [vmem:[#allocation7 + $0x1b44] ss:$72 sps:$4 sm:$0xff]   ;;  %v23233_v37 = vld [vmem:[#allocation7 + $0x1b38] ss:$72 sps:$4 sm:$0xff]  }
 0x812   : > { %16738 = vmatpush1.bf16.msra.mxu1 %v23179_v38  ;;  %v23236_v38 = vld [vmem:[#allocation7 + $0x1b40] ss:$72 sps:$4 sm:$0xff]  }
 0x813   : > { %17082 = vmatpush1.bf16.msra.mxu0 %v23182_v1  ;;  %16739 = vmatprep.subr.bf16.mxu1 %v23187_v9  ;;  %v23241_v1 = vld [vmem:[#allocation7 + $0x1bcc] ss:$72 sps:$4 sm:$0xff]  }
 0x814   : > { %17083 = vmatprep.subr.bf16.mxu0 %v23190_v39  ;;  %v23244_v9 = vld [vmem:[#allocation7 + $0x1bd4] ss:$72 sps:$4 sm:$0xff]   ;;  %v23239_v39 = vld [vmem:[#allocation7 + $0x1bc8] ss:$72 sps:$4 sm:$0xff]  }
 0x816   : > { %16740 = vmatpush1.bf16.msra.mxu1 %v23185_v40  ;;  %v23242_v40 = vld [vmem:[#allocation7 + $0x1bd0] ss:$72 sps:$4 sm:$0xff]  }
 0x817   : > { %17084 = vmatpush1.bf16.msra.mxu0 %v23188_v41  ;;  %16741 = vmatprep.subr.bf16.mxu1 %v23193_v43  ;;  %v23247_v41 = vld [vmem:[#allocation7 + $0x1c5c] ss:$72 sps:$4 sm:$0xff]  }
 0x818   : > { %17085 = vmatprep.subr.bf16.mxu0 %v23196_v44  ;;  %v23250_v43 = vld [vmem:[#allocation7 + $0x1c64] ss:$72 sps:$4 sm:$0xff]   ;;  %v23245_v44 = vld [vmem:[#allocation7 + $0x1c58] ss:$72 sps:$4 sm:$0xff]  }
 0x81a   : > { %16742 = vmatpush1.bf16.msra.mxu1 %v23191_v45  ;;  %v23248_v45 = vld [vmem:[#allocation7 + $0x1c60] ss:$72 sps:$4 sm:$0xff]  }
 0x81b   : > { %17086 = vmatpush1.bf16.msra.mxu0 %v23194_v46  ;;  %16743 = vmatprep.subr.bf16.mxu1 %v23199_v47  ;;  %v23253_v46 = vld [vmem:[#allocation7 + $0x1cec] ss:$72 sps:$4 sm:$0xff]   ;;  %v23251_v47 = vld [vmem:[#allocation7 + $0x1ce8] ss:$72 sps:$4 sm:$0xff]  }
 0x81c   : > { %17087 = vmatprep.subr.bf16.mxu0 %v23202_v48  ;;  %v23254_v48 = vld [vmem:[#allocation7 + $0x1cf0] ss:$72 sps:$4 sm:$0xff]  }
 0x81e   : > { %16744 = vmatpush1.bf16.msra.mxu1 %v23197_v19  ;;  %v23259_v19 = vld [vmem:[#allocation7 + $0x1d7c] ss:$72 sps:$4 sm:$0xff]  }
 0x81f   : > { %17088 = vmatpush1.bf16.msra.mxu0 %v23200_v49  ;;  %16745 = vmatprep.subr.bf16.mxu1 %v23205_v50  ;;  %v23262_v49 = vld [vmem:[#allocation7 + $0x1d84] ss:$72 sps:$4 sm:$0xff]   ;;  %v23257_v50 = vld [vmem:[#allocation7 + $0x1d78] ss:$72 sps:$4 sm:$0xff]  }
 0x820   : > { %17089 = vmatprep.subr.bf16.mxu0 %v23208_v51  ;;  %v23265_v51 = vld [vmem:[#allocation7 + $0x1e0c] ss:$72 sps:$4 sm:$0xff]  }
 0x822   : > { %16746 = vmatpush1.bf16.msra.mxu1 %v23203_v52  ;;  %v23268_v52 = vld [vmem:[#allocation7 + $0x1e14] ss:$72 sps:$4 sm:$0xff]  }
 0x823   : > { %17090 = vmatpush1.bf16.msra.mxu0 %v23206_v63  ;;  %16747 = vmatprep.subr.bf16.mxu1 %v23211_v0  ;;  %v23263_v63 = vld [vmem:[#allocation7 + $0x1e08] ss:$72 sps:$4 sm:$0xff]  }
 0x824   : > { %17091 = vmatprep.subr.bf16.mxu0 %v23214_v10  ;;  %v23266_v0 = vld [vmem:[#allocation7 + $0x1e10] ss:$72 sps:$4 sm:$0xff]   ;;  %v17326_v10 = vmul.f32 %v24244_v12, %v24244_v12  ;;  %v17336_v12 = vmul.f32 %v24290_v61, %v24290_v61 }
 0x826   : > { %16748 = vmatpush1.bf16.msra.mxu1 %v23209_v3  ;;  %v23271_v3 = vld [vmem:[#allocation7 + $0x1e9c] ss:$72 sps:$4 sm:$0xff]  }
 0x827   : > { %17092 = vmatpush1.bf16.msra.mxu0 %v23212_v11  ;;  %16749 = vmatprep.subr.bf16.mxu1 %v23217_v14  ;;  %v17335_v11 = vmul.f32 %v24248_v23, %v24248_v23  ;;  %v17327_v14 = vmul.f32 %v24282_v54, %v24282_v54  ;;  %v17337_v54 = vmul.f32 %v24294_v7, %v24294_v7 }
 0x828   : > { %17093 = vmatprep.subr.bf16.mxu0 %v23220_v15  ;;  %v17329_v15 = vmul.f32 %v24284_v55, %v24284_v55 }
 0x82a   : > { %16750 = vmatpush1.bf16.msra.mxu1 %v23215_v16  ;;  %v17328_v16 = vmul.f32 %v24286_v56, %v24286_v56 }
 0x82b   : > { %17094 = vmatpush1.bf16.msra.mxu0 %v23218_v18  ;;  %16751 = vmatprep.subr.bf16.mxu1 %v23223_v28 }
 0x82c   : > { %17095 = vmatprep.subr.bf16.mxu0 %v23226_v22  ;;  %v23274_v22 = vld [vmem:[#allocation7 + $0x1ea4] ss:$72 sps:$4 sm:$0xff]  }
 0x82e   : > { %16752 = vmatpush1.bf16.msra.mxu1 %v23221_v30  ;;  %v17338_v30 = vmul.f32 %v24292_v62, %v24292_v62 }
 0x82f   : > { %17096 = vmatpush1.bf16.msra.mxu0 %v23224_v24  ;;  %16753 = vmatprep.subr.bf16.mxu1 %v23229_v25 }
 0x830   : > { %17097 = vmatprep.subr.bf16.mxu0 %v23232_v27 }
 0x832   : > { %16754 = vmatpush1.bf16.msra.mxu1 %v23227_v29 }
 0x833   : > { %17098 = vmatpush1.bf16.msra.mxu0 %v23230_v34  ;;  %16766 = vmatprep.subr.bf16.mxu1 %v23235_v13  ;;  %v23269_v13 = vld [vmem:[#allocation7 + $0x1e98] ss:$72 sps:$4 sm:$0xff]  }
 0x834   : > { %17110 = vmatprep.subr.bf16.mxu0 %v23238_v36  ;;  %v23272_v36 = vld [vmem:[#allocation7 + $0x1ea0] ss:$72 sps:$4 sm:$0xff]  }
 0x835   : > { %16756 = vmatmul.mubr.bf16.vlgmr.msra.gmra.mrb[16].mxu1 %v24207_v58 }
 0x836   : > { %17100 = vmatmul.mubr.bf16.vlgmr.msra.gmra.mrb[16].mxu0 %v24207_v58  ;;  %16767 = vmatpush1.bf16.msra.mxu1 %v23233_v37  ;;  %v23256_v58 = vld [vmem:[#allocation7 + $0x1cf4] ss:$72 sps:$4 sm:$0xff]  }
 0x837   : > { %17111 = vmatpush1.bf16.msra.mxu0 %v23236_v38  ;;  %16768 = vmatprep.subr.bf16.mxu1 %v23241_v1 }
 0x838   : > { %17112 = vmatprep.subr.bf16.mxu0 %v23244_v9  ;;  %16798 = vmatprep.mubr.bf16.mxu1 %v24211_v2 }
 0x839   : > { %17142 = vmatprep.mubr.bf16.mxu0 %v24211_v2  ;;  %v23260_v2 = vld [vmem:[#allocation7 + $0x1d80] ss:$72 sps:$4 sm:$0xff]  }
 0x83a   : > { %16769 = vmatpush1.bf16.msra.mxu1 %v23239_v39  ;;  %v23277_v39 = vld [vmem:[#allocation7 + $0x1f2c] ss:$72 sps:$4 sm:$0xff]  }
 0x83b   : > { %17113 = vmatpush1.bf16.msra.mxu0 %v23242_v40  ;;  %16770 = vmatprep.subr.bf16.mxu1 %v23247_v41  ;;  %v23280_v40 = vld [vmem:[#allocation7 + $0x1f34] ss:$72 sps:$4 sm:$0xff]  }
 0x83c   : > { %17114 = vmatprep.subr.bf16.mxu0 %v23250_v43 }
 0x83e   : > { %16771 = vmatpush1.bf16.msra.mxu1 %v23245_v44 }
 0x83f   : > { %17115 = vmatpush1.bf16.msra.mxu0 %v23248_v45  ;;  %16772 = vmatprep.subr.bf16.mxu1 %v23253_v46 }
 0x840   : > { %17116 = vmatprep.subr.bf16.mxu0 %v23256_v58 }
 0x842   : > { %16773 = vmatpush1.bf16.msra.mxu1 %v23251_v47 }
 0x843   : > { %17117 = vmatpush1.bf16.msra.mxu0 %v23254_v48  ;;  %16774 = vmatprep.subr.bf16.mxu1 %v23259_v19  ;;  %v23275_v48 = vld [vmem:[#allocation7 + $0x1f28] ss:$72 sps:$4 sm:$0xff]  }
 0x844   : > { %17118 = vmatprep.subr.bf16.mxu0 %v23262_v49 }
 0x846   : > { %16775 = vmatpush1.bf16.msra.mxu1 %v23257_v50 }
 0x847   : > { %17119 = vmatpush1.bf16.msra.mxu0 %v23260_v2  ;;  %16776 = vmatprep.subr.bf16.mxu1 %v23265_v51  ;;  %v23278_v51 = vld [vmem:[#allocation7 + $0x1f30] ss:$72 sps:$4 sm:$0xff]  }
 0x848   : > { %17120 = vmatprep.subr.bf16.mxu0 %v23268_v52  ;;  %v16284_v18 = vpop.f32.mrb[12].mxu1 }
 0x849   : > { %v16628_v28 = vpop.f32.mrb[12].mxu0  ;;  %v17344_v24 = vmul.f32 %v16284_v18, %v16284_v18  ;;  %v16286_v25 = vpop.f32.mrb[13].mxu1  ;;  %v23292_v18 = vld [vmem:[#allocation7 + $0x2054] ss:$72 sps:$4 sm:$0xff]  }
 0x84a   : > { %v17346_v23 = vmul.f32 %v16628_v28, %v16628_v28  ;;  %v16630_v27 = vpop.f32.mrb[13].mxu0  ;;  %v17345_v55 = vmul.f32 %v16286_v25, %v16286_v25  ;;  %v16288_v34 = vpop.f32.mrb[14].mxu1  ;;  %16777 = vmatpush1.bf16.msra.mxu1 %v23263_v63  ;;  %v23283_v63 = vld [vmem:[#allocation7 + $0x1fbc] ss:$72 sps:$4 sm:$0xff]   ;;  %v23287_v28 = vld [vmem:[#allocation7 + $0x2048] ss:$72 sps:$4 sm:$0xff]  }
 0x84b   : > { %v17347_v29 = vmul.f32 %v16630_v27, %v16630_v27  ;;  %v16632_v56 = vpop.f32.mrb[14].mxu0  ;;  %17121 = vmatpush1.bf16.msra.mxu0 %v23266_v0  ;;  %v17362_v37 = vadd.f32 %v17344_v24, %v17326_v10  ;;  %v17353_v38 = vmul.f32 %v16288_v34, %v16288_v34  ;;  %v16290_v62 = vpop.f32.mrb[15].mxu1  ;;  %16778 = vmatprep.subr.bf16.mxu1 %v23271_v3  ;;  %v23286_v0 = vld [vmem:[#allocation7 + $0x1fc4] ss:$72 sps:$4 sm:$0xff]   ;;  %v23293_v27 = vld [vmem:[#allocation7 + $0x20d8] ss:$72 sps:$4 sm:$0xff]  }
 0x84c   : > { %v17364_v61 = vadd.f32 %v17346_v23, %v17328_v16  ;;  %v17355_v1 = vmul.f32 %v16632_v56, %v16632_v56  ;;  %v16634_v9 = vpop.f32.mrb[15].mxu0  ;;  %v17363_v41 = vadd.f32 %v17345_v55, %v17327_v14  ;;  %v17354_v7 = vmul.f32 %v16290_v62, %v16290_v62  ;;  %17122 = vmatprep.subr.bf16.mxu0 %v23274_v22  ;;  %v23281_v14 = vld [vmem:[#allocation7 + $0x1fb8] ss:$72 sps:$4 sm:$0xff]   ;;  %v23289_v16 = vld [vmem:[#allocation7 + $0x204c] ss:$72 sps:$4 sm:$0xff]  }
 0x84d   : > { %v17365_v43 = vadd.f32 %v17347_v29, %v17329_v15  ;;  %v17356_v44 = vmul.f32 %v16634_v9, %v16634_v9  ;;  %v17380_v45 = vmax.f32 %v17362_v37, 1e-20  ;;  %v17371_v58 = vadd.f32 %v17353_v38, %v17335_v11  ;;  %v23284_v15 = vld [vmem:[#allocation7 + $0x1fc0] ss:$72 sps:$4 sm:$0xff]   ;;  %v23290_v22 = vld [vmem:[#allocation7 + $0x2050] ss:$72 sps:$4 sm:$0xff]  }
 0x84e   : > { %v17382_v46 = vmax.f32 %v17364_v61, 1e-20  ;;  %v17373_v47 = vadd.f32 %v17355_v1, %v17337_v54  ;;  %v17381_v19 = vmax.f32 %v17363_v41, 1e-20  ;;  %v17372_v50 = vadd.f32 %v17354_v7, %v17336_v12  ;;  %16779 = vmatpush1.bf16.msra.mxu1 %v23269_v13  ;;  %v23295_v12 = vld [vmem:[#allocation7 + $0x20dc] ss:$72 sps:$4 sm:$0xff]  }
 0x84f   : > { %v17383_v49 = vmax.f32 %v17365_v43, 1e-20  ;;  %v17374_v2 = vadd.f32 %v17356_v44, %v17338_v30  ;;  %17123 = vmatpush1.bf16.msra.mxu0 %v23272_v36  ;;  %23717 = vlog2.f32 %v17380_v45  ;;  %v17389_v52 = vmax.f32 %v17371_v58, 1e-20  ;;  %16780 = vmatprep.subr.bf16.mxu1 %v23277_v39  ;;  %v23298_v30 = vld [vmem:[#allocation7 + $0x20e4] ss:$72 sps:$4 sm:$0xff]  }
 0x850   : > { %17124 = vmatprep.subr.bf16.mxu0 %v23280_v40  ;;  %23719 = vlog2.f32 %v17382_v46  ;;  %v17391_v10 = vmax.f32 %v17373_v47, 1e-20  ;;  %v17390_v3 = vmax.f32 %v17372_v50, 1e-20  ;;  %v23296_v54 = vld [vmem:[#allocation7 + $0x20e0] ss:$72 sps:$4 sm:$0xff]  }
 0x851   : > { %23721 = vlog2.f32 %v17381_v19  ;;  %v17392_v11 = vmax.f32 %v17374_v2, 1e-20  ;;  %v23301_v34 = vld [vmem:[#allocation7 + $0x216c] ss:$72 sps:$4 sm:$0xff]   ;;  %v23299_v61 = vld [vmem:[#allocation7 + $0x2168] ss:$72 sps:$4 sm:$0xff]  }
 0x852   : > { %23723 = vlog2.f32 %v17383_v49  ;;  %16781 = vmatpush1.bf16.msra.mxu1 %v23275_v48  ;;  %v23304_v56 = vld [vmem:[#allocation7 + $0x2174] ss:$72 sps:$4 sm:$0xff]   ;;  %v23302_v9 = vld [vmem:[#allocation7 + $0x2170] ss:$72 sps:$4 sm:$0xff]   ;;  %v23310_v46 = vld [vmem:[#allocation7 + $0x2204] ss:$72 sps:$4 sm:$0xff]  }
 0x853   : > { %17125 = vmatpush1.bf16.msra.mxu0 %v23278_v51  ;;  %23725 = vlog2.f32 %v17389_v52  ;;  %16782 = vmatprep.subr.bf16.mxu1 %v23283_v63  ;;  %v23307_v43 = vld [vmem:[#allocation7 + $0x21fc] ss:$72 sps:$4 sm:$0xff]   ;;  %v23305_v2 = vld [vmem:[#allocation7 + $0x21f8] ss:$72 sps:$4 sm:$0xff]   ;;  %v23313_v63 = vld [vmem:[#allocation7 + $0x228c] ss:$72 sps:$4 sm:$0xff]  }
 0x854   : > { %17126 = vmatprep.subr.bf16.mxu0 %v23286_v0  ;;  %23727 = vlog2.f32 %v17391_v10  ;;  %v23308_v51 = vld [vmem:[#allocation7 + $0x2200] ss:$72 sps:$4 sm:$0xff]   ;;  %v23316_v0 = vld [vmem:[#allocation7 + $0x2294] ss:$72 sps:$4 sm:$0xff]  }
 0x855   : > { %23729 = vlog2.f32 %v17390_v3  ;;  %v23311_v10 = vld [vmem:[#allocation7 + $0x2288] ss:$72 sps:$4 sm:$0xff]  }
 0x856   : > { %23731 = vlog2.f32 %v17392_v11  ;;  %16783 = vmatpush1.bf16.msra.mxu1 %v23281_v14  ;;  %v23314_v3 = vld [vmem:[#allocation7 + $0x2290] ss:$72 sps:$4 sm:$0xff]   ;;  %v23319_v11 = vld [vmem:[#allocation7 + $0x231c] ss:$72 sps:$4 sm:$0xff]  }
 0x857   : > { %17127 = vmatpush1.bf16.msra.mxu0 %v23284_v15  ;;  %16784 = vmatprep.subr.bf16.mxu1 %v23289_v16  ;;  %v23322_v14 = vld [vmem:[#allocation7 + $0x2324] ss:$72 sps:$4 sm:$0xff]   ;;  %v23317_v15 = vld [vmem:[#allocation7 + $0x2318] ss:$72 sps:$4 sm:$0xff]  }
 0x858   : > { %17128 = vmatprep.subr.bf16.mxu0 %v23292_v18  ;;  %v23320_v16 = vld [vmem:[#allocation7 + $0x2320] ss:$72 sps:$4 sm:$0xff]   ;;  %v23325_v18 = vld [vmem:[#allocation7 + $0x23ac] ss:$72 sps:$4 sm:$0xff]  }
 0x859   : > { %v23718_v24 = vpop.eup %23717 }
 0x85a   : > { %v23720_v23 = vpop.eup %23719  ;;  %v17400_v25 = vmul.f32 0.6931472, %v23718_v24  ;;  %16785 = vmatpush1.bf16.msra.mxu1 %v23287_v28  ;;  %v23328_v28 = vld [vmem:[#allocation7 + $0x23b4] ss:$72 sps:$4 sm:$0xff]   ;;  %v23334_v24 = vld [vmem:[#allocation7 + $0x2444] ss:$72 sps:$4 sm:$0xff]  }
 0x85b   : > { %17129 = vmatpush1.bf16.msra.mxu0 %v23290_v22  ;;  %v23722_v55 = vpop.eup %23721  ;;  %v17404_v29 = vmul.f32 0.6931472, %v23720_v23  ;;  %16786 = vmatprep.subr.bf16.mxu1 %v23295_v12  ;;  %v23323_v22 = vld [vmem:[#allocation7 + $0x23a8] ss:$72 sps:$4 sm:$0xff]   ;;  %v23329_v23 = vld [vmem:[#allocation7 + $0x2438] ss:$72 sps:$4 sm:$0xff]  }
 0x85c   : > { %17130 = vmatprep.subr.bf16.mxu0 %v23298_v30  ;;  %v23724_v13 = vpop.eup %23723  ;;  %v17434_v36 = vmul.f32 2.1714723, %v17400_v25  ;;  %v17402_v37 = vmul.f32 0.6931472, %v23722_v55  ;;  %v23326_v12 = vld [vmem:[#allocation7 + $0x23b0] ss:$72 sps:$4 sm:$0xff]  }
 0x85d   : > { %v23726_v38 = vpop.eup %23725  ;;  %v17436_v1 = vmul.f32 2.1714723, %v17404_v29  ;;  %v17406_v62 = vmul.f32 0.6931472, %v23724_v13  ;;  %v23331_v30 = vld [vmem:[#allocation7 + $0x243c] ss:$72 sps:$4 sm:$0xff]  }
 0x85e   : > { %v23728_v39 = vpop.eup %23727  ;;  %17452 = vst [vmem:[%s24347_s20 + $0x8] sm:$0xff] %v17434_v36  ;;  %v17435_v40 = vmul.f32 2.1714723, %v17402_v37  ;;  %v17418_v41 = vmul.f32 0.6931472, %v23726_v38  ;;  %16787 = vmatpush1.bf16.msra.mxu1 %v23293_v27 }
 0x85f   : > { %17131 = vmatpush1.bf16.msra.mxu0 %v23296_v54  ;;  %v23730_v7 = vpop.eup %23729  ;;  %17454 = vst [vmem:[%s24347_s20 + $0x18] sm:$0xff] %v17436_v1  ;;  %v17437_v44 = vmul.f32 2.1714723, %v17406_v62  ;;  %v17422_v45 = vmul.f32 0.6931472, %v23728_v39  ;;  %16788 = vmatprep.subr.bf16.mxu1 %v23301_v34 }
 0x860   : > { %17132 = vmatprep.subr.bf16.mxu0 %v23304_v56  ;;  %v23732_v58 = vpop.eup %23731  ;;  %17453 = vst [vmem:[%s24347_s20 + $0x10] sm:$0xff] %v17435_v40  ;;  %v17443_v47 = vmul.f32 2.1714723, %v17418_v41  ;;  %v17420_v48 = vmul.f32 0.6931472, %v23730_v7 }
 0x861   : > { %17455 = vst [vmem:[%s24347_s20 + $0x20] sm:$0xff] %v17437_v44  ;;  %v17445_v19 = vmul.f32 2.1714723, %v17422_v45  ;;  %v17424_v49 = vmul.f32 0.6931472, %v23732_v58 }
 0x862   : > { %17461 = vst [vmem:[%s24347_s20 + $0x50] sm:$0xff] %v17443_v47  ;;  %v17444_v50 = vmul.f32 2.1714723, %v17420_v48  ;;  %16789 = vmatpush1.bf16.msra.mxu1 %v23299_v61  ;;  %v23332_v25 = vld [vmem:[#allocation7 + $0x2440] ss:$72 sps:$4 sm:$0xff]  }
 0x863   : > { %17133 = vmatpush1.bf16.msra.mxu0 %v23302_v9  ;;  %17463 = vst [vmem:[%s24347_s20 + $0x60] sm:$0xff] %v17445_v19  ;;  %v17446_v52 = vmul.f32 2.1714723, %v17424_v49  ;;  %16790 = vmatprep.subr.bf16.mxu1 %v23307_v43  ;;  %v23337_v27 = vld [vmem:[#allocation7 + $0x24cc] ss:$72 sps:$4 sm:$0xff]  }
 0x864   : > { %17134 = vmatprep.subr.bf16.mxu0 %v23310_v46  ;;  %17462 = vst [vmem:[%s24347_s20 + $0x58] sm:$0xff] %v17444_v50  ;;  %v23340_v54 = vld [vmem:[#allocation7 + $0x24d4] ss:$72 sps:$4 sm:$0xff]   ;;  %v23335_v55 = vld [vmem:[#allocation7 + $0x24c8] ss:$72 sps:$4 sm:$0xff]  }
 0x865   : > { %17464 = vst [vmem:[%s24347_s20 + $0x68] sm:$0xff] %v17446_v52  ;;  %v23338_v29 = vld [vmem:[#allocation7 + $0x24d0] ss:$72 sps:$4 sm:$0xff]   ;;  %v23343_v34 = vld [vmem:[#allocation7 + $0x255c] ss:$72 sps:$4 sm:$0xff]  }
 0x866   : > { %16791 = vmatpush1.bf16.msra.mxu1 %v23305_v2  ;;  %v23346_v56 = vld [vmem:[#allocation7 + $0x2564] ss:$72 sps:$4 sm:$0xff]   ;;  %v23341_v13 = vld [vmem:[#allocation7 + $0x2558] ss:$72 sps:$4 sm:$0xff]   ;;  %v23347_v61 = vld [vmem:[#allocation7 + $0x25e8] ss:$72 sps:$4 sm:$0xff]  }
 0x867   : > { %17135 = vmatpush1.bf16.msra.mxu0 %v23308_v51  ;;  %16792 = vmatprep.subr.bf16.mxu1 %v23313_v63  ;;  %v23344_v36 = vld [vmem:[#allocation7 + $0x2560] ss:$72 sps:$4 sm:$0xff]   ;;  %v23349_v37 = vld [vmem:[#allocation7 + $0x25ec] ss:$72 sps:$4 sm:$0xff]   ;;  %v23350_v38 = vld [vmem:[#allocation7 + $0x25f0] ss:$72 sps:$4 sm:$0xff]  }
 0x868   : > { %17136 = vmatprep.subr.bf16.mxu0 %v23316_v0  ;;  %v23355_v1 = vld [vmem:[#allocation7 + $0x267c] ss:$72 sps:$4 sm:$0xff]   ;;  %v23353_v9 = vld [vmem:[#allocation7 + $0x2678] ss:$72 sps:$4 sm:$0xff]   ;;  %v23361_v39 = vld [vmem:[#allocation7 + $0x270c] ss:$72 sps:$4 sm:$0xff]  }
 0x869   : > { %v23358_v62 = vld [vmem:[#allocation7 + $0x2684] ss:$72 sps:$4 sm:$0xff]   ;;  %v23364_v40 = vld [vmem:[#allocation7 + $0x2714] ss:$72 sps:$4 sm:$0xff]   ;;  %v23359_v41 = vld [vmem:[#allocation7 + $0x2708] ss:$72 sps:$4 sm:$0xff]  }
 0x86a   : > { %16793 = vmatpush1.bf16.msra.mxu1 %v23311_v10  ;;  %v23362_v43 = vld [vmem:[#allocation7 + $0x2710] ss:$72 sps:$4 sm:$0xff]   ;;  %v23367_v7 = vld [vmem:[#allocation7 + $0x279c] ss:$72 sps:$4 sm:$0xff]   ;;  %v23368_v46 = vld [vmem:[#allocation7 + $0x27a0] ss:$72 sps:$4 sm:$0xff]  }
 0x86b   : > { %17137 = vmatpush1.bf16.msra.mxu0 %v23314_v3  ;;  %16794 = vmatprep.subr.bf16.mxu1 %v23319_v11  ;;  %v23370_v44 = vld [vmem:[#allocation7 + $0x27a4] ss:$72 sps:$4 sm:$0xff]   ;;  %v23365_v45 = vld [vmem:[#allocation7 + $0x2798] ss:$72 sps:$4 sm:$0xff]   ;;  %v23376_v47 = vld [vmem:[#allocation7 + $0x2834] ss:$72 sps:$4 sm:$0xff]  }
 0x86c   : > { %17138 = vmatprep.subr.bf16.mxu0 %v23322_v14  ;;  %v23373_v58 = vld [vmem:[#allocation7 + $0x282c] ss:$72 sps:$4 sm:$0xff]   ;;  %v23371_v48 = vld [vmem:[#allocation7 + $0x2828] ss:$72 sps:$4 sm:$0xff]   ;;  %v23379_v49 = vld [vmem:[#allocation7 + $0x28bc] ss:$72 sps:$4 sm:$0xff]  }
 0x86d   : > { %v23374_v19 = vld [vmem:[#allocation7 + $0x2830] ss:$72 sps:$4 sm:$0xff]   ;;  %v23382_v50 = vld [vmem:[#allocation7 + $0x28c4] ss:$72 sps:$4 sm:$0xff]   ;;  %v23380_v51 = vld [vmem:[#allocation7 + $0x28c0] ss:$72 sps:$4 sm:$0xff]  }
 0x86e   : > { %16795 = vmatpush1.bf16.msra.mxu1 %v23317_v15  ;;  %v23377_v2 = vld [vmem:[#allocation7 + $0x28b8] ss:$72 sps:$4 sm:$0xff]   ;;  %v23385_v52 = vld [vmem:[#allocation7 + $0x294c] ss:$72 sps:$4 sm:$0xff]   ;;  %v23383_v0 = vld [vmem:[#allocation7 + $0x2948] ss:$72 sps:$4 sm:$0xff]  }
 0x86f   : > { %17139 = vmatpush1.bf16.msra.mxu0 %v23320_v16  ;;  %16796 = vmatprep.subr.bf16.mxu1 %v23325_v18  ;;  %v23388_v63 = vld [vmem:[#allocation7 + $0x2954] ss:$72 sps:$4 sm:$0xff]   ;;  %v23386_v10 = vld [vmem:[#allocation7 + $0x2950] ss:$72 sps:$4 sm:$0xff]   ;;  %v23394_v11 = vld [vmem:[#allocation7 + $0x29e4] ss:$72 sps:$4 sm:$0xff]  }
 0x870   : > { %17140 = vmatprep.subr.bf16.mxu0 %v23328_v28  ;;  %v23391_v3 = vld [vmem:[#allocation7 + $0x29dc] ss:$72 sps:$4 sm:$0xff]   ;;  %v23389_v14 = vld [vmem:[#allocation7 + $0x29d8] ss:$72 sps:$4 sm:$0xff]   ;;  %v23397_v16 = vld [vmem:[#allocation7 + $0x2a6c] ss:$72 sps:$4 sm:$0xff]  }
 0x871   : > { %v23392_v15 = vld [vmem:[#allocation7 + $0x29e0] ss:$72 sps:$4 sm:$0xff]   ;;  %v23400_v18 = vld [vmem:[#allocation7 + $0x2a74] ss:$72 sps:$4 sm:$0xff]  }
 0x872   : > { %16797 = vmatpush1.bf16.msra.mxu1 %v23323_v22  ;;  %v23395_v28 = vld [vmem:[#allocation7 + $0x2a68] ss:$72 sps:$4 sm:$0xff]  }
 0x873   : > { %17141 = vmatpush1.bf16.msra.mxu0 %v23326_v12  ;;  %16809 = vmatprep.subr.bf16.mxu1 %v23331_v30  ;;  %v23398_v22 = vld [vmem:[#allocation7 + $0x2a70] ss:$72 sps:$4 sm:$0xff]   ;;  %v23403_v12 = vld [vmem:[#allocation7 + $0x2afc] ss:$72 sps:$4 sm:$0xff]  }
 0x874   : > { %17153 = vmatprep.subr.bf16.mxu0 %v23334_v24  ;;  %v23406_v30 = vld [vmem:[#allocation7 + $0x2b04] ss:$72 sps:$4 sm:$0xff]   ;;  %v23401_v24 = vld [vmem:[#allocation7 + $0x2af8] ss:$72 sps:$4 sm:$0xff]  }
 0x875   : > { %16799 = vmatmul.mubr.bf16.vlgmr.msra.gmra.mrb[16].mxu1 %v24222_v33 }
 0x876   : > { %17143 = vmatmul.mubr.bf16.vlgmr.msra.gmra.mrb[16].mxu0 %v24222_v33  ;;  %16810 = vmatpush1.bf16.msra.mxu1 %v23329_v23  ;;  %v23352_v33 = vld [vmem:[#allocation7 + $0x25f4] ss:$72 sps:$4 sm:$0xff]   ;;  %v23404_v23 = vld [vmem:[#allocation7 + $0x2b00] ss:$72 sps:$4 sm:$0xff]  }
 0x877   : > { %17154 = vmatpush1.bf16.msra.mxu0 %v23332_v25  ;;  %16811 = vmatprep.subr.bf16.mxu1 %v23337_v27  ;;  %v23409_v25 = vld [vmem:[#allocation7 + $0x2b8c] ss:$72 sps:$4 sm:$0xff]  }
 0x878   : > { %17155 = vmatprep.subr.bf16.mxu0 %v23340_v54  ;;  %16841 = vmatprep.mubr.bf16.mxu1 %v24156_v6  ;;  %v23412_v27 = vld [vmem:[#allocation7 + $0x2b94] ss:$72 sps:$4 sm:$0xff]   ;;  %v23407_v54 = vld [vmem:[#allocation7 + $0x2b88] ss:$72 sps:$4 sm:$0xff]  }
 0x879   : > { %17185 = vmatprep.mubr.bf16.mxu0 %v24156_v6  ;;  %v23356_v6 = vld [vmem:[#allocation7 + $0x2680] ss:$72 sps:$4 sm:$0xff]  }
 0x87a   : > { %16812 = vmatpush1.bf16.msra.mxu1 %v23335_v55  ;;  %v23410_v55 = vld [vmem:[#allocation7 + $0x2b90] ss:$72 sps:$4 sm:$0xff]  }
 0x87b   : > { %17156 = vmatpush1.bf16.msra.mxu0 %v23338_v29  ;;  %16813 = vmatprep.subr.bf16.mxu1 %v23343_v34  ;;  %v23415_v29 = vld [vmem:[#allocation7 + $0x2c1c] ss:$72 sps:$4 sm:$0xff]  }
 0x87c   : > { %17157 = vmatprep.subr.bf16.mxu0 %v23346_v56  ;;  %v23418_v34 = vld [vmem:[#allocation7 + $0x2c24] ss:$72 sps:$4 sm:$0xff]   ;;  %v23413_v56 = vld [vmem:[#allocation7 + $0x2c18] ss:$72 sps:$4 sm:$0xff]  }
 0x87e   : > { %16814 = vmatpush1.bf16.msra.mxu1 %v23341_v13  ;;  %v23416_v13 = vld [vmem:[#allocation7 + $0x2c20] ss:$72 sps:$4 sm:$0xff]  }
 0x87f   : > { %17158 = vmatpush1.bf16.msra.mxu0 %v23344_v36  ;;  %16815 = vmatprep.subr.bf16.mxu1 %v23349_v37  ;;  %v23421_v36 = vld [vmem:[#allocation7 + $0x2cac] ss:$72 sps:$4 sm:$0xff]  }
 0x880   : > { %17159 = vmatprep.subr.bf16.mxu0 %v23352_v33  ;;  %v23424_v37 = vld [vmem:[#allocation7 + $0x2cb4] ss:$72 sps:$4 sm:$0xff]   ;;  %v23419_v33 = vld [vmem:[#allocation7 + $0x2ca8] ss:$72 sps:$4 sm:$0xff]  }
 0x882   : > { %16816 = vmatpush1.bf16.msra.mxu1 %v23347_v61  ;;  %v23422_v61 = vld [vmem:[#allocation7 + $0x2cb0] ss:$72 sps:$4 sm:$0xff]  }
 0x883   : > { %17160 = vmatpush1.bf16.msra.mxu0 %v23350_v38  ;;  %16817 = vmatprep.subr.bf16.mxu1 %v23355_v1  ;;  %v23427_v38 = vld [vmem:[#allocation7 + $0x2d3c] ss:$72 sps:$4 sm:$0xff]  }
 0x884   : > { %17161 = vmatprep.subr.bf16.mxu0 %v23358_v62  ;;  %v23430_v1 = vld [vmem:[#allocation7 + $0x2d44] ss:$72 sps:$4 sm:$0xff]   ;;  %v23425_v62 = vld [vmem:[#allocation7 + $0x2d38] ss:$72 sps:$4 sm:$0xff]  }
 0x886   : > { %16818 = vmatpush1.bf16.msra.mxu1 %v23353_v9  ;;  %v23428_v9 = vld [vmem:[#allocation7 + $0x2d40] ss:$72 sps:$4 sm:$0xff]  }
 0x887   : > { %17162 = vmatpush1.bf16.msra.mxu0 %v23356_v6  ;;  %16819 = vmatprep.subr.bf16.mxu1 %v23361_v39  ;;  %v23433_v6 = vld [vmem:[#allocation7 + $0x2dcc] ss:$72 sps:$4 sm:$0xff]  }
 0x888   : > { %17163 = vmatprep.subr.bf16.mxu0 %v23364_v40  ;;  %v23436_v39 = vld [vmem:[#allocation7 + $0x2dd4] ss:$72 sps:$4 sm:$0xff]   ;;  %v23431_v40 = vld [vmem:[#allocation7 + $0x2dc8] ss:$72 sps:$4 sm:$0xff]  }
 0x88a   : > { %16820 = vmatpush1.bf16.msra.mxu1 %v23359_v41  ;;  %v23434_v41 = vld [vmem:[#allocation7 + $0x2dd0] ss:$72 sps:$4 sm:$0xff]  }
 0x88b   : > { %17164 = vmatpush1.bf16.msra.mxu0 %v23362_v43  ;;  %16821 = vmatprep.subr.bf16.mxu1 %v23367_v7  ;;  %v23439_v43 = vld [vmem:[#allocation7 + $0x2e5c] ss:$72 sps:$4 sm:$0xff]  }
 0x88c   : > { %17165 = vmatprep.subr.bf16.mxu0 %v23370_v44  ;;  %v23442_v7 = vld [vmem:[#allocation7 + $0x2e64] ss:$72 sps:$4 sm:$0xff]   ;;  %v23437_v44 = vld [vmem:[#allocation7 + $0x2e58] ss:$72 sps:$4 sm:$0xff]  }
 0x88e   : > { %16822 = vmatpush1.bf16.msra.mxu1 %v23365_v45  ;;  %v23440_v45 = vld [vmem:[#allocation7 + $0x2e60] ss:$72 sps:$4 sm:$0xff]  }
 0x88f   : > { %17166 = vmatpush1.bf16.msra.mxu0 %v23368_v46  ;;  %16823 = vmatprep.subr.bf16.mxu1 %v23373_v58  ;;  %v23445_v46 = vld [vmem:[#allocation7 + $0x2eec] ss:$72 sps:$4 sm:$0xff]   ;;  %v23443_v58 = vld [vmem:[#allocation7 + $0x2ee8] ss:$72 sps:$4 sm:$0xff]  }
 0x890   : > { %17167 = vmatprep.subr.bf16.mxu0 %v23376_v47  ;;  %v23446_v47 = vld [vmem:[#allocation7 + $0x2ef0] ss:$72 sps:$4 sm:$0xff]  }
 0x892   : > { %16824 = vmatpush1.bf16.msra.mxu1 %v23371_v48  ;;  %v23451_v48 = vld [vmem:[#allocation7 + $0x2f7c] ss:$72 sps:$4 sm:$0xff]  }
 0x893   : > { %17168 = vmatpush1.bf16.msra.mxu0 %v23374_v19  ;;  %16825 = vmatprep.subr.bf16.mxu1 %v23379_v49  ;;  %v23454_v19 = vld [vmem:[#allocation7 + $0x2f84] ss:$72 sps:$4 sm:$0xff]   ;;  %v23449_v49 = vld [vmem:[#allocation7 + $0x2f78] ss:$72 sps:$4 sm:$0xff]  }
 0x894   : > { %17169 = vmatprep.subr.bf16.mxu0 %v23382_v50  ;;  %v23457_v50 = vld [vmem:[#allocation7 + $0x300c] ss:$72 sps:$4 sm:$0xff]  }
 0x896   : > { %16826 = vmatpush1.bf16.msra.mxu1 %v23377_v2  ;;  %v23460_v2 = vld [vmem:[#allocation7 + $0x3014] ss:$72 sps:$4 sm:$0xff]  }
 0x897   : > { %17170 = vmatpush1.bf16.msra.mxu0 %v23380_v51  ;;  %16827 = vmatprep.subr.bf16.mxu1 %v23385_v52  ;;  %v23455_v51 = vld [vmem:[#allocation7 + $0x3008] ss:$72 sps:$4 sm:$0xff]  }
 0x898   : > { %17171 = vmatprep.subr.bf16.mxu0 %v23388_v63  ;;  %v23458_v52 = vld [vmem:[#allocation7 + $0x3010] ss:$72 sps:$4 sm:$0xff]   ;;  %v23463_v63 = vld [vmem:[#allocation7 + $0x309c] ss:$72 sps:$4 sm:$0xff]  }
 0x89a   : > { %16828 = vmatpush1.bf16.msra.mxu1 %v23383_v0  ;;  %v23466_v0 = vld [vmem:[#allocation7 + $0x30a4] ss:$72 sps:$4 sm:$0xff]  }
 0x89b   : > { %17172 = vmatpush1.bf16.msra.mxu0 %v23386_v10  ;;  %16829 = vmatprep.subr.bf16.mxu1 %v23391_v3  ;;  %v23461_v10 = vld [vmem:[#allocation7 + $0x3098] ss:$72 sps:$4 sm:$0xff]  }
 0x89c   : > { %17173 = vmatprep.subr.bf16.mxu0 %v23394_v11  ;;  %v23464_v3 = vld [vmem:[#allocation7 + $0x30a0] ss:$72 sps:$4 sm:$0xff]   ;;  %v23469_v11 = vld [vmem:[#allocation7 + $0x312c] ss:$72 sps:$4 sm:$0xff]  }
 0x89e   : > { %16830 = vmatpush1.bf16.msra.mxu1 %v23389_v14  ;;  %v23472_v14 = vld [vmem:[#allocation7 + $0x3134] ss:$72 sps:$4 sm:$0xff]  }
 0x89f   : > { %17174 = vmatpush1.bf16.msra.mxu0 %v23392_v15  ;;  %16831 = vmatprep.subr.bf16.mxu1 %v23397_v16  ;;  %v23467_v15 = vld [vmem:[#allocation7 + $0x3128] ss:$72 sps:$4 sm:$0xff]  }
 0x8a0   : > { %17175 = vmatprep.subr.bf16.mxu0 %v23400_v18  ;;  %v23470_v16 = vld [vmem:[#allocation7 + $0x3130] ss:$72 sps:$4 sm:$0xff]   ;;  %v23475_v18 = vld [vmem:[#allocation7 + $0x31bc] ss:$72 sps:$4 sm:$0xff]  }
 0x8a2   : > { %16832 = vmatpush1.bf16.msra.mxu1 %v23395_v28  ;;  %v23478_v28 = vld [vmem:[#allocation7 + $0x31c4] ss:$72 sps:$4 sm:$0xff]  }
 0x8a3   : > { %17176 = vmatpush1.bf16.msra.mxu0 %v23398_v22  ;;  %16833 = vmatprep.subr.bf16.mxu1 %v23403_v12  ;;  %v23473_v22 = vld [vmem:[#allocation7 + $0x31b8] ss:$72 sps:$4 sm:$0xff]  }
 0x8a4   : > { %17177 = vmatprep.subr.bf16.mxu0 %v23406_v30  ;;  %v23476_v12 = vld [vmem:[#allocation7 + $0x31c0] ss:$72 sps:$4 sm:$0xff]   ;;  %v23481_v30 = vld [vmem:[#allocation7 + $0x324c] ss:$72 sps:$4 sm:$0xff]  }
 0x8a6   : > { %16834 = vmatpush1.bf16.msra.mxu1 %v23401_v24  ;;  %v23484_v24 = vld [vmem:[#allocation7 + $0x3254] ss:$72 sps:$4 sm:$0xff]  }
 0x8a7   : > { %17178 = vmatpush1.bf16.msra.mxu0 %v23404_v23  ;;  %16835 = vmatprep.subr.bf16.mxu1 %v23409_v25  ;;  %v23479_v23 = vld [vmem:[#allocation7 + $0x3248] ss:$72 sps:$4 sm:$0xff]  }
 0x8a8   : > { %17179 = vmatprep.subr.bf16.mxu0 %v23412_v27  ;;  %v23482_v25 = vld [vmem:[#allocation7 + $0x3250] ss:$72 sps:$4 sm:$0xff]   ;;  %v23487_v27 = vld [vmem:[#allocation7 + $0x32dc] ss:$72 sps:$4 sm:$0xff]  }
 0x8aa   : > { %16836 = vmatpush1.bf16.msra.mxu1 %v23407_v54  ;;  %v23490_v54 = vld [vmem:[#allocation7 + $0x32e4] ss:$72 sps:$4 sm:$0xff]  }
 0x8ab   : > { %17180 = vmatpush1.bf16.msra.mxu0 %v23410_v55  ;;  %16837 = vmatprep.subr.bf16.mxu1 %v23415_v29  ;;  %v23485_v55 = vld [vmem:[#allocation7 + $0x32d8] ss:$72 sps:$4 sm:$0xff]  }
 0x8ac   : > { %17181 = vmatprep.subr.bf16.mxu0 %v23418_v34  ;;  %v23488_v29 = vld [vmem:[#allocation7 + $0x32e0] ss:$72 sps:$4 sm:$0xff]   ;;  %v23493_v34 = vld [vmem:[#allocation7 + $0x336c] ss:$72 sps:$4 sm:$0xff]  }
 0x8ae   : > { %16838 = vmatpush1.bf16.msra.mxu1 %v23413_v56  ;;  %v23496_v56 = vld [vmem:[#allocation7 + $0x3374] ss:$72 sps:$4 sm:$0xff]  }
 0x8af   : > { %17182 = vmatpush1.bf16.msra.mxu0 %v23416_v13  ;;  %16839 = vmatprep.subr.bf16.mxu1 %v23421_v36  ;;  %v23491_v13 = vld [vmem:[#allocation7 + $0x3368] ss:$72 sps:$4 sm:$0xff]  }
 0x8b0   : > { %17183 = vmatprep.subr.bf16.mxu0 %v23424_v37  ;;  %v23494_v36 = vld [vmem:[#allocation7 + $0x3370] ss:$72 sps:$4 sm:$0xff]   ;;  %v23499_v37 = vld [vmem:[#allocation7 + $0x33fc] ss:$72 sps:$4 sm:$0xff]  }
 0x8b2   : > { %16840 = vmatpush1.bf16.msra.mxu1 %v23419_v33  ;;  %v23502_v33 = vld [vmem:[#allocation7 + $0x3404] ss:$72 sps:$4 sm:$0xff]  }
 0x8b3   : > { %17184 = vmatpush1.bf16.msra.mxu0 %v23422_v61  ;;  %16852 = vmatprep.subr.bf16.mxu1 %v23427_v38  ;;  %v23497_v61 = vld [vmem:[#allocation7 + $0x33f8] ss:$72 sps:$4 sm:$0xff]  }
 0x8b4   : > { %17196 = vmatprep.subr.bf16.mxu0 %v23430_v1  ;;  %v23500_v38 = vld [vmem:[#allocation7 + $0x3400] ss:$72 sps:$4 sm:$0xff]   ;;  %v23505_v1 = vld [vmem:[#allocation7 + $0x348c] ss:$72 sps:$4 sm:$0xff]  }
 0x8b5   : > { %16842 = vmatmul.mubr.bf16.vlgmr.msra.gmra.mrb[16].mxu1 %v24164_v31 }
 0x8b6   : > { %17186 = vmatmul.mubr.bf16.vlgmr.msra.gmra.mrb[16].mxu0 %v24164_v31  ;;  %16853 = vmatpush1.bf16.msra.mxu1 %v23425_v62  ;;  %v23448_v31 = vld [vmem:[#allocation7 + $0x2ef4] ss:$72 sps:$4 sm:$0xff]  }
 0x8b7   : > { %17197 = vmatpush1.bf16.msra.mxu0 %v23428_v9  ;;  %16854 = vmatprep.subr.bf16.mxu1 %v23433_v6  ;;  %v23508_v62 = vld [vmem:[#allocation7 + $0x3494] ss:$72 sps:$4 sm:$0xff]   ;;  %v23503_v9 = vld [vmem:[#allocation7 + $0x3488] ss:$72 sps:$4 sm:$0xff]  }
 0x8b8   : > { %17198 = vmatprep.subr.bf16.mxu0 %v23436_v39  ;;  %16884 = vmatprep.mubr.bf16.mxu1 %v24174_v17  ;;  %v23506_v6 = vld [vmem:[#allocation7 + $0x3490] ss:$72 sps:$4 sm:$0xff]   ;;  %v23511_v39 = vld [vmem:[#allocation7 + $0x351c] ss:$72 sps:$4 sm:$0xff]  }
 0x8b9   : > { %17228 = vmatprep.mubr.bf16.mxu0 %v24174_v17  ;;  %v23452_v17 = vld [vmem:[#allocation7 + $0x2f80] ss:$72 sps:$4 sm:$0xff]  }
 0x8ba   : > { %16855 = vmatpush1.bf16.msra.mxu1 %v23431_v40  ;;  %v23514_v40 = vld [vmem:[#allocation7 + $0x3524] ss:$72 sps:$4 sm:$0xff]  }
 0x8bb   : > { %17199 = vmatpush1.bf16.msra.mxu0 %v23434_v41  ;;  %16856 = vmatprep.subr.bf16.mxu1 %v23439_v43  ;;  %v23509_v41 = vld [vmem:[#allocation7 + $0x3518] ss:$72 sps:$4 sm:$0xff]  }
 0x8bc   : > { %17200 = vmatprep.subr.bf16.mxu0 %v23442_v7  ;;  %v23512_v43 = vld [vmem:[#allocation7 + $0x3520] ss:$72 sps:$4 sm:$0xff]   ;;  %v23517_v7 = vld [vmem:[#allocation7 + $0x35ac] ss:$72 sps:$4 sm:$0xff]  }
 0x8be   : > { %16857 = vmatpush1.bf16.msra.mxu1 %v23437_v44  ;;  %v23520_v44 = vld [vmem:[#allocation7 + $0x35b4] ss:$72 sps:$4 sm:$0xff]  }
 0x8bf   : > { %17201 = vmatpush1.bf16.msra.mxu0 %v23440_v45  ;;  %16858 = vmatprep.subr.bf16.mxu1 %v23445_v46  ;;  %v23515_v45 = vld [vmem:[#allocation7 + $0x35a8] ss:$72 sps:$4 sm:$0xff]  }
 0x8c0   : > { %17202 = vmatprep.subr.bf16.mxu0 %v23448_v31  ;;  %v23518_v46 = vld [vmem:[#allocation7 + $0x35b0] ss:$72 sps:$4 sm:$0xff]   ;;  %v23523_v31 = vld [vmem:[#allocation7 + $0x363c] ss:$72 sps:$4 sm:$0xff]  }
 0x8c2   : > { %16859 = vmatpush1.bf16.msra.mxu1 %v23443_v58  ;;  %v23526_v58 = vld [vmem:[#allocation7 + $0x3644] ss:$72 sps:$4 sm:$0xff]  }
 0x8c3   : > { %17203 = vmatpush1.bf16.msra.mxu0 %v23446_v47  ;;  %16860 = vmatprep.subr.bf16.mxu1 %v23451_v48  ;;  %v23521_v47 = vld [vmem:[#allocation7 + $0x3638] ss:$72 sps:$4 sm:$0xff]  }
 0x8c4   : > { %17204 = vmatprep.subr.bf16.mxu0 %v23454_v19  ;;  %v23524_v48 = vld [vmem:[#allocation7 + $0x3640] ss:$72 sps:$4 sm:$0xff]   ;;  %v23529_v19 = vld [vmem:[#allocation7 + $0x36cc] ss:$72 sps:$4 sm:$0xff]  }
 0x8c6   : > { %16861 = vmatpush1.bf16.msra.mxu1 %v23449_v49  ;;  %v23532_v49 = vld [vmem:[#allocation7 + $0x36d4] ss:$72 sps:$4 sm:$0xff]  }
 0x8c7   : > { %17205 = vmatpush1.bf16.msra.mxu0 %v23452_v17  ;;  %16862 = vmatprep.subr.bf16.mxu1 %v23457_v50  ;;  %v23527_v17 = vld [vmem:[#allocation7 + $0x36c8] ss:$72 sps:$4 sm:$0xff]  }
 0x8c8   : > { %17206 = vmatprep.subr.bf16.mxu0 %v23460_v2  ;;  %v23530_v50 = vld [vmem:[#allocation7 + $0x36d0] ss:$72 sps:$4 sm:$0xff]   ;;  %v23535_v2 = vld [vmem:[#allocation7 + $0x375c] ss:$72 sps:$4 sm:$0xff]  }
 0x8ca   : > { %16863 = vmatpush1.bf16.msra.mxu1 %v23455_v51  ;;  %v23538_v51 = vld [vmem:[#allocation7 + $0x3764] ss:$72 sps:$4 sm:$0xff]  }
 0x8cb   : > { %17207 = vmatpush1.bf16.msra.mxu0 %v23458_v52  ;;  %16864 = vmatprep.subr.bf16.mxu1 %v23463_v63  ;;  %v23533_v52 = vld [vmem:[#allocation7 + $0x3758] ss:$72 sps:$4 sm:$0xff]  }
 0x8cc   : > { %17208 = vmatprep.subr.bf16.mxu0 %v23466_v0  ;;  %v23536_v63 = vld [vmem:[#allocation7 + $0x3760] ss:$72 sps:$4 sm:$0xff]   ;;  %v23541_v0 = vld [vmem:[#allocation7 + $0x37ec] ss:$72 sps:$4 sm:$0xff]  }
 0x8ce   : > { %16865 = vmatpush1.bf16.msra.mxu1 %v23461_v10  ;;  %v23539_v10 = vld [vmem:[#allocation7 + $0x37e8] ss:$72 sps:$4 sm:$0xff]  }
 0x8cf   : > { %17209 = vmatpush1.bf16.msra.mxu0 %v23464_v3  ;;  %16866 = vmatprep.subr.bf16.mxu1 %v23469_v11  ;;  %v23542_v3 = vld [vmem:[#allocation7 + $0x37f0] ss:$72 sps:$4 sm:$0xff]   ;;  %v23547_v11 = vld [vmem:[#allocation7 + $0x387c] ss:$72 sps:$4 sm:$0xff]  }
 0x8d0   : > { %17210 = vmatprep.subr.bf16.mxu0 %v23472_v14  ;;  %v23550_v14 = vld [vmem:[#allocation7 + $0x3884] ss:$72 sps:$4 sm:$0xff]  }
 0x8d2   : > { %16867 = vmatpush1.bf16.msra.mxu1 %v23467_v15  ;;  %v23545_v15 = vld [vmem:[#allocation7 + $0x3878] ss:$72 sps:$4 sm:$0xff]  }
 0x8d3   : > { %17211 = vmatpush1.bf16.msra.mxu0 %v23470_v16  ;;  %16868 = vmatprep.subr.bf16.mxu1 %v23475_v18  ;;  %v23553_v16 = vld [vmem:[#allocation7 + $0x390c] ss:$72 sps:$4 sm:$0xff]  }
 0x8d4   : > { %17212 = vmatprep.subr.bf16.mxu0 %v23478_v28  ;;  %v23556_v18 = vld [vmem:[#allocation7 + $0x3914] ss:$72 sps:$4 sm:$0xff]   ;;  %v23551_v28 = vld [vmem:[#allocation7 + $0x3908] ss:$72 sps:$4 sm:$0xff]  }
 0x8d6   : > { %16869 = vmatpush1.bf16.msra.mxu1 %v23473_v22  ;;  %v23554_v22 = vld [vmem:[#allocation7 + $0x3910] ss:$72 sps:$4 sm:$0xff]  }
 0x8d7   : > { %17213 = vmatpush1.bf16.msra.mxu0 %v23476_v12  ;;  %16870 = vmatprep.subr.bf16.mxu1 %v23481_v30  ;;  %v23559_v12 = vld [vmem:[#allocation7 + $0x399c] ss:$72 sps:$4 sm:$0xff]  }
 0x8d8   : > { %17214 = vmatprep.subr.bf16.mxu0 %v23484_v24  ;;  %v23562_v30 = vld [vmem:[#allocation7 + $0x39a4] ss:$72 sps:$4 sm:$0xff]   ;;  %v23557_v24 = vld [vmem:[#allocation7 + $0x3998] ss:$72 sps:$4 sm:$0xff]  }
 0x8da   : > { %16871 = vmatpush1.bf16.msra.mxu1 %v23479_v23  ;;  %v23560_v23 = vld [vmem:[#allocation7 + $0x39a0] ss:$72 sps:$4 sm:$0xff]  }
 0x8db   : > { %17215 = vmatpush1.bf16.msra.mxu0 %v23482_v25  ;;  %16872 = vmatprep.subr.bf16.mxu1 %v23487_v27  ;;  %v23565_v25 = vld [vmem:[#allocation7 + $0x3a2c] ss:$72 sps:$4 sm:$0xff]  }
 0x8dc   : > { %17216 = vmatprep.subr.bf16.mxu0 %v23490_v54  ;;  %v23568_v27 = vld [vmem:[#allocation7 + $0x3a34] ss:$72 sps:$4 sm:$0xff]   ;;  %v23563_v54 = vld [vmem:[#allocation7 + $0x3a28] ss:$72 sps:$4 sm:$0xff]  }
 0x8de   : > { %16873 = vmatpush1.bf16.msra.mxu1 %v23485_v55  ;;  %v23566_v55 = vld [vmem:[#allocation7 + $0x3a30] ss:$72 sps:$4 sm:$0xff]  }
 0x8df   : > { %17217 = vmatpush1.bf16.msra.mxu0 %v23488_v29  ;;  %16874 = vmatprep.subr.bf16.mxu1 %v23493_v34  ;;  %v23571_v29 = vld [vmem:[#allocation7 + $0x3abc] ss:$72 sps:$4 sm:$0xff]  }
 0x8e0   : > { %17218 = vmatprep.subr.bf16.mxu0 %v23496_v56  ;;  %v23574_v34 = vld [vmem:[#allocation7 + $0x3ac4] ss:$72 sps:$4 sm:$0xff]   ;;  %v23569_v56 = vld [vmem:[#allocation7 + $0x3ab8] ss:$72 sps:$4 sm:$0xff]  }
 0x8e2   : > { %16875 = vmatpush1.bf16.msra.mxu1 %v23491_v13  ;;  %v23572_v13 = vld [vmem:[#allocation7 + $0x3ac0] ss:$72 sps:$4 sm:$0xff]  }
 0x8e3   : > { %17219 = vmatpush1.bf16.msra.mxu0 %v23494_v36  ;;  %16876 = vmatprep.subr.bf16.mxu1 %v23499_v37  ;;  %v23577_v36 = vld [vmem:[#allocation7 + $0x3b4c] ss:$72 sps:$4 sm:$0xff]  }
 0x8e4   : > { %17220 = vmatprep.subr.bf16.mxu0 %v23502_v33  ;;  %v23580_v37 = vld [vmem:[#allocation7 + $0x3b54] ss:$72 sps:$4 sm:$0xff]   ;;  %v23575_v33 = vld [vmem:[#allocation7 + $0x3b48] ss:$72 sps:$4 sm:$0xff]  }
 0x8e6   : > { %16877 = vmatpush1.bf16.msra.mxu1 %v23497_v61  ;;  %v23578_v61 = vld [vmem:[#allocation7 + $0x3b50] ss:$72 sps:$4 sm:$0xff]  }
 0x8e7   : > { %17221 = vmatpush1.bf16.msra.mxu0 %v23500_v38  ;;  %16878 = vmatprep.subr.bf16.mxu1 %v23505_v1  ;;  %v23583_v38 = vld [vmem:[#allocation7 + $0x3bdc] ss:$72 sps:$4 sm:$0xff]  }
 0x8e8   : > { %17222 = vmatprep.subr.bf16.mxu0 %v23508_v62  ;;  %v23586_v1 = vld [vmem:[#allocation7 + $0x3be4] ss:$72 sps:$4 sm:$0xff]   ;;  %v23581_v62 = vld [vmem:[#allocation7 + $0x3bd8] ss:$72 sps:$4 sm:$0xff]  }
 0x8ea   : > { %16879 = vmatpush1.bf16.msra.mxu1 %v23503_v9  ;;  %v23584_v9 = vld [vmem:[#allocation7 + $0x3be0] ss:$72 sps:$4 sm:$0xff]  }
 0x8eb   : > { %17223 = vmatpush1.bf16.msra.mxu0 %v23506_v6  ;;  %16880 = vmatprep.subr.bf16.mxu1 %v23511_v39  ;;  %v23589_v6 = vld [vmem:[#allocation7 + $0x3c6c] ss:$72 sps:$4 sm:$0xff]  }
 0x8ec   : > { %17224 = vmatprep.subr.bf16.mxu0 %v23514_v40  ;;  %v23592_v39 = vld [vmem:[#allocation7 + $0x3c74] ss:$72 sps:$4 sm:$0xff]   ;;  %v23587_v40 = vld [vmem:[#allocation7 + $0x3c68] ss:$72 sps:$4 sm:$0xff]  }
 0x8ee   : > { %16881 = vmatpush1.bf16.msra.mxu1 %v23509_v41  ;;  %v23590_v41 = vld [vmem:[#allocation7 + $0x3c70] ss:$72 sps:$4 sm:$0xff]  }
 0x8ef   : > { %17225 = vmatpush1.bf16.msra.mxu0 %v23512_v43  ;;  %16882 = vmatprep.subr.bf16.mxu1 %v23517_v7  ;;  %v23595_v43 = vld [vmem:[#allocation7 + $0x3cfc] ss:$72 sps:$4 sm:$0xff]  }
 0x8f0   : > { %17226 = vmatprep.subr.bf16.mxu0 %v23520_v44  ;;  %v23598_v7 = vld [vmem:[#allocation7 + $0x3d04] ss:$72 sps:$4 sm:$0xff]   ;;  %v23593_v44 = vld [vmem:[#allocation7 + $0x3cf8] ss:$72 sps:$4 sm:$0xff]  }
 0x8f2   : > { %16883 = vmatpush1.bf16.msra.mxu1 %v23515_v45  ;;  %v23596_v45 = vld [vmem:[#allocation7 + $0x3d00] ss:$72 sps:$4 sm:$0xff]  }
 0x8f3   : > { %17227 = vmatpush1.bf16.msra.mxu0 %v23518_v46  ;;  %16895 = vmatprep.subr.bf16.mxu1 %v23523_v31  ;;  %v23601_v46 = vld [vmem:[#allocation7 + $0x3d8c] ss:$72 sps:$4 sm:$0xff]  }
 0x8f4   : > { %17239 = vmatprep.subr.bf16.mxu0 %v23526_v58  ;;  %v23604_v31 = vld [vmem:[#allocation7 + $0x3d94] ss:$72 sps:$4 sm:$0xff]   ;;  %v23599_v58 = vld [vmem:[#allocation7 + $0x3d88] ss:$72 sps:$4 sm:$0xff]  }
 0x8f5   : > { %16885 = vmatmul.mubr.bf16.vlgmr.msra.gmra.mrb[16].mxu1 %v24182_v4 }
 0x8f6   : > { %17229 = vmatmul.mubr.bf16.vlgmr.msra.gmra.mrb[16].mxu0 %v24182_v4  ;;  %16896 = vmatpush1.bf16.msra.mxu1 %v23521_v47  ;;  %v23544_v4 = vld [vmem:[#allocation7 + $0x37f4] ss:$72 sps:$4 sm:$0xff]   ;;  %v23602_v47 = vld [vmem:[#allocation7 + $0x3d90] ss:$72 sps:$4 sm:$0xff]  }
 0x8f7   : > { %17240 = vmatpush1.bf16.msra.mxu0 %v23524_v48  ;;  %16897 = vmatprep.subr.bf16.mxu1 %v23529_v19  ;;  %v23607_v48 = vld [vmem:[#allocation7 + $0x3e1c] ss:$72 sps:$4 sm:$0xff]  }
 0x8f8   : > { %17241 = vmatprep.subr.bf16.mxu0 %v23532_v49  ;;  %16927 = vmatprep.mubr.bf16.mxu1 %v24192_v59  ;;  %v23610_v19 = vld [vmem:[#allocation7 + $0x3e24] ss:$72 sps:$4 sm:$0xff]   ;;  %v23605_v49 = vld [vmem:[#allocation7 + $0x3e18] ss:$72 sps:$4 sm:$0xff]  }
 0x8f9   : > { %17271 = vmatprep.mubr.bf16.mxu0 %v24192_v59  ;;  %v23548_v59 = vld [vmem:[#allocation7 + $0x3880] ss:$72 sps:$4 sm:$0xff]  }
 0x8fa   : > { %16898 = vmatpush1.bf16.msra.mxu1 %v23527_v17  ;;  %v23608_v17 = vld [vmem:[#allocation7 + $0x3e20] ss:$72 sps:$4 sm:$0xff]  }
 0x8fb   : > { %17242 = vmatpush1.bf16.msra.mxu0 %v23530_v50  ;;  %16899 = vmatprep.subr.bf16.mxu1 %v23535_v2  ;;  %v23613_v50 = vld [vmem:[#allocation7 + $0x3eac] ss:$72 sps:$4 sm:$0xff]  }
 0x8fc   : > { %17243 = vmatprep.subr.bf16.mxu0 %v23538_v51  ;;  %v23616_v2 = vld [vmem:[#allocation7 + $0x3eb4] ss:$72 sps:$4 sm:$0xff]   ;;  %v23611_v51 = vld [vmem:[#allocation7 + $0x3ea8] ss:$72 sps:$4 sm:$0xff]  }
 0x8fe   : > { %16900 = vmatpush1.bf16.msra.mxu1 %v23533_v52  ;;  %v23614_v52 = vld [vmem:[#allocation7 + $0x3eb0] ss:$72 sps:$4 sm:$0xff]  }
 0x8ff   : > { %17244 = vmatpush1.bf16.msra.mxu0 %v23536_v63  ;;  %16901 = vmatprep.subr.bf16.mxu1 %v23541_v0  ;;  %v23619_v63 = vld [vmem:[#allocation7 + $0x3f3c] ss:$72 sps:$4 sm:$0xff]  }
 0x900   : > { %17245 = vmatprep.subr.bf16.mxu0 %v23544_v4  ;;  %v23622_v0 = vld [vmem:[#allocation7 + $0x3f44] ss:$72 sps:$4 sm:$0xff]   ;;  %v23617_v4 = vld [vmem:[#allocation7 + $0x3f38] ss:$72 sps:$4 sm:$0xff]  }
 0x902   : > { %16902 = vmatpush1.bf16.msra.mxu1 %v23539_v10  ;;  %v23620_v10 = vld [vmem:[#allocation7 + $0x3f40] ss:$72 sps:$4 sm:$0xff]  }
 0x903   : > { %17246 = vmatpush1.bf16.msra.mxu0 %v23542_v3  ;;  %16903 = vmatprep.subr.bf16.mxu1 %v23547_v11  ;;  %v23625_v3 = vld [vmem:[#allocation7 + $0x3fcc] ss:$72 sps:$4 sm:$0xff]  }
 0x904   : > { %17247 = vmatprep.subr.bf16.mxu0 %v23550_v14  ;;  %v23628_v11 = vld [vmem:[#allocation7 + $0x3fd4] ss:$72 sps:$4 sm:$0xff]   ;;  %v23623_v14 = vld [vmem:[#allocation7 + $0x3fc8] ss:$72 sps:$4 sm:$0xff]  }
 0x906   : > { %16904 = vmatpush1.bf16.msra.mxu1 %v23545_v15  ;;  %v23626_v15 = vld [vmem:[#allocation7 + $0x3fd0] ss:$72 sps:$4 sm:$0xff]  }
 0x907   : > { %17248 = vmatpush1.bf16.msra.mxu0 %v23548_v59  ;;  %16905 = vmatprep.subr.bf16.mxu1 %v23553_v16  ;;  %v23631_v59 = vld [vmem:[#allocation7 + $0x405c] ss:$72 sps:$4 sm:$0xff]  }
 0x908   : > { %17249 = vmatprep.subr.bf16.mxu0 %v23556_v18  ;;  %v23634_v16 = vld [vmem:[#allocation7 + $0x4064] ss:$72 sps:$4 sm:$0xff]   ;;  %v23629_v18 = vld [vmem:[#allocation7 + $0x4058] ss:$72 sps:$4 sm:$0xff]  }
 0x90a   : > { %16906 = vmatpush1.bf16.msra.mxu1 %v23551_v28  ;;  %v23632_v28 = vld [vmem:[#allocation7 + $0x4060] ss:$72 sps:$4 sm:$0xff]  }
 0x90b   : > { %17250 = vmatpush1.bf16.msra.mxu0 %v23554_v22  ;;  %16907 = vmatprep.subr.bf16.mxu1 %v23559_v12  ;;  %v23637_v22 = vld [vmem:[#allocation7 + $0x40ec] ss:$72 sps:$4 sm:$0xff]   ;;  %v23635_v12 = vld [vmem:[#allocation7 + $0x40e8] ss:$72 sps:$4 sm:$0xff]  }
 0x90c   : > { %17251 = vmatprep.subr.bf16.mxu0 %v23562_v30  ;;  %v23638_v30 = vld [vmem:[#allocation7 + $0x40f0] ss:$72 sps:$4 sm:$0xff]  }
 0x90e   : > { %16908 = vmatpush1.bf16.msra.mxu1 %v23557_v24  ;;  %v23643_v24 = vld [vmem:[#allocation7 + $0x417c] ss:$72 sps:$4 sm:$0xff]  }
 0x90f   : > { %17252 = vmatpush1.bf16.msra.mxu0 %v23560_v23  ;;  %16909 = vmatprep.subr.bf16.mxu1 %v23565_v25  ;;  %v23646_v23 = vld [vmem:[#allocation7 + $0x4184] ss:$72 sps:$4 sm:$0xff]   ;;  %v23641_v25 = vld [vmem:[#allocation7 + $0x4178] ss:$72 sps:$4 sm:$0xff]  }
 0x910   : > { %17253 = vmatprep.subr.bf16.mxu0 %v23568_v27  ;;  %v23649_v27 = vld [vmem:[#allocation7 + $0x420c] ss:$72 sps:$4 sm:$0xff]  }
 0x912   : > { %16910 = vmatpush1.bf16.msra.mxu1 %v23563_v54  ;;  %v23652_v54 = vld [vmem:[#allocation7 + $0x4214] ss:$72 sps:$4 sm:$0xff]  }
 0x913   : > { %17254 = vmatpush1.bf16.msra.mxu0 %v23566_v55  ;;  %16911 = vmatprep.subr.bf16.mxu1 %v23571_v29  ;;  %v23647_v55 = vld [vmem:[#allocation7 + $0x4208] ss:$72 sps:$4 sm:$0xff]  }
 0x914   : > { %17255 = vmatprep.subr.bf16.mxu0 %v23574_v34  ;;  %v23650_v29 = vld [vmem:[#allocation7 + $0x4210] ss:$72 sps:$4 sm:$0xff]   ;;  %v23655_v34 = vld [vmem:[#allocation7 + $0x429c] ss:$72 sps:$4 sm:$0xff]  }
 0x916   : > { %16912 = vmatpush1.bf16.msra.mxu1 %v23569_v56  ;;  %v23658_v56 = vld [vmem:[#allocation7 + $0x42a4] ss:$72 sps:$4 sm:$0xff]  }
 0x917   : > { %17256 = vmatpush1.bf16.msra.mxu0 %v23572_v13  ;;  %16913 = vmatprep.subr.bf16.mxu1 %v23577_v36  ;;  %v23653_v13 = vld [vmem:[#allocation7 + $0x4298] ss:$72 sps:$4 sm:$0xff]  }
 0x918   : > { %17257 = vmatprep.subr.bf16.mxu0 %v23580_v37  ;;  %v23656_v36 = vld [vmem:[#allocation7 + $0x42a0] ss:$72 sps:$4 sm:$0xff]   ;;  %v23661_v37 = vld [vmem:[#allocation7 + $0x432c] ss:$72 sps:$4 sm:$0xff]  }
 0x91a   : > { %16914 = vmatpush1.bf16.msra.mxu1 %v23575_v33  ;;  %v23664_v33 = vld [vmem:[#allocation7 + $0x4334] ss:$72 sps:$4 sm:$0xff]  }
 0x91b   : > { %17258 = vmatpush1.bf16.msra.mxu0 %v23578_v61  ;;  %16915 = vmatprep.subr.bf16.mxu1 %v23583_v38  ;;  %v23659_v61 = vld [vmem:[#allocation7 + $0x4328] ss:$72 sps:$4 sm:$0xff]  }
 0x91c   : > { %17259 = vmatprep.subr.bf16.mxu0 %v23586_v1  ;;  %v23662_v38 = vld [vmem:[#allocation7 + $0x4330] ss:$72 sps:$4 sm:$0xff]   ;;  %v23667_v1 = vld [vmem:[#allocation7 + $0x43bc] ss:$72 sps:$4 sm:$0xff]  }
 0x91e   : > { %16916 = vmatpush1.bf16.msra.mxu1 %v23581_v62  ;;  %v23670_v62 = vld [vmem:[#allocation7 + $0x43c4] ss:$72 sps:$4 sm:$0xff]  }
 0x91f   : > { %17260 = vmatpush1.bf16.msra.mxu0 %v23584_v9  ;;  %16917 = vmatprep.subr.bf16.mxu1 %v23589_v6  ;;  %v23665_v9 = vld [vmem:[#allocation7 + $0x43b8] ss:$72 sps:$4 sm:$0xff]  }
 0x920   : > { %17261 = vmatprep.subr.bf16.mxu0 %v23592_v39  ;;  %v23668_v6 = vld [vmem:[#allocation7 + $0x43c0] ss:$72 sps:$4 sm:$0xff]   ;;  %v23673_v39 = vld [vmem:[#allocation7 + $0x444c] ss:$72 sps:$4 sm:$0xff]  }
 0x922   : > { %16918 = vmatpush1.bf16.msra.mxu1 %v23587_v40  ;;  %v23676_v40 = vld [vmem:[#allocation7 + $0x4454] ss:$72 sps:$4 sm:$0xff]  }
 0x923   : > { %17262 = vmatpush1.bf16.msra.mxu0 %v23590_v41  ;;  %16919 = vmatprep.subr.bf16.mxu1 %v23595_v43  ;;  %v23671_v41 = vld [vmem:[#allocation7 + $0x4448] ss:$72 sps:$4 sm:$0xff]  }
 0x924   : > { %17263 = vmatprep.subr.bf16.mxu0 %v23598_v7  ;;  %v23674_v43 = vld [vmem:[#allocation7 + $0x4450] ss:$72 sps:$4 sm:$0xff]   ;;  %v23679_v7 = vld [vmem:[#allocation7 + $0x44dc] ss:$72 sps:$4 sm:$0xff]  }
 0x926   : > { %16920 = vmatpush1.bf16.msra.mxu1 %v23593_v44  ;;  %v23682_v44 = vld [vmem:[#allocation7 + $0x44e4] ss:$72 sps:$4 sm:$0xff]  }
 0x927   : > { %17264 = vmatpush1.bf16.msra.mxu0 %v23596_v45  ;;  %16921 = vmatprep.subr.bf16.mxu1 %v23601_v46  ;;  %v23677_v45 = vld [vmem:[#allocation7 + $0x44d8] ss:$72 sps:$4 sm:$0xff]  }
 0x928   : > { %17265 = vmatprep.subr.bf16.mxu0 %v23604_v31  ;;  %v23680_v46 = vld [vmem:[#allocation7 + $0x44e0] ss:$72 sps:$4 sm:$0xff]   ;;  %v23685_v31 = vld [vmem:[#allocation7 + $0x456c] ss:$72 sps:$4 sm:$0xff]  }
 0x92a   : > { %16922 = vmatpush1.bf16.msra.mxu1 %v23599_v58  ;;  %v23688_v58 = vld [vmem:[#allocation7 + $0x4574] ss:$72 sps:$4 sm:$0xff]  }
 0x92b   : > { %17266 = vmatpush1.bf16.msra.mxu0 %v23602_v47  ;;  %16923 = vmatprep.subr.bf16.mxu1 %v23607_v48  ;;  %v23683_v47 = vld [vmem:[#allocation7 + $0x4568] ss:$72 sps:$4 sm:$0xff]  }
 0x92c   : > { %17267 = vmatprep.subr.bf16.mxu0 %v23610_v19  ;;  %v23686_v48 = vld [vmem:[#allocation7 + $0x4570] ss:$72 sps:$4 sm:$0xff]   ;;  %v23691_v19 = vld [vmem:[#allocation7 + $0x45fc] ss:$72 sps:$4 sm:$0xff]  }
 0x92e   : > { %16924 = vmatpush1.bf16.msra.mxu1 %v23605_v49  ;;  %v23694_v49 = vld [vmem:[#allocation7 + $0x4604] ss:$72 sps:$4 sm:$0xff]  }
 0x92f   : > { %17268 = vmatpush1.bf16.msra.mxu0 %v23608_v17  ;;  %16925 = vmatprep.subr.bf16.mxu1 %v23613_v50  ;;  %v23689_v17 = vld [vmem:[#allocation7 + $0x45f8] ss:$72 sps:$4 sm:$0xff]  }
 0x930   : > { %17269 = vmatprep.subr.bf16.mxu0 %v23616_v2  ;;  %v23692_v50 = vld [vmem:[#allocation7 + $0x4600] ss:$72 sps:$4 sm:$0xff]   ;;  %v23697_v2 = vld [vmem:[#allocation7 + $0x468c] ss:$72 sps:$4 sm:$0xff]  }
 0x932   : > { %16926 = vmatpush1.bf16.msra.mxu1 %v23611_v51  ;;  %v23700_v51 = vld [vmem:[#allocation7 + $0x4694] ss:$72 sps:$4 sm:$0xff]  }
 0x933   : > { %17270 = vmatpush1.bf16.msra.mxu0 %v23614_v52  ;;  %16938 = vmatprep.subr.bf16.mxu1 %v23619_v63  ;;  %v23695_v52 = vld [vmem:[#allocation7 + $0x4688] ss:$72 sps:$4 sm:$0xff]  }
 0x934   : > { %17282 = vmatprep.subr.bf16.mxu0 %v23622_v0  ;;  %v23698_v63 = vld [vmem:[#allocation7 + $0x4690] ss:$72 sps:$4 sm:$0xff]   ;;  %v23703_v0 = vld [vmem:[#allocation7 + $0x471c] ss:$72 sps:$4 sm:$0xff]  }
 0x935   : > { %16928 = vmatmul.mubr.bf16.vlgmr.msra.gmra.mrb[16].mxu1 %v24209_v60 }
 0x936   : > { %17272 = vmatmul.mubr.bf16.vlgmr.msra.gmra.mrb[16].mxu0 %v24209_v60  ;;  %16939 = vmatpush1.bf16.msra.mxu1 %v23617_v4  ;;  %v23640_v60 = vld [vmem:[#allocation7 + $0x40f4] ss:$72 sps:$4 sm:$0xff]   ;;  %v23706_v4 = vld [vmem:[#allocation7 + $0x4724] ss:$72 sps:$4 sm:$0xff]  }
 0x937   : > { %17283 = vmatpush1.bf16.msra.mxu0 %v23620_v10  ;;  %16940 = vmatprep.subr.bf16.mxu1 %v23625_v3  ;;  %v23701_v10 = vld [vmem:[#allocation7 + $0x4718] ss:$72 sps:$4 sm:$0xff]  }
 0x938   : > { %17284 = vmatprep.subr.bf16.mxu0 %v23628_v11  ;;  %16970 = vmatprep.mubr.bf16.mxu1 %v24213_v5  ;;  %v23704_v3 = vld [vmem:[#allocation7 + $0x4720] ss:$72 sps:$4 sm:$0xff]   ;;  %v23709_v11 = vld [vmem:[#allocation7 + $0x47ac] ss:$72 sps:$4 sm:$0xff]  }
 0x939   : > { %17314 = vmatprep.mubr.bf16.mxu0 %v24213_v5  ;;  %v23644_v5 = vld [vmem:[#allocation7 + $0x4180] ss:$72 sps:$4 sm:$0xff]  }
 0x93a   : > { %16941 = vmatpush1.bf16.msra.mxu1 %v23623_v14  ;;  %v23712_v14 = vld [vmem:[#allocation7 + $0x47b4] ss:$72 sps:$4 sm:$0xff]  }
 0x93b   : > { %17285 = vmatpush1.bf16.msra.mxu0 %v23626_v15  ;;  %16942 = vmatprep.subr.bf16.mxu1 %v23631_v59  ;;  %v23707_v15 = vld [vmem:[#allocation7 + $0x47a8] ss:$72 sps:$4 sm:$0xff]  }
 0x93c   : > { %17286 = vmatprep.subr.bf16.mxu0 %v23634_v16  ;;  %v23710_v59 = vld [vmem:[#allocation7 + $0x47b0] ss:$72 sps:$4 sm:$0xff]   ;;  %v17330_v16 = vmul.f32 %v24288_v57, %v24288_v57 }
 0x93e   : > { %16943 = vmatpush1.bf16.msra.mxu1 %v23629_v18  ;;  %v17339_v18 = vmul.f32 %v24296_v8, %v24296_v8  ;;  %v17342_v8 = vmul.f32 %v24340_v26, %v24340_v26 }
 0x93f   : > { %17287 = vmatpush1.bf16.msra.mxu0 %v23632_v28  ;;  %16944 = vmatprep.subr.bf16.mxu1 %v23637_v22  ;;  %v17331_v28 = vmul.f32 %v24330_v20, %v24330_v20  ;;  %v17333_v22 = vmul.f32 %v24332_v21, %v24332_v21  ;;  %v17341_v20 = vmul.f32 %v24342_v32, %v24342_v32 }
 0x940   : > { %17288 = vmatprep.subr.bf16.mxu0 %v23640_v60 }
 0x942   : > { %16945 = vmatpush1.bf16.msra.mxu1 %v23635_v12 }
 0x943   : > { %17289 = vmatpush1.bf16.msra.mxu0 %v23638_v30  ;;  %16946 = vmatprep.subr.bf16.mxu1 %v23643_v24  ;;  %v17332_v30 = vmul.f32 %v24334_v42, %v24334_v42 }
 0x944   : > { %17290 = vmatprep.subr.bf16.mxu0 %v23646_v23 }
 0x946   : > { %16947 = vmatpush1.bf16.msra.mxu1 %v23641_v25 }
 0x947   : > { %17291 = vmatpush1.bf16.msra.mxu0 %v23644_v5  ;;  %16948 = vmatprep.subr.bf16.mxu1 %v23649_v27 }
 0x948   : > { %17292 = vmatprep.subr.bf16.mxu0 %v23652_v54 }
 0x94a   : > { %16949 = vmatpush1.bf16.msra.mxu1 %v23647_v55 }
 0x94b   : > { %17293 = vmatpush1.bf16.msra.mxu0 %v23650_v29  ;;  %16950 = vmatprep.subr.bf16.mxu1 %v23655_v34 }
 0x94c   : > { %17294 = vmatprep.subr.bf16.mxu0 %v23658_v56 }
 0x94e   : > { %16951 = vmatpush1.bf16.msra.mxu1 %v23653_v13 }
 0x94f   : > { %17295 = vmatpush1.bf16.msra.mxu0 %v23656_v36  ;;  %16952 = vmatprep.subr.bf16.mxu1 %v23661_v37 }
 0x950   : > { %17296 = vmatprep.subr.bf16.mxu0 %v23664_v33 }
 0x952   : > { %16953 = vmatpush1.bf16.msra.mxu1 %v23659_v61 }
 0x953   : > { %17297 = vmatpush1.bf16.msra.mxu0 %v23662_v38  ;;  %16954 = vmatprep.subr.bf16.mxu1 %v23667_v1 }
 0x954   : > { %17298 = vmatprep.subr.bf16.mxu0 %v23670_v62 }
 0x956   : > { %16955 = vmatpush1.bf16.msra.mxu1 %v23665_v9 }
 0x957   : > { %17299 = vmatpush1.bf16.msra.mxu0 %v23668_v6  ;;  %16956 = vmatprep.subr.bf16.mxu1 %v23673_v39 }
 0x958   : > { %17300 = vmatprep.subr.bf16.mxu0 %v23676_v40 }
 0x95a   : > { %16957 = vmatpush1.bf16.msra.mxu1 %v23671_v41 }
 0x95b   : > { %17301 = vmatpush1.bf16.msra.mxu0 %v23674_v43  ;;  %16958 = vmatprep.subr.bf16.mxu1 %v23679_v7 }
 0x95c   : > { %17302 = vmatprep.subr.bf16.mxu0 %v23682_v44 }
 0x95e   : > { %16959 = vmatpush1.bf16.msra.mxu1 %v23677_v45 }
 0x95f   : > { %17303 = vmatpush1.bf16.msra.mxu0 %v23680_v46  ;;  %16960 = vmatprep.subr.bf16.mxu1 %v23685_v31 }
 0x960   : > { %17304 = vmatprep.subr.bf16.mxu0 %v23688_v58 }
 0x962   : > { %16961 = vmatpush1.bf16.msra.mxu1 %v23683_v47 }
 0x963   : > { %17305 = vmatpush1.bf16.msra.mxu0 %v23686_v48  ;;  %16962 = vmatprep.subr.bf16.mxu1 %v23691_v19 }
 0x964   : > { %17306 = vmatprep.subr.bf16.mxu0 %v23694_v49 }
 0x966   : > { %16963 = vmatpush1.bf16.msra.mxu1 %v23689_v17 }
 0x967   : > { %17307 = vmatpush1.bf16.msra.mxu0 %v23692_v50  ;;  %16964 = vmatprep.subr.bf16.mxu1 %v23697_v2 }
 0x968   : > { %17308 = vmatprep.subr.bf16.mxu0 %v23700_v51 }
 0x96a   : > { %16965 = vmatpush1.bf16.msra.mxu1 %v23695_v52 }
 0x96b   : > { %17309 = vmatpush1.bf16.msra.mxu0 %v23698_v63  ;;  %16966 = vmatprep.subr.bf16.mxu1 %v23703_v0 }
 0x96c   : > { %17310 = vmatprep.subr.bf16.mxu0 %v23706_v4 }
 0x96e   : > { %16967 = vmatpush1.bf16.msra.mxu1 %v23701_v10 }
 0x96f   : > { %17311 = vmatpush1.bf16.msra.mxu0 %v23704_v3  ;;  %16968 = vmatprep.subr.bf16.mxu1 %v23709_v11 }
 0x970   : > { %17312 = vmatprep.subr.bf16.mxu0 %v23712_v14 }
 0x972   : > { %16969 = vmatpush1.bf16.msra.mxu1 %v23707_v15 }
 0x973   : > { %17313 = vmatpush1.bf16.msra.mxu0 %v23710_v59 }
 0x975   : > { %16971 = vmatmul.mubr.bf16.vlgmr.msra.gmra.mrb[16].mxu1 %v24224_v35 }
 0x976   : > { %17315 = vmatmul.mubr.bf16.vlgmr.msra.gmra.mrb[16].mxu0 %v24224_v35  ;;  %v17340_v35 = vmul.f32 %v24338_v53, %v24338_v53 }
 0xa48   : > { %v16972_v60 = vpop.f32.mrb[16].mxu1 }
 0xa49   : > { %v17316_v12 = vpop.f32.mrb[16].mxu0  ;;  %v17348_v24 = vmul.f32 %v16972_v60, %v16972_v60  ;;  %v16974_v57 = vpop.f32.mrb[17].mxu1 }
 0xa4a   : > { %v17350_v23 = vmul.f32 %v17316_v12, %v17316_v12  ;;  %v17318_v25 = vpop.f32.mrb[17].mxu0  ;;  %v17349_v5 = vmul.f32 %v16974_v57, %v16974_v57  ;;  %v16976_v27 = vpop.f32.mrb[18].mxu1 }
 0xa4b   : > { %v17351_v21 = vmul.f32 %v17318_v25, %v17318_v25  ;;  %v17320_v54 = vpop.f32.mrb[18].mxu0  ;;  %v17366_v55 = vadd.f32 %v17348_v24, %v17330_v16  ;;  %v17357_v42 = vmul.f32 %v16976_v27, %v16976_v27  ;;  %v16978_v56 = vpop.f32.mrb[19].mxu1 }
 0xa4c   : > { %v17368_v29 = vadd.f32 %v17350_v23, %v17332_v30  ;;  %v17359_v34 = vmul.f32 %v17320_v54, %v17320_v54  ;;  %v17322_v53 = vpop.f32.mrb[19].mxu0  ;;  %v17367_v13 = vadd.f32 %v17349_v5, %v17331_v28  ;;  %v17358_v37 = vmul.f32 %v16978_v56, %v16978_v56 }
 0xa4d   : > { %v17369_v36 = vadd.f32 %v17351_v21, %v17333_v22  ;;  %v17360_v33 = vmul.f32 %v17322_v53, %v17322_v53  ;;  %v17384_v61 = vmax.f32 %v17366_v55, 1e-20  ;;  %v17375_v26 = vadd.f32 %v17357_v42, %v17339_v18 }
 0xa4e   : > { %v17386_v38 = vmax.f32 %v17368_v29, 1e-20  ;;  %v17377_v1 = vadd.f32 %v17359_v34, %v17341_v20  ;;  %v17385_v62 = vmax.f32 %v17367_v13, 1e-20  ;;  %v17376_v9 = vadd.f32 %v17358_v37, %v17340_v35 }
 0xa4f   : > { %v17387_v32 = vmax.f32 %v17369_v36, 1e-20  ;;  %v17378_v6 = vadd.f32 %v17360_v33, %v17342_v8  ;;  %23733 = vlog2.f32 %v17384_v61  ;;  %v17393_v39 = vmax.f32 %v17375_v26, 1e-20 }
 0xa50   : > { %23735 = vlog2.f32 %v17386_v38  ;;  %v17395_v40 = vmax.f32 %v17377_v1, 1e-20  ;;  %v17394_v41 = vmax.f32 %v17376_v9, 1e-20 }
 0xa51   : > { %23737 = vlog2.f32 %v17385_v62  ;;  %v17396_v43 = vmax.f32 %v17378_v6, 1e-20 }
 0xa52   : > { %23739 = vlog2.f32 %v17387_v32 }
 0xa53   : > { %23741 = vlog2.f32 %v17393_v39 }
 0xa54   : > { %23743 = vlog2.f32 %v17395_v40 }
 0xa55   : > { %23745 = vlog2.f32 %v17394_v41 }
 0xa56   : > { %23747 = vlog2.f32 %v17396_v43 }
 0xa59   : > { %v23734_v7 = vpop.eup %23733 }
 0xa5a   : > { %v23736_v44 = vpop.eup %23735  ;;  %v17408_v45 = vmul.f32 0.6931472, %v23734_v7 }
 0xa5b   : > { %v23738_v46 = vpop.eup %23737  ;;  %v17412_v31 = vmul.f32 0.6931472, %v23736_v44 }
 0xa5c   : > { %v23740_v58 = vpop.eup %23739  ;;  %v17438_v47 = vmul.f32 2.1714723, %v17408_v45  ;;  %v17410_v48 = vmul.f32 0.6931472, %v23738_v46 }
 0xa5d   : > { %v23742_v19 = vpop.eup %23741  ;;  %v17440_v49 = vmul.f32 2.1714723, %v17412_v31  ;;  %v17414_v17 = vmul.f32 0.6931472, %v23740_v58 }
 0xa5e   : > { %v23744_v50 = vpop.eup %23743  ;;  %17456 = vst [vmem:[%s24347_s20 + $0x28] sm:$0xff] %v17438_v47  ;;  %v17439_v2 = vmul.f32 2.1714723, %v17410_v48  ;;  %v17426_v51 = vmul.f32 0.6931472, %v23742_v19 }
 0xa5f   : > { %v23746_v52 = vpop.eup %23745  ;;  %17458 = vst [vmem:[%s24347_s20 + $0x38] sm:$0xff] %v17440_v49  ;;  %v17441_v63 = vmul.f32 2.1714723, %v17414_v17  ;;  %v17430_v0 = vmul.f32 0.6931472, %v23744_v50 }
 0xa60   : > { %v23748_v4 = vpop.eup %23747  ;;  %17457 = vst [vmem:[%s24347_s20 + $0x30] sm:$0xff] %v17439_v2  ;;  %v17447_v10 = vmul.f32 2.1714723, %v17426_v51  ;;  %v17428_v3 = vmul.f32 0.6931472, %v23746_v52 }
 0xa61   : > { %17459 = vst [vmem:[%s24347_s20 + $0x40] sm:$0xff] %v17441_v63  ;;  %v17449_v11 = vmul.f32 2.1714723, %v17430_v0  ;;  %v17432_v14 = vmul.f32 0.6931472, %v23748_v4 }
 0xa62   : > { %17465 = vst [vmem:[%s24347_s20 + $0x70] sm:$0xff] %v17447_v10  ;;  %v17448_v15 = vmul.f32 2.1714723, %v17428_v3 }
 0xa63   : > { %17467 = vst [vmem:[%s24347_s20 + $0x80] sm:$0xff] %v17449_v11  ;;  %v17450_v59 = vmul.f32 2.1714723, %v17432_v14 }
 0xa64   : > { %17466 = vst [vmem:[%s24347_s20 + $0x78] sm:$0xff] %v17448_v15 }
 0xa65   : > { %17468 = vst [vmem:[%s24347_s20 + $0x88] sm:$0xff] %v17450_v59 }
 0xa66   : > { %23850 = shalt.err (!%p23847_p2)
}
 0xa67   : > { %s23851_s6 = scalar_lea.hbm %s24451_s8, 2304  ;;  %s23855_s25 = scalar_lea.hbm %s24507_s3, 6912 }
 0xa68   : > { %p23852_p7 = scmp.ne.s32.totalorder %s24451_s8, %s23851_s6  ;;  %p23856_p10 = scmp.lt.u32.totalorder %s24451_s8, %s24507_s3 }
 0xa69   : > { %p23857_p4 = scmp.lt.u32.totalorder %s23855_s25, %s23851_s6  ;;  %p23859_p8 = scmp.lt.u32.totalorder %s23851_s6, %s24451_s8 }
 0xa6a   : > { %p23853_p3 = pnand %p23852_p7, %p24073_p11 }
 0xa6b   : > { %p23858_p6 = por %p23857_p4, %p23856_p10 }
 0xa6c   : > { %p23854_p1 = pneg %p23853_p3 }
 0xa6d   : > { %p23860_p13 = por %p23859_p8, %p23858_p6 }
 0xa6f   : > { %p23861_p0 = pnand %p23860_p13, %p23854_p1 }
 0xa71   : > { %23864 = shalt.err (!%p23861_p0)
}
 0xa72   : > { %s23937_s20 = smov 1152   ;;  %s23938_s22 = smov 72  }
 0xa73   : > { %20178 = dma.vmem_to_hbm [thread:$0]  (%p24073_p11), %s24453_s5, 2304, %s24451_s8, %s17470_s27, %s23937_s20, %s23937_s20, %s23938_s22  }
 0xa74 PF: > { %p20200_p5 = scmp.ge.s32.totalorder %s23927_s17, 2  ;;  %s17501_s15 = sand.u32 1, %s23907_s12  }
 0xa75   : > { %p24524_p9 = scmp.ne.s32.totalorder %s24512_s21, 0  ;;  %s17502_s7 = scalar_lea.sflag [#allocation4], %s17501_s15 }
 0xa77   : > { %p20192_p12 = pnand %p20200_p5, %p24524_p9 }
 0xa79   : > { %23902 = dma.done.wait (!%p20192_p12), %s17502_s7, 2304  }
 0xa7a   : > { %23904 = vsyncadd (!%p20192_p12), %s17502_s7, 4294964992  ;;  %s20_s17 = sadd.s32 1, %s23927_s17   ;;  %s24525_s12 = smov %s23911_s13 }
 0xa7b   : > { %p17_p2 = scmp.ge.s32.totalorder %s20_s17, 5   ;;  %s24526_s13 = smov %s23915_s14 }
 0xa7c   : > { %s24527_s14 = smov %s24083_s28  ;;  %s24528_s15 = smov %s23923_s16 }
 0xa7d   : > { %s24529_s16 = smov %s24531_s10  ;;  %19 = sbr.rel (!%p17_p2) target bundleno = 7 (0x7), region = 87 }
 0xa84   :  { %17507 = vsyncpa [#allocation3], 1 }
 0xa85   :  { %17509 = vsyncpa [#allocation3 + $0x1], 1 }
 0xa86   :  { %17510 = vsyncpa [#allocation6], 1 }
 0xa87   :  { %17512 = vsyncpa [#allocation6 + $0x1], 1 }
 0xa88   :  { %17513 = vsyncpa [#allocation4], 1 }
 0xa89   :  { %17515 = vsyncpa [#allocation4 + $0x1], 1 }

</bundles_post_ra>
